<compile_context>
chip_gen: v7x
topology: tpu7x:2x2x1
jax: 0.10.0
libtpu: 0.0.40
codegen_flags: <defaults>
</compile_context>

<pallas_src>
import functools
import numpy as np

import jax
import jax.numpy as jnp
from jax.experimental import pallas as pl
from jax.experimental.pallas import tpu as pltpu

# ------------------------- small, deterministic Swin config -------------------------
IN_CHANS = 3
IMG_SIZE = 16
PATCH = 4
EMBED_DIM = 16
DEPTHS = (2, 2)
HEADS = (2, 4)
WINDOW = 2
MLP_RATIO = 4.0
NUM_FEATURES = 24          # the `feat` Linear output (1024->512 in the original, scaled down)
BATCH = 2
LN_EPS = 1e-5
NORMALIZE_EPS = 1e-12

BATCH_TILE = 2             # images per grid step over the merged (2*BATCH) batch:
                           # 2 parallel steps -> both v7x TensorCores busy, only 2 serial
                           # steps on v5e/v6e (vs 4 per kernel before the merge).

VMEM = pltpu.MemorySpace.VMEM
MXU_DTYPE = jnp.bfloat16   # MXU-native input dtype; accumulation stays f32


# ------------------------------- BlockSpec helpers ----------------------------------
def _batch_tile(bt):
    bm = min(BATCH_TILE, bt)
    while bt % bm:
        bm -= 1
    return bm


def _batch_spec(a, bm):
    """Block `bm` images per grid step along the leading (batch) axis."""
    trail = (0,) * (a.ndim - 1)
    return pl.BlockSpec((bm,) + a.shape[1:], lambda b: (b,) + trail)


def _bcast_spec(a):
    """Same full-array block for every grid step (weights / biases / tables)."""
    zeros = (0,) * a.ndim
    return pl.BlockSpec(a.shape, lambda b: zeros)


def _parallel_params():
    # batch grid axis is embarrassingly parallel -> lets v7x split it across its 2 TCs
    return pltpu.CompilerParams(dimension_semantics=("parallel",))


# ------------------------------- in-kernel helpers ----------------------------------
def _mxu_dot(a, b):
    return jnp.dot(a.astype(MXU_DTYPE), b.astype(MXU_DTYPE),
                   preferred_element_type=jnp.float32)


def _ln(x, g, b, eps):
    mu = jnp.mean(x, axis=-1, keepdims=True)
    xc = x - mu
    var = jnp.mean(xc * xc, axis=-1, keepdims=True)
    return xc * jax.lax.rsqrt(var + eps) * g + b


# ------------------------------- Pallas kernels -------------------------------------
def _patch_embed_kernel(x_ref, w_ref, b_ref, g_ref, beta_ref, o_ref, *, eps):
    # fused: 4x4/stride-4 Conv2d as patch-flatten matmul + patch LayerNorm
    bm, lp, cin = x_ref.shape
    c = w_ref.shape[1]
    y = _mxu_dot(x_ref[...].reshape(bm * lp, cin), w_ref[...]) + b_ref[...]
    o_ref[...] = _ln(y, g_ref[...], beta_ref[...], eps).reshape(bm, lp, c)


def _swin_block_kernel(*refs, bm, nW, N, heads, hd, eps, has_mask):
    """One full Swin block (LN1 -> QKV -> window attention -> proj -> residual -> LN2
    -> MLP/GELU -> residual). x is (bm, L, C) with tokens already in windowed order."""
    if has_mask:
        (x_ref, g1_ref, b1_ref, wq_ref, wk_ref, wv_ref, bq_ref, bk_ref, bv_ref,
         rel_ref, mask_ref, wproj_ref, bproj_ref, g2_ref, b2_ref,
         w1_ref, fb1_ref, w2_ref, fb2_ref, o_ref) = refs
    else:
        (x_ref, g1_ref, b1_ref, wq_ref, wk_ref, wv_ref, bq_ref, bk_ref, bv_ref,
         rel_ref, wproj_ref, bproj_ref, g2_ref, b2_ref,
         w1_ref, fb1_ref, w2_ref, fb2_ref, o_ref) = refs
        mask_ref = None

    C = heads * hd
    L = nW * N
    T = bm * L
    x = x_ref[...].reshape(T, C)                           # (T, C) f32

    # ---- LN1, cast to bf16 ONCE (reused by all per-head QKV matmuls) ----
    xn = _ln(x, g1_ref[...], b1_ref[...], eps).astype(MXU_DTYPE)

    # ---- window attention: per-head weights pre-split at the wrapper, so there are no
    #      sub-128 lane slices of activations; scale is folded into Wq/bq offline. ----
    attn = bproj_ref[...]                                  # (1, C); broadcasts over T below
    for h in range(heads):
        q = jnp.dot(xn, wq_ref[h], preferred_element_type=jnp.float32) + bq_ref[h]
        k = jnp.dot(xn, wk_ref[h], preferred_element_type=jnp.float32) + bk_ref[h]
        v = jnp.dot(xn, wv_ref[h], preferred_element_type=jnp.float32) + bv_ref[h]
        q = q.reshape(bm * nW, N, hd).astype(MXU_DTYPE)
        k = k.reshape(bm * nW, N, hd).astype(MXU_DTYPE)
        v = v.reshape(bm * nW, N, hd).astype(MXU_DTYPE)
        s = jnp.einsum("wnd,wmd->wnm", q, k,
                       preferred_element_type=jnp.float32)          # (bm*nW, N, N)
        # un-broadcast bias: rel-pos (N, N) + optional shift mask (nW, N, N), broadcast in vregs
        s = s.reshape(bm, nW, N, N) + rel_ref[h]
        if has_mask:
            s = s + mask_ref[...]
        s = s - jnp.max(s, axis=-1, keepdims=True)
        p = jnp.exp(s)
        p = p * pl.reciprocal(jnp.sum(p, axis=-1, keepdims=True), approx=True)
        p = p.reshape(bm * nW, N, N).astype(MXU_DTYPE)
        oh = jnp.einsum("wnm,wmd->wnd", p, v,
                        preferred_element_type=jnp.float32)          # (bm*nW, N, hd)
        # concat_h(oh) @ Wproj  ==  sum_h  oh @ Wproj[h]   (avoids lane-concat)
        attn = attn + jnp.dot(oh.reshape(T, hd).astype(MXU_DTYPE), wproj_ref[h],
                              preferred_element_type=jnp.float32)

    x = x + attn                                           # residual 1

    # ---- LN2 + MLP ----
    xn2 = _ln(x, g2_ref[...], b2_ref[...], eps)
    hmid = jnp.dot(xn2.astype(MXU_DTYPE), w1_ref[...],
                   preferred_element_type=jnp.float32) + fb1_ref[...]
    # TODO(synk): PyTorch nn.GELU is exact erf-GELU; tanh approximation used in-kernel.
    hmid = jax.nn.gelu(hmid, approximate=True)
    y = jnp.dot(hmid.astype(MXU_DTYPE), w2_ref[...],
                preferred_element_type=jnp.float32) + fb2_ref[...]
    o_ref[...] = (x + y).reshape(bm, L, C)                 # residual 2


def _downsample_kernel(x_ref, g_ref, b_ref, w_ref, o_ref, *, eps):
    # fused patch-merging: LayerNorm(4C) + bias-free Linear(4C -> 2C)
    bm, l4, c4 = x_ref.shape
    cout = w_ref.shape[1]
    xn = _ln(x_ref[...].reshape(bm * l4, c4), g_ref[...], b_ref[...], eps)
    o_ref[...] = _mxu_dot(xn, w_ref[...]).reshape(bm, l4, cout)


def _head_cosine_kernel(x_ref, g_ref, b_ref, w_ref, fb_ref, o_ref,
                        *, n_img, eps, feat_eps):
    # fused: final LayerNorm + token mean-pool + `feat` Linear + F.normalize + x1 @ x2.T
    bt, l, c = x_ref.shape
    xn = _ln(x_ref[...].reshape(bt * l, c), g_ref[...], b_ref[...], eps).reshape(bt, l, c)
    pooled = jnp.mean(xn, axis=1)                          # (bt, C)
    feats = _mxu_dot(pooled, w_ref[...]) + fb_ref[...]     # (bt, F)
    norm = jnp.sqrt(jnp.sum(feats * feats, axis=-1, keepdims=True))
    fn = feats / jnp.maximum(norm, feat_eps)
    x1 = fn[:n_img]                                        # features of the first image batch
    x2 = fn[n_img:]                                        # features of the second image batch
    o_ref[...] = jnp.dot(x1, x2.T, preferred_element_type=jnp.float32)


# ------------------------------- kernel wrappers -------------------------------------
def pallas_patch_embed(x_patches, pe):
    Bt, Lp, _ = x_patches.shape
    C = pe["w"].shape[1]
    bm = _batch_tile(Bt)
    inputs = (x_patches, pe["w"], pe["b"], pe["g"], pe["beta"])
    return pl.pallas_call(
        functools.partial(_patch_embed_kernel, eps=LN_EPS),
        out_shape=jax.ShapeDtypeStruct((Bt, Lp, C), jnp.float32),
        grid=(Bt // bm,),
        in_specs=[_batch_spec(x_patches, bm)] + [_bcast_spec(a) for a in inputs[1:]],
        out_specs=pl.BlockSpec((bm, Lp, C), lambda b: (b, 0, 0)),
        compiler_params=_parallel_params(),
    )(*inputs)


def pallas_swin_block(xw, bp, *, heads, window, has_mask):
    Bt, L, C = xw.shape
    N = window * window
    nW = L // N
    hd = C // heads
    bm = _batch_tile(Bt)
    inputs = [xw, bp["g1"], bp["b1"], bp["wq"], bp["wk"], bp["wv"],
              bp["bq"], bp["bk"], bp["bv"], bp["rel"]]
    if has_mask:
        inputs.append(bp["mask"])
    inputs += [bp["wproj"], bp["bproj"], bp["g2"], bp["b2"],
               bp["w1"], bp["fb1"], bp["w2"], bp["fb2"]]
    return pl.pallas_call(
        functools.partial(_swin_block_kernel, bm=bm, nW=nW, N=N, heads=heads,
                          hd=hd, eps=LN_EPS, has_mask=has_mask),
        out_shape=jax.ShapeDtypeStruct((Bt, L, C), jnp.float32),
        grid=(Bt // bm,),
        in_specs=[_batch_spec(xw, bm)] + [_bcast_spec(a) for a in inputs[1:]],
        out_specs=pl.BlockSpec((bm, L, C), lambda b: (b, 0, 0)),
        compiler_params=_parallel_params(),
    )(*inputs)


def pallas_downsample(x, dp):
    Bt, L4, _ = x.shape
    Cout = dp["w"].shape[1]
    bm = _batch_tile(Bt)
    inputs = (x, dp["g"], dp["b"], dp["w"])
    return pl.pallas_call(
        functools.partial(_downsample_kernel, eps=LN_EPS),
        out_shape=jax.ShapeDtypeStruct((Bt, L4, Cout), jnp.float32),
        grid=(Bt // bm,),
        in_specs=[_batch_spec(x, bm)] + [_bcast_spec(a) for a in inputs[1:]],
        out_specs=pl.BlockSpec((bm, L4, Cout), lambda b: (b, 0, 0)),
        compiler_params=_parallel_params(),
    )(*inputs)


def pallas_head_cosine(x, hp, n_img):
    # needs both image batches together (x1 @ x2.T couples them) -> single ungridded call
    inputs = (x, hp["g"], hp["b"], hp["w"], hp["fb"])
    return pl.pallas_call(
        functools.partial(_head_cosine_kernel, n_img=n_img, eps=LN_EPS,
                          feat_eps=NORMALIZE_EPS),
        out_shape=jax.ShapeDtypeStruct((n_img, n_img), jnp.float32),
        in_specs=[pl.BlockSpec(memory_space=VMEM)] * len(inputs),
        out_specs=pl.BlockSpec(memory_space=VMEM),
    )(*inputs)


# ------------------------------- Swin glue (token permutations, XLA) -------------------
def block_window_shift(H, W, block_idx):
    window = WINDOW
    shift = 0 if block_idx % 2 == 0 else WINDOW // 2
    if min(H, W) <= window:            # timm: shrink window / disable shift
        shift = 0
        window = min(H, W)
    return window, shift


def tokens_to_windows(x, H, W, window, shift):
    B, L, C = x.shape
    x = x.reshape(B, H, W, C)
    if shift > 0:
        x = jnp.roll(x, shift=(-shift, -shift), axis=(1, 2))
    x = x.reshape(B, H // window, window, W // window, window, C)
    x = jnp.transpose(x, (0, 1, 3, 2, 4, 5))
    return x.reshape(B, L, C)


def windows_to_tokens(xw, H, W, window, shift):
    B, L, C = xw.shape
    x = xw.reshape(B, H // window, W // window, window, window, C)
    x = jnp.transpose(x, (0, 1, 3, 2, 4, 5)).reshape(B, H, W, C)
    if shift > 0:
        x = jnp.roll(x, shift=(shift, shift), axis=(1, 2))
    return x.reshape(B, L, C)


def patch_merge_gather(x, H, W):
    B, _, C = x.shape
    x = x.reshape(B, H, W, C)
    x0 = x[:, 0::2, 0::2, :]
    x1 = x[:, 1::2, 0::2, :]
    x2 = x[:, 0::2, 1::2, :]
    x3 = x[:, 1::2, 1::2, :]
    return jnp.concatenate([x0, x1, x2, x3], axis=-1).reshape(B, (H // 2) * (W // 2), 4 * C)


# ------------------------------- static attention bias / mask --------------------------
def _relative_position_index(w):
    coords = np.stack(np.meshgrid(np.arange(w), np.arange(w), indexing="ij"))
    coords_flat = coords.reshape(2, -1)
    rel = coords_flat[:, :, None] - coords_flat[:, None, :]
    rel = rel.transpose(1, 2, 0).astype(np.int64)
    rel[:, :, 0] += w - 1
    rel[:, :, 1] += w - 1
    rel[:, :, 0] *= 2 * w - 1
    return rel.sum(-1)                                    # (N, N)


def _window_partition_np(img, w):
    H, W = img.shape
    x = img.reshape(H // w, w, W // w, w)
    x = x.transpose(0, 2, 1, 3)
    return x.reshape(-1, w * w)


def compute_attn_mask(H, W, window, shift):
    img = np.zeros((H, W), dtype=np.float32)
    cnt = 0
    for hs in (slice(0, -window), slice(-window, -shift), slice(-shift, None)):
        for ws in (slice(0, -window), slice(-window, -shift), slice(-shift, None)):
            img[hs, ws] = cnt
            cnt += 1
    mw = _window_partition_np(img, window)                # (nW, N)
    attn = mw[:, None, :] - mw[:, :, None]
    return np.where(attn != 0, -100.0, 0.0).astype(np.float32)  # (nW, N, N)


def get_rel_pos_bias(table, window, num_heads):
    idx = _relative_position_index(window)
    N = window * window
    bias = table[idx.reshape(-1)]                         # (N*N, heads)
    return jnp.transpose(bias.reshape(N, N, num_heads), (2, 0, 1))   # (heads, N, N)


# ------------------------------- parameters -------------------------------------------
def init_params(key):
    kit = iter(jax.random.split(key, 64))

    def w_init(shape):
        return jax.random.normal(next(kit), shape, jnp.float32) * 0.02

    def ln(dim):
        return {"g": jnp.ones((dim,), jnp.float32), "b": jnp.zeros((dim,), jnp.float32)}

    def dense(i, o, bias=True):
        return {"w": w_init((i, o)),
                "b": jnp.zeros((o,), jnp.float32) if bias else None}

    params = {
        "patch_embed": dense(PATCH * PATCH * IN_CHANS, EMBED_DIM),
        "patch_norm": ln(EMBED_DIM),
    }
    stages = []
    dim = EMBED_DIM
    for si in range(len(DEPTHS)):
        blocks = []
        for _ in range(DEPTHS[si]):
            blocks.append({
                "norm1": ln(dim),
                "qkv": dense(dim, 3 * dim),
                "rpb": w_init(((2 * WINDOW - 1) ** 2, HEADS[si])),
                "proj": dense(dim, dim),
                "norm2": ln(dim),
                "fc1": dense(dim, int(dim * MLP_RATIO)),
                "fc2": dense(int(dim * MLP_RATIO), dim),
            })
        downsample = None
        if si < len(DEPTHS) - 1:
            downsample = {"norm": ln(4 * dim), "reduction": dense(4 * dim, 2 * dim, bias=False)}
        stages.append({"blocks": blocks, "downsample": downsample})
        if si < len(DEPTHS) - 1:
            dim *= 2
    params["stages"] = stages
    params["norm"] = ln(dim)
    params["feat"] = dense(dim, NUM_FEATURES)
    return params


def prepare_params(params):
    """One-time (outside jit) transform into kernel-ready layouts: per-head Wq/Wk/Wv with the
    attention scale folded into Wq/bq, per-head Wproj slices, un-broadcast rel-pos bias
    (heads, N, N), shift masks (nW, N, N), and bf16 MXU weights."""
    pe, pn = params["patch_embed"], params["patch_norm"]
    C0 = pe["w"].shape[1]
    prep = {
        "patch_embed": {"w": pe["w"].astype(MXU_DTYPE), "b": pe["b"].reshape(1, C0),
                        "g": pn["g"].reshape(1, C0), "beta": pn["b"].reshape(1, C0)},
        "stages": [],
    }
    H = W = IMG_SIZE // PATCH
    for si, stage in enumerate(params["stages"]):
        heads = HEADS[si]
        blocks = []
        for bi, blk in enumerate(stage["blocks"]):
            window, shift = block_window_shift(H, W, bi)
            C = blk["norm1"]["g"].shape[0]
            hd = C // heads
            scale = hd ** -0.5
            wqkv, bqkv = blk["qkv"]["w"], blk["qkv"]["b"]

            def per_head(off, s):
                w = wqkv[:, off:off + C].reshape(C, heads, hd).transpose(1, 0, 2) * s
                b = bqkv[off:off + C].reshape(heads, 1, hd) * s
                return w.astype(MXU_DTYPE), b.astype(jnp.float32)

            wq, bq = per_head(0, scale)        # timm applies scale after the qkv bias add,
            wk, bk = per_head(C, 1.0)          # so it folds into BOTH Wq and bq.
            wv, bv = per_head(2 * C, 1.0)
            hidden = blk["fc1"]["w"].shape[1]
            bp = {
                "g1": blk["norm1"]["g"].reshape(1, C), "b1": blk["norm1"]["b"].reshape(1, C),
                "wq": wq, "wk": wk, "wv": wv, "bq": bq, "bk": bk, "bv": bv,
                "rel": get_rel_pos_bias(blk["rpb"], window, heads),         # (heads, N, N)
                "wproj": blk["proj"]["w"].reshape(heads, hd, C).astype(MXU_DTYPE),
                "bproj": blk["proj"]["b"].reshape(1, C),
                "g2": blk["norm2"]["g"].reshape(1, C), "b2": blk["norm2"]["b"].reshape(1, C),
                "w1": blk["fc1"]["w"].astype(MXU_DTYPE), "fb1": blk["fc1"]["b"].reshape(1, hidden),
                "w2": blk["fc2"]["w"].astype(MXU_DTYPE), "fb2": blk["fc2"]["b"].reshape(1, C),
            }
            if shift > 0:
                bp["mask"] = jnp.asarray(compute_attn_mask(H, W, window, shift))  # (nW, N, N)
            blocks.append(bp)
        ds = None
        if stage["downsample"] is not None:
            d = stage["downsample"]
            C4 = d["norm"]["g"].shape[0]
            ds = {"g": d["norm"]["g"].reshape(1, C4), "b": d["norm"]["b"].reshape(1, C4),
                  "w": d["reduction"]["w"].astype(MXU_DTYPE)}
            H, W = H // 2, W // 2
        prep["stages"].append({"blocks": blocks, "downsample": ds})
    Cf = params["norm"]["g"].shape[0]
    Ff = params["feat"]["w"].shape[1]
    prep["head"] = {"g": params["norm"]["g"].reshape(1, Cf),
                    "b": params["norm"]["b"].reshape(1, Cf),
                    "w": params["feat"]["w"].astype(MXU_DTYPE),
                    "fb": params["feat"]["b"].reshape(1, Ff)}
    return prep


# ------------------------------- forward pass ------------------------------------------
def forward_features(x_nchw, prep):
    # layout: NCHW in (PyTorch), NHWC internally; 4x4/stride-4 conv == patch-flatten matmul.
    Bt, Cin, Himg, Wimg = x_nchw.shape
    x = jnp.transpose(x_nchw, (0, 2, 3, 1))
    Hp, Wp = Himg // PATCH, Wimg // PATCH
    x = x.reshape(Bt, Hp, PATCH, Wp, PATCH, Cin)
    x = jnp.transpose(x, (0, 1, 3, 2, 4, 5)).reshape(Bt, Hp * Wp, PATCH * PATCH * Cin)
    x = pallas_patch_embed(x, prep["patch_embed"])                    # (Bt, L, C)

    H, W = Hp, Wp
    for si, stage in enumerate(prep["stages"]):
        for bi, bp in enumerate(stage["blocks"]):
            window, shift = block_window_shift(H, W, bi)
            # TODO(synk): cyclic shift + window partition/reverse kept as XLA permutations;
            # in-kernel fusion (pltpu.roll + 6-D transposes) skipped to keep Mosaic lowering simple.
            xw = tokens_to_windows(x, H, W, window, shift)
            xw = pallas_swin_block(xw, bp, heads=HEADS[si], window=window,
                                   has_mask=(shift > 0))
            x = windows_to_tokens(xw, H, W, window, shift)
        if stage["downsample"] is not None:
            x = patch_merge_gather(x, H, W)
            x = pallas_downsample(x, stage["downsample"])
            H, W = H // 2, W // 2
    return x                                                          # (Bt, L_final, C_final)


def swin_transformer_forward(x, y, prep):
    n_img = x.shape[0]
    xy = jnp.concatenate([x, y], axis=0)      # both images share ONE fused forward pass
    feats = forward_features(xy, prep)
    # final LN + mean-pool + feat Linear + F.normalize(dim=1) + matmul(x1, x2.T), fused
    return pallas_head_cosine(feats, prep["head"], n_img)


# ------------------------------------ main ---------------------------------------------
if __name__ == "__main__":
    root = jax.random.PRNGKey(0)
    kp, kx, ky = jax.random.split(root, 3)
    params = init_params(kp)
    prep = prepare_params(params)             # one-time offline param-layout transform

    x = jax.random.normal(kx, (BATCH, IN_CHANS, IMG_SIZE, IMG_SIZE), jnp.float32)
    y = jax.random.normal(ky, (BATCH, IN_CHANS, IMG_SIZE, IMG_SIZE), jnp.float32)

    fwd = jax.jit(swin_transformer_forward)
    z = fwd(x, y, prep)
    jax.block_until_ready(z)
    assert z.shape == (BATCH, BATCH), z.shape
    print("KERNEL_OK")
</pallas_src>

<mosaic_0001>
module attributes {stable_mosaic.version = 11 : i64} {
  func.func @_patch_embed_kernel(%arg0: i32, %arg1: memref<2x16x48xf32, #tpu.memory_space<vmem>>, %arg2: memref<48x16xbf16, #tpu.memory_space<vmem>>, %arg3: memref<1x16xf32, #tpu.memory_space<vmem>>, %arg4: memref<1x16xf32, #tpu.memory_space<vmem>>, %arg5: memref<1x16xf32, #tpu.memory_space<vmem>>, %arg6: memref<2x16x16xf32, #tpu.memory_space<vmem>>) attributes {dimension_semantics = [#tpu.dimension_semantics<parallel>], iteration_bounds = array<i64: 2>, scalar_prefetch = 0 : i64, scratch_operands = 0 : i64, tpu.core_type = #tpu.core_type<tc>, window_params = [{transform_indices = @transform_0, window_bounds = array<i64: 2, 16, 48>}, {pipeline_mode = #tpu.pipeline_mode<synchronous>, transform_indices = @transform_1, window_bounds = array<i64: 48, 16>}, {pipeline_mode = #tpu.pipeline_mode<synchronous>, transform_indices = @transform_2, window_bounds = array<i64: 1, 16>}, {pipeline_mode = #tpu.pipeline_mode<synchronous>, transform_indices = @transform_3, window_bounds = array<i64: 1, 16>}, {pipeline_mode = #tpu.pipeline_mode<synchronous>, transform_indices = @transform_4, window_bounds = array<i64: 1, 16>}, {transform_indices = @transform_5, window_bounds = array<i64: 2, 16, 16>}]} {
    %c0 = arith.constant 0 : index
    %c0_0 = arith.constant 0 : index
    %c0_1 = arith.constant 0 : index
    %0 = vector.load %arg1[%c0, %c0_0, %c0_1] : memref<2x16x48xf32, #tpu.memory_space<vmem>>, vector<2x16x48xf32>
    %1 = vector.shape_cast %0 : vector<2x16x48xf32> to vector<32x48xf32>
    %c0_2 = arith.constant 0 : index
    %c0_3 = arith.constant 0 : index
    %2 = vector.load %arg2[%c0_2, %c0_3] : memref<48x16xbf16, #tpu.memory_space<vmem>>, vector<48x16xbf16>
    %3 = arith.truncf %1 : vector<32x48xf32> to vector<32x48xbf16>
    %cst = arith.constant dense<0.000000e+00> : vector<32x16xf32>
    %4 = tpu.matmul %3, %2, %cst {dimension_numbers = #tpu.dot_dimension_numbers<[1], [0], [0], [1], [0, 0, 1, 1], [], []>} : vector<32x48xbf16>, vector<48x16xbf16>, vector<32x16xf32> -> vector<32x16xf32>
    %c0_4 = arith.constant 0 : index
    %c0_5 = arith.constant 0 : index
    %5 = vector.load %arg3[%c0_4, %c0_5] : memref<1x16xf32, #tpu.memory_space<vmem>>, vector<1x16xf32>
    %6 = vector.broadcast %5 : vector<1x16xf32> to vector<32x16xf32>
    %7 = arith.addf %4, %6 : vector<32x16xf32>
    %c0_6 = arith.constant 0 : index
    %c0_7 = arith.constant 0 : index
    %8 = vector.load %arg4[%c0_6, %c0_7] : memref<1x16xf32, #tpu.memory_space<vmem>>, vector<1x16xf32>
    %c0_8 = arith.constant 0 : index
    %c0_9 = arith.constant 0 : index
    %9 = vector.load %arg5[%c0_8, %c0_9] : memref<1x16xf32, #tpu.memory_space<vmem>>, vector<1x16xf32>
    %cst_10 = arith.constant dense<0.000000e+00> : vector<32xf32>
    %10 = vector.multi_reduction <add>, %7, %cst_10 [1] : vector<32x16xf32> to vector<32xf32>
    %11 = vector.shape_cast %10 : vector<32xf32> to vector<32x1xf32>
    %cst_11 = arith.constant 1.600000e+01 : f32
    %12 = vector.broadcast %cst_11 : f32 to vector<32x1xf32>
    %13 = arith.divf %11, %12 : vector<32x1xf32>
    %14 = vector.broadcast %13 : vector<32x1xf32> to vector<32x16xf32>
    %15 = arith.subf %7, %14 : vector<32x16xf32>
    %16 = arith.mulf %15, %15 : vector<32x16xf32>
    %cst_12 = arith.constant dense<0.000000e+00> : vector<32xf32>
    %17 = vector.multi_reduction <add>, %16, %cst_12 [1] : vector<32x16xf32> to vector<32xf32>
    %18 = vector.shape_cast %17 : vector<32xf32> to vector<32x1xf32>
    %cst_13 = arith.constant 1.600000e+01 : f32
    %19 = vector.broadcast %cst_13 : f32 to vector<32x1xf32>
    %20 = arith.divf %18, %19 : vector<32x1xf32>
    %cst_14 = arith.constant 9.99999974E-6 : f32
    %21 = vector.broadcast %cst_14 : f32 to vector<32x1xf32>
    %22 = arith.addf %20, %21 : vector<32x1xf32>
    %23 = math.rsqrt %22 : vector<32x1xf32>
    %24 = vector.broadcast %23 : vector<32x1xf32> to vector<32x16xf32>
    %25 = arith.mulf %15, %24 : vector<32x16xf32>
    %26 = vector.broadcast %8 : vector<1x16xf32> to vector<32x16xf32>
    %27 = arith.mulf %25, %26 : vector<32x16xf32>
    %28 = vector.broadcast %9 : vector<1x16xf32> to vector<32x16xf32>
    %29 = arith.addf %27, %28 : vector<32x16xf32>
    %30 = vector.shape_cast %29 : vector<32x16xf32> to vector<2x16x16xf32>
    %c0_15 = arith.constant 0 : index
    %c0_16 = arith.constant 0 : index
    %c0_17 = arith.constant 0 : index
    %31 = vector.load %arg6[%c0_15, %c0_16, %c0_17] : memref<2x16x16xf32, #tpu.memory_space<vmem>>, vector<2x16x16xf32>
    tpu.vector_store %arg6[%c0_15, %c0_16, %c0_17], %30 {strides = array<i32>} : memref<2x16x16xf32, #tpu.memory_space<vmem>>, vector<2x16x16xf32>,
    return
  }
  func.func @transform_0(%arg0: i32) -> (i32, i32, i32) {
    %c0_i32 = arith.constant 0 : i32
    %c0_i32_0 = arith.constant 0 : i32
    %c0_i32_1 = arith.constant 0 : i32
    return %arg0, %c0_i32, %c0_i32_0 : i32, i32, i32
  }
  func.func @transform_1(%arg0: i32) -> (i32, i32) {
    %c0_i32 = arith.constant 0 : i32
    %c0_i32_0 = arith.constant 0 : i32
    %c0_i32_1 = arith.constant 0 : i32
    return %c0_i32, %c0_i32_0 : i32, i32
  }
  func.func @transform_2(%arg0: i32) -> (i32, i32) {
    %c0_i32 = arith.constant 0 : i32
    %c0_i32_0 = arith.constant 0 : i32
    %c0_i32_1 = arith.constant 0 : i32
    return %c0_i32, %c0_i32_0 : i32, i32
  }
  func.func @transform_3(%arg0: i32) -> (i32, i32) {
    %c0_i32 = arith.constant 0 : i32
    %c0_i32_0 = arith.constant 0 : i32
    %c0_i32_1 = arith.constant 0 : i32
    return %c0_i32, %c0_i32_0 : i32, i32
  }
  func.func @transform_4(%arg0: i32) -> (i32, i32) {
    %c0_i32 = arith.constant 0 : i32
    %c0_i32_0 = arith.constant 0 : i32
    %c0_i32_1 = arith.constant 0 : i32
    return %c0_i32, %c0_i32_0 : i32, i32
  }
  func.func @transform_5(%arg0: i32) -> (i32, i32, i32) {
    %c0_i32 = arith.constant 0 : i32
    %c0_i32_0 = arith.constant 0 : i32
    %c0_i32_1 = arith.constant 0 : i32
    return %arg0, %c0_i32, %c0_i32_0 : i32, i32, i32
  }
}

module attributes {stable_mosaic.version = 11 : i64} {
  func.func @_swin_block_kernel(%arg0: i32, %arg1: memref<2x16x16xf32, #tpu.memory_space<vmem>>, %arg2: memref<1x16xf32, #tpu.memory_space<vmem>>, %arg3: memref<1x16xf32, #tpu.memory_space<vmem>>, %arg4: memref<2x16x8xbf16, #tpu.memory_space<vmem>>, %arg5: memref<2x16x8xbf16, #tpu.memory_space<vmem>>, %arg6: memref<2x16x8xbf16, #tpu.memory_space<vmem>>, %arg7: memref<2x1x8xf32, #tpu.memory_space<vmem>>, %arg8: memref<2x1x8xf32, #tpu.memory_space<vmem>>, %arg9: memref<2x1x8xf32, #tpu.memory_space<vmem>>, %arg10: memref<2x4x4xf32, #tpu.memory_space<vmem>>, %arg11: memref<2x8x16xbf16, #tpu.memory_space<vmem>>, %arg12: memref<1x16xf32, #tpu.memory_space<vmem>>, %arg13: memref<1x16xf32, #tpu.memory_space<vmem>>, %arg14: memref<1x16xf32, #tpu.memory_space<vmem>>, %arg15: memref<16x64xbf16, #tpu.memory_space<vmem>>, %arg16: memref<1x64xf32, #tpu.memory_space<vmem>>, %arg17: memref<64x16xbf16, #tpu.memory_space<vmem>>, %arg18: memref<1x16xf32, #tpu.memory_space<vmem>>, %arg19: memref<2x16x16xf32, #tpu.memory_space<vmem>>) attributes {dimension_semantics = [#tpu.dimension_semantics<parallel>], iteration_bounds = array<i64: 2>, scalar_prefetch = 0 : i64, scratch_operands = 0 : i64, tpu.core_type = #tpu.core_type<tc>, window_params = [{transform_indices = @transform_0, window_bounds = array<i64: 2, 16, 16>}, {pipeline_mode = #tpu.pipeline_mode<synchronous>, transform_indices = @transform_1, window_bounds = array<i64: 1, 16>}, {pipeline_mode = #tpu.pipeline_mode<synchronous>, transform_indices = @transform_2, window_bounds = array<i64: 1, 16>}, {pipeline_mode = #tpu.pipeline_mode<synchronous>, transform_indices = @transform_3, window_bounds = array<i64: 2, 16, 8>}, {pipeline_mode = #tpu.pipeline_mode<synchronous>, transform_indices = @transform_4, window_bounds = array<i64: 2, 16, 8>}, {pipeline_mode = #tpu.pipeline_mode<synchronous>, transform_indices = @transform_5, window_bounds = array<i64: 2, 16, 8>}, {pipeline_mode = #tpu.pipeline_mode<synchronous>, transform_indices = @transform_6, window_bounds = array<i64: 2, 1, 8>}, {pipeline_mode = #tpu.pipeline_mode<synchronous>, transform_indices = @transform_7, window_bounds = array<i64: 2, 1, 8>}, {pipeline_mode = #tpu.pipeline_mode<synchronous>, transform_indices = @transform_8, window_bounds = array<i64: 2, 1, 8>}, {pipeline_mode = #tpu.pipeline_mode<synchronous>, transform_indices = @transform_9, window_bounds = array<i64: 2, 4, 4>}, {pipeline_mode = #tpu.pipeline_mode<synchronous>, transform_indices = @transform_10, window_bounds = array<i64: 2, 8, 16>}, {pipeline_mode = #tpu.pipeline_mode<synchronous>, transform_indices = @transform_11, window_bounds = array<i64: 1, 16>}, {pipeline_mode = #tpu.pipeline_mode<synchronous>, transform_indices = @transform_12, window_bounds = array<i64: 1, 16>}, {pipeline_mode = #tpu.pipeline_mode<synchronous>, transform_indices = @transform_13, window_bounds = array<i64: 1, 16>}, {pipeline_mode = #tpu.pipeline_mode<synchronous>, transform_indices = @transform_14, window_bounds = array<i64: 16, 64>}, {pipeline_mode = #tpu.pipeline_mode<synchronous>, transform_indices = @transform_15, window_bounds = array<i64: 1, 64>}, {pipeline_mode = #tpu.pipeline_mode<synchronous>, transform_indices = @transform_16, window_bounds = array<i64: 64, 16>}, {pipeline_mode = #tpu.pipeline_mode<synchronous>, transform_indices = @transform_17, window_bounds = array<i64: 1, 16>}, {transform_indices = @transform_18, window_bounds = array<i64: 2, 16, 16>}]} {
    %c0 = arith.constant 0 : index
    %c0_0 = arith.constant 0 : index
    %c0_1 = arith.constant 0 : index
    %0 = vector.load %arg1[%c0, %c0_0, %c0_1] : memref<2x16x16xf32, #tpu.memory_space<vmem>>, vector<2x16x16xf32>
    %1 = vector.shape_cast %0 : vector<2x16x16xf32> to vector<32x16xf32>
    %c0_2 = arith.constant 0 : index
    %c0_3 = arith.constant 0 : index
    %2 = vector.load %arg2[%c0_2, %c0_3] : memref<1x16xf32, #tpu.memory_space<vmem>>, vector<1x16xf32>
    %c0_4 = arith.constant 0 : index
    %c0_5 = arith.constant 0 : index
    %3 = vector.load %arg3[%c0_4, %c0_5] : memref<1x16xf32, #tpu.memory_space<vmem>>, vector<1x16xf32>
    %cst = arith.constant dense<0.000000e+00> : vector<32xf32>
    %4 = vector.multi_reduction <add>, %1, %cst [1] : vector<32x16xf32> to vector<32xf32>
    %5 = vector.shape_cast %4 : vector<32xf32> to vector<32x1xf32>
    %cst_6 = arith.constant 1.600000e+01 : f32
    %6 = vector.broadcast %cst_6 : f32 to vector<32x1xf32>
    %7 = arith.divf %5, %6 : vector<32x1xf32>
    %8 = vector.broadcast %7 : vector<32x1xf32> to vector<32x16xf32>
    %9 = arith.subf %1, %8 : vector<32x16xf32>
    %10 = arith.mulf %9, %9 : vector<32x16xf32>
    %cst_7 = arith.constant dense<0.000000e+00> : vector<32xf32>
    %11 = vector.multi_reduction <add>, %10, %cst_7 [1] : vector<32x16xf32> to vector<32xf32>
    %12 = vector.shape_cast %11 : vector<32xf32> to vector<32x1xf32>
    %cst_8 = arith.constant 1.600000e+01 : f32
    %13 = vector.broadcast %cst_8 : f32 to vector<32x1xf32>
    %14 = arith.divf %12, %13 : vector<32x1xf32>
    %cst_9 = arith.constant 9.99999974E-6 : f32
    %15 = vector.broadcast %cst_9 : f32 to vector<32x1xf32>
    %16 = arith.addf %14, %15 : vector<32x1xf32>
    %17 = math.rsqrt %16 : vector<32x1xf32>
    %18 = vector.broadcast %17 : vector<32x1xf32> to vector<32x16xf32>
    %19 = arith.mulf %9, %18 : vector<32x16xf32>
    %20 = vector.broadcast %2 : vector<1x16xf32> to vector<32x16xf32>
    %21 = arith.mulf %19, %20 : vector<32x16xf32>
    %22 = vector.broadcast %3 : vector<1x16xf32> to vector<32x16xf32>
    %23 = arith.addf %21, %22 : vector<32x16xf32>
    %24 = arith.truncf %23 : vector<32x16xf32> to vector<32x16xbf16>
    %c0_10 = arith.constant 0 : index
    %c0_11 = arith.constant 0 : index
    %25 = vector.load %arg12[%c0_10, %c0_11] : memref<1x16xf32, #tpu.memory_space<vmem>>, vector<1x16xf32>
    %c0_12 = arith.constant 0 : index
    %c0_13 = arith.constant 0 : index
    %c0_14 = arith.constant 0 : index
    %26 = vector.load %arg4[%c0_12, %c0_13, %c0_14] : memref<2x16x8xbf16, #tpu.memory_space<vmem>>, vector<1x16x8xbf16>
    %27 = vector.shape_cast %26 : vector<1x16x8xbf16> to vector<16x8xbf16>
    %cst_15 = arith.constant dense<0.000000e+00> : vector<32x8xf32>
    %28 = tpu.matmul %24, %27, %cst_15 {dimension_numbers = #tpu.dot_dimension_numbers<[1], [0], [0], [1], [0, 0, 1, 1], [], []>} : vector<32x16xbf16>, vector<16x8xbf16>, vector<32x8xf32> -> vector<32x8xf32>
    %c0_16 = arith.constant 0 : index
    %c0_17 = arith.constant 0 : index
    %c0_18 = arith.constant 0 : index
    %29 = vector.load %arg7[%c0_16, %c0_17, %c0_18] : memref<2x1x8xf32, #tpu.memory_space<vmem>>, vector<1x1x8xf32>
    %30 = vector.shape_cast %29 : vector<1x1x8xf32> to vector<1x8xf32>
    %31 = vector.broadcast %30 : vector<1x8xf32> to vector<32x8xf32>
    %32 = arith.addf %28, %31 : vector<32x8xf32>
    %c0_19 = arith.constant 0 : index
    %c0_20 = arith.constant 0 : index
    %c0_21 = arith.constant 0 : index
    %33 = vector.load %arg5[%c0_19, %c0_20, %c0_21] : memref<2x16x8xbf16, #tpu.memory_space<vmem>>, vector<1x16x8xbf16>
    %34 = vector.shape_cast %33 : vector<1x16x8xbf16> to vector<16x8xbf16>
    %cst_22 = arith.constant dense<0.000000e+00> : vector<32x8xf32>
    %35 = tpu.matmul %24, %34, %cst_22 {dimension_numbers = #tpu.dot_dimension_numbers<[1], [0], [0], [1], [0, 0, 1, 1], [], []>} : vector<32x16xbf16>, vector<16x8xbf16>, vector<32x8xf32> -> vector<32x8xf32>
    %c0_23 = arith.constant 0 : index
    %c0_24 = arith.constant 0 : index
    %c0_25 = arith.constant 0 : index
    %36 = vector.load %arg8[%c0_23, %c0_24, %c0_25] : memref<2x1x8xf32, #tpu.memory_space<vmem>>, vector<1x1x8xf32>
    %37 = vector.shape_cast %36 : vector<1x1x8xf32> to vector<1x8xf32>
    %38 = vector.broadcast %37 : vector<1x8xf32> to vector<32x8xf32>
    %39 = arith.addf %35, %38 : vector<32x8xf32>
    %c0_26 = arith.constant 0 : index
    %c0_27 = arith.constant 0 : index
    %c0_28 = arith.constant 0 : index
    %40 = vector.load %arg6[%c0_26, %c0_27, %c0_28] : memref<2x16x8xbf16, #tpu.memory_space<vmem>>, vector<1x16x8xbf16>
    %41 = vector.shape_cast %40 : vector<1x16x8xbf16> to vector<16x8xbf16>
    %cst_29 = arith.constant dense<0.000000e+00> : vector<32x8xf32>
    %42 = tpu.matmul %24, %41, %cst_29 {dimension_numbers = #tpu.dot_dimension_numbers<[1], [0], [0], [1], [0, 0, 1, 1], [], []>} : vector<32x16xbf16>, vector<16x8xbf16>, vector<32x8xf32> -> vector<32x8xf32>
    %c0_30 = arith.constant 0 : index
    %c0_31 = arith.constant 0 : index
    %c0_32 = arith.constant 0 : index
    %43 = vector.load %arg9[%c0_30, %c0_31, %c0_32] : memref<2x1x8xf32, #tpu.memory_space<vmem>>, vector<1x1x8xf32>
    %44 = vector.shape_cast %43 : vector<1x1x8xf32> to vector<1x8xf32>
    %45 = vector.broadcast %44 : vector<1x8xf32> to vector<32x8xf32>
    %46 = arith.addf %42, %45 : vector<32x8xf32>
    %47 = vector.shape_cast %32 : vector<32x8xf32> to vector<8x4x8xf32>
    %48 = arith.truncf %47 : vector<8x4x8xf32> to vector<8x4x8xbf16>
    %49 = vector.shape_cast %39 : vector<32x8xf32> to vector<8x4x8xf32>
    %50 = arith.truncf %49 : vector<8x4x8xf32> to vector<8x4x8xbf16>
    %51 = vector.shape_cast %46 : vector<32x8xf32> to vector<8x4x8xf32>
    %52 = arith.truncf %51 : vector<8x4x8xf32> to vector<8x4x8xbf16>
    "tpu.trace_start"() <{level = 10 : i32, message = "wnd,wmd->wnm"}> : () -> ()
    %cst_33 = arith.constant dense<0.000000e+00> : vector<8x4x4xf32>
    %53 = tpu.matmul %48, %50, %cst_33 {dimension_numbers = #tpu.dot_dimension_numbers<[2], [2], [1], [1], [0, 0, 0, 1, 1, 1], [0], [0]>} : vector<8x4x8xbf16>, vector<8x4x8xbf16>, vector<8x4x4xf32> -> vector<8x4x4xf32>
    "tpu.trace_stop"() : () -> ()
    %54 = vector.shape_cast %53 : vector<8x4x4xf32> to vector<2x4x4x4xf32>
    %c0_34 = arith.constant 0 : index
    %c0_35 = arith.constant 0 : index
    %c0_36 = arith.constant 0 : index
    %55 = vector.load %arg10[%c0_34, %c0_35, %c0_36] : memref<2x4x4xf32, #tpu.memory_space<vmem>>, vector<1x4x4xf32>
    %56 = vector.shape_cast %55 : vector<1x4x4xf32> to vector<4x4xf32>
    %57 = vector.shape_cast %56 : vector<4x4xf32> to vector<1x1x4x4xf32>
    %58 = vector.broadcast %57 : vector<1x1x4x4xf32> to vector<2x4x4x4xf32>
    %59 = arith.addf %54, %58 : vector<2x4x4x4xf32>
    %cst_37 = arith.constant dense<0xFF800000> : vector<2x4x4xf32>
    %60 = vector.multi_reduction <maximumf>, %59, %cst_37 [3] : vector<2x4x4x4xf32> to vector<2x4x4xf32>
    %61 = vector.shape_cast %60 : vector<2x4x4xf32> to vector<2x4x4x1xf32>
    %62 = vector.broadcast %61 : vector<2x4x4x1xf32> to vector<2x4x4x4xf32>
    %63 = arith.subf %59, %62 : vector<2x4x4x4xf32>
    %64 = math.exp %63 : vector<2x4x4x4xf32>
    %cst_38 = arith.constant dense<0.000000e+00> : vector<2x4x4xf32>
    %65 = vector.multi_reduction <add>, %64, %cst_38 [3] : vector<2x4x4x4xf32> to vector<2x4x4xf32>
    %66 = vector.shape_cast %65 : vector<2x4x4xf32> to vector<2x4x4x1xf32>
    %67 = tpu.reciprocal %66 {approx = true} : vector<2x4x4x1xf32> -> vector<2x4x4x1xf32>
    %68 = vector.broadcast %67 : vector<2x4x4x1xf32> to vector<2x4x4x4xf32>
    %69 = arith.mulf %64, %68 : vector<2x4x4x4xf32>
    %70 = vector.shape_cast %69 : vector<2x4x4x4xf32> to vector<8x4x4xf32>
    %71 = arith.truncf %70 : vector<8x4x4xf32> to vector<8x4x4xbf16>
    "tpu.trace_start"() <{level = 10 : i32, message = "wnm,wmd->wnd"}> : () -> ()
    %cst_39 = arith.constant dense<0.000000e+00> : vector<8x4x8xf32>
    %72 = tpu.matmul %71, %52, %cst_39 {dimension_numbers = #tpu.dot_dimension_numbers<[2], [1], [1], [2], [0, 0, 0, 1, 1, 2], [0], [0]>} : vector<8x4x4xbf16>, vector<8x4x8xbf16>, vector<8x4x8xf32> -> vector<8x4x8xf32>
    "tpu.trace_stop"() : () -> ()
    %73 = vector.shape_cast %72 : vector<8x4x8xf32> to vector<32x8xf32>
    %74 = arith.truncf %73 : vector<32x8xf32> to vector<32x8xbf16>
    %c0_40 = arith.constant 0 : index
    %c0_41 = arith.constant 0 : index
    %c0_42 = arith.constant 0 : index
    %75 = vector.load %arg11[%c0_40, %c0_41, %c0_42] : memref<2x8x16xbf16, #tpu.memory_space<vmem>>, vector<1x8x16xbf16>
    %76 = vector.shape_cast %75 : vector<1x8x16xbf16> to vector<8x16xbf16>
    %cst_43 = arith.constant dense<0.000000e+00> : vector<32x16xf32>
    %77 = tpu.matmul %74, %76, %cst_43 {dimension_numbers = #tpu.dot_dimension_numbers<[1], [0], [0], [1], [0, 0, 1, 1], [], []>} : vector<32x8xbf16>, vector<8x16xbf16>, vector<32x16xf32> -> vector<32x16xf32>
    %78 = vector.broadcast %25 : vector<1x16xf32> to vector<32x16xf32>
    %79 = arith.addf %78, %77 : vector<32x16xf32>
    %c1 = arith.constant 1 : index
    %c0_44 = arith.constant 0 : index
    %c0_45 = arith.constant 0 : index
    %80 = vector.load %arg4[%c1, %c0_44, %c0_45] : memref<2x16x8xbf16, #tpu.memory_space<vmem>>, vector<1x16x8xbf16>
    %81 = vector.shape_cast %80 : vector<1x16x8xbf16> to vector<16x8xbf16>
    %cst_46 = arith.constant dense<0.000000e+00> : vector<32x8xf32>
    %82 = tpu.matmul %24, %81, %cst_46 {dimension_numbers = #tpu.dot_dimension_numbers<[1], [0], [0], [1], [0, 0, 1, 1], [], []>} : vector<32x16xbf16>, vector<16x8xbf16>, vector<32x8xf32> -> vector<32x8xf32>
    %c1_47 = arith.constant 1 : index
    %c0_48 = arith.constant 0 : index
    %c0_49 = arith.constant 0 : index
    %83 = vector.load %arg7[%c1_47, %c0_48, %c0_49] : memref<2x1x8xf32, #tpu.memory_space<vmem>>, vector<1x1x8xf32>
    %84 = vector.shape_cast %83 : vector<1x1x8xf32> to vector<1x8xf32>
    %85 = vector.broadcast %84 : vector<1x8xf32> to vector<32x8xf32>
    %86 = arith.addf %82, %85 : vector<32x8xf32>
    %c1_50 = arith.constant 1 : index
    %c0_51 = arith.constant 0 : index
    %c0_52 = arith.constant 0 : index
    %87 = vector.load %arg5[%c1_50, %c0_51, %c0_52] : memref<2x16x8xbf16, #tpu.memory_space<vmem>>, vector<1x16x8xbf16>
    %88 = vector.shape_cast %87 : vector<1x16x8xbf16> to vector<16x8xbf16>
    %cst_53 = arith.constant dense<0.000000e+00> : vector<32x8xf32>
    %89 = tpu.matmul %24, %88, %cst_53 {dimension_numbers = #tpu.dot_dimension_numbers<[1], [0], [0], [1], [0, 0, 1, 1], [], []>} : vector<32x16xbf16>, vector<16x8xbf16>, vector<32x8xf32> -> vector<32x8xf32>
    %c1_54 = arith.constant 1 : index
    %c0_55 = arith.constant 0 : index
    %c0_56 = arith.constant 0 : index
    %90 = vector.load %arg8[%c1_54, %c0_55, %c0_56] : memref<2x1x8xf32, #tpu.memory_space<vmem>>, vector<1x1x8xf32>
    %91 = vector.shape_cast %90 : vector<1x1x8xf32> to vector<1x8xf32>
    %92 = vector.broadcast %91 : vector<1x8xf32> to vector<32x8xf32>
    %93 = arith.addf %89, %92 : vector<32x8xf32>
    %c1_57 = arith.constant 1 : index
    %c0_58 = arith.constant 0 : index
    %c0_59 = arith.constant 0 : index
    %94 = vector.load %arg6[%c1_57, %c0_58, %c0_59] : memref<2x16x8xbf16, #tpu.memory_space<vmem>>, vector<1x16x8xbf16>
    %95 = vector.shape_cast %94 : vector<1x16x8xbf16> to vector<16x8xbf16>
    %cst_60 = arith.constant dense<0.000000e+00> : vector<32x8xf32>
    %96 = tpu.matmul %24, %95, %cst_60 {dimension_numbers = #tpu.dot_dimension_numbers<[1], [0], [0], [1], [0, 0, 1, 1], [], []>} : vector<32x16xbf16>, vector<16x8xbf16>, vector<32x8xf32> -> vector<32x8xf32>
    %c1_61 = arith.constant 1 : index
    %c0_62 = arith.constant 0 : index
    %c0_63 = arith.constant 0 : index
    %97 = vector.load %arg9[%c1_61, %c0_62, %c0_63] : memref<2x1x8xf32, #tpu.memory_space<vmem>>, vector<1x1x8xf32>
    %98 = vector.shape_cast %97 : vector<1x1x8xf32> to vector<1x8xf32>
    %99 = vector.broadcast %98 : vector<1x8xf32> to vector<32x8xf32>
    %100 = arith.addf %96, %99 : vector<32x8xf32>
    %101 = vector.shape_cast %86 : vector<32x8xf32> to vector<8x4x8xf32>
    %102 = arith.truncf %101 : vector<8x4x8xf32> to vector<8x4x8xbf16>
    %103 = vector.shape_cast %93 : vector<32x8xf32> to vector<8x4x8xf32>
    %104 = arith.truncf %103 : vector<8x4x8xf32> to vector<8x4x8xbf16>
    %105 = vector.shape_cast %100 : vector<32x8xf32> to vector<8x4x8xf32>
    %106 = arith.truncf %105 : vector<8x4x8xf32> to vector<8x4x8xbf16>
    "tpu.trace_start"() <{level = 10 : i32, message = "wnd,wmd->wnm"}> : () -> ()
    %cst_64 = arith.constant dense<0.000000e+00> : vector<8x4x4xf32>
    %107 = tpu.matmul %102, %104, %cst_64 {dimension_numbers = #tpu.dot_dimension_numbers<[2], [2], [1], [1], [0, 0, 0, 1, 1, 1], [0], [0]>} : vector<8x4x8xbf16>, vector<8x4x8xbf16>, vector<8x4x4xf32> -> vector<8x4x4xf32>
    "tpu.trace_stop"() : () -> ()
    %108 = vector.shape_cast %107 : vector<8x4x4xf32> to vector<2x4x4x4xf32>
    %c1_65 = arith.constant 1 : index
    %c0_66 = arith.constant 0 : index
    %c0_67 = arith.constant 0 : index
    %109 = vector.load %arg10[%c1_65, %c0_66, %c0_67] : memref<2x4x4xf32, #tpu.memory_space<vmem>>, vector<1x4x4xf32>
    %110 = vector.shape_cast %109 : vector<1x4x4xf32> to vector<4x4xf32>
    %111 = vector.shape_cast %110 : vector<4x4xf32> to vector<1x1x4x4xf32>
    %112 = vector.broadcast %111 : vector<1x1x4x4xf32> to vector<2x4x4x4xf32>
    %113 = arith.addf %108, %112 : vector<2x4x4x4xf32>
    %cst_68 = arith.constant dense<0xFF800000> : vector<2x4x4xf32>
    %114 = vector.multi_reduction <maximumf>, %113, %cst_68 [3] : vector<2x4x4x4xf32> to vector<2x4x4xf32>
    %115 = vector.shape_cast %114 : vector<2x4x4xf32> to vector<2x4x4x1xf32>
    %116 = vector.broadcast %115 : vector<2x4x4x1xf32> to vector<2x4x4x4xf32>
    %117 = arith.subf %113, %116 : vector<2x4x4x4xf32>
    %118 = math.exp %117 : vector<2x4x4x4xf32>
    %cst_69 = arith.constant dense<0.000000e+00> : vector<2x4x4xf32>
    %119 = vector.multi_reduction <add>, %118, %cst_69 [3] : vector<2x4x4x4xf32> to vector<2x4x4xf32>
    %120 = vector.shape_cast %119 : vector<2x4x4xf32> to vector<2x4x4x1xf32>
    %121 = tpu.reciprocal %120 {approx = true} : vector<2x4x4x1xf32> -> vector<2x4x4x1xf32>
    %122 = vector.broadcast %121 : vector<2x4x4x1xf32> to vector<2x4x4x4xf32>
    %123 = arith.mulf %118, %122 : vector<2x4x4x4xf32>
    %124 = vector.shape_cast %123 : vector<2x4x4x4xf32> to vector<8x4x4xf32>
    %125 = arith.truncf %124 : vector<8x4x4xf32> to vector<8x4x4xbf16>
    "tpu.trace_start"() <{level = 10 : i32, message = "wnm,wmd->wnd"}> : () -> ()
    %cst_70 = arith.constant dense<0.000000e+00> : vector<8x4x8xf32>
    %126 = tpu.matmul %125, %106, %cst_70 {dimension_numbers = #tpu.dot_dimension_numbers<[2], [1], [1], [2], [0, 0, 0, 1, 1, 2], [0], [0]>} : vector<8x4x4xbf16>, vector<8x4x8xbf16>, vector<8x4x8xf32> -> vector<8x4x8xf32>
    "tpu.trace_stop"() : () -> ()
    %127 = vector.shape_cast %126 : vector<8x4x8xf32> to vector<32x8xf32>
    %128 = arith.truncf %127 : vector<32x8xf32> to vector<32x8xbf16>
    %c1_71 = arith.constant 1 : index
    %c0_72 = arith.constant 0 : index
    %c0_73 = arith.constant 0 : index
    %129 = vector.load %arg11[%c1_71, %c0_72, %c0_73] : memref<2x8x16xbf16, #tpu.memory_space<vmem>>, vector<1x8x16xbf16>
    %130 = vector.shape_cast %129 : vector<1x8x16xbf16> to vector<8x16xbf16>
    %cst_74 = arith.constant dense<0.000000e+00> : vector<32x16xf32>
    %131 = tpu.matmul %128, %130, %cst_74 {dimension_numbers = #tpu.dot_dimension_numbers<[1], [0], [0], [1], [0, 0, 1, 1], [], []>} : vector<32x8xbf16>, vector<8x16xbf16>, vector<32x16xf32> -> vector<32x16xf32>
    %132 = arith.addf %79, %131 : vector<32x16xf32>
    %133 = arith.addf %1, %132 : vector<32x16xf32>
    %c0_75 = arith.constant 0 : index
    %c0_76 = arith.constant 0 : index
    %134 = vector.load %arg13[%c0_75, %c0_76] : memref<1x16xf32, #tpu.memory_space<vmem>>, vector<1x16xf32>
    %c0_77 = arith.constant 0 : index
    %c0_78 = arith.constant 0 : index
    %135 = vector.load %arg14[%c0_77, %c0_78] : memref<1x16xf32, #tpu.memory_space<vmem>>, vector<1x16xf32>
    %cst_79 = arith.constant dense<0.000000e+00> : vector<32xf32>
    %136 = vector.multi_reduction <add>, %133, %cst_79 [1] : vector<32x16xf32> to vector<32xf32>
    %137 = vector.shape_cast %136 : vector<32xf32> to vector<32x1xf32>
    %cst_80 = arith.constant 1.600000e+01 : f32
    %138 = vector.broadcast %cst_80 : f32 to vector<32x1xf32>
    %139 = arith.divf %137, %138 : vector<32x1xf32>
    %140 = vector.broadcast %139 : vector<32x1xf32> to vector<32x16xf32>
    %141 = arith.subf %133, %140 : vector<32x16xf32>
    %142 = arith.mulf %141, %141 : vector<32x16xf32>
    %cst_81 = arith.constant dense<0.000000e+00> : vector<32xf32>
    %143 = vector.multi_reduction <add>, %142, %cst_81 [1] : vector<32x16xf32> to vector<32xf32>
    %144 = vector.shape_cast %143 : vector<32xf32> to vector<32x1xf32>
    %cst_82 = arith.constant 1.600000e+01 : f32
    %145 = vector.broadcast %cst_82 : f32 to vector<32x1xf32>
    %146 = arith.divf %144, %145 : vector<32x1xf32>
    %cst_83 = arith.constant 9.99999974E-6 : f32
    %147 = vector.broadcast %cst_83 : f32 to vector<32x1xf32>
    %148 = arith.addf %146, %147 : vector<32x1xf32>
    %149 = math.rsqrt %148 : vector<32x1xf32>
    %150 = vector.broadcast %149 : vector<32x1xf32> to vector<32x16xf32>
    %151 = arith.mulf %141, %150 : vector<32x16xf32>
    %152 = vector.broadcast %134 : vector<1x16xf32> to vector<32x16xf32>
    %153 = arith.mulf %151, %152 : vector<32x16xf32>
    %154 = vector.broadcast %135 : vector<1x16xf32> to vector<32x16xf32>
    %155 = arith.addf %153, %154 : vector<32x16xf32>
    %156 = arith.truncf %155 : vector<32x16xf32> to vector<32x16xbf16>
    %c0_84 = arith.constant 0 : index
    %c0_85 = arith.constant 0 : index
    %157 = vector.load %arg15[%c0_84, %c0_85] : memref<16x64xbf16, #tpu.memory_space<vmem>>, vector<16x64xbf16>
    %cst_86 = arith.constant dense<0.000000e+00> : vector<32x64xf32>
    %158 = tpu.matmul %156, %157, %cst_86 {dimension_numbers = #tpu.dot_dimension_numbers<[1], [0], [0], [1], [0, 0, 1, 1], [], []>} : vector<32x16xbf16>, vector<16x64xbf16>, vector<32x64xf32> -> vector<32x64xf32>
    %c0_87 = arith.constant 0 : index
    %c0_88 = arith.constant 0 : index
    %159 = vector.load %arg16[%c0_87, %c0_88] : memref<1x64xf32, #tpu.memory_space<vmem>>, vector<1x64xf32>
    %160 = vector.broadcast %159 : vector<1x64xf32> to vector<32x64xf32>
    %161 = arith.addf %158, %160 : vector<32x64xf32>
    %162 = arith.mulf %161, %161 : vector<32x64xf32>
    %163 = arith.mulf %161, %162 : vector<32x64xf32>
    %cst_89 = arith.constant 4.471500e-02 : f32
    %164 = vector.broadcast %cst_89 : f32 to vector<32x64xf32>
    %165 = arith.mulf %164, %163 : vector<32x64xf32>
    %166 = arith.addf %161, %165 : vector<32x64xf32>
    %cst_90 = arith.constant 0.797884583 : f32
    %167 = vector.broadcast %cst_90 : f32 to vector<32x64xf32>
    %168 = arith.mulf %167, %166 : vector<32x64xf32>
    %169 = math.tanh %168 : vector<32x64xf32>
    %cst_91 = arith.constant 1.000000e+00 : f32
    %170 = vector.broadcast %cst_91 : f32 to vector<32x64xf32>
    %171 = arith.addf %170, %169 : vector<32x64xf32>
    %cst_92 = arith.constant 5.000000e-01 : f32
    %172 = vector.broadcast %cst_92 : f32 to vector<32x64xf32>
    %173 = arith.mulf %172, %171 : vector<32x64xf32>
    %174 = arith.mulf %161, %173 : vector<32x64xf32>
    %175 = arith.truncf %174 : vector<32x64xf32> to vector<32x64xbf16>
    %c0_93 = arith.constant 0 : index
    %c0_94 = arith.constant 0 : index
    %176 = vector.load %arg17[%c0_93, %c0_94] : memref<64x16xbf16, #tpu.memory_space<vmem>>, vector<64x16xbf16>
    %cst_95 = arith.constant dense<0.000000e+00> : vector<32x16xf32>
    %177 = tpu.matmul %175, %176, %cst_95 {dimension_numbers = #tpu.dot_dimension_numbers<[1], [0], [0], [1], [0, 0, 1, 1], [], []>} : vector<32x64xbf16>, vector<64x16xbf16>, vector<32x16xf32> -> vector<32x16xf32>
    %c0_96 = arith.constant 0 : index
    %c0_97 = arith.constant 0 : index
    %178 = vector.load %arg18[%c0_96, %c0_97] : memref<1x16xf32, #tpu.memory_space<vmem>>, vector<1x16xf32>
    %179 = vector.broadcast %178 : vector<1x16xf32> to vector<32x16xf32>
    %180 = arith.addf %177, %179 : vector<32x16xf32>
    %181 = arith.addf %133, %180 : vector<32x16xf32>
    %182 = vector.shape_cast %181 : vector<32x16xf32> to vector<2x16x16xf32>
    %c0_98 = arith.constant 0 : index
    %c0_99 = arith.constant 0 : index
    %c0_100 = arith.constant 0 : index
    %183 = vector.load %arg19[%c0_98, %c0_99, %c0_100] : memref<2x16x16xf32, #tpu.memory_space<vmem>>, vector<2x16x16xf32>
    tpu.vector_store %arg19[%c0_98, %c0_99, %c0_100], %182 {strides = array<i32>} : memref<2x16x16xf32, #tpu.memory_space<vmem>>, vector<2x16x16xf32>,
    return
  }
  func.func @transform_0(%arg0: i32) -> (i32, i32, i32) {
    %c0_i32 = arith.constant 0 : i32
    %c0_i32_0 = arith.constant 0 : i32
    %c0_i32_1 = arith.constant 0 : i32
    return %arg0, %c0_i32, %c0_i32_0 : i32, i32, i32
  }
  func.func @transform_1(%arg0: i32) -> (i32, i32) {
    %c0_i32 = arith.constant 0 : i32
    %c0_i32_0 = arith.constant 0 : i32
    %c0_i32_1 = arith.constant 0 : i32
    return %c0_i32, %c0_i32_0 : i32, i32
  }
  func.func @transform_2(%arg0: i32) -> (i32, i32) {
    %c0_i32 = arith.constant 0 : i32
    %c0_i32_0 = arith.constant 0 : i32
    %c0_i32_1 = arith.constant 0 : i32
    return %c0_i32, %c0_i32_0 : i32, i32
  }
  func.func @transform_3(%arg0: i32) -> (i32, i32, i32) {
    %c0_i32 = arith.constant 0 : i32
    %c0_i32_0 = arith.constant 0 : i32
    %c0_i32_1 = arith.constant 0 : i32
    %c0_i32_2 = arith.constant 0 : i32
    return %c0_i32, %c0_i32_0, %c0_i32_1 : i32, i32, i32
  }
  func.func @transform_4(%arg0: i32) -> (i32, i32, i32) {
    %c0_i32 = arith.constant 0 : i32
    %c0_i32_0 = arith.constant 0 : i32
    %c0_i32_1 = arith.constant 0 : i32
    %c0_i32_2 = arith.constant 0 : i32
    return %c0_i32, %c0_i32_0, %c0_i32_1 : i32, i32, i32
  }
  func.func @transform_5(%arg0: i32) -> (i32, i32, i32) {
    %c0_i32 = arith.constant 0 : i32
    %c0_i32_0 = arith.constant 0 : i32
    %c0_i32_1 = arith.constant 0 : i32
    %c0_i32_2 = arith.constant 0 : i32
    return %c0_i32, %c0_i32_0, %c0_i32_1 : i32, i32, i32
  }
  func.func @transform_6(%arg0: i32) -> (i32, i32, i32) {
    %c0_i32 = arith.constant 0 : i32
    %c0_i32_0 = arith.constant 0 : i32
    %c0_i32_1 = arith.constant 0 : i32
    %c0_i32_2 = arith.constant 0 : i32
    return %c0_i32, %c0_i32_0, %c0_i32_1 : i32, i32, i32
  }
  func.func @transform_7(%arg0: i32) -> (i32, i32, i32) {
    %c0_i32 = arith.constant 0 : i32
    %c0_i32_0 = arith.constant 0 : i32
    %c0_i32_1 = arith.constant 0 : i32
    %c0_i32_2 = arith.constant 0 : i32
    return %c0_i32, %c0_i32_0, %c0_i32_1 : i32, i32, i32
  }
  func.func @transform_8(%arg0: i32) -> (i32, i32, i32) {
    %c0_i32 = arith.constant 0 : i32
    %c0_i32_0 = arith.constant 0 : i32
    %c0_i32_1 = arith.constant 0 : i32
    %c0_i32_2 = arith.constant 0 : i32
    return %c0_i32, %c0_i32_0, %c0_i32_1 : i32, i32, i32
  }
  func.func @transform_9(%arg0: i32) -> (i32, i32, i32) {
    %c0_i32 = arith.constant 0 : i32
    %c0_i32_0 = arith.constant 0 : i32
    %c0_i32_1 = arith.constant 0 : i32
    %c0_i32_2 = arith.constant 0 : i32
    return %c0_i32, %c0_i32_0, %c0_i32_1 : i32, i32, i32
  }
  func.func @transform_10(%arg0: i32) -> (i32, i32, i32) {
    %c0_i32 = arith.constant 0 : i32
    %c0_i32_0 = arith.constant 0 : i32
    %c0_i32_1 = arith.constant 0 : i32
    %c0_i32_2 = arith.constant 0 : i32
    return %c0_i32, %c0_i32_0, %c0_i32_1 : i32, i32, i32
  }
  func.func @transform_11(%arg0: i32) -> (i32, i32) {
    %c0_i32 = arith.constant 0 : i32
    %c0_i32_0 = arith.constant 0 : i32
    %c0_i32_1 = arith.constant 0 : i32
    return %c0_i32, %c0_i32_0 : i32, i32
  }
  func.func @transform_12(%arg0: i32) -> (i32, i32) {
    %c0_i32 = arith.constant 0 : i32
    %c0_i32_0 = arith.constant 0 : i32
    %c0_i32_1 = arith.constant 0 : i32
    return %c0_i32, %c0_i32_0 : i32, i32
  }
  func.func @transform_13(%arg0: i32) -> (i32, i32) {
    %c0_i32 = arith.constant 0 : i32
    %c0_i32_0 = arith.constant 0 : i32
    %c0_i32_1 = arith.constant 0 : i32
    return %c0_i32, %c0_i32_0 : i32, i32
  }
  func.func @transform_14(%arg0: i32) -> (i32, i32) {
    %c0_i32 = arith.constant 0 : i32
    %c0_i32_0 = arith.constant 0 : i32
    %c0_i32_1 = arith.constant 0 : i32
    return %c0_i32, %c0_i32_0 : i32, i32
  }
  func.func @transform_15(%arg0: i32) -> (i32, i32) {
    %c0_i32 = arith.constant 0 : i32
    %c0_i32_0 = arith.constant 0 : i32
    %c0_i32_1 = arith.constant 0 : i32
    return %c0_i32, %c0_i32_0 : i32, i32
  }
  func.func @transform_16(%arg0: i32) -> (i32, i32) {
    %c0_i32 = arith.constant 0 : i32
    %c0_i32_0 = arith.constant 0 : i32
    %c0_i32_1 = arith.constant 0 : i32
    return %c0_i32, %c0_i32_0 : i32, i32
  }
  func.func @transform_17(%arg0: i32) -> (i32, i32) {
    %c0_i32 = arith.constant 0 : i32
    %c0_i32_0 = arith.constant 0 : i32
    %c0_i32_1 = arith.constant 0 : i32
    return %c0_i32, %c0_i32_0 : i32, i32
  }
  func.func @transform_18(%arg0: i32) -> (i32, i32, i32) {
    %c0_i32 = arith.constant 0 : i32
    %c0_i32_0 = arith.constant 0 : i32
    %c0_i32_1 = arith.constant 0 : i32
    return %arg0, %c0_i32, %c0_i32_0 : i32, i32, i32
  }
}

module attributes {stable_mosaic.version = 11 : i64} {
  func.func @_swin_block_kernel(%arg0: i32, %arg1: memref<2x16x16xf32, #tpu.memory_space<vmem>>, %arg2: memref<1x16xf32, #tpu.memory_space<vmem>>, %arg3: memref<1x16xf32, #tpu.memory_space<vmem>>, %arg4: memref<2x16x8xbf16, #tpu.memory_space<vmem>>, %arg5: memref<2x16x8xbf16, #tpu.memory_space<vmem>>, %arg6: memref<2x16x8xbf16, #tpu.memory_space<vmem>>, %arg7: memref<2x1x8xf32, #tpu.memory_space<vmem>>, %arg8: memref<2x1x8xf32, #tpu.memory_space<vmem>>, %arg9: memref<2x1x8xf32, #tpu.memory_space<vmem>>, %arg10: memref<2x4x4xf32, #tpu.memory_space<vmem>>, %arg11: memref<4x4x4xf32, #tpu.memory_space<vmem>>, %arg12: memref<2x8x16xbf16, #tpu.memory_space<vmem>>, %arg13: memref<1x16xf32, #tpu.memory_space<vmem>>, %arg14: memref<1x16xf32, #tpu.memory_space<vmem>>, %arg15: memref<1x16xf32, #tpu.memory_space<vmem>>, %arg16: memref<16x64xbf16, #tpu.memory_space<vmem>>, %arg17: memref<1x64xf32, #tpu.memory_space<vmem>>, %arg18: memref<64x16xbf16, #tpu.memory_space<vmem>>, %arg19: memref<1x16xf32, #tpu.memory_space<vmem>>, %arg20: memref<2x16x16xf32, #tpu.memory_space<vmem>>) attributes {dimension_semantics = [#tpu.dimension_semantics<parallel>], iteration_bounds = array<i64: 2>, scalar_prefetch = 0 : i64, scratch_operands = 0 : i64, tpu.core_type = #tpu.core_type<tc>, window_params = [{transform_indices = @transform_0, window_bounds = array<i64: 2, 16, 16>}, {pipeline_mode = #tpu.pipeline_mode<synchronous>, transform_indices = @transform_1, window_bounds = array<i64: 1, 16>}, {pipeline_mode = #tpu.pipeline_mode<synchronous>, transform_indices = @transform_2, window_bounds = array<i64: 1, 16>}, {pipeline_mode = #tpu.pipeline_mode<synchronous>, transform_indices = @transform_3, window_bounds = array<i64: 2, 16, 8>}, {pipeline_mode = #tpu.pipeline_mode<synchronous>, transform_indices = @transform_4, window_bounds = array<i64: 2, 16, 8>}, {pipeline_mode = #tpu.pipeline_mode<synchronous>, transform_indices = @transform_5, window_bounds = array<i64: 2, 16, 8>}, {pipeline_mode = #tpu.pipeline_mode<synchronous>, transform_indices = @transform_6, window_bounds = array<i64: 2, 1, 8>}, {pipeline_mode = #tpu.pipeline_mode<synchronous>, transform_indices = @transform_7, window_bounds = array<i64: 2, 1, 8>}, {pipeline_mode = #tpu.pipeline_mode<synchronous>, transform_indices = @transform_8, window_bounds = array<i64: 2, 1, 8>}, {pipeline_mode = #tpu.pipeline_mode<synchronous>, transform_indices = @transform_9, window_bounds = array<i64: 2, 4, 4>}, {pipeline_mode = #tpu.pipeline_mode<synchronous>, transform_indices = @transform_10, window_bounds = array<i64: 4, 4, 4>}, {pipeline_mode = #tpu.pipeline_mode<synchronous>, transform_indices = @transform_11, window_bounds = array<i64: 2, 8, 16>}, {pipeline_mode = #tpu.pipeline_mode<synchronous>, transform_indices = @transform_12, window_bounds = array<i64: 1, 16>}, {pipeline_mode = #tpu.pipeline_mode<synchronous>, transform_indices = @transform_13, window_bounds = array<i64: 1, 16>}, {pipeline_mode = #tpu.pipeline_mode<synchronous>, transform_indices = @transform_14, window_bounds = array<i64: 1, 16>}, {pipeline_mode = #tpu.pipeline_mode<synchronous>, transform_indices = @transform_15, window_bounds = array<i64: 16, 64>}, {pipeline_mode = #tpu.pipeline_mode<synchronous>, transform_indices = @transform_16, window_bounds = array<i64: 1, 64>}, {pipeline_mode = #tpu.pipeline_mode<synchronous>, transform_indices = @transform_17, window_bounds = array<i64: 64, 16>}, {pipeline_mode = #tpu.pipeline_mode<synchronous>, transform_indices = @transform_18, window_bounds = array<i64: 1, 16>}, {transform_indices = @transform_19, window_bounds = array<i64: 2, 16, 16>}]} {
    %c0 = arith.constant 0 : index
    %c0_0 = arith.constant 0 : index
    %c0_1 = arith.constant 0 : index
    %0 = vector.load %arg1[%c0, %c0_0, %c0_1] : memref<2x16x16xf32, #tpu.memory_space<vmem>>, vector<2x16x16xf32>
    %1 = vector.shape_cast %0 : vector<2x16x16xf32> to vector<32x16xf32>
    %c0_2 = arith.constant 0 : index
    %c0_3 = arith.constant 0 : index
    %2 = vector.load %arg2[%c0_2, %c0_3] : memref<1x16xf32, #tpu.memory_space<vmem>>, vector<1x16xf32>
    %c0_4 = arith.constant 0 : index
    %c0_5 = arith.constant 0 : index
    %3 = vector.load %arg3[%c0_4, %c0_5] : memref<1x16xf32, #tpu.memory_space<vmem>>, vector<1x16xf32>
    %cst = arith.constant dense<0.000000e+00> : vector<32xf32>
    %4 = vector.multi_reduction <add>, %1, %cst [1] : vector<32x16xf32> to vector<32xf32>
    %5 = vector.shape_cast %4 : vector<32xf32> to vector<32x1xf32>
    %cst_6 = arith.constant 1.600000e+01 : f32
    %6 = vector.broadcast %cst_6 : f32 to vector<32x1xf32>
    %7 = arith.divf %5, %6 : vector<32x1xf32>
    %8 = vector.broadcast %7 : vector<32x1xf32> to vector<32x16xf32>
    %9 = arith.subf %1, %8 : vector<32x16xf32>
    %10 = arith.mulf %9, %9 : vector<32x16xf32>
    %cst_7 = arith.constant dense<0.000000e+00> : vector<32xf32>
    %11 = vector.multi_reduction <add>, %10, %cst_7 [1] : vector<32x16xf32> to vector<32xf32>
    %12 = vector.shape_cast %11 : vector<32xf32> to vector<32x1xf32>
    %cst_8 = arith.constant 1.600000e+01 : f32
    %13 = vector.broadcast %cst_8 : f32 to vector<32x1xf32>
    %14 = arith.divf %12, %13 : vector<32x1xf32>
    %cst_9 = arith.constant 9.99999974E-6 : f32
    %15 = vector.broadcast %cst_9 : f32 to vector<32x1xf32>
    %16 = arith.addf %14, %15 : vector<32x1xf32>
    %17 = math.rsqrt %16 : vector<32x1xf32>
    %18 = vector.broadcast %17 : vector<32x1xf32> to vector<32x16xf32>
    %19 = arith.mulf %9, %18 : vector<32x16xf32>
    %20 = vector.broadcast %2 : vector<1x16xf32> to vector<32x16xf32>
    %21 = arith.mulf %19, %20 : vector<32x16xf32>
    %22 = vector.broadcast %3 : vector<1x16xf32> to vector<32x16xf32>
    %23 = arith.addf %21, %22 : vector<32x16xf32>
    %24 = arith.truncf %23 : vector<32x16xf32> to vector<32x16xbf16>
    %c0_10 = arith.constant 0 : index
    %c0_11 = arith.constant 0 : index
    %25 = vector.load %arg13[%c0_10, %c0_11] : memref<1x16xf32, #tpu.memory_space<vmem>>, vector<1x16xf32>
    %c0_12 = arith.constant 0 : index
    %c0_13 = arith.constant 0 : index
    %c0_14 = arith.constant 0 : index
    %26 = vector.load %arg4[%c0_12, %c0_13, %c0_14] : memref<2x16x8xbf16, #tpu.memory_space<vmem>>, vector<1x16x8xbf16>
    %27 = vector.shape_cast %26 : vector<1x16x8xbf16> to vector<16x8xbf16>
    %cst_15 = arith.constant dense<0.000000e+00> : vector<32x8xf32>
    %28 = tpu.matmul %24, %27, %cst_15 {dimension_numbers = #tpu.dot_dimension_numbers<[1], [0], [0], [1], [0, 0, 1, 1], [], []>} : vector<32x16xbf16>, vector<16x8xbf16>, vector<32x8xf32> -> vector<32x8xf32>
    %c0_16 = arith.constant 0 : index
    %c0_17 = arith.constant 0 : index
    %c0_18 = arith.constant 0 : index
    %29 = vector.load %arg7[%c0_16, %c0_17, %c0_18] : memref<2x1x8xf32, #tpu.memory_space<vmem>>, vector<1x1x8xf32>
    %30 = vector.shape_cast %29 : vector<1x1x8xf32> to vector<1x8xf32>
    %31 = vector.broadcast %30 : vector<1x8xf32> to vector<32x8xf32>
    %32 = arith.addf %28, %31 : vector<32x8xf32>
    %c0_19 = arith.constant 0 : index
    %c0_20 = arith.constant 0 : index
    %c0_21 = arith.constant 0 : index
    %33 = vector.load %arg5[%c0_19, %c0_20, %c0_21] : memref<2x16x8xbf16, #tpu.memory_space<vmem>>, vector<1x16x8xbf16>
    %34 = vector.shape_cast %33 : vector<1x16x8xbf16> to vector<16x8xbf16>
    %cst_22 = arith.constant dense<0.000000e+00> : vector<32x8xf32>
    %35 = tpu.matmul %24, %34, %cst_22 {dimension_numbers = #tpu.dot_dimension_numbers<[1], [0], [0], [1], [0, 0, 1, 1], [], []>} : vector<32x16xbf16>, vector<16x8xbf16>, vector<32x8xf32> -> vector<32x8xf32>
    %c0_23 = arith.constant 0 : index
    %c0_24 = arith.constant 0 : index
    %c0_25 = arith.constant 0 : index
    %36 = vector.load %arg8[%c0_23, %c0_24, %c0_25] : memref<2x1x8xf32, #tpu.memory_space<vmem>>, vector<1x1x8xf32>
    %37 = vector.shape_cast %36 : vector<1x1x8xf32> to vector<1x8xf32>
    %38 = vector.broadcast %37 : vector<1x8xf32> to vector<32x8xf32>
    %39 = arith.addf %35, %38 : vector<32x8xf32>
    %c0_26 = arith.constant 0 : index
    %c0_27 = arith.constant 0 : index
    %c0_28 = arith.constant 0 : index
    %40 = vector.load %arg6[%c0_26, %c0_27, %c0_28] : memref<2x16x8xbf16, #tpu.memory_space<vmem>>, vector<1x16x8xbf16>
    %41 = vector.shape_cast %40 : vector<1x16x8xbf16> to vector<16x8xbf16>
    %cst_29 = arith.constant dense<0.000000e+00> : vector<32x8xf32>
    %42 = tpu.matmul %24, %41, %cst_29 {dimension_numbers = #tpu.dot_dimension_numbers<[1], [0], [0], [1], [0, 0, 1, 1], [], []>} : vector<32x16xbf16>, vector<16x8xbf16>, vector<32x8xf32> -> vector<32x8xf32>
    %c0_30 = arith.constant 0 : index
    %c0_31 = arith.constant 0 : index
    %c0_32 = arith.constant 0 : index
    %43 = vector.load %arg9[%c0_30, %c0_31, %c0_32] : memref<2x1x8xf32, #tpu.memory_space<vmem>>, vector<1x1x8xf32>
    %44 = vector.shape_cast %43 : vector<1x1x8xf32> to vector<1x8xf32>
    %45 = vector.broadcast %44 : vector<1x8xf32> to vector<32x8xf32>
    %46 = arith.addf %42, %45 : vector<32x8xf32>
    %47 = vector.shape_cast %32 : vector<32x8xf32> to vector<8x4x8xf32>
    %48 = arith.truncf %47 : vector<8x4x8xf32> to vector<8x4x8xbf16>
    %49 = vector.shape_cast %39 : vector<32x8xf32> to vector<8x4x8xf32>
    %50 = arith.truncf %49 : vector<8x4x8xf32> to vector<8x4x8xbf16>
    %51 = vector.shape_cast %46 : vector<32x8xf32> to vector<8x4x8xf32>
    %52 = arith.truncf %51 : vector<8x4x8xf32> to vector<8x4x8xbf16>
    "tpu.trace_start"() <{level = 10 : i32, message = "wnd,wmd->wnm"}> : () -> ()
    %cst_33 = arith.constant dense<0.000000e+00> : vector<8x4x4xf32>
    %53 = tpu.matmul %48, %50, %cst_33 {dimension_numbers = #tpu.dot_dimension_numbers<[2], [2], [1], [1], [0, 0, 0, 1, 1, 1], [0], [0]>} : vector<8x4x8xbf16>, vector<8x4x8xbf16>, vector<8x4x4xf32> -> vector<8x4x4xf32>
    "tpu.trace_stop"() : () -> ()
    %54 = vector.shape_cast %53 : vector<8x4x4xf32> to vector<2x4x4x4xf32>
    %c0_34 = arith.constant 0 : index
    %c0_35 = arith.constant 0 : index
    %c0_36 = arith.constant 0 : index
    %55 = vector.load %arg10[%c0_34, %c0_35, %c0_36] : memref<2x4x4xf32, #tpu.memory_space<vmem>>, vector<1x4x4xf32>
    %56 = vector.shape_cast %55 : vector<1x4x4xf32> to vector<4x4xf32>
    %57 = vector.shape_cast %56 : vector<4x4xf32> to vector<1x1x4x4xf32>
    %58 = vector.broadcast %57 : vector<1x1x4x4xf32> to vector<2x4x4x4xf32>
    %59 = arith.addf %54, %58 : vector<2x4x4x4xf32>
    %c0_37 = arith.constant 0 : index
    %c0_38 = arith.constant 0 : index
    %c0_39 = arith.constant 0 : index
    %60 = vector.load %arg11[%c0_37, %c0_38, %c0_39] : memref<4x4x4xf32, #tpu.memory_space<vmem>>, vector<4x4x4xf32>
    %61 = vector.shape_cast %60 : vector<4x4x4xf32> to vector<1x4x4x4xf32>
    %62 = vector.broadcast %61 : vector<1x4x4x4xf32> to vector<2x4x4x4xf32>
    %63 = arith.addf %59, %62 : vector<2x4x4x4xf32>
    %cst_40 = arith.constant dense<0xFF800000> : vector<2x4x4xf32>
    %64 = vector.multi_reduction <maximumf>, %63, %cst_40 [3] : vector<2x4x4x4xf32> to vector<2x4x4xf32>
    %65 = vector.shape_cast %64 : vector<2x4x4xf32> to vector<2x4x4x1xf32>
    %66 = vector.broadcast %65 : vector<2x4x4x1xf32> to vector<2x4x4x4xf32>
    %67 = arith.subf %63, %66 : vector<2x4x4x4xf32>
    %68 = math.exp %67 : vector<2x4x4x4xf32>
    %cst_41 = arith.constant dense<0.000000e+00> : vector<2x4x4xf32>
    %69 = vector.multi_reduction <add>, %68, %cst_41 [3] : vector<2x4x4x4xf32> to vector<2x4x4xf32>
    %70 = vector.shape_cast %69 : vector<2x4x4xf32> to vector<2x4x4x1xf32>
    %71 = tpu.reciprocal %70 {approx = true} : vector<2x4x4x1xf32> -> vector<2x4x4x1xf32>
    %72 = vector.broadcast %71 : vector<2x4x4x1xf32> to vector<2x4x4x4xf32>
    %73 = arith.mulf %68, %72 : vector<2x4x4x4xf32>
    %74 = vector.shape_cast %73 : vector<2x4x4x4xf32> to vector<8x4x4xf32>
    %75 = arith.truncf %74 : vector<8x4x4xf32> to vector<8x4x4xbf16>
    "tpu.trace_start"() <{level = 10 : i32, message = "wnm,wmd->wnd"}> : () -> ()
    %cst_42 = arith.constant dense<0.000000e+00> : vector<8x4x8xf32>
    %76 = tpu.matmul %75, %52, %cst_42 {dimension_numbers = #tpu.dot_dimension_numbers<[2], [1], [1], [2], [0, 0, 0, 1, 1, 2], [0], [0]>} : vector<8x4x4xbf16>, vector<8x4x8xbf16>, vector<8x4x8xf32> -> vector<8x4x8xf32>
    "tpu.trace_stop"() : () -> ()
    %77 = vector.shape_cast %76 : vector<8x4x8xf32> to vector<32x8xf32>
    %78 = arith.truncf %77 : vector<32x8xf32> to vector<32x8xbf16>
    %c0_43 = arith.constant 0 : index
    %c0_44 = arith.constant 0 : index
    %c0_45 = arith.constant 0 : index
    %79 = vector.load %arg12[%c0_43, %c0_44, %c0_45] : memref<2x8x16xbf16, #tpu.memory_space<vmem>>, vector<1x8x16xbf16>
    %80 = vector.shape_cast %79 : vector<1x8x16xbf16> to vector<8x16xbf16>
    %cst_46 = arith.constant dense<0.000000e+00> : vector<32x16xf32>
    %81 = tpu.matmul %78, %80, %cst_46 {dimension_numbers = #tpu.dot_dimension_numbers<[1], [0], [0], [1], [0, 0, 1, 1], [], []>} : vector<32x8xbf16>, vector<8x16xbf16>, vector<32x16xf32> -> vector<32x16xf32>
    %82 = vector.broadcast %25 : vector<1x16xf32> to vector<32x16xf32>
    %83 = arith.addf %82, %81 : vector<32x16xf32>
    %c1 = arith.constant 1 : index
    %c0_47 = arith.constant 0 : index
    %c0_48 = arith.constant 0 : index
    %84 = vector.load %arg4[%c1, %c0_47, %c0_48] : memref<2x16x8xbf16, #tpu.memory_space<vmem>>, vector<1x16x8xbf16>
    %85 = vector.shape_cast %84 : vector<1x16x8xbf16> to vector<16x8xbf16>
    %cst_49 = arith.constant dense<0.000000e+00> : vector<32x8xf32>
    %86 = tpu.matmul %24, %85, %cst_49 {dimension_numbers = #tpu.dot_dimension_numbers<[1], [0], [0], [1], [0, 0, 1, 1], [], []>} : vector<32x16xbf16>, vector<16x8xbf16>, vector<32x8xf32> -> vector<32x8xf32>
    %c1_50 = arith.constant 1 : index
    %c0_51 = arith.constant 0 : index
    %c0_52 = arith.constant 0 : index
    %87 = vector.load %arg7[%c1_50, %c0_51, %c0_52] : memref<2x1x8xf32, #tpu.memory_space<vmem>>, vector<1x1x8xf32>
    %88 = vector.shape_cast %87 : vector<1x1x8xf32> to vector<1x8xf32>
    %89 = vector.broadcast %88 : vector<1x8xf32> to vector<32x8xf32>
    %90 = arith.addf %86, %89 : vector<32x8xf32>
    %c1_53 = arith.constant 1 : index
    %c0_54 = arith.constant 0 : index
    %c0_55 = arith.constant 0 : index
    %91 = vector.load %arg5[%c1_53, %c0_54, %c0_55] : memref<2x16x8xbf16, #tpu.memory_space<vmem>>, vector<1x16x8xbf16>
    %92 = vector.shape_cast %91 : vector<1x16x8xbf16> to vector<16x8xbf16>
    %cst_56 = arith.constant dense<0.000000e+00> : vector<32x8xf32>
    %93 = tpu.matmul %24, %92, %cst_56 {dimension_numbers = #tpu.dot_dimension_numbers<[1], [0], [0], [1], [0, 0, 1, 1], [], []>} : vector<32x16xbf16>, vector<16x8xbf16>, vector<32x8xf32> -> vector<32x8xf32>
    %c1_57 = arith.constant 1 : index
    %c0_58 = arith.constant 0 : index
    %c0_59 = arith.constant 0 : index
    %94 = vector.load %arg8[%c1_57, %c0_58, %c0_59] : memref<2x1x8xf32, #tpu.memory_space<vmem>>, vector<1x1x8xf32>
    %95 = vector.shape_cast %94 : vector<1x1x8xf32> to vector<1x8xf32>
    %96 = vector.broadcast %95 : vector<1x8xf32> to vector<32x8xf32>
    %97 = arith.addf %93, %96 : vector<32x8xf32>
    %c1_60 = arith.constant 1 : index
    %c0_61 = arith.constant 0 : index
    %c0_62 = arith.constant 0 : index
    %98 = vector.load %arg6[%c1_60, %c0_61, %c0_62] : memref<2x16x8xbf16, #tpu.memory_space<vmem>>, vector<1x16x8xbf16>
    %99 = vector.shape_cast %98 : vector<1x16x8xbf16> to vector<16x8xbf16>
    %cst_63 = arith.constant dense<0.000000e+00> : vector<32x8xf32>
    %100 = tpu.matmul %24, %99, %cst_63 {dimension_numbers = #tpu.dot_dimension_numbers<[1], [0], [0], [1], [0, 0, 1, 1], [], []>} : vector<32x16xbf16>, vector<16x8xbf16>, vector<32x8xf32> -> vector<32x8xf32>
    %c1_64 = arith.constant 1 : index
    %c0_65 = arith.constant 0 : index
    %c0_66 = arith.constant 0 : index
    %101 = vector.load %arg9[%c1_64, %c0_65, %c0_66] : memref<2x1x8xf32, #tpu.memory_space<vmem>>, vector<1x1x8xf32>
    %102 = vector.shape_cast %101 : vector<1x1x8xf32> to vector<1x8xf32>
    %103 = vector.broadcast %102 : vector<1x8xf32> to vector<32x8xf32>
    %104 = arith.addf %100, %103 : vector<32x8xf32>
    %105 = vector.shape_cast %90 : vector<32x8xf32> to vector<8x4x8xf32>
    %106 = arith.truncf %105 : vector<8x4x8xf32> to vector<8x4x8xbf16>
    %107 = vector.shape_cast %97 : vector<32x8xf32> to vector<8x4x8xf32>
    %108 = arith.truncf %107 : vector<8x4x8xf32> to vector<8x4x8xbf16>
    %109 = vector.shape_cast %104 : vector<32x8xf32> to vector<8x4x8xf32>
    %110 = arith.truncf %109 : vector<8x4x8xf32> to vector<8x4x8xbf16>
    "tpu.trace_start"() <{level = 10 : i32, message = "wnd,wmd->wnm"}> : () -> ()
    %cst_67 = arith.constant dense<0.000000e+00> : vector<8x4x4xf32>
    %111 = tpu.matmul %106, %108, %cst_67 {dimension_numbers = #tpu.dot_dimension_numbers<[2], [2], [1], [1], [0, 0, 0, 1, 1, 1], [0], [0]>} : vector<8x4x8xbf16>, vector<8x4x8xbf16>, vector<8x4x4xf32> -> vector<8x4x4xf32>
    "tpu.trace_stop"() : () -> ()
    %112 = vector.shape_cast %111 : vector<8x4x4xf32> to vector<2x4x4x4xf32>
    %c1_68 = arith.constant 1 : index
    %c0_69 = arith.constant 0 : index
    %c0_70 = arith.constant 0 : index
    %113 = vector.load %arg10[%c1_68, %c0_69, %c0_70] : memref<2x4x4xf32, #tpu.memory_space<vmem>>, vector<1x4x4xf32>
    %114 = vector.shape_cast %113 : vector<1x4x4xf32> to vector<4x4xf32>
    %115 = vector.shape_cast %114 : vector<4x4xf32> to vector<1x1x4x4xf32>
    %116 = vector.broadcast %115 : vector<1x1x4x4xf32> to vector<2x4x4x4xf32>
    %117 = arith.addf %112, %116 : vector<2x4x4x4xf32>
    %c0_71 = arith.constant 0 : index
    %c0_72 = arith.constant 0 : index
    %c0_73 = arith.constant 0 : index
    %118 = vector.load %arg11[%c0_71, %c0_72, %c0_73] : memref<4x4x4xf32, #tpu.memory_space<vmem>>, vector<4x4x4xf32>
    %119 = vector.shape_cast %118 : vector<4x4x4xf32> to vector<1x4x4x4xf32>
    %120 = vector.broadcast %119 : vector<1x4x4x4xf32> to vector<2x4x4x4xf32>
    %121 = arith.addf %117, %120 : vector<2x4x4x4xf32>
    %cst_74 = arith.constant dense<0xFF800000> : vector<2x4x4xf32>
    %122 = vector.multi_reduction <maximumf>, %121, %cst_74 [3] : vector<2x4x4x4xf32> to vector<2x4x4xf32>
    %123 = vector.shape_cast %122 : vector<2x4x4xf32> to vector<2x4x4x1xf32>
    %124 = vector.broadcast %123 : vector<2x4x4x1xf32> to vector<2x4x4x4xf32>
    %125 = arith.subf %121, %124 : vector<2x4x4x4xf32>
    %126 = math.exp %125 : vector<2x4x4x4xf32>
    %cst_75 = arith.constant dense<0.000000e+00> : vector<2x4x4xf32>
    %127 = vector.multi_reduction <add>, %126, %cst_75 [3] : vector<2x4x4x4xf32> to vector<2x4x4xf32>
    %128 = vector.shape_cast %127 : vector<2x4x4xf32> to vector<2x4x4x1xf32>
    %129 = tpu.reciprocal %128 {approx = true} : vector<2x4x4x1xf32> -> vector<2x4x4x1xf32>
    %130 = vector.broadcast %129 : vector<2x4x4x1xf32> to vector<2x4x4x4xf32>
    %131 = arith.mulf %126, %130 : vector<2x4x4x4xf32>
    %132 = vector.shape_cast %131 : vector<2x4x4x4xf32> to vector<8x4x4xf32>
    %133 = arith.truncf %132 : vector<8x4x4xf32> to vector<8x4x4xbf16>
    "tpu.trace_start"() <{level = 10 : i32, message = "wnm,wmd->wnd"}> : () -> ()
    %cst_76 = arith.constant dense<0.000000e+00> : vector<8x4x8xf32>
    %134 = tpu.matmul %133, %110, %cst_76 {dimension_numbers = #tpu.dot_dimension_numbers<[2], [1], [1], [2], [0, 0, 0, 1, 1, 2], [0], [0]>} : vector<8x4x4xbf16>, vector<8x4x8xbf16>, vector<8x4x8xf32> -> vector<8x4x8xf32>
    "tpu.trace_stop"() : () -> ()
    %135 = vector.shape_cast %134 : vector<8x4x8xf32> to vector<32x8xf32>
    %136 = arith.truncf %135 : vector<32x8xf32> to vector<32x8xbf16>
    %c1_77 = arith.constant 1 : index
    %c0_78 = arith.constant 0 : index
    %c0_79 = arith.constant 0 : index
    %137 = vector.load %arg12[%c1_77, %c0_78, %c0_79] : memref<2x8x16xbf16, #tpu.memory_space<vmem>>, vector<1x8x16xbf16>
    %138 = vector.shape_cast %137 : vector<1x8x16xbf16> to vector<8x16xbf16>
    %cst_80 = arith.constant dense<0.000000e+00> : vector<32x16xf32>
    %139 = tpu.matmul %136, %138, %cst_80 {dimension_numbers = #tpu.dot_dimension_numbers<[1], [0], [0], [1], [0, 0, 1, 1], [], []>} : vector<32x8xbf16>, vector<8x16xbf16>, vector<32x16xf32> -> vector<32x16xf32>
    %140 = arith.addf %83, %139 : vector<32x16xf32>
    %141 = arith.addf %1, %140 : vector<32x16xf32>
    %c0_81 = arith.constant 0 : index
    %c0_82 = arith.constant 0 : index
    %142 = vector.load %arg14[%c0_81, %c0_82] : memref<1x16xf32, #tpu.memory_space<vmem>>, vector<1x16xf32>
    %c0_83 = arith.constant 0 : index
    %c0_84 = arith.constant 0 : index
    %143 = vector.load %arg15[%c0_83, %c0_84] : memref<1x16xf32, #tpu.memory_space<vmem>>, vector<1x16xf32>
    %cst_85 = arith.constant dense<0.000000e+00> : vector<32xf32>
    %144 = vector.multi_reduction <add>, %141, %cst_85 [1] : vector<32x16xf32> to vector<32xf32>
    %145 = vector.shape_cast %144 : vector<32xf32> to vector<32x1xf32>
    %cst_86 = arith.constant 1.600000e+01 : f32
    %146 = vector.broadcast %cst_86 : f32 to vector<32x1xf32>
    %147 = arith.divf %145, %146 : vector<32x1xf32>
    %148 = vector.broadcast %147 : vector<32x1xf32> to vector<32x16xf32>
    %149 = arith.subf %141, %148 : vector<32x16xf32>
    %150 = arith.mulf %149, %149 : vector<32x16xf32>
    %cst_87 = arith.constant dense<0.000000e+00> : vector<32xf32>
    %151 = vector.multi_reduction <add>, %150, %cst_87 [1] : vector<32x16xf32> to vector<32xf32>
    %152 = vector.shape_cast %151 : vector<32xf32> to vector<32x1xf32>
    %cst_88 = arith.constant 1.600000e+01 : f32
    %153 = vector.broadcast %cst_88 : f32 to vector<32x1xf32>
    %154 = arith.divf %152, %153 : vector<32x1xf32>
    %cst_89 = arith.constant 9.99999974E-6 : f32
    %155 = vector.broadcast %cst_89 : f32 to vector<32x1xf32>
    %156 = arith.addf %154, %155 : vector<32x1xf32>
    %157 = math.rsqrt %156 : vector<32x1xf32>
    %158 = vector.broadcast %157 : vector<32x1xf32> to vector<32x16xf32>
    %159 = arith.mulf %149, %158 : vector<32x16xf32>
    %160 = vector.broadcast %142 : vector<1x16xf32> to vector<32x16xf32>
    %161 = arith.mulf %159, %160 : vector<32x16xf32>
    %162 = vector.broadcast %143 : vector<1x16xf32> to vector<32x16xf32>
    %163 = arith.addf %161, %162 : vector<32x16xf32>
    %164 = arith.truncf %163 : vector<32x16xf32> to vector<32x16xbf16>
    %c0_90 = arith.constant 0 : index
    %c0_91 = arith.constant 0 : index
    %165 = vector.load %arg16[%c0_90, %c0_91] : memref<16x64xbf16, #tpu.memory_space<vmem>>, vector<16x64xbf16>
    %cst_92 = arith.constant dense<0.000000e+00> : vector<32x64xf32>
    %166 = tpu.matmul %164, %165, %cst_92 {dimension_numbers = #tpu.dot_dimension_numbers<[1], [0], [0], [1], [0, 0, 1, 1], [], []>} : vector<32x16xbf16>, vector<16x64xbf16>, vector<32x64xf32> -> vector<32x64xf32>
    %c0_93 = arith.constant 0 : index
    %c0_94 = arith.constant 0 : index
    %167 = vector.load %arg17[%c0_93, %c0_94] : memref<1x64xf32, #tpu.memory_space<vmem>>, vector<1x64xf32>
    %168 = vector.broadcast %167 : vector<1x64xf32> to vector<32x64xf32>
    %169 = arith.addf %166, %168 : vector<32x64xf32>
    %170 = arith.mulf %169, %169 : vector<32x64xf32>
    %171 = arith.mulf %169, %170 : vector<32x64xf32>
    %cst_95 = arith.constant 4.471500e-02 : f32
    %172 = vector.broadcast %cst_95 : f32 to vector<32x64xf32>
    %173 = arith.mulf %172, %171 : vector<32x64xf32>
    %174 = arith.addf %169, %173 : vector<32x64xf32>
    %cst_96 = arith.constant 0.797884583 : f32
    %175 = vector.broadcast %cst_96 : f32 to vector<32x64xf32>
    %176 = arith.mulf %175, %174 : vector<32x64xf32>
    %177 = math.tanh %176 : vector<32x64xf32>
    %cst_97 = arith.constant 1.000000e+00 : f32
    %178 = vector.broadcast %cst_97 : f32 to vector<32x64xf32>
    %179 = arith.addf %178, %177 : vector<32x64xf32>
    %cst_98 = arith.constant 5.000000e-01 : f32
    %180 = vector.broadcast %cst_98 : f32 to vector<32x64xf32>
    %181 = arith.mulf %180, %179 : vector<32x64xf32>
    %182 = arith.mulf %169, %181 : vector<32x64xf32>
    %183 = arith.truncf %182 : vector<32x64xf32> to vector<32x64xbf16>
    %c0_99 = arith.constant 0 : index
    %c0_100 = arith.constant 0 : index
    %184 = vector.load %arg18[%c0_99, %c0_100] : memref<64x16xbf16, #tpu.memory_space<vmem>>, vector<64x16xbf16>
    %cst_101 = arith.constant dense<0.000000e+00> : vector<32x16xf32>
    %185 = tpu.matmul %183, %184, %cst_101 {dimension_numbers = #tpu.dot_dimension_numbers<[1], [0], [0], [1], [0, 0, 1, 1], [], []>} : vector<32x64xbf16>, vector<64x16xbf16>, vector<32x16xf32> -> vector<32x16xf32>
    %c0_102 = arith.constant 0 : index
    %c0_103 = arith.constant 0 : index
    %186 = vector.load %arg19[%c0_102, %c0_103] : memref<1x16xf32, #tpu.memory_space<vmem>>, vector<1x16xf32>
    %187 = vector.broadcast %186 : vector<1x16xf32> to vector<32x16xf32>
    %188 = arith.addf %185, %187 : vector<32x16xf32>
    %189 = arith.addf %141, %188 : vector<32x16xf32>
    %190 = vector.shape_cast %189 : vector<32x16xf32> to vector<2x16x16xf32>
    %c0_104 = arith.constant 0 : index
    %c0_105 = arith.constant 0 : index
    %c0_106 = arith.constant 0 : index
    %191 = vector.load %arg20[%c0_104, %c0_105, %c0_106] : memref<2x16x16xf32, #tpu.memory_space<vmem>>, vector<2x16x16xf32>
    tpu.vector_store %arg20[%c0_104, %c0_105, %c0_106], %190 {strides = array<i32>} : memref<2x16x16xf32, #tpu.memory_space<vmem>>, vector<2x16x16xf32>,
    return
  }
  func.func @transform_0(%arg0: i32) -> (i32, i32, i32) {
    %c0_i32 = arith.constant 0 : i32
    %c0_i32_0 = arith.constant 0 : i32
    %c0_i32_1 = arith.constant 0 : i32
    return %arg0, %c0_i32, %c0_i32_0 : i32, i32, i32
  }
  func.func @transform_1(%arg0: i32) -> (i32, i32) {
    %c0_i32 = arith.constant 0 : i32
    %c0_i32_0 = arith.constant 0 : i32
    %c0_i32_1 = arith.constant 0 : i32
    return %c0_i32, %c0_i32_0 : i32, i32
  }
  func.func @transform_2(%arg0: i32) -> (i32, i32) {
    %c0_i32 = arith.constant 0 : i32
    %c0_i32_0 = arith.constant 0 : i32
    %c0_i32_1 = arith.constant 0 : i32
    return %c0_i32, %c0_i32_0 : i32, i32
  }
  func.func @transform_3(%arg0: i32) -> (i32, i32, i32) {
    %c0_i32 = arith.constant 0 : i32
    %c0_i32_0 = arith.constant 0 : i32
    %c0_i32_1 = arith.constant 0 : i32
    %c0_i32_2 = arith.constant 0 : i32
    return %c0_i32, %c0_i32_0, %c0_i32_1 : i32, i32, i32
  }
  func.func @transform_4(%arg0: i32) -> (i32, i32, i32) {
    %c0_i32 = arith.constant 0 : i32
    %c0_i32_0 = arith.constant 0 : i32
    %c0_i32_1 = arith.constant 0 : i32
    %c0_i32_2 = arith.constant 0 : i32
    return %c0_i32, %c0_i32_0, %c0_i32_1 : i32, i32, i32
  }
  func.func @transform_5(%arg0: i32) -> (i32, i32, i32) {
    %c0_i32 = arith.constant 0 : i32
    %c0_i32_0 = arith.constant 0 : i32
    %c0_i32_1 = arith.constant 0 : i32
    %c0_i32_2 = arith.constant 0 : i32
    return %c0_i32, %c0_i32_0, %c0_i32_1 : i32, i32, i32
  }
  func.func @transform_6(%arg0: i32) -> (i32, i32, i32) {
    %c0_i32 = arith.constant 0 : i32
    %c0_i32_0 = arith.constant 0 : i32
    %c0_i32_1 = arith.constant 0 : i32
    %c0_i32_2 = arith.constant 0 : i32
    return %c0_i32, %c0_i32_0, %c0_i32_1 : i32, i32, i32
  }
  func.func @transform_7(%arg0: i32) -> (i32, i32, i32) {
    %c0_i32 = arith.constant 0 : i32
    %c0_i32_0 = arith.constant 0 : i32
    %c0_i32_1 = arith.constant 0 : i32
    %c0_i32_2 = arith.constant 0 : i32
    return %c0_i32, %c0_i32_0, %c0_i32_1 : i32, i32, i32
  }
  func.func @transform_8(%arg0: i32) -> (i32, i32, i32) {
    %c0_i32 = arith.constant 0 : i32
    %c0_i32_0 = arith.constant 0 : i32
    %c0_i32_1 = arith.constant 0 : i32
    %c0_i32_2 = arith.constant 0 : i32
    return %c0_i32, %c0_i32_0, %c0_i32_1 : i32, i32, i32
  }
  func.func @transform_9(%arg0: i32) -> (i32, i32, i32) {
    %c0_i32 = arith.constant 0 : i32
    %c0_i32_0 = arith.constant 0 : i32
    %c0_i32_1 = arith.constant 0 : i32
    %c0_i32_2 = arith.constant 0 : i32
    return %c0_i32, %c0_i32_0, %c0_i32_1 : i32, i32, i32
  }
  func.func @transform_10(%arg0: i32) -> (i32, i32, i32) {
    %c0_i32 = arith.constant 0 : i32
    %c0_i32_0 = arith.constant 0 : i32
    %c0_i32_1 = arith.constant 0 : i32
    %c0_i32_2 = arith.constant 0 : i32
    return %c0_i32, %c0_i32_0, %c0_i32_1 : i32, i32, i32
  }
  func.func @transform_11(%arg0: i32) -> (i32, i32, i32) {
    %c0_i32 = arith.constant 0 : i32
    %c0_i32_0 = arith.constant 0 : i32
    %c0_i32_1 = arith.constant 0 : i32
    %c0_i32_2 = arith.constant 0 : i32
    return %c0_i32, %c0_i32_0, %c0_i32_1 : i32, i32, i32
  }
  func.func @transform_12(%arg0: i32) -> (i32, i32) {
    %c0_i32 = arith.constant 0 : i32
    %c0_i32_0 = arith.constant 0 : i32
    %c0_i32_1 = arith.constant 0 : i32
    return %c0_i32, %c0_i32_0 : i32, i32
  }
  func.func @transform_13(%arg0: i32) -> (i32, i32) {
    %c0_i32 = arith.constant 0 : i32
    %c0_i32_0 = arith.constant 0 : i32
    %c0_i32_1 = arith.constant 0 : i32
    return %c0_i32, %c0_i32_0 : i32, i32
  }
  func.func @transform_14(%arg0: i32) -> (i32, i32) {
    %c0_i32 = arith.constant 0 : i32
    %c0_i32_0 = arith.constant 0 : i32
    %c0_i32_1 = arith.constant 0 : i32
    return %c0_i32, %c0_i32_0 : i32, i32
  }
  func.func @transform_15(%arg0: i32) -> (i32, i32) {
    %c0_i32 = arith.constant 0 : i32
    %c0_i32_0 = arith.constant 0 : i32
    %c0_i32_1 = arith.constant 0 : i32
    return %c0_i32, %c0_i32_0 : i32, i32
  }
  func.func @transform_16(%arg0: i32) -> (i32, i32) {
    %c0_i32 = arith.constant 0 : i32
    %c0_i32_0 = arith.constant 0 : i32
    %c0_i32_1 = arith.constant 0 : i32
    return %c0_i32, %c0_i32_0 : i32, i32
  }
  func.func @transform_17(%arg0: i32) -> (i32, i32) {
    %c0_i32 = arith.constant 0 : i32
    %c0_i32_0 = arith.constant 0 : i32
    %c0_i32_1 = arith.constant 0 : i32
    return %c0_i32, %c0_i32_0 : i32, i32
  }
  func.func @transform_18(%arg0: i32) -> (i32, i32) {
    %c0_i32 = arith.constant 0 : i32
    %c0_i32_0 = arith.constant 0 : i32
    %c0_i32_1 = arith.constant 0 : i32
    return %c0_i32, %c0_i32_0 : i32, i32
  }
  func.func @transform_19(%arg0: i32) -> (i32, i32, i32) {
    %c0_i32 = arith.constant 0 : i32
    %c0_i32_0 = arith.constant 0 : i32
    %c0_i32_1 = arith.constant 0 : i32
    return %arg0, %c0_i32, %c0_i32_0 : i32, i32, i32
  }
}

module attributes {stable_mosaic.version = 11 : i64} {
  func.func @_downsample_kernel(%arg0: i32, %arg1: memref<2x4x64xf32, #tpu.memory_space<vmem>>, %arg2: memref<1x64xf32, #tpu.memory_space<vmem>>, %arg3: memref<1x64xf32, #tpu.memory_space<vmem>>, %arg4: memref<64x32xbf16, #tpu.memory_space<vmem>>, %arg5: memref<2x4x32xf32, #tpu.memory_space<vmem>>) attributes {dimension_semantics = [#tpu.dimension_semantics<parallel>], iteration_bounds = array<i64: 2>, scalar_prefetch = 0 : i64, scratch_operands = 0 : i64, tpu.core_type = #tpu.core_type<tc>, window_params = [{transform_indices = @transform_0, window_bounds = array<i64: 2, 4, 64>}, {pipeline_mode = #tpu.pipeline_mode<synchronous>, transform_indices = @transform_1, window_bounds = array<i64: 1, 64>}, {pipeline_mode = #tpu.pipeline_mode<synchronous>, transform_indices = @transform_2, window_bounds = array<i64: 1, 64>}, {pipeline_mode = #tpu.pipeline_mode<synchronous>, transform_indices = @transform_3, window_bounds = array<i64: 64, 32>}, {transform_indices = @transform_4, window_bounds = array<i64: 2, 4, 32>}]} {
    %c0 = arith.constant 0 : index
    %c0_0 = arith.constant 0 : index
    %c0_1 = arith.constant 0 : index
    %0 = vector.load %arg1[%c0, %c0_0, %c0_1] : memref<2x4x64xf32, #tpu.memory_space<vmem>>, vector<2x4x64xf32>
    %1 = vector.shape_cast %0 : vector<2x4x64xf32> to vector<8x64xf32>
    %c0_2 = arith.constant 0 : index
    %c0_3 = arith.constant 0 : index
    %2 = vector.load %arg2[%c0_2, %c0_3] : memref<1x64xf32, #tpu.memory_space<vmem>>, vector<1x64xf32>
    %c0_4 = arith.constant 0 : index
    %c0_5 = arith.constant 0 : index
    %3 = vector.load %arg3[%c0_4, %c0_5] : memref<1x64xf32, #tpu.memory_space<vmem>>, vector<1x64xf32>
    %cst = arith.constant dense<0.000000e+00> : vector<8xf32>
    %4 = vector.multi_reduction <add>, %1, %cst [1] : vector<8x64xf32> to vector<8xf32>
    %5 = vector.shape_cast %4 : vector<8xf32> to vector<8x1xf32>
    %cst_6 = arith.constant 6.400000e+01 : f32
    %6 = vector.broadcast %cst_6 : f32 to vector<8x1xf32>
    %7 = arith.divf %5, %6 : vector<8x1xf32>
    %8 = vector.broadcast %7 : vector<8x1xf32> to vector<8x64xf32>
    %9 = arith.subf %1, %8 : vector<8x64xf32>
    %10 = arith.mulf %9, %9 : vector<8x64xf32>
    %cst_7 = arith.constant dense<0.000000e+00> : vector<8xf32>
    %11 = vector.multi_reduction <add>, %10, %cst_7 [1] : vector<8x64xf32> to vector<8xf32>
    %12 = vector.shape_cast %11 : vector<8xf32> to vector<8x1xf32>
    %cst_8 = arith.constant 6.400000e+01 : f32
    %13 = vector.broadcast %cst_8 : f32 to vector<8x1xf32>
    %14 = arith.divf %12, %13 : vector<8x1xf32>
    %cst_9 = arith.constant 9.99999974E-6 : f32
    %15 = vector.broadcast %cst_9 : f32 to vector<8x1xf32>
    %16 = arith.addf %14, %15 : vector<8x1xf32>
    %17 = math.rsqrt %16 : vector<8x1xf32>
    %18 = vector.broadcast %17 : vector<8x1xf32> to vector<8x64xf32>
    %19 = arith.mulf %9, %18 : vector<8x64xf32>
    %20 = vector.broadcast %2 : vector<1x64xf32> to vector<8x64xf32>
    %21 = arith.mulf %19, %20 : vector<8x64xf32>
    %22 = vector.broadcast %3 : vector<1x64xf32> to vector<8x64xf32>
    %23 = arith.addf %21, %22 : vector<8x64xf32>
    %c0_10 = arith.constant 0 : index
    %c0_11 = arith.constant 0 : index
    %24 = vector.load %arg4[%c0_10, %c0_11] : memref<64x32xbf16, #tpu.memory_space<vmem>>, vector<64x32xbf16>
    %25 = arith.truncf %23 : vector<8x64xf32> to vector<8x64xbf16>
    %cst_12 = arith.constant dense<0.000000e+00> : vector<8x32xf32>
    %26 = tpu.matmul %25, %24, %cst_12 {dimension_numbers = #tpu.dot_dimension_numbers<[1], [0], [0], [1], [0, 0, 1, 1], [], []>} : vector<8x64xbf16>, vector<64x32xbf16>, vector<8x32xf32> -> vector<8x32xf32>
    %27 = vector.shape_cast %26 : vector<8x32xf32> to vector<2x4x32xf32>
    %c0_13 = arith.constant 0 : index
    %c0_14 = arith.constant 0 : index
    %c0_15 = arith.constant 0 : index
    %28 = vector.load %arg5[%c0_13, %c0_14, %c0_15] : memref<2x4x32xf32, #tpu.memory_space<vmem>>, vector<2x4x32xf32>
    tpu.vector_store %arg5[%c0_13, %c0_14, %c0_15], %27 {strides = array<i32>} : memref<2x4x32xf32, #tpu.memory_space<vmem>>, vector<2x4x32xf32>,
    return
  }
  func.func @transform_0(%arg0: i32) -> (i32, i32, i32) {
    %c0_i32 = arith.constant 0 : i32
    %c0_i32_0 = arith.constant 0 : i32
    %c0_i32_1 = arith.constant 0 : i32
    return %arg0, %c0_i32, %c0_i32_0 : i32, i32, i32
  }
  func.func @transform_1(%arg0: i32) -> (i32, i32) {
    %c0_i32 = arith.constant 0 : i32
    %c0_i32_0 = arith.constant 0 : i32
    %c0_i32_1 = arith.constant 0 : i32
    return %c0_i32, %c0_i32_0 : i32, i32
  }
  func.func @transform_2(%arg0: i32) -> (i32, i32) {
    %c0_i32 = arith.constant 0 : i32
    %c0_i32_0 = arith.constant 0 : i32
    %c0_i32_1 = arith.constant 0 : i32
    return %c0_i32, %c0_i32_0 : i32, i32
  }
  func.func @transform_3(%arg0: i32) -> (i32, i32) {
    %c0_i32 = arith.constant 0 : i32
    %c0_i32_0 = arith.constant 0 : i32
    %c0_i32_1 = arith.constant 0 : i32
    return %c0_i32, %c0_i32_0 : i32, i32
  }
  func.func @transform_4(%arg0: i32) -> (i32, i32, i32) {
    %c0_i32 = arith.constant 0 : i32
    %c0_i32_0 = arith.constant 0 : i32
    %c0_i32_1 = arith.constant 0 : i32
    return %arg0, %c0_i32, %c0_i32_0 : i32, i32, i32
  }
}

module attributes {stable_mosaic.version = 11 : i64} {
  func.func @_swin_block_kernel(%arg0: i32, %arg1: memref<2x4x32xf32, #tpu.memory_space<vmem>>, %arg2: memref<1x32xf32, #tpu.memory_space<vmem>>, %arg3: memref<1x32xf32, #tpu.memory_space<vmem>>, %arg4: memref<4x32x8xbf16, #tpu.memory_space<vmem>>, %arg5: memref<4x32x8xbf16, #tpu.memory_space<vmem>>, %arg6: memref<4x32x8xbf16, #tpu.memory_space<vmem>>, %arg7: memref<4x1x8xf32, #tpu.memory_space<vmem>>, %arg8: memref<4x1x8xf32, #tpu.memory_space<vmem>>, %arg9: memref<4x1x8xf32, #tpu.memory_space<vmem>>, %arg10: memref<4x4x4xf32, #tpu.memory_space<vmem>>, %arg11: memref<4x8x32xbf16, #tpu.memory_space<vmem>>, %arg12: memref<1x32xf32, #tpu.memory_space<vmem>>, %arg13: memref<1x32xf32, #tpu.memory_space<vmem>>, %arg14: memref<1x32xf32, #tpu.memory_space<vmem>>, %arg15: memref<32x128xbf16, #tpu.memory_space<vmem>>, %arg16: memref<1x128xf32, #tpu.memory_space<vmem>>, %arg17: memref<128x32xbf16, #tpu.memory_space<vmem>>, %arg18: memref<1x32xf32, #tpu.memory_space<vmem>>, %arg19: memref<2x4x32xf32, #tpu.memory_space<vmem>>) attributes {dimension_semantics = [#tpu.dimension_semantics<parallel>], iteration_bounds = array<i64: 2>, scalar_prefetch = 0 : i64, scratch_operands = 0 : i64, tpu.core_type = #tpu.core_type<tc>, window_params = [{transform_indices = @transform_0, window_bounds = array<i64: 2, 4, 32>}, {pipeline_mode = #tpu.pipeline_mode<synchronous>, transform_indices = @transform_1, window_bounds = array<i64: 1, 32>}, {pipeline_mode = #tpu.pipeline_mode<synchronous>, transform_indices = @transform_2, window_bounds = array<i64: 1, 32>}, {pipeline_mode = #tpu.pipeline_mode<synchronous>, transform_indices = @transform_3, window_bounds = array<i64: 4, 32, 8>}, {pipeline_mode = #tpu.pipeline_mode<synchronous>, transform_indices = @transform_4, window_bounds = array<i64: 4, 32, 8>}, {pipeline_mode = #tpu.pipeline_mode<synchronous>, transform_indices = @transform_5, window_bounds = array<i64: 4, 32, 8>}, {pipeline_mode = #tpu.pipeline_mode<synchronous>, transform_indices = @transform_6, window_bounds = array<i64: 4, 1, 8>}, {pipeline_mode = #tpu.pipeline_mode<synchronous>, transform_indices = @transform_7, window_bounds = array<i64: 4, 1, 8>}, {pipeline_mode = #tpu.pipeline_mode<synchronous>, transform_indices = @transform_8, window_bounds = array<i64: 4, 1, 8>}, {pipeline_mode = #tpu.pipeline_mode<synchronous>, transform_indices = @transform_9, window_bounds = array<i64: 4, 4, 4>}, {pipeline_mode = #tpu.pipeline_mode<synchronous>, transform_indices = @transform_10, window_bounds = array<i64: 4, 8, 32>}, {pipeline_mode = #tpu.pipeline_mode<synchronous>, transform_indices = @transform_11, window_bounds = array<i64: 1, 32>}, {pipeline_mode = #tpu.pipeline_mode<synchronous>, transform_indices = @transform_12, window_bounds = array<i64: 1, 32>}, {pipeline_mode = #tpu.pipeline_mode<synchronous>, transform_indices = @transform_13, window_bounds = array<i64: 1, 32>}, {pipeline_mode = #tpu.pipeline_mode<synchronous>, transform_indices = @transform_14, window_bounds = array<i64: 32, 128>}, {pipeline_mode = #tpu.pipeline_mode<synchronous>, transform_indices = @transform_15, window_bounds = array<i64: 1, 128>}, {pipeline_mode = #tpu.pipeline_mode<synchronous>, transform_indices = @transform_16, window_bounds = array<i64: 128, 32>}, {pipeline_mode = #tpu.pipeline_mode<synchronous>, transform_indices = @transform_17, window_bounds = array<i64: 1, 32>}, {transform_indices = @transform_18, window_bounds = array<i64: 2, 4, 32>}]} {
    %c0 = arith.constant 0 : index
    %c0_0 = arith.constant 0 : index
    %c0_1 = arith.constant 0 : index
    %0 = vector.load %arg1[%c0, %c0_0, %c0_1] : memref<2x4x32xf32, #tpu.memory_space<vmem>>, vector<2x4x32xf32>
    %1 = vector.shape_cast %0 : vector<2x4x32xf32> to vector<8x32xf32>
    %c0_2 = arith.constant 0 : index
    %c0_3 = arith.constant 0 : index
    %2 = vector.load %arg2[%c0_2, %c0_3] : memref<1x32xf32, #tpu.memory_space<vmem>>, vector<1x32xf32>
    %c0_4 = arith.constant 0 : index
    %c0_5 = arith.constant 0 : index
    %3 = vector.load %arg3[%c0_4, %c0_5] : memref<1x32xf32, #tpu.memory_space<vmem>>, vector<1x32xf32>
    %cst = arith.constant dense<0.000000e+00> : vector<8xf32>
    %4 = vector.multi_reduction <add>, %1, %cst [1] : vector<8x32xf32> to vector<8xf32>
    %5 = vector.shape_cast %4 : vector<8xf32> to vector<8x1xf32>
    %cst_6 = arith.constant 3.200000e+01 : f32
    %6 = vector.broadcast %cst_6 : f32 to vector<8x1xf32>
    %7 = arith.divf %5, %6 : vector<8x1xf32>
    %8 = vector.broadcast %7 : vector<8x1xf32> to vector<8x32xf32>
    %9 = arith.subf %1, %8 : vector<8x32xf32>
    %10 = arith.mulf %9, %9 : vector<8x32xf32>
    %cst_7 = arith.constant dense<0.000000e+00> : vector<8xf32>
    %11 = vector.multi_reduction <add>, %10, %cst_7 [1] : vector<8x32xf32> to vector<8xf32>
    %12 = vector.shape_cast %11 : vector<8xf32> to vector<8x1xf32>
    %cst_8 = arith.constant 3.200000e+01 : f32
    %13 = vector.broadcast %cst_8 : f32 to vector<8x1xf32>
    %14 = arith.divf %12, %13 : vector<8x1xf32>
    %cst_9 = arith.constant 9.99999974E-6 : f32
    %15 = vector.broadcast %cst_9 : f32 to vector<8x1xf32>
    %16 = arith.addf %14, %15 : vector<8x1xf32>
    %17 = math.rsqrt %16 : vector<8x1xf32>
    %18 = vector.broadcast %17 : vector<8x1xf32> to vector<8x32xf32>
    %19 = arith.mulf %9, %18 : vector<8x32xf32>
    %20 = vector.broadcast %2 : vector<1x32xf32> to vector<8x32xf32>
    %21 = arith.mulf %19, %20 : vector<8x32xf32>
    %22 = vector.broadcast %3 : vector<1x32xf32> to vector<8x32xf32>
    %23 = arith.addf %21, %22 : vector<8x32xf32>
    %24 = arith.truncf %23 : vector<8x32xf32> to vector<8x32xbf16>
    %c0_10 = arith.constant 0 : index
    %c0_11 = arith.constant 0 : index
    %25 = vector.load %arg12[%c0_10, %c0_11] : memref<1x32xf32, #tpu.memory_space<vmem>>, vector<1x32xf32>
    %c0_12 = arith.constant 0 : index
    %c0_13 = arith.constant 0 : index
    %c0_14 = arith.constant 0 : index
    %26 = vector.load %arg4[%c0_12, %c0_13, %c0_14] : memref<4x32x8xbf16, #tpu.memory_space<vmem>>, vector<1x32x8xbf16>
    %27 = vector.shape_cast %26 : vector<1x32x8xbf16> to vector<32x8xbf16>
    %cst_15 = arith.constant dense<0.000000e+00> : vector<8x8xf32>
    %28 = tpu.matmul %24, %27, %cst_15 {dimension_numbers = #tpu.dot_dimension_numbers<[1], [0], [0], [1], [0, 0, 1, 1], [], []>} : vector<8x32xbf16>, vector<32x8xbf16>, vector<8x8xf32> -> vector<8x8xf32>
    %c0_16 = arith.constant 0 : index
    %c0_17 = arith.constant 0 : index
    %c0_18 = arith.constant 0 : index
    %29 = vector.load %arg7[%c0_16, %c0_17, %c0_18] : memref<4x1x8xf32, #tpu.memory_space<vmem>>, vector<1x1x8xf32>
    %30 = vector.shape_cast %29 : vector<1x1x8xf32> to vector<1x8xf32>
    %31 = vector.broadcast %30 : vector<1x8xf32> to vector<8x8xf32>
    %32 = arith.addf %28, %31 : vector<8x8xf32>
    %c0_19 = arith.constant 0 : index
    %c0_20 = arith.constant 0 : index
    %c0_21 = arith.constant 0 : index
    %33 = vector.load %arg5[%c0_19, %c0_20, %c0_21] : memref<4x32x8xbf16, #tpu.memory_space<vmem>>, vector<1x32x8xbf16>
    %34 = vector.shape_cast %33 : vector<1x32x8xbf16> to vector<32x8xbf16>
    %cst_22 = arith.constant dense<0.000000e+00> : vector<8x8xf32>
    %35 = tpu.matmul %24, %34, %cst_22 {dimension_numbers = #tpu.dot_dimension_numbers<[1], [0], [0], [1], [0, 0, 1, 1], [], []>} : vector<8x32xbf16>, vector<32x8xbf16>, vector<8x8xf32> -> vector<8x8xf32>
    %c0_23 = arith.constant 0 : index
    %c0_24 = arith.constant 0 : index
    %c0_25 = arith.constant 0 : index
    %36 = vector.load %arg8[%c0_23, %c0_24, %c0_25] : memref<4x1x8xf32, #tpu.memory_space<vmem>>, vector<1x1x8xf32>
    %37 = vector.shape_cast %36 : vector<1x1x8xf32> to vector<1x8xf32>
    %38 = vector.broadcast %37 : vector<1x8xf32> to vector<8x8xf32>
    %39 = arith.addf %35, %38 : vector<8x8xf32>
    %c0_26 = arith.constant 0 : index
    %c0_27 = arith.constant 0 : index
    %c0_28 = arith.constant 0 : index
    %40 = vector.load %arg6[%c0_26, %c0_27, %c0_28] : memref<4x32x8xbf16, #tpu.memory_space<vmem>>, vector<1x32x8xbf16>
    %41 = vector.shape_cast %40 : vector<1x32x8xbf16> to vector<32x8xbf16>
    %cst_29 = arith.constant dense<0.000000e+00> : vector<8x8xf32>
    %42 = tpu.matmul %24, %41, %cst_29 {dimension_numbers = #tpu.dot_dimension_numbers<[1], [0], [0], [1], [0, 0, 1, 1], [], []>} : vector<8x32xbf16>, vector<32x8xbf16>, vector<8x8xf32> -> vector<8x8xf32>
    %c0_30 = arith.constant 0 : index
    %c0_31 = arith.constant 0 : index
    %c0_32 = arith.constant 0 : index
    %43 = vector.load %arg9[%c0_30, %c0_31, %c0_32] : memref<4x1x8xf32, #tpu.memory_space<vmem>>, vector<1x1x8xf32>
    %44 = vector.shape_cast %43 : vector<1x1x8xf32> to vector<1x8xf32>
    %45 = vector.broadcast %44 : vector<1x8xf32> to vector<8x8xf32>
    %46 = arith.addf %42, %45 : vector<8x8xf32>
    %47 = vector.shape_cast %32 : vector<8x8xf32> to vector<2x4x8xf32>
    %48 = arith.truncf %47 : vector<2x4x8xf32> to vector<2x4x8xbf16>
    %49 = vector.shape_cast %39 : vector<8x8xf32> to vector<2x4x8xf32>
    %50 = arith.truncf %49 : vector<2x4x8xf32> to vector<2x4x8xbf16>
    %51 = vector.shape_cast %46 : vector<8x8xf32> to vector<2x4x8xf32>
    %52 = arith.truncf %51 : vector<2x4x8xf32> to vector<2x4x8xbf16>
    "tpu.trace_start"() <{level = 10 : i32, message = "wnd,wmd->wnm"}> : () -> ()
    %cst_33 = arith.constant dense<0.000000e+00> : vector<2x4x4xf32>
    %53 = tpu.matmul %48, %50, %cst_33 {dimension_numbers = #tpu.dot_dimension_numbers<[2], [2], [1], [1], [0, 0, 0, 1, 1, 1], [0], [0]>} : vector<2x4x8xbf16>, vector<2x4x8xbf16>, vector<2x4x4xf32> -> vector<2x4x4xf32>
    "tpu.trace_stop"() : () -> ()
    %54 = vector.shape_cast %53 : vector<2x4x4xf32> to vector<2x1x4x4xf32>
    %c0_34 = arith.constant 0 : index
    %c0_35 = arith.constant 0 : index
    %c0_36 = arith.constant 0 : index
    %55 = vector.load %arg10[%c0_34, %c0_35, %c0_36] : memref<4x4x4xf32, #tpu.memory_space<vmem>>, vector<1x4x4xf32>
    %56 = vector.shape_cast %55 : vector<1x4x4xf32> to vector<4x4xf32>
    %57 = vector.shape_cast %56 : vector<4x4xf32> to vector<1x1x4x4xf32>
    %58 = vector.broadcast %57 : vector<1x1x4x4xf32> to vector<2x1x4x4xf32>
    %59 = arith.addf %54, %58 : vector<2x1x4x4xf32>
    %cst_37 = arith.constant dense<0xFF800000> : vector<2x1x4xf32>
    %60 = vector.multi_reduction <maximumf>, %59, %cst_37 [3] : vector<2x1x4x4xf32> to vector<2x1x4xf32>
    %61 = vector.shape_cast %60 : vector<2x1x4xf32> to vector<2x1x4x1xf32>
    %62 = vector.broadcast %61 : vector<2x1x4x1xf32> to vector<2x1x4x4xf32>
    %63 = arith.subf %59, %62 : vector<2x1x4x4xf32>
    %64 = math.exp %63 : vector<2x1x4x4xf32>
    %cst_38 = arith.constant dense<0.000000e+00> : vector<2x1x4xf32>
    %65 = vector.multi_reduction <add>, %64, %cst_38 [3] : vector<2x1x4x4xf32> to vector<2x1x4xf32>
    %66 = vector.shape_cast %65 : vector<2x1x4xf32> to vector<2x1x4x1xf32>
    %67 = tpu.reciprocal %66 {approx = true} : vector<2x1x4x1xf32> -> vector<2x1x4x1xf32>
    %68 = vector.broadcast %67 : vector<2x1x4x1xf32> to vector<2x1x4x4xf32>
    %69 = arith.mulf %64, %68 : vector<2x1x4x4xf32>
    %70 = vector.shape_cast %69 : vector<2x1x4x4xf32> to vector<2x4x4xf32>
    %71 = arith.truncf %70 : vector<2x4x4xf32> to vector<2x4x4xbf16>
    "tpu.trace_start"() <{level = 10 : i32, message = "wnm,wmd->wnd"}> : () -> ()
    %cst_39 = arith.constant dense<0.000000e+00> : vector<2x4x8xf32>
    %72 = tpu.matmul %71, %52, %cst_39 {dimension_numbers = #tpu.dot_dimension_numbers<[2], [1], [1], [2], [0, 0, 0, 1, 1, 2], [0], [0]>} : vector<2x4x4xbf16>, vector<2x4x8xbf16>, vector<2x4x8xf32> -> vector<2x4x8xf32>
    "tpu.trace_stop"() : () -> ()
    %73 = vector.shape_cast %72 : vector<2x4x8xf32> to vector<8x8xf32>
    %74 = arith.truncf %73 : vector<8x8xf32> to vector<8x8xbf16>
    %c0_40 = arith.constant 0 : index
    %c0_41 = arith.constant 0 : index
    %c0_42 = arith.constant 0 : index
    %75 = vector.load %arg11[%c0_40, %c0_41, %c0_42] : memref<4x8x32xbf16, #tpu.memory_space<vmem>>, vector<1x8x32xbf16>
    %76 = vector.shape_cast %75 : vector<1x8x32xbf16> to vector<8x32xbf16>
    %cst_43 = arith.constant dense<0.000000e+00> : vector<8x32xf32>
    %77 = tpu.matmul %74, %76, %cst_43 {dimension_numbers = #tpu.dot_dimension_numbers<[1], [0], [0], [1], [0, 0, 1, 1], [], []>} : vector<8x8xbf16>, vector<8x32xbf16>, vector<8x32xf32> -> vector<8x32xf32>
    %78 = vector.broadcast %25 : vector<1x32xf32> to vector<8x32xf32>
    %79 = arith.addf %78, %77 : vector<8x32xf32>
    %c1 = arith.constant 1 : index
    %c0_44 = arith.constant 0 : index
    %c0_45 = arith.constant 0 : index
    %80 = vector.load %arg4[%c1, %c0_44, %c0_45] : memref<4x32x8xbf16, #tpu.memory_space<vmem>>, vector<1x32x8xbf16>
    %81 = vector.shape_cast %80 : vector<1x32x8xbf16> to vector<32x8xbf16>
    %cst_46 = arith.constant dense<0.000000e+00> : vector<8x8xf32>
    %82 = tpu.matmul %24, %81, %cst_46 {dimension_numbers = #tpu.dot_dimension_numbers<[1], [0], [0], [1], [0, 0, 1, 1], [], []>} : vector<8x32xbf16>, vector<32x8xbf16>, vector<8x8xf32> -> vector<8x8xf32>
    %c1_47 = arith.constant 1 : index
    %c0_48 = arith.constant 0 : index
    %c0_49 = arith.constant 0 : index
    %83 = vector.load %arg7[%c1_47, %c0_48, %c0_49] : memref<4x1x8xf32, #tpu.memory_space<vmem>>, vector<1x1x8xf32>
    %84 = vector.shape_cast %83 : vector<1x1x8xf32> to vector<1x8xf32>
    %85 = vector.broadcast %84 : vector<1x8xf32> to vector<8x8xf32>
    %86 = arith.addf %82, %85 : vector<8x8xf32>
    %c1_50 = arith.constant 1 : index
    %c0_51 = arith.constant 0 : index
    %c0_52 = arith.constant 0 : index
    %87 = vector.load %arg5[%c1_50, %c0_51, %c0_52] : memref<4x32x8xbf16, #tpu.memory_space<vmem>>, vector<1x32x8xbf16>
    %88 = vector.shape_cast %87 : vector<1x32x8xbf16> to vector<32x8xbf16>
    %cst_53 = arith.constant dense<0.000000e+00> : vector<8x8xf32>
    %89 = tpu.matmul %24, %88, %cst_53 {dimension_numbers = #tpu.dot_dimension_numbers<[1], [0], [0], [1], [0, 0, 1, 1], [], []>} : vector<8x32xbf16>, vector<32x8xbf16>, vector<8x8xf32> -> vector<8x8xf32>
    %c1_54 = arith.constant 1 : index
    %c0_55 = arith.constant 0 : index
    %c0_56 = arith.constant 0 : index
    %90 = vector.load %arg8[%c1_54, %c0_55, %c0_56] : memref<4x1x8xf32, #tpu.memory_space<vmem>>, vector<1x1x8xf32>
    %91 = vector.shape_cast %90 : vector<1x1x8xf32> to vector<1x8xf32>
    %92 = vector.broadcast %91 : vector<1x8xf32> to vector<8x8xf32>
    %93 = arith.addf %89, %92 : vector<8x8xf32>
    %c1_57 = arith.constant 1 : index
    %c0_58 = arith.constant 0 : index
    %c0_59 = arith.constant 0 : index
    %94 = vector.load %arg6[%c1_57, %c0_58, %c0_59] : memref<4x32x8xbf16, #tpu.memory_space<vmem>>, vector<1x32x8xbf16>
    %95 = vector.shape_cast %94 : vector<1x32x8xbf16> to vector<32x8xbf16>
    %cst_60 = arith.constant dense<0.000000e+00> : vector<8x8xf32>
    %96 = tpu.matmul %24, %95, %cst_60 {dimension_numbers = #tpu.dot_dimension_numbers<[1], [0], [0], [1], [0, 0, 1, 1], [], []>} : vector<8x32xbf16>, vector<32x8xbf16>, vector<8x8xf32> -> vector<8x8xf32>
    %c1_61 = arith.constant 1 : index
    %c0_62 = arith.constant 0 : index
    %c0_63 = arith.constant 0 : index
    %97 = vector.load %arg9[%c1_61, %c0_62, %c0_63] : memref<4x1x8xf32, #tpu.memory_space<vmem>>, vector<1x1x8xf32>
    %98 = vector.shape_cast %97 : vector<1x1x8xf32> to vector<1x8xf32>
    %99 = vector.broadcast %98 : vector<1x8xf32> to vector<8x8xf32>
    %100 = arith.addf %96, %99 : vector<8x8xf32>
    %101 = vector.shape_cast %86 : vector<8x8xf32> to vector<2x4x8xf32>
    %102 = arith.truncf %101 : vector<2x4x8xf32> to vector<2x4x8xbf16>
    %103 = vector.shape_cast %93 : vector<8x8xf32> to vector<2x4x8xf32>
    %104 = arith.truncf %103 : vector<2x4x8xf32> to vector<2x4x8xbf16>
    %105 = vector.shape_cast %100 : vector<8x8xf32> to vector<2x4x8xf32>
    %106 = arith.truncf %105 : vector<2x4x8xf32> to vector<2x4x8xbf16>
    "tpu.trace_start"() <{level = 10 : i32, message = "wnd,wmd->wnm"}> : () -> ()
    %cst_64 = arith.constant dense<0.000000e+00> : vector<2x4x4xf32>
    %107 = tpu.matmul %102, %104, %cst_64 {dimension_numbers = #tpu.dot_dimension_numbers<[2], [2], [1], [1], [0, 0, 0, 1, 1, 1], [0], [0]>} : vector<2x4x8xbf16>, vector<2x4x8xbf16>, vector<2x4x4xf32> -> vector<2x4x4xf32>
    "tpu.trace_stop"() : () -> ()
    %108 = vector.shape_cast %107 : vector<2x4x4xf32> to vector<2x1x4x4xf32>
    %c1_65 = arith.constant 1 : index
    %c0_66 = arith.constant 0 : index
    %c0_67 = arith.constant 0 : index
    %109 = vector.load %arg10[%c1_65, %c0_66, %c0_67] : memref<4x4x4xf32, #tpu.memory_space<vmem>>, vector<1x4x4xf32>
    %110 = vector.shape_cast %109 : vector<1x4x4xf32> to vector<4x4xf32>
    %111 = vector.shape_cast %110 : vector<4x4xf32> to vector<1x1x4x4xf32>
    %112 = vector.broadcast %111 : vector<1x1x4x4xf32> to vector<2x1x4x4xf32>
    %113 = arith.addf %108, %112 : vector<2x1x4x4xf32>
    %cst_68 = arith.constant dense<0xFF800000> : vector<2x1x4xf32>
    %114 = vector.multi_reduction <maximumf>, %113, %cst_68 [3] : vector<2x1x4x4xf32> to vector<2x1x4xf32>
    %115 = vector.shape_cast %114 : vector<2x1x4xf32> to vector<2x1x4x1xf32>
    %116 = vector.broadcast %115 : vector<2x1x4x1xf32> to vector<2x1x4x4xf32>
    %117 = arith.subf %113, %116 : vector<2x1x4x4xf32>
    %118 = math.exp %117 : vector<2x1x4x4xf32>
    %cst_69 = arith.constant dense<0.000000e+00> : vector<2x1x4xf32>
    %119 = vector.multi_reduction <add>, %118, %cst_69 [3] : vector<2x1x4x4xf32> to vector<2x1x4xf32>
    %120 = vector.shape_cast %119 : vector<2x1x4xf32> to vector<2x1x4x1xf32>
    %121 = tpu.reciprocal %120 {approx = true} : vector<2x1x4x1xf32> -> vector<2x1x4x1xf32>
    %122 = vector.broadcast %121 : vector<2x1x4x1xf32> to vector<2x1x4x4xf32>
    %123 = arith.mulf %118, %122 : vector<2x1x4x4xf32>
    %124 = vector.shape_cast %123 : vector<2x1x4x4xf32> to vector<2x4x4xf32>
    %125 = arith.truncf %124 : vector<2x4x4xf32> to vector<2x4x4xbf16>
    "tpu.trace_start"() <{level = 10 : i32, message = "wnm,wmd->wnd"}> : () -> ()
    %cst_70 = arith.constant dense<0.000000e+00> : vector<2x4x8xf32>
    %126 = tpu.matmul %125, %106, %cst_70 {dimension_numbers = #tpu.dot_dimension_numbers<[2], [1], [1], [2], [0, 0, 0, 1, 1, 2], [0], [0]>} : vector<2x4x4xbf16>, vector<2x4x8xbf16>, vector<2x4x8xf32> -> vector<2x4x8xf32>
    "tpu.trace_stop"() : () -> ()
    %127 = vector.shape_cast %126 : vector<2x4x8xf32> to vector<8x8xf32>
    %128 = arith.truncf %127 : vector<8x8xf32> to vector<8x8xbf16>
    %c1_71 = arith.constant 1 : index
    %c0_72 = arith.constant 0 : index
    %c0_73 = arith.constant 0 : index
    %129 = vector.load %arg11[%c1_71, %c0_72, %c0_73] : memref<4x8x32xbf16, #tpu.memory_space<vmem>>, vector<1x8x32xbf16>
    %130 = vector.shape_cast %129 : vector<1x8x32xbf16> to vector<8x32xbf16>
    %cst_74 = arith.constant dense<0.000000e+00> : vector<8x32xf32>
    %131 = tpu.matmul %128, %130, %cst_74 {dimension_numbers = #tpu.dot_dimension_numbers<[1], [0], [0], [1], [0, 0, 1, 1], [], []>} : vector<8x8xbf16>, vector<8x32xbf16>, vector<8x32xf32> -> vector<8x32xf32>
    %132 = arith.addf %79, %131 : vector<8x32xf32>
    %c2 = arith.constant 2 : index
    %c0_75 = arith.constant 0 : index
    %c0_76 = arith.constant 0 : index
    %133 = vector.load %arg4[%c2, %c0_75, %c0_76] : memref<4x32x8xbf16, #tpu.memory_space<vmem>>, vector<1x32x8xbf16>
    %134 = vector.shape_cast %133 : vector<1x32x8xbf16> to vector<32x8xbf16>
    %cst_77 = arith.constant dense<0.000000e+00> : vector<8x8xf32>
    %135 = tpu.matmul %24, %134, %cst_77 {dimension_numbers = #tpu.dot_dimension_numbers<[1], [0], [0], [1], [0, 0, 1, 1], [], []>} : vector<8x32xbf16>, vector<32x8xbf16>, vector<8x8xf32> -> vector<8x8xf32>
    %c2_78 = arith.constant 2 : index
    %c0_79 = arith.constant 0 : index
    %c0_80 = arith.constant 0 : index
    %136 = vector.load %arg7[%c2_78, %c0_79, %c0_80] : memref<4x1x8xf32, #tpu.memory_space<vmem>>, vector<1x1x8xf32>
    %137 = vector.shape_cast %136 : vector<1x1x8xf32> to vector<1x8xf32>
    %138 = vector.broadcast %137 : vector<1x8xf32> to vector<8x8xf32>
    %139 = arith.addf %135, %138 : vector<8x8xf32>
    %c2_81 = arith.constant 2 : index
    %c0_82 = arith.constant 0 : index
    %c0_83 = arith.constant 0 : index
    %140 = vector.load %arg5[%c2_81, %c0_82, %c0_83] : memref<4x32x8xbf16, #tpu.memory_space<vmem>>, vector<1x32x8xbf16>
    %141 = vector.shape_cast %140 : vector<1x32x8xbf16> to vector<32x8xbf16>
    %cst_84 = arith.constant dense<0.000000e+00> : vector<8x8xf32>
    %142 = tpu.matmul %24, %141, %cst_84 {dimension_numbers = #tpu.dot_dimension_numbers<[1], [0], [0], [1], [0, 0, 1, 1], [], []>} : vector<8x32xbf16>, vector<32x8xbf16>, vector<8x8xf32> -> vector<8x8xf32>
    %c2_85 = arith.constant 2 : index
    %c0_86 = arith.constant 0 : index
    %c0_87 = arith.constant 0 : index
    %143 = vector.load %arg8[%c2_85, %c0_86, %c0_87] : memref<4x1x8xf32, #tpu.memory_space<vmem>>, vector<1x1x8xf32>
    %144 = vector.shape_cast %143 : vector<1x1x8xf32> to vector<1x8xf32>
    %145 = vector.broadcast %144 : vector<1x8xf32> to vector<8x8xf32>
    %146 = arith.addf %142, %145 : vector<8x8xf32>
    %c2_88 = arith.constant 2 : index
    %c0_89 = arith.constant 0 : index
    %c0_90 = arith.constant 0 : index
    %147 = vector.load %arg6[%c2_88, %c0_89, %c0_90] : memref<4x32x8xbf16, #tpu.memory_space<vmem>>, vector<1x32x8xbf16>
    %148 = vector.shape_cast %147 : vector<1x32x8xbf16> to vector<32x8xbf16>
    %cst_91 = arith.constant dense<0.000000e+00> : vector<8x8xf32>
    %149 = tpu.matmul %24, %148, %cst_91 {dimension_numbers = #tpu.dot_dimension_numbers<[1], [0], [0], [1], [0, 0, 1, 1], [], []>} : vector<8x32xbf16>, vector<32x8xbf16>, vector<8x8xf32> -> vector<8x8xf32>
    %c2_92 = arith.constant 2 : index
    %c0_93 = arith.constant 0 : index
    %c0_94 = arith.constant 0 : index
    %150 = vector.load %arg9[%c2_92, %c0_93, %c0_94] : memref<4x1x8xf32, #tpu.memory_space<vmem>>, vector<1x1x8xf32>
    %151 = vector.shape_cast %150 : vector<1x1x8xf32> to vector<1x8xf32>
    %152 = vector.broadcast %151 : vector<1x8xf32> to vector<8x8xf32>
    %153 = arith.addf %149, %152 : vector<8x8xf32>
    %154 = vector.shape_cast %139 : vector<8x8xf32> to vector<2x4x8xf32>
    %155 = arith.truncf %154 : vector<2x4x8xf32> to vector<2x4x8xbf16>
    %156 = vector.shape_cast %146 : vector<8x8xf32> to vector<2x4x8xf32>
    %157 = arith.truncf %156 : vector<2x4x8xf32> to vector<2x4x8xbf16>
    %158 = vector.shape_cast %153 : vector<8x8xf32> to vector<2x4x8xf32>
    %159 = arith.truncf %158 : vector<2x4x8xf32> to vector<2x4x8xbf16>
    "tpu.trace_start"() <{level = 10 : i32, message = "wnd,wmd->wnm"}> : () -> ()
    %cst_95 = arith.constant dense<0.000000e+00> : vector<2x4x4xf32>
    %160 = tpu.matmul %155, %157, %cst_95 {dimension_numbers = #tpu.dot_dimension_numbers<[2], [2], [1], [1], [0, 0, 0, 1, 1, 1], [0], [0]>} : vector<2x4x8xbf16>, vector<2x4x8xbf16>, vector<2x4x4xf32> -> vector<2x4x4xf32>
    "tpu.trace_stop"() : () -> ()
    %161 = vector.shape_cast %160 : vector<2x4x4xf32> to vector<2x1x4x4xf32>
    %c2_96 = arith.constant 2 : index
    %c0_97 = arith.constant 0 : index
    %c0_98 = arith.constant 0 : index
    %162 = vector.load %arg10[%c2_96, %c0_97, %c0_98] : memref<4x4x4xf32, #tpu.memory_space<vmem>>, vector<1x4x4xf32>
    %163 = vector.shape_cast %162 : vector<1x4x4xf32> to vector<4x4xf32>
    %164 = vector.shape_cast %163 : vector<4x4xf32> to vector<1x1x4x4xf32>
    %165 = vector.broadcast %164 : vector<1x1x4x4xf32> to vector<2x1x4x4xf32>
    %166 = arith.addf %161, %165 : vector<2x1x4x4xf32>
    %cst_99 = arith.constant dense<0xFF800000> : vector<2x1x4xf32>
    %167 = vector.multi_reduction <maximumf>, %166, %cst_99 [3] : vector<2x1x4x4xf32> to vector<2x1x4xf32>
    %168 = vector.shape_cast %167 : vector<2x1x4xf32> to vector<2x1x4x1xf32>
    %169 = vector.broadcast %168 : vector<2x1x4x1xf32> to vector<2x1x4x4xf32>
    %170 = arith.subf %166, %169 : vector<2x1x4x4xf32>
    %171 = math.exp %170 : vector<2x1x4x4xf32>
    %cst_100 = arith.constant dense<0.000000e+00> : vector<2x1x4xf32>
    %172 = vector.multi_reduction <add>, %171, %cst_100 [3] : vector<2x1x4x4xf32> to vector<2x1x4xf32>
    %173 = vector.shape_cast %172 : vector<2x1x4xf32> to vector<2x1x4x1xf32>
    %174 = tpu.reciprocal %173 {approx = true} : vector<2x1x4x1xf32> -> vector<2x1x4x1xf32>
    %175 = vector.broadcast %174 : vector<2x1x4x1xf32> to vector<2x1x4x4xf32>
    %176 = arith.mulf %171, %175 : vector<2x1x4x4xf32>
    %177 = vector.shape_cast %176 : vector<2x1x4x4xf32> to vector<2x4x4xf32>
    %178 = arith.truncf %177 : vector<2x4x4xf32> to vector<2x4x4xbf16>
    "tpu.trace_start"() <{level = 10 : i32, message = "wnm,wmd->wnd"}> : () -> ()
    %cst_101 = arith.constant dense<0.000000e+00> : vector<2x4x8xf32>
    %179 = tpu.matmul %178, %159, %cst_101 {dimension_numbers = #tpu.dot_dimension_numbers<[2], [1], [1], [2], [0, 0, 0, 1, 1, 2], [0], [0]>} : vector<2x4x4xbf16>, vector<2x4x8xbf16>, vector<2x4x8xf32> -> vector<2x4x8xf32>
    "tpu.trace_stop"() : () -> ()
    %180 = vector.shape_cast %179 : vector<2x4x8xf32> to vector<8x8xf32>
    %181 = arith.truncf %180 : vector<8x8xf32> to vector<8x8xbf16>
    %c2_102 = arith.constant 2 : index
    %c0_103 = arith.constant 0 : index
    %c0_104 = arith.constant 0 : index
    %182 = vector.load %arg11[%c2_102, %c0_103, %c0_104] : memref<4x8x32xbf16, #tpu.memory_space<vmem>>, vector<1x8x32xbf16>
    %183 = vector.shape_cast %182 : vector<1x8x32xbf16> to vector<8x32xbf16>
    %cst_105 = arith.constant dense<0.000000e+00> : vector<8x32xf32>
    %184 = tpu.matmul %181, %183, %cst_105 {dimension_numbers = #tpu.dot_dimension_numbers<[1], [0], [0], [1], [0, 0, 1, 1], [], []>} : vector<8x8xbf16>, vector<8x32xbf16>, vector<8x32xf32> -> vector<8x32xf32>
    %185 = arith.addf %132, %184 : vector<8x32xf32>
    %c3 = arith.constant 3 : index
    %c0_106 = arith.constant 0 : index
    %c0_107 = arith.constant 0 : index
    %186 = vector.load %arg4[%c3, %c0_106, %c0_107] : memref<4x32x8xbf16, #tpu.memory_space<vmem>>, vector<1x32x8xbf16>
    %187 = vector.shape_cast %186 : vector<1x32x8xbf16> to vector<32x8xbf16>
    %cst_108 = arith.constant dense<0.000000e+00> : vector<8x8xf32>
    %188 = tpu.matmul %24, %187, %cst_108 {dimension_numbers = #tpu.dot_dimension_numbers<[1], [0], [0], [1], [0, 0, 1, 1], [], []>} : vector<8x32xbf16>, vector<32x8xbf16>, vector<8x8xf32> -> vector<8x8xf32>
    %c3_109 = arith.constant 3 : index
    %c0_110 = arith.constant 0 : index
    %c0_111 = arith.constant 0 : index
    %189 = vector.load %arg7[%c3_109, %c0_110, %c0_111] : memref<4x1x8xf32, #tpu.memory_space<vmem>>, vector<1x1x8xf32>
    %190 = vector.shape_cast %189 : vector<1x1x8xf32> to vector<1x8xf32>
    %191 = vector.broadcast %190 : vector<1x8xf32> to vector<8x8xf32>
    %192 = arith.addf %188, %191 : vector<8x8xf32>
    %c3_112 = arith.constant 3 : index
    %c0_113 = arith.constant 0 : index
    %c0_114 = arith.constant 0 : index
    %193 = vector.load %arg5[%c3_112, %c0_113, %c0_114] : memref<4x32x8xbf16, #tpu.memory_space<vmem>>, vector<1x32x8xbf16>
    %194 = vector.shape_cast %193 : vector<1x32x8xbf16> to vector<32x8xbf16>
    %cst_115 = arith.constant dense<0.000000e+00> : vector<8x8xf32>
    %195 = tpu.matmul %24, %194, %cst_115 {dimension_numbers = #tpu.dot_dimension_numbers<[1], [0], [0], [1], [0, 0, 1, 1], [], []>} : vector<8x32xbf16>, vector<32x8xbf16>, vector<8x8xf32> -> vector<8x8xf32>
    %c3_116 = arith.constant 3 : index
    %c0_117 = arith.constant 0 : index
    %c0_118 = arith.constant 0 : index
    %196 = vector.load %arg8[%c3_116, %c0_117, %c0_118] : memref<4x1x8xf32, #tpu.memory_space<vmem>>, vector<1x1x8xf32>
    %197 = vector.shape_cast %196 : vector<1x1x8xf32> to vector<1x8xf32>
    %198 = vector.broadcast %197 : vector<1x8xf32> to vector<8x8xf32>
    %199 = arith.addf %195, %198 : vector<8x8xf32>
    %c3_119 = arith.constant 3 : index
    %c0_120 = arith.constant 0 : index
    %c0_121 = arith.constant 0 : index
    %200 = vector.load %arg6[%c3_119, %c0_120, %c0_121] : memref<4x32x8xbf16, #tpu.memory_space<vmem>>, vector<1x32x8xbf16>
    %201 = vector.shape_cast %200 : vector<1x32x8xbf16> to vector<32x8xbf16>
    %cst_122 = arith.constant dense<0.000000e+00> : vector<8x8xf32>
    %202 = tpu.matmul %24, %201, %cst_122 {dimension_numbers = #tpu.dot_dimension_numbers<[1], [0], [0], [1], [0, 0, 1, 1], [], []>} : vector<8x32xbf16>, vector<32x8xbf16>, vector<8x8xf32> -> vector<8x8xf32>
    %c3_123 = arith.constant 3 : index
    %c0_124 = arith.constant 0 : index
    %c0_125 = arith.constant 0 : index
    %203 = vector.load %arg9[%c3_123, %c0_124, %c0_125] : memref<4x1x8xf32, #tpu.memory_space<vmem>>, vector<1x1x8xf32>
    %204 = vector.shape_cast %203 : vector<1x1x8xf32> to vector<1x8xf32>
    %205 = vector.broadcast %204 : vector<1x8xf32> to vector<8x8xf32>
    %206 = arith.addf %202, %205 : vector<8x8xf32>
    %207 = vector.shape_cast %192 : vector<8x8xf32> to vector<2x4x8xf32>
    %208 = arith.truncf %207 : vector<2x4x8xf32> to vector<2x4x8xbf16>
    %209 = vector.shape_cast %199 : vector<8x8xf32> to vector<2x4x8xf32>
    %210 = arith.truncf %209 : vector<2x4x8xf32> to vector<2x4x8xbf16>
    %211 = vector.shape_cast %206 : vector<8x8xf32> to vector<2x4x8xf32>
    %212 = arith.truncf %211 : vector<2x4x8xf32> to vector<2x4x8xbf16>
    "tpu.trace_start"() <{level = 10 : i32, message = "wnd,wmd->wnm"}> : () -> ()
    %cst_126 = arith.constant dense<0.000000e+00> : vector<2x4x4xf32>
    %213 = tpu.matmul %208, %210, %cst_126 {dimension_numbers = #tpu.dot_dimension_numbers<[2], [2], [1], [1], [0, 0, 0, 1, 1, 1], [0], [0]>} : vector<2x4x8xbf16>, vector<2x4x8xbf16>, vector<2x4x4xf32> -> vector<2x4x4xf32>
    "tpu.trace_stop"() : () -> ()
    %214 = vector.shape_cast %213 : vector<2x4x4xf32> to vector<2x1x4x4xf32>
    %c3_127 = arith.constant 3 : index
    %c0_128 = arith.constant 0 : index
    %c0_129 = arith.constant 0 : index
    %215 = vector.load %arg10[%c3_127, %c0_128, %c0_129] : memref<4x4x4xf32, #tpu.memory_space<vmem>>, vector<1x4x4xf32>
    %216 = vector.shape_cast %215 : vector<1x4x4xf32> to vector<4x4xf32>
    %217 = vector.shape_cast %216 : vector<4x4xf32> to vector<1x1x4x4xf32>
    %218 = vector.broadcast %217 : vector<1x1x4x4xf32> to vector<2x1x4x4xf32>
    %219 = arith.addf %214, %218 : vector<2x1x4x4xf32>
    %cst_130 = arith.constant dense<0xFF800000> : vector<2x1x4xf32>
    %220 = vector.multi_reduction <maximumf>, %219, %cst_130 [3] : vector<2x1x4x4xf32> to vector<2x1x4xf32>
    %221 = vector.shape_cast %220 : vector<2x1x4xf32> to vector<2x1x4x1xf32>
    %222 = vector.broadcast %221 : vector<2x1x4x1xf32> to vector<2x1x4x4xf32>
    %223 = arith.subf %219, %222 : vector<2x1x4x4xf32>
    %224 = math.exp %223 : vector<2x1x4x4xf32>
    %cst_131 = arith.constant dense<0.000000e+00> : vector<2x1x4xf32>
    %225 = vector.multi_reduction <add>, %224, %cst_131 [3] : vector<2x1x4x4xf32> to vector<2x1x4xf32>
    %226 = vector.shape_cast %225 : vector<2x1x4xf32> to vector<2x1x4x1xf32>
    %227 = tpu.reciprocal %226 {approx = true} : vector<2x1x4x1xf32> -> vector<2x1x4x1xf32>
    %228 = vector.broadcast %227 : vector<2x1x4x1xf32> to vector<2x1x4x4xf32>
    %229 = arith.mulf %224, %228 : vector<2x1x4x4xf32>
    %230 = vector.shape_cast %229 : vector<2x1x4x4xf32> to vector<2x4x4xf32>
    %231 = arith.truncf %230 : vector<2x4x4xf32> to vector<2x4x4xbf16>
    "tpu.trace_start"() <{level = 10 : i32, message = "wnm,wmd->wnd"}> : () -> ()
    %cst_132 = arith.constant dense<0.000000e+00> : vector<2x4x8xf32>
    %232 = tpu.matmul %231, %212, %cst_132 {dimension_numbers = #tpu.dot_dimension_numbers<[2], [1], [1], [2], [0, 0, 0, 1, 1, 2], [0], [0]>} : vector<2x4x4xbf16>, vector<2x4x8xbf16>, vector<2x4x8xf32> -> vector<2x4x8xf32>
    "tpu.trace_stop"() : () -> ()
    %233 = vector.shape_cast %232 : vector<2x4x8xf32> to vector<8x8xf32>
    %234 = arith.truncf %233 : vector<8x8xf32> to vector<8x8xbf16>
    %c3_133 = arith.constant 3 : index
    %c0_134 = arith.constant 0 : index
    %c0_135 = arith.constant 0 : index
    %235 = vector.load %arg11[%c3_133, %c0_134, %c0_135] : memref<4x8x32xbf16, #tpu.memory_space<vmem>>, vector<1x8x32xbf16>
    %236 = vector.shape_cast %235 : vector<1x8x32xbf16> to vector<8x32xbf16>
    %cst_136 = arith.constant dense<0.000000e+00> : vector<8x32xf32>
    %237 = tpu.matmul %234, %236, %cst_136 {dimension_numbers = #tpu.dot_dimension_numbers<[1], [0], [0], [1], [0, 0, 1, 1], [], []>} : vector<8x8xbf16>, vector<8x32xbf16>, vector<8x32xf32> -> vector<8x32xf32>
    %238 = arith.addf %185, %237 : vector<8x32xf32>
    %239 = arith.addf %1, %238 : vector<8x32xf32>
    %c0_137 = arith.constant 0 : index
    %c0_138 = arith.constant 0 : index
    %240 = vector.load %arg13[%c0_137, %c0_138] : memref<1x32xf32, #tpu.memory_space<vmem>>, vector<1x32xf32>
    %c0_139 = arith.constant 0 : index
    %c0_140 = arith.constant 0 : index
    %241 = vector.load %arg14[%c0_139, %c0_140] : memref<1x32xf32, #tpu.memory_space<vmem>>, vector<1x32xf32>
    %cst_141 = arith.constant dense<0.000000e+00> : vector<8xf32>
    %242 = vector.multi_reduction <add>, %239, %cst_141 [1] : vector<8x32xf32> to vector<8xf32>
    %243 = vector.shape_cast %242 : vector<8xf32> to vector<8x1xf32>
    %cst_142 = arith.constant 3.200000e+01 : f32
    %244 = vector.broadcast %cst_142 : f32 to vector<8x1xf32>
    %245 = arith.divf %243, %244 : vector<8x1xf32>
    %246 = vector.broadcast %245 : vector<8x1xf32> to vector<8x32xf32>
    %247 = arith.subf %239, %246 : vector<8x32xf32>
    %248 = arith.mulf %247, %247 : vector<8x32xf32>
    %cst_143 = arith.constant dense<0.000000e+00> : vector<8xf32>
    %249 = vector.multi_reduction <add>, %248, %cst_143 [1] : vector<8x32xf32> to vector<8xf32>
    %250 = vector.shape_cast %249 : vector<8xf32> to vector<8x1xf32>
    %cst_144 = arith.constant 3.200000e+01 : f32
    %251 = vector.broadcast %cst_144 : f32 to vector<8x1xf32>
    %252 = arith.divf %250, %251 : vector<8x1xf32>
    %cst_145 = arith.constant 9.99999974E-6 : f32
    %253 = vector.broadcast %cst_145 : f32 to vector<8x1xf32>
    %254 = arith.addf %252, %253 : vector<8x1xf32>
    %255 = math.rsqrt %254 : vector<8x1xf32>
    %256 = vector.broadcast %255 : vector<8x1xf32> to vector<8x32xf32>
    %257 = arith.mulf %247, %256 : vector<8x32xf32>
    %258 = vector.broadcast %240 : vector<1x32xf32> to vector<8x32xf32>
    %259 = arith.mulf %257, %258 : vector<8x32xf32>
    %260 = vector.broadcast %241 : vector<1x32xf32> to vector<8x32xf32>
    %261 = arith.addf %259, %260 : vector<8x32xf32>
    %262 = arith.truncf %261 : vector<8x32xf32> to vector<8x32xbf16>
    %c0_146 = arith.constant 0 : index
    %c0_147 = arith.constant 0 : index
    %263 = vector.load %arg15[%c0_146, %c0_147] : memref<32x128xbf16, #tpu.memory_space<vmem>>, vector<32x128xbf16>
    %cst_148 = arith.constant dense<0.000000e+00> : vector<8x128xf32>
    %264 = tpu.matmul %262, %263, %cst_148 {dimension_numbers = #tpu.dot_dimension_numbers<[1], [0], [0], [1], [0, 0, 1, 1], [], []>} : vector<8x32xbf16>, vector<32x128xbf16>, vector<8x128xf32> -> vector<8x128xf32>
    %c0_149 = arith.constant 0 : index
    %c0_150 = arith.constant 0 : index
    %265 = vector.load %arg16[%c0_149, %c0_150] : memref<1x128xf32, #tpu.memory_space<vmem>>, vector<1x128xf32>
    %266 = vector.broadcast %265 : vector<1x128xf32> to vector<8x128xf32>
    %267 = arith.addf %264, %266 : vector<8x128xf32>
    %268 = arith.mulf %267, %267 : vector<8x128xf32>
    %269 = arith.mulf %267, %268 : vector<8x128xf32>
    %cst_151 = arith.constant 4.471500e-02 : f32
    %270 = vector.broadcast %cst_151 : f32 to vector<8x128xf32>
    %271 = arith.mulf %270, %269 : vector<8x128xf32>
    %272 = arith.addf %267, %271 : vector<8x128xf32>
    %cst_152 = arith.constant 0.797884583 : f32
    %273 = vector.broadcast %cst_152 : f32 to vector<8x128xf32>
    %274 = arith.mulf %273, %272 : vector<8x128xf32>
    %275 = math.tanh %274 : vector<8x128xf32>
    %cst_153 = arith.constant 1.000000e+00 : f32
    %276 = vector.broadcast %cst_153 : f32 to vector<8x128xf32>
    %277 = arith.addf %276, %275 : vector<8x128xf32>
    %cst_154 = arith.constant 5.000000e-01 : f32
    %278 = vector.broadcast %cst_154 : f32 to vector<8x128xf32>
    %279 = arith.mulf %278, %277 : vector<8x128xf32>
    %280 = arith.mulf %267, %279 : vector<8x128xf32>
    %281 = arith.truncf %280 : vector<8x128xf32> to vector<8x128xbf16>
    %c0_155 = arith.constant 0 : index
    %c0_156 = arith.constant 0 : index
    %282 = vector.load %arg17[%c0_155, %c0_156] : memref<128x32xbf16, #tpu.memory_space<vmem>>, vector<128x32xbf16>
    %cst_157 = arith.constant dense<0.000000e+00> : vector<8x32xf32>
    %283 = tpu.matmul %281, %282, %cst_157 {dimension_numbers = #tpu.dot_dimension_numbers<[1], [0], [0], [1], [0, 0, 1, 1], [], []>} : vector<8x128xbf16>, vector<128x32xbf16>, vector<8x32xf32> -> vector<8x32xf32>
    %c0_158 = arith.constant 0 : index
    %c0_159 = arith.constant 0 : index
    %284 = vector.load %arg18[%c0_158, %c0_159] : memref<1x32xf32, #tpu.memory_space<vmem>>, vector<1x32xf32>
    %285 = vector.broadcast %284 : vector<1x32xf32> to vector<8x32xf32>
    %286 = arith.addf %283, %285 : vector<8x32xf32>
    %287 = arith.addf %239, %286 : vector<8x32xf32>
    %288 = vector.shape_cast %287 : vector<8x32xf32> to vector<2x4x32xf32>
    %c0_160 = arith.constant 0 : index
    %c0_161 = arith.constant 0 : index
    %c0_162 = arith.constant 0 : index
    %289 = vector.load %arg19[%c0_160, %c0_161, %c0_162] : memref<2x4x32xf32, #tpu.memory_space<vmem>>, vector<2x4x32xf32>
    tpu.vector_store %arg19[%c0_160, %c0_161, %c0_162], %288 {strides = array<i32>} : memref<2x4x32xf32, #tpu.memory_space<vmem>>, vector<2x4x32xf32>,
    return
  }
  func.func @transform_0(%arg0: i32) -> (i32, i32, i32) {
    %c0_i32 = arith.constant 0 : i32
    %c0_i32_0 = arith.constant 0 : i32
    %c0_i32_1 = arith.constant 0 : i32
    return %arg0, %c0_i32, %c0_i32_0 : i32, i32, i32
  }
  func.func @transform_1(%arg0: i32) -> (i32, i32) {
    %c0_i32 = arith.constant 0 : i32
    %c0_i32_0 = arith.constant 0 : i32
    %c0_i32_1 = arith.constant 0 : i32
    return %c0_i32, %c0_i32_0 : i32, i32
  }
  func.func @transform_2(%arg0: i32) -> (i32, i32) {
    %c0_i32 = arith.constant 0 : i32
    %c0_i32_0 = arith.constant 0 : i32
    %c0_i32_1 = arith.constant 0 : i32
    return %c0_i32, %c0_i32_0 : i32, i32
  }
  func.func @transform_3(%arg0: i32) -> (i32, i32, i32) {
    %c0_i32 = arith.constant 0 : i32
    %c0_i32_0 = arith.constant 0 : i32
    %c0_i32_1 = arith.constant 0 : i32
    %c0_i32_2 = arith.constant 0 : i32
    return %c0_i32, %c0_i32_0, %c0_i32_1 : i32, i32, i32
  }
  func.func @transform_4(%arg0: i32) -> (i32, i32, i32) {
    %c0_i32 = arith.constant 0 : i32
    %c0_i32_0 = arith.constant 0 : i32
    %c0_i32_1 = arith.constant 0 : i32
    %c0_i32_2 = arith.constant 0 : i32
    return %c0_i32, %c0_i32_0, %c0_i32_1 : i32, i32, i32
  }
  func.func @transform_5(%arg0: i32) -> (i32, i32, i32) {
    %c0_i32 = arith.constant 0 : i32
    %c0_i32_0 = arith.constant 0 : i32
    %c0_i32_1 = arith.constant 0 : i32
    %c0_i32_2 = arith.constant 0 : i32
    return %c0_i32, %c0_i32_0, %c0_i32_1 : i32, i32, i32
  }
  func.func @transform_6(%arg0: i32) -> (i32, i32, i32) {
    %c0_i32 = arith.constant 0 : i32
    %c0_i32_0 = arith.constant 0 : i32
    %c0_i32_1 = arith.constant 0 : i32
    %c0_i32_2 = arith.constant 0 : i32
    return %c0_i32, %c0_i32_0, %c0_i32_1 : i32, i32, i32
  }
  func.func @transform_7(%arg0: i32) -> (i32, i32, i32) {
    %c0_i32 = arith.constant 0 : i32
    %c0_i32_0 = arith.constant 0 : i32
    %c0_i32_1 = arith.constant 0 : i32
    %c0_i32_2 = arith.constant 0 : i32
    return %c0_i32, %c0_i32_0, %c0_i32_1 : i32, i32, i32
  }
  func.func @transform_8(%arg0: i32) -> (i32, i32, i32) {
    %c0_i32 = arith.constant 0 : i32
    %c0_i32_0 = arith.constant 0 : i32
    %c0_i32_1 = arith.constant 0 : i32
    %c0_i32_2 = arith.constant 0 : i32
    return %c0_i32, %c0_i32_0, %c0_i32_1 : i32, i32, i32
  }
  func.func @transform_9(%arg0: i32) -> (i32, i32, i32) {
    %c0_i32 = arith.constant 0 : i32
    %c0_i32_0 = arith.constant 0 : i32
    %c0_i32_1 = arith.constant 0 : i32
    %c0_i32_2 = arith.constant 0 : i32
    return %c0_i32, %c0_i32_0, %c0_i32_1 : i32, i32, i32
  }
  func.func @transform_10(%arg0: i32) -> (i32, i32, i32) {
    %c0_i32 = arith.constant 0 : i32
    %c0_i32_0 = arith.constant 0 : i32
    %c0_i32_1 = arith.constant 0 : i32
    %c0_i32_2 = arith.constant 0 : i32
    return %c0_i32, %c0_i32_0, %c0_i32_1 : i32, i32, i32
  }
  func.func @transform_11(%arg0: i32) -> (i32, i32) {
    %c0_i32 = arith.constant 0 : i32
    %c0_i32_0 = arith.constant 0 : i32
    %c0_i32_1 = arith.constant 0 : i32
    return %c0_i32, %c0_i32_0 : i32, i32
  }
  func.func @transform_12(%arg0: i32) -> (i32, i32) {
    %c0_i32 = arith.constant 0 : i32
    %c0_i32_0 = arith.constant 0 : i32
    %c0_i32_1 = arith.constant 0 : i32
    return %c0_i32, %c0_i32_0 : i32, i32
  }
  func.func @transform_13(%arg0: i32) -> (i32, i32) {
    %c0_i32 = arith.constant 0 : i32
    %c0_i32_0 = arith.constant 0 : i32
    %c0_i32_1 = arith.constant 0 : i32
    return %c0_i32, %c0_i32_0 : i32, i32
  }
  func.func @transform_14(%arg0: i32) -> (i32, i32) {
    %c0_i32 = arith.constant 0 : i32
    %c0_i32_0 = arith.constant 0 : i32
    %c0_i32_1 = arith.constant 0 : i32
    return %c0_i32, %c0_i32_0 : i32, i32
  }
  func.func @transform_15(%arg0: i32) -> (i32, i32) {
    %c0_i32 = arith.constant 0 : i32
    %c0_i32_0 = arith.constant 0 : i32
    %c0_i32_1 = arith.constant 0 : i32
    return %c0_i32, %c0_i32_0 : i32, i32
  }
  func.func @transform_16(%arg0: i32) -> (i32, i32) {
    %c0_i32 = arith.constant 0 : i32
    %c0_i32_0 = arith.constant 0 : i32
    %c0_i32_1 = arith.constant 0 : i32
    return %c0_i32, %c0_i32_0 : i32, i32
  }
  func.func @transform_17(%arg0: i32) -> (i32, i32) {
    %c0_i32 = arith.constant 0 : i32
    %c0_i32_0 = arith.constant 0 : i32
    %c0_i32_1 = arith.constant 0 : i32
    return %c0_i32, %c0_i32_0 : i32, i32
  }
  func.func @transform_18(%arg0: i32) -> (i32, i32, i32) {
    %c0_i32 = arith.constant 0 : i32
    %c0_i32_0 = arith.constant 0 : i32
    %c0_i32_1 = arith.constant 0 : i32
    return %arg0, %c0_i32, %c0_i32_0 : i32, i32, i32
  }
}

module attributes {stable_mosaic.version = 11 : i64} {
  func.func @_head_cosine_kernel(%arg0: memref<4x4x32xf32, #tpu.memory_space<vmem>>, %arg1: memref<1x32xf32, #tpu.memory_space<vmem>>, %arg2: memref<1x32xf32, #tpu.memory_space<vmem>>, %arg3: memref<32x24xbf16, #tpu.memory_space<vmem>>, %arg4: memref<1x24xf32, #tpu.memory_space<vmem>>, %arg5: memref<2x2xf32, #tpu.memory_space<vmem>>) attributes {dimension_semantics = [], scalar_prefetch = 0 : i64, scratch_operands = 0 : i64, tpu.core_type = #tpu.core_type<tc>} {
    %c0 = arith.constant 0 : index
    %c0_0 = arith.constant 0 : index
    %c0_1 = arith.constant 0 : index
    %0 = vector.load %arg0[%c0, %c0_0, %c0_1] : memref<4x4x32xf32, #tpu.memory_space<vmem>>, vector<4x4x32xf32>
    %1 = vector.shape_cast %0 : vector<4x4x32xf32> to vector<16x32xf32>
    %c0_2 = arith.constant 0 : index
    %c0_3 = arith.constant 0 : index
    %2 = vector.load %arg1[%c0_2, %c0_3] : memref<1x32xf32, #tpu.memory_space<vmem>>, vector<1x32xf32>
    %c0_4 = arith.constant 0 : index
    %c0_5 = arith.constant 0 : index
    %3 = vector.load %arg2[%c0_4, %c0_5] : memref<1x32xf32, #tpu.memory_space<vmem>>, vector<1x32xf32>
    %cst = arith.constant dense<0.000000e+00> : vector<16xf32>
    %4 = vector.multi_reduction <add>, %1, %cst [1] : vector<16x32xf32> to vector<16xf32>
    %5 = vector.shape_cast %4 : vector<16xf32> to vector<16x1xf32>
    %cst_6 = arith.constant 3.200000e+01 : f32
    %6 = vector.broadcast %cst_6 : f32 to vector<16x1xf32>
    %7 = arith.divf %5, %6 : vector<16x1xf32>
    %8 = vector.broadcast %7 : vector<16x1xf32> to vector<16x32xf32>
    %9 = arith.subf %1, %8 : vector<16x32xf32>
    %10 = arith.mulf %9, %9 : vector<16x32xf32>
    %cst_7 = arith.constant dense<0.000000e+00> : vector<16xf32>
    %11 = vector.multi_reduction <add>, %10, %cst_7 [1] : vector<16x32xf32> to vector<16xf32>
    %12 = vector.shape_cast %11 : vector<16xf32> to vector<16x1xf32>
    %cst_8 = arith.constant 3.200000e+01 : f32
    %13 = vector.broadcast %cst_8 : f32 to vector<16x1xf32>
    %14 = arith.divf %12, %13 : vector<16x1xf32>
    %cst_9 = arith.constant 9.99999974E-6 : f32
    %15 = vector.broadcast %cst_9 : f32 to vector<16x1xf32>
    %16 = arith.addf %14, %15 : vector<16x1xf32>
    %17 = math.rsqrt %16 : vector<16x1xf32>
    %18 = vector.broadcast %17 : vector<16x1xf32> to vector<16x32xf32>
    %19 = arith.mulf %9, %18 : vector<16x32xf32>
    %20 = vector.broadcast %2 : vector<1x32xf32> to vector<16x32xf32>
    %21 = arith.mulf %19, %20 : vector<16x32xf32>
    %22 = vector.broadcast %3 : vector<1x32xf32> to vector<16x32xf32>
    %23 = arith.addf %21, %22 : vector<16x32xf32>
    %24 = vector.shape_cast %23 : vector<16x32xf32> to vector<4x4x32xf32>
    %cst_10 = arith.constant dense<0.000000e+00> : vector<4x32xf32>
    %25 = vector.multi_reduction <add>, %24, %cst_10 [1] : vector<4x4x32xf32> to vector<4x32xf32>
    %cst_11 = arith.constant 4.000000e+00 : f32
    %26 = vector.broadcast %cst_11 : f32 to vector<4x32xf32>
    %27 = arith.divf %25, %26 : vector<4x32xf32>
    %c0_12 = arith.constant 0 : index
    %c0_13 = arith.constant 0 : index
    %28 = vector.load %arg3[%c0_12, %c0_13] : memref<32x24xbf16, #tpu.memory_space<vmem>>, vector<32x24xbf16>
    %29 = arith.truncf %27 : vector<4x32xf32> to vector<4x32xbf16>
    %cst_14 = arith.constant dense<0.000000e+00> : vector<4x24xf32>
    %30 = tpu.matmul %29, %28, %cst_14 {dimension_numbers = #tpu.dot_dimension_numbers<[1], [0], [0], [1], [0, 0, 1, 1], [], []>} : vector<4x32xbf16>, vector<32x24xbf16>, vector<4x24xf32> -> vector<4x24xf32>
    %c0_15 = arith.constant 0 : index
    %c0_16 = arith.constant 0 : index
    %31 = vector.load %arg4[%c0_15, %c0_16] : memref<1x24xf32, #tpu.memory_space<vmem>>, vector<1x24xf32>
    %32 = vector.broadcast %31 : vector<1x24xf32> to vector<4x24xf32>
    %33 = arith.addf %30, %32 : vector<4x24xf32>
    %34 = arith.mulf %33, %33 : vector<4x24xf32>
    %cst_17 = arith.constant dense<0.000000e+00> : vector<4xf32>
    %35 = vector.multi_reduction <add>, %34, %cst_17 [1] : vector<4x24xf32> to vector<4xf32>
    %36 = vector.shape_cast %35 : vector<4xf32> to vector<4x1xf32>
    %37 = math.sqrt %36 : vector<4x1xf32>
    %cst_18 = arith.constant 9.99999996E-13 : f32
    %38 = vector.broadcast %cst_18 : f32 to vector<4x1xf32>
    %39 = arith.maximumf %37, %38 : vector<4x1xf32>
    %40 = vector.broadcast %39 : vector<4x1xf32> to vector<4x24xf32>
    %41 = arith.divf %33, %40 : vector<4x24xf32>
    %42 = vector.extract_strided_slice %41 {offsets = [0, 0], sizes = [2, 24], strides = [1, 1]} : vector<4x24xf32> to vector<2x24xf32>
    %43 = vector.extract_strided_slice %41 {offsets = [2, 0], sizes = [2, 24], strides = [1, 1]} : vector<4x24xf32> to vector<2x24xf32>
    %44 = tpu.transpose %43, [1, 0] : vector<2x24xf32> -> vector<24x2xf32>
    %cst_19 = arith.constant dense<0.000000e+00> : vector<2x2xf32>
    %45 = tpu.matmul %42, %44, %cst_19 {dimension_numbers = #tpu.dot_dimension_numbers<[1], [0], [0], [1], [0, 0, 1, 1], [], []>} : vector<2x24xf32>, vector<24x2xf32>, vector<2x2xf32> -> vector<2x2xf32>
    %c0_20 = arith.constant 0 : index
    %c0_21 = arith.constant 0 : index
    %46 = vector.load %arg5[%c0_20, %c0_21] : memref<2x2xf32, #tpu.memory_space<vmem>>, vector<2x2xf32>
    tpu.vector_store %arg5[%c0_20, %c0_21], %45 {strides = array<i32>} : memref<2x2xf32, #tpu.memory_space<vmem>>, vector<2x2xf32>,
    return
  }
}

</mosaic_0001>

<bundles_post_ra>
// kernel: swin_transformer_forward.7
= control target key start
LH: loop header
LB: loop body
LE: loop exit
PB: predicated region body
PF: predicated region fallthrough
CT: control target
= control target key end

     0   :  { %s560_s18 = smov 0   ;;  %s614_s0 = inlined_call_operand.vmem [shape: f32[4,16,48], index: 0, kind: input, shape index: {}]   ;;  %s615_s1 = inlined_call_operand.vmem [shape: bf16[48,16], index: 1, kind: input, shape index: {}]   ;;  %s616_s2 = inlined_call_operand.vmem [shape: f32[1,16], index: 2, kind: input, shape index: {}]   ;;  %s617_s3 = inlined_call_operand.vmem [shape: f32[1,16], index: 3, kind: input, shape index: {}]   ;;  %s618_s4 = inlined_call_operand.vmem [shape: f32[1,16], index: 4, kind: input, shape index: {}]   ;;  %s619_s5 = inlined_call_operand.vmem [shape: f32[4,16,16], index: 5, kind: output, shape index: {}]  }
   0x1 LB: > { %s465_s19 = sadd.s32 4294967295, %s528_s18   ;;  %p469_p0 = scmp.ge.s32.totalorder %s528_s18, 1  ;;  %s528_s18 = sphi %s560_s18, %s15_s18  }
   0x2   : > { %p189_p1 = scmp.lt.s32.totalorder %s528_s18, 3 }
   0x4   : > { %p190_p2 = pnand %p469_p0, %p189_p1 }
   0x5   : > { %v511_v0 = vld [vmem:[%s615_s1] sm:$0xff] (!%p190_p2)   ;;  %s470_s22 = sshll.u32 (!%p190_p2), %s465_s19, 1  ;;  %v512_v1 = vld [vmem:[%s615_s1 + $0x8] sm:$0xff] (!%p190_p2)   ;;  %v513_v2 = vld [vmem:[%s615_s1 + $0x10] sm:$0xff] (!%p190_p2)   ;;  %vm271_vm0 = vcmask (!%p190_p2), 392192   ;;  %vm329_vm1 = vcmask (!%p190_p2), 130048  }
   0x6   : > { %193 = sbr.rel (%p190_p2) target bundleno = 557 (0x22d), region = 40  ;;  %p220_p3 = scmp.lt.s32.totalorder (!%p190_p2), %s470_s22, 3  ;;  %493 = vmatprep.subr.bf16.mxu0 (!%p190_p2), %v511_v0  ;;  %v476_v9 = vld [vmem:[%s616_s2] ss:$0 sm:$0xff] (!%p190_p2) }
   0x7   : > { %494 = vmatpush3.bf16.msra.mxu0 (!%p190_p2), %v511_v0  ;;  %v482_v55 = vld [vmem:[%s617_s3] ss:$0 sm:$0xff] (!%p190_p2) }
   0x8   : > { %495 = vmatprep.subr.bf16.mxu0 (!%p190_p2), %v512_v1  ;;  %v483_v57 = vld [vmem:[%s618_s4] ss:$0 sm:$0xff] (!%p190_p2) }
   0xb   : > { %496 = vmatpush3.bf16.msra.mxu0 (!%p190_p2), %v512_v1 }
   0xc   : > { %497 = vmatprep.subr.bf16.mxu0 (!%p190_p2), %v513_v2 }
   0xd   : > { %s621_s22 = smov (!%p220_p3, %s470_s22), 3 }
   0xe   : > { %s486_s27 = sshll.u32 %s621_s22, 4 }
   0xf   : > { %s224_s30 = scalar_lea.vmem %s614_s0, %s486_s27  ;;  %498 = vmatpush3.bf16.msra.mxu0 %v513_v2  ;;  %s231_s14 = scalar_lea.vmem %s619_s5, %s486_s27 }
  0x10   : > { %v234_v3 = vld [vmem:[%s224_s30] sm:$0xff]  ;;  %v235_v4 = vld [vmem:[%s224_s30 + $0x8] sm:$0xff]  ;;  %v236_v5 = vld [vmem:[%s224_s30 + $0x10] sm:$0xff] }
  0x11   : > { %v244_v6 = vpack.c.bf16 %v235_v4, %v234_v3  ;;  %v237_v7 = vld [vmem:[%s224_s30 + $0x18] sm:$0xff] }
  0x12   : > { %v245_v8 = vpack.c.bf16 %v237_v7, %v236_v5 }
  0x13   : > { %499 = vmatprep.mubr.msk.bf16.mxu0 %vm271_vm0, %v244_v6 }
  0x14   : > { %500 = vmatmul.mubr.msk.bf16.vlgmr.msra.gmra.mrb[0].mxu0 %vm271_vm0, %v245_v8 }
  0xe7   : > { %v501_v10 = vpop.f32.mrb[0].mxu0 }
  0xe8   : > { %v321_v11 = vadd.f32 %v501_v10, %v476_v9  ;;  %v312_v12 = vpop.f32.mrb[1].mxu0 }
  0xe9   : > { %v313_v13 = vadd.f32 %v476_v9, %v312_v12  ;;  %v502_v14 = vpop.f32.mrb[2].mxu0 }
  0xea   : > { %v324_v15 = vadd.f32 %v502_v14, %v476_v9  ;;  %v315_v16 = vpop.f32.mrb[3].mxu0  ;;  %v336_v17 = vsel %vm329_vm1, %v321_v11, 0.0 }
  0xeb   : > { %v316_v18 = vadd.f32 %v476_v9, %v315_v16  ;;  %337 = vadd.xlane.f32.xlu1 %v336_v17  ;;  %v330_v19 = vsel %vm329_vm1, %v313_v13, 0.0 }
  0xec   : > { %331 = vadd.xlane.f32.xlu0 %v330_v19  ;;  %v339_v20 = vsel %vm329_vm1, %v324_v15, 0.0 }
  0xed   : > { %v333_v21 = vsel %vm329_vm1, %v316_v18, 0.0 }
  0xef   : > { %340 = vadd.xlane.f32.xlu1 %v339_v20 }
  0xf0   : > { %334 = vadd.xlane.f32.xlu0 %v333_v21 }
 0x178   : > { %v338_v22 = vpop.xlane.xlu1 %337 }
 0x179   : > { %v345_v23 = vmul.f32 0.0625, %v338_v22  ;;  %v332_v24 = vpop.xlane.xlu0 %331 }
 0x17a   : > { %v343_v25 = vmul.f32 0.0625, %v332_v24 }
 0x17b   : > { %v349_v26 = vsub.f32 %v321_v11, %v345_v23 }
 0x17c   : > { %v347_v27 = vsub.f32 %v313_v13, %v343_v25  ;;  %v341_v28 = vpop.xlane.xlu1 %340 }
 0x17d   : > { %v346_v29 = vmul.f32 0.0625, %v341_v28  ;;  %v335_v30 = vpop.xlane.xlu0 %334  ;;  %v353_v36 = vmul.f32 %v349_v26, %v349_v26 }
 0x17e   : > { %v344_v31 = vmul.f32 0.0625, %v335_v30  ;;  %v351_v32 = vmul.f32 %v347_v27, %v347_v27 }
 0x17f   : > { %v350_v33 = vsub.f32 %v324_v15, %v346_v29  ;;  %v361_v38 = vsel %vm329_vm1, %v353_v36, 0.0 }
 0x180   : > { %v348_v34 = vsub.f32 %v316_v18, %v344_v31  ;;  %v355_v35 = vsel %vm329_vm1, %v351_v32, 0.0 }
 0x181   : > { %356 = vadd.xlane.f32.xlu0 %v355_v35  ;;  %v354_v40 = vmul.f32 %v350_v33, %v350_v33 }
 0x182   : > { %v352_v37 = vmul.f32 %v348_v34, %v348_v34 }
 0x183   : > { %v364_v41 = vsel %vm329_vm1, %v354_v40, 0.0 }
 0x184   : > { %v358_v39 = vsel %vm329_vm1, %v352_v37, 0.0 }
 0x185   : > { %362 = vadd.xlane.f32.xlu0 %v361_v38  ;;  %359 = vadd.xlane.f32.xlu1 %v358_v39 }
 0x189   : > { %365 = vadd.xlane.f32.xlu1 %v364_v41 }
 0x20e   : > { %v357_v42 = vpop.xlane.xlu0 %356 }
 0x20f   : > { %v367_v43 = vmul.f32 0.0625, %v357_v42 }
 0x211   : > { %v371_v44 = vadd.f32 1e-05, %v367_v43 }
 0x212   : > { %v360_v45 = vpop.xlane.xlu1 %359  ;;  %v363_v46 = vpop.xlane.xlu0 %362 }
 0x213   : > { %514 = vrsqrt.f32 %v371_v44  ;;  %v368_v47 = vmul.f32 0.0625, %v360_v45  ;;  %v369_v48 = vmul.f32 0.0625, %v363_v46 }
 0x215   : > { %v372_v49 = vadd.f32 1e-05, %v368_v47  ;;  %v373_v50 = vadd.f32 1e-05, %v369_v48 }
 0x216   : > { %v366_v51 = vpop.xlane.xlu1 %365 }
 0x217   : > { %516 = vrsqrt.f32 %v372_v49  ;;  %v370_v52 = vmul.f32 0.0625, %v366_v51 }
 0x218   : > { %518 = vrsqrt.f32 %v373_v50 }
 0x219   : > { %v374_v53 = vadd.f32 1e-05, %v370_v52 }
 0x21b   : > { %520 = vrsqrt.f32 %v374_v53 }
 0x21d   : > { %v515_v54 = vpop.eup %514 }
 0x21e   : > { %v379_v56 = vmul.f32 %v515_v54, %v347_v27 }
 0x220   : > { %v389_v58 = vmul.f32 %v482_v55, %v379_v56 }
 0x221   : > { %v517_v59 = vpop.eup %516 }
 0x222   : > { %v519_v60 = vpop.eup %518  ;;  %v399_v61 = vadd.f32 %v483_v57, %v389_v58  ;;  %v380_v62 = vmul.f32 %v517_v59, %v348_v34 }
 0x223   : > { %v381_v63 = vmul.f32 %v519_v60, %v349_v26 }
 0x224   : > { %403 = vst.msk [vmem:[%s231_s14] sm:$0xff] %vm329_vm1, %v399_v61  ;;  %v390_v0 = vmul.f32 %v482_v55, %v380_v62 }
 0x225   : > { %v521_v1 = vpop.eup %520  ;;  %v391_v2 = vmul.f32 %v482_v55, %v381_v63 }
 0x226   : > { %v400_v3 = vadd.f32 %v483_v57, %v390_v0  ;;  %v382_v4 = vmul.f32 %v521_v1, %v350_v33 }
 0x227   : > { %v401_v5 = vadd.f32 %v483_v57, %v391_v2 }
 0x228   : > { %404 = vst.msk [vmem:[%s231_s14 + $0x8] sm:$0xff] %vm329_vm1, %v400_v3  ;;  %v392_v6 = vmul.f32 %v482_v55, %v382_v4 }
 0x229   : > { %405 = vst.msk [vmem:[%s231_s14 + $0x10] sm:$0xff] %vm329_vm1, %v401_v5 }
 0x22a   : > { %v402_v7 = vadd.f32 %v483_v57, %v392_v6 }
 0x22c   : > { %406 = vst.msk [vmem:[%s231_s14 + $0x18] sm:$0xff] %vm329_vm1, %v402_v7 }
 0x22d PF: > { %s15_s18 = sadd.s32 1, %s528_s18  }
 0x22e   : > { %p12_p4 = scmp.ge.s32.totalorder %s15_s18, 4  }
 0x230   :  { %14 = sbr.rel (!%p12_p4) target bundleno = 1 (0x1), region = 70 }

// kernel: swin_transformer_forward.8
= control target key start
LH: loop header
LB: loop body
LE: loop exit
PB: predicated region body
PF: predicated region fallthrough
CT: control target
= control target key end

     0   :  { %s4075_s27 = smov 0   ;;  %s4556_s0 = inlined_call_operand.vmem [shape: f32[4,16,16], index: 0, kind: input, shape index: {}]   ;;  %s4557_s1 = inlined_call_operand.vmem [shape: f32[1,16], index: 1, kind: input, shape index: {}]   ;;  %s4558_s2 = inlined_call_operand.vmem [shape: f32[1,16], index: 2, kind: input, shape index: {}]   ;;  %s4559_s3 = inlined_call_operand.vmem [shape: bf16[2,16,8], index: 3, kind: input, shape index: {}]   ;;  %s4560_s4 = inlined_call_operand.vmem [shape: bf16[2,16,8], index: 4, kind: input, shape index: {}]   ;;  %s4561_s5 = inlined_call_operand.vmem [shape: bf16[2,16,8], index: 5, kind: input, shape index: {}]   ;;  %s4562_s6 = inlined_call_operand.vmem [shape: f32[2,1,8], index: 6, kind: input, shape index: {}]   ;;  %s4563_s7 = inlined_call_operand.vmem [shape: f32[2,1,8], index: 7, kind: input, shape index: {}]   ;;  %s4564_s8 = inlined_call_operand.vmem [shape: f32[2,1,8], index: 8, kind: input, shape index: {}]   ;;  %s4565_s9 = inlined_call_operand.vmem [shape: f32[2,4,4], index: 9, kind: input, shape index: {}]   ;;  %s4566_s10 = inlined_call_operand.vmem [shape: bf16[2,8,16], index: 10, kind: input, shape index: {}]   ;;  %s4567_s11 = inlined_call_operand.vmem [shape: f32[1,16], index: 11, kind: input, shape index: {}]   ;;  %s4568_s12 = inlined_call_operand.vmem [shape: f32[1,16], index: 12, kind: input, shape index: {}]   ;;  %s4569_s13 = inlined_call_operand.vmem [shape: f32[1,16], index: 13, kind: input, shape index: {}]   ;;  %s4570_s14 = inlined_call_operand.vmem [shape: bf16[16,64], index: 14, kind: input, shape index: {}]   ;;  %s4571_s15 = inlined_call_operand.vmem [shape: f32[1,64], index: 15, kind: input, shape index: {}]   ;;  %s4572_s16 = inlined_call_operand.vmem [shape: bf16[64,16], index: 16, kind: input, shape index: {}]   ;;  %s4573_s17 = inlined_call_operand.vmem [shape: f32[1,16], index: 17, kind: input, shape index: {}]   ;;  %s4574_s18 = inlined_call_operand.vmem [shape: f32[4,16,16], index: 18, kind: output, shape index: {}]  }
   0x1   :  { %4575 = sst [smem:[#allocation2_spill]] %s4556_s0 }
   0x2   :  { %4576 = sst [smem:[#allocation3_spill]] %s4557_s1 }
   0x3   :  { %4577 = sst [smem:[#allocation4_spill]] %s4558_s2 }
   0x4 LB: > { %s3390_s28 = sadd.s32 4294967295, %s3976_s27   ;;  %p3394_p0 = scmp.ge.s32.totalorder %s3976_s27, 1  ;;  %s3976_s27 = sphi %s4075_s27, %s28_s27  }
   0x5   : > { %p514_p1 = scmp.lt.s32.totalorder %s3976_s27, 3 }
   0x7   : > { %p515_p2 = pnand %p3394_p0, %p514_p1 }
   0x8   : > { %s3395_s29 = sshll.u32 (!%p515_p2), %s3390_s28, 1  ;;  %vm591_vm0 = vcmask (!%p515_p2), 130048   ;;  %s4578_s1 = sld [smem:[#allocation2_spill]] (!%p515_p2)  ;;  %v3867_v28 = vld [vmem:[%s4559_s3] sm:$0xff] (!%p515_p2)   ;;  %v3978_v63 = vmov (!%p515_p2), 0.0   ;;  %vm3979_vm1 = vmmov (!%p515_p2), 0  }
   0x9   : > { %518 = sbr.rel (%p515_p2) target bundleno = 3350 (0xd16), region = 92  ;;  %p571_p3 = scmp.lt.s32.totalorder (!%p515_p2), %s3395_s29, 3  ;;  %v3868_v29 = vld [vmem:[%s4560_s4] sm:$0xff] (!%p515_p2)   ;;  %3589 = vmatprep.subr.bf16.mxu0 (!%p515_p2), %v3867_v28  ;;  %vm926_vm2 = vcmask (!%p515_p2), 64512   ;;  %vm1405_vm3 = vcmask (!%p515_p2), 1041408   ;;  %vm1304_vm4 = vcmask (!%p515_p2), 27648  }
   0xa   : > { %3595 = vmatprep.subr.bf16.mxu1 (!%p515_p2), %v3868_v29  ;;  %3590 = vmatpush3.bf16.msra.mxu0 (!%p515_p2), %v3867_v28  ;;  %v3869_v30 = vld [vmem:[%s4561_s5] sm:$0xff] (!%p515_p2)   ;;  %s4579_s0 = sld [smem:[#allocation3_spill]] (!%p515_p2)  ;;  %s4580_s21 = sld [smem:[#allocation4_spill]] (!%p515_p2)  ;;  %vm1401_vm5 = vcmask (!%p515_p2), 31744   ;;  %vm1796_vm6 = vcmask (!%p515_p2), 1043456   ;;  %vm3268_vm7 = vcmask (!%p515_p2), 523264  }
   0xb   : > { %3596 = vmatpush3.bf16.msra.mxu1 (!%p515_p2), %v3868_v29  ;;  %3601 = vmatprep.subr.bf16.mxu0 (!%p515_p2), %v3869_v30 }
   0xc   : > { %3607 = vmatprep.subr.bf16.mxu1 (!%p515_p2), %v3978_v63 }
  0x10   : > { %s4582_s29 = smov (!%p571_p3, %s3395_s29), 3  ;;  %v3401_v45 = vld [vmem:[%s4579_s0] ss:$0 sm:$0xff] }
  0x11   : > { %s3490_s30 = sshll.u32 %s4582_s29, 4  ;;  %v3402_v50 = vld [vmem:[%s4580_s21] ss:$0 sm:$0xff] }
  0x12   : > { %s4091_s20 = scalar_lea.vmem %s4578_s1, %s3490_s30  ;;  %s582_s23 = scalar_lea.vmem %s4574_s18, %s3490_s30 }
  0x13   : > { %v585_v0 = vld [vmem:[%s4091_s20] sm:$0xff]  ;;  %v587_v1 = vld [vmem:[%s4091_s20 + $0x10] sm:$0xff]  ;;  %v586_v2 = vld [vmem:[%s4091_s20 + $0x8] sm:$0xff] }
  0x14   : > { %v592_v3 = vsel %vm591_vm0, %v585_v0, 0.0  ;;  %v598_v4 = vsel %vm591_vm0, %v587_v1, 0.0  ;;  %v588_v5 = vld [vmem:[%s4091_s20 + $0x18] sm:$0xff]  ;;  %v595_v6 = vsel %vm591_vm0, %v586_v2, 0.0 }
  0x15   : > { %593 = vadd.xlane.f32.xlu0 %v592_v3  ;;  %599 = vadd.xlane.f32.xlu1 %v598_v4  ;;  %v601_v7 = vsel %vm591_vm0, %v588_v5, 0.0 }
  0x19   : > { %596 = vadd.xlane.f32.xlu0 %v595_v6  ;;  %602 = vadd.xlane.f32.xlu1 %v601_v7 }
  0xa2   : > { %v594_v8 = vpop.xlane.xlu0 %593  ;;  %v600_v9 = vpop.xlane.xlu1 %599 }
  0xa3   : > { %v605_v10 = vmul.f32 0.0625, %v594_v8  ;;  %v607_v11 = vmul.f32 0.0625, %v600_v9 }
  0xa5   : > { %v609_v12 = vsub.f32 %v585_v0, %v605_v10  ;;  %v611_v13 = vsub.f32 %v587_v1, %v607_v11  ;;  %v3407_v0 = vld [vmem:[%s4563_s7] ss:$0 sm:$0xff] }
  0xa6   : > { %v597_v14 = vpop.xlane.xlu0 %596  ;;  %v603_v15 = vpop.xlane.xlu1 %602  ;;  %v4150_v11 = vld [vmem:[%s4562_s6] ss:$0 sm:$0xff] }
  0xa7   : > { %v606_v16 = vmul.f32 0.0625, %v597_v14  ;;  %v608_v17 = vmul.f32 0.0625, %v603_v15  ;;  %v613_v18 = vmul.f32 %v609_v12, %v609_v12  ;;  %v615_v19 = vmul.f32 %v611_v13, %v611_v13  ;;  %v3411_v15 = vld [vmem:[%s4564_s8] ss:$0 sm:$0xff] }
  0xa9   : > { %v610_v20 = vsub.f32 %v586_v2, %v606_v16  ;;  %v612_v21 = vsub.f32 %v588_v5, %v608_v17  ;;  %v617_v22 = vsel %vm591_vm0, %v613_v18, 0.0  ;;  %v623_v23 = vsel %vm591_vm0, %v615_v19, 0.0 }
  0xaa   : > { %618 = vadd.xlane.f32.xlu0 %v617_v22 }
  0xab   : > { %v614_v24 = vmul.f32 %v610_v20, %v610_v20  ;;  %v616_v25 = vmul.f32 %v612_v21, %v612_v21 }
  0xad   : > { %v620_v26 = vsel %vm591_vm0, %v614_v24, 0.0  ;;  %v626_v27 = vsel %vm591_vm0, %v616_v25, 0.0 }
  0xae   : > { %624 = vadd.xlane.f32.xlu0 %v623_v23  ;;  %621 = vadd.xlane.f32.xlu1 %v620_v26 }
  0xb2   : > { %627 = vadd.xlane.f32.xlu1 %v626_v27 }
 0x137   : > { %v619_v31 = vpop.xlane.xlu0 %618 }
 0x138   : > { %v629_v32 = vmul.f32 0.0625, %v619_v31 }
 0x13a   : > { %v633_v33 = vadd.f32 1e-05, %v629_v32 }
 0x13b   : > { %v622_v34 = vpop.xlane.xlu1 %621  ;;  %v625_v35 = vpop.xlane.xlu0 %624 }
 0x13c   : > { %3878 = vrsqrt.f32 %v633_v33  ;;  %v630_v36 = vmul.f32 0.0625, %v622_v34  ;;  %v631_v37 = vmul.f32 0.0625, %v625_v35 }
 0x13e   : > { %v634_v38 = vadd.f32 1e-05, %v630_v36  ;;  %v635_v39 = vadd.f32 1e-05, %v631_v37 }
 0x13f   : > { %v628_v40 = vpop.xlane.xlu1 %627 }
 0x140   : > { %3880 = vrsqrt.f32 %v634_v38  ;;  %v632_v41 = vmul.f32 0.0625, %v628_v40 }
 0x141   : > { %3882 = vrsqrt.f32 %v635_v39 }
 0x142   : > { %v636_v42 = vadd.f32 1e-05, %v632_v41 }
 0x144   : > { %3884 = vrsqrt.f32 %v636_v42 }
 0x146   : > { %v3879_v43 = vpop.eup %3878 }
 0x147   : > { %v641_v44 = vmul.f32 %v3879_v43, %v609_v12 }
 0x149   : > { %v651_v48 = vmul.f32 %v3401_v45, %v641_v44 }
 0x14a   : > { %v3881_v46 = vpop.eup %3880 }
 0x14b   : > { %v3883_v47 = vpop.eup %3882  ;;  %v642_v49 = vmul.f32 %v3881_v46, %v610_v20  ;;  %v661_v54 = vadd.f32 %v3402_v50, %v651_v48 }
 0x14c   : > { %v643_v51 = vmul.f32 %v3883_v47, %v611_v13 }
 0x14d   : > { %v652_v52 = vmul.f32 %v3401_v45, %v642_v49 }
 0x14e   : > { %v3885_v53 = vpop.eup %3884  ;;  %v653_v56 = vmul.f32 %v3401_v45, %v643_v51 }
 0x14f   : > { %v662_v55 = vadd.f32 %v3402_v50, %v652_v52  ;;  %v644_v57 = vmul.f32 %v3885_v53, %v612_v21 }
 0x150   : > { %v663_v60 = vadd.f32 %v3402_v50, %v653_v56 }
 0x151   : > { %v654_v58 = vmul.f32 %v3401_v45, %v644_v57  ;;  %v4120_v59 = vpack.c.bf16 %v662_v55, %v661_v54 }
 0x153   : > { %v664_v61 = vadd.f32 %v3402_v50, %v654_v58  ;;  %3591 = vmatprep.mubr.msk.bf16.mxu0 %vm591_vm0, %v4120_v59  ;;  %3597 = vmatprep.mubr.msk.bf16.mxu1 %vm591_vm0, %v4120_v59 }
 0x155   : > { %v4126_v62 = vpack.c.bf16 %v664_v61, %v663_v60 }
 0x157   : > { %3592 = vmatmul.mubr.msk.bf16.vlgmr.msra.gmra.mrb[0].mxu0 %vm591_vm0, %v4126_v62  ;;  %3598 = vmatmul.mubr.msk.bf16.vlgmr.msra.gmra.mrb[0].mxu1 %vm591_vm0, %v4126_v62 }
 0x158   : > { %3603 = vmatprep.mubr.msk.bf16.mxu0 %vm591_vm0, %v4120_v59  ;;  %3602 = vmatpush3.bf16.msra.mxu0 %v3869_v30 }
 0x159   : > { %3613 = vmatprep.subr.bf16.mxu0 %v3978_v63  ;;  %3609 = vmatprep.mubr.msk.bf16.mxu1 %vm3979_vm1, %v3978_v63 }
 0x15f   : > { %3604 = vmatmul.mubr.msk.bf16.vlgmr.msra.gmra.mrb[4].mxu0 %vm591_vm0, %v4126_v62 }
 0x160   : > { %3615 = vmatprep.mubr.msk.bf16.mxu0 %vm3979_vm1, %v3978_v63 }
 0x22a   : > { %v3593_v1 = vpop.f32.mrb[0].mxu0  ;;  %v3599_v2 = vpop.f32.mrb[0].mxu1 }
 0x22b   : > { %v723_v3 = vpop.f32.mrb[1].mxu0  ;;  %v787_v4 = vpop.f32.mrb[1].mxu1  ;;  %v796_v29 = vadd.f32 %v3599_v2, %v3407_v0  ;;  %v732_v42 = vadd.f32 %v3593_v1, %v4150_v11 }
 0x22c   : > { %v788_v5 = vadd.f32 %v3407_v0, %v787_v4  ;;  %v4145_v6 = vpop.f32.mrb[2].mxu0  ;;  %v3600_v7 = vpop.f32.mrb[2].mxu1  ;;  %v724_v16 = vadd.f32 %v4150_v11, %v723_v3  ;;  %v1295_v3 = vld [vmem:[%s4565_s9] sm:$0xf] }
 0x22d   : > { %v726_v8 = vpop.f32.mrb[3].mxu0  ;;  %v790_v9 = vpop.f32.mrb[3].mxu1  ;;  %v892_v35 = vcombine.high %v796_v29, %v796_v29  ;;  %v902_v38 = vpack.c.bf16 %v796_v29, %v796_v29  ;;  %v799_v40 = vadd.f32 %v3600_v7, %v3407_v0  ;;  %v872_v47 = vcombine.high %v732_v42, %v732_v42 }
 0x22e   : > { %v890_v10 = vcombine.high %v788_v5, %v788_v5  ;;  %v898_v12 = vpack.c.bf16 %v788_v5, %v788_v5  ;;  %v791_v14 = vadd.f32 %v3407_v0, %v790_v9  ;;  %v870_v26 = vcombine.high %v724_v16, %v724_v16 }
 0x22f   : > { %v878_v31 = vpack.c.bf16 %v724_v16, %v724_v16  ;;  %v727_v33 = vadd.f32 %v4150_v11, %v726_v8  ;;  %v903_v39 = vpack.c.bf16 %v892_v35, %v892_v35  ;;  %v1115_v44 = vsel %vm926_vm2, %v902_v38, 0 }
 0x230   : > { %v899_v13 = vpack.c.bf16 %v890_v10, %v890_v10  ;;  %v931_v18 = vsel %vm926_vm2, %v898_v12, 0  ;;  %v891_v21 = vcombine.high %v791_v14, %v791_v14  ;;  %v900_v28 = vpack.c.bf16 %v791_v14, %v791_v14 }
 0x231   : > { %3608 = vmatpush3.bf16.xpose.msra.mxu1 %v931_v18  ;;  %v879_v32 = vpack.c.bf16 %v870_v26, %v870_v26  ;;  %v871_v37 = vcombine.high %v727_v33, %v727_v33  ;;  %v880_v41 = vpack.c.bf16 %v727_v33, %v727_v33  ;;  %v893_v45 = vcombine.high %v799_v40, %v799_v40 }
 0x232   : > { %v3605_v17 = vpop.f32.mrb[4].mxu0  ;;  %v977_v22 = vsel %vm926_vm2, %v899_v13, 0  ;;  %3619 = vmatprep.subr.bf16.mxu1 %v3978_v63  ;;  %v901_v30 = vpack.c.bf16 %v891_v21, %v891_v21  ;;  %v1023_v34 = vsel %vm926_vm2, %v900_v28, 0  ;;  %v1161_v46 = vsel %vm926_vm2, %v903_v39, 0 }
 0x233   : > { %v4157_v19 = vadd.f32 %v3605_v17, %v3411_v15  ;;  %v851_v20 = vpop.f32.mrb[5].mxu0  ;;  %3614 = vmatpush3.bf16.xpose.msra.mxu0 %v977_v22  ;;  %v881_v43 = vpack.c.bf16 %v871_v37, %v871_v37  ;;  %v904_v48 = vpack.c.bf16 %v799_v40, %v799_v40  ;;  %v905_v49 = vpack.c.bf16 %v893_v45, %v893_v45 }
 0x234   : > { %v3606_v23 = vpop.f32.mrb[6].mxu0  ;;  %3625 = vmatprep.subr.bf16.mxu0 %v3978_v63  ;;  %v1069_v36 = vsel %vm926_vm2, %v901_v30, 0  ;;  %v852_v50 = vadd.f32 %v3411_v15, %v851_v20  ;;  %v882_v51 = vpack.c.bf16 %v732_v42, %v732_v42  ;;  %v883_v52 = vpack.c.bf16 %v872_v47, %v872_v47 }
 0x235   : > { %v4160_v24 = vadd.f32 %v3606_v23, %v3411_v15  ;;  %v854_v25 = vpop.f32.mrb[7].mxu0  ;;  %v735_v53 = vadd.f32 %v4145_v6, %v4150_v11  ;;  %v1207_v54 = vsel %vm926_vm2, %v904_v48, 0  ;;  %v1253_v56 = vsel %vm926_vm2, %v905_v49, 0 }
 0x236   : > { %v4163_v27 = vadd.f32 %v3411_v15, %v854_v25  ;;  %v910_v55 = vcombine.high %v852_v50, %v852_v50  ;;  %v918_v58 = vpack.c.bf16 %v852_v50, %v852_v50 }
 0x237   : > { %v873_v57 = vcombine.high %v735_v53, %v735_v53  ;;  %v884_v61 = vpack.c.bf16 %v735_v53, %v735_v53 }
 0x238   : > { %3610 = vmatmul.mubr.msk.bf16.vlgmr.msra.gmra.mrb[4].mxu1 %vm926_vm2, %v878_v31  ;;  %v919_v60 = vpack.c.bf16 %v910_v55, %v910_v55  ;;  %v1407_v1 = vsel %vm1405_vm3, %v918_v58, 0 }
 0x239   : > { %3620 = vmatpush3.bf16.xpose.msra.mxu1 %v1023_v34  ;;  %3621 = vmatprep.mubr.msk.bf16.mxu1 %vm3979_vm1, %v3978_v63  ;;  %v885_v0 = vpack.c.bf16 %v873_v57, %v873_v57 }
 0x23a   : > { %3616 = vmatmul.mubr.msk.bf16.vlgmr.msra.gmra.mrb[8].mxu0 %vm926_vm2, %v879_v32  ;;  %3631 = vmatprep.subr.bf16.mxu1 %v3978_v63  ;;  %v1453_v2 = vsel %vm1405_vm3, %v919_v60, 0 }
 0x23b   : > { %3626 = vmatpush3.bf16.xpose.msra.mxu0 %v1069_v36  ;;  %3627 = vmatprep.mubr.msk.bf16.mxu0 %vm3979_vm1, %v3978_v63 }
 0x23c   : > { %3637 = vmatprep.subr.bf16.mxu0 %v3978_v63 }
 0x240   : > { %3622 = vmatmul.mubr.msk.bf16.vlgmr.msra.gmra.mrb[8].mxu1 %vm926_vm2, %v880_v41 }
 0x241   : > { %3632 = vmatpush3.bf16.xpose.msra.mxu1 %v1115_v44  ;;  %3633 = vmatprep.mubr.msk.bf16.mxu1 %vm3979_vm1, %v3978_v63 }
 0x242   : > { %3628 = vmatmul.mubr.msk.bf16.vlgmr.msra.gmra.mrb[12].mxu0 %vm926_vm2, %v881_v43  ;;  %3643 = vmatprep.subr.bf16.mxu1 %v3978_v63 }
 0x243   : > { %3638 = vmatpush3.bf16.xpose.msra.mxu0 %v1161_v46  ;;  %3639 = vmatprep.mubr.msk.bf16.mxu0 %vm3979_vm1, %v3978_v63 }
 0x244   : > { %3649 = vmatprep.subr.bf16.mxu0 %v3978_v63 }
 0x248   : > { %3634 = vmatmul.mubr.msk.bf16.vlgmr.msra.gmra.mrb[12].mxu1 %vm926_vm2, %v882_v51 }
 0x249   : > { %3644 = vmatpush3.bf16.xpose.msra.mxu1 %v1207_v54  ;;  %3645 = vmatprep.mubr.msk.bf16.mxu1 %vm3979_vm1, %v3978_v63 }
 0x24a   : > { %3640 = vmatmul.mubr.msk.bf16.vlgmr.msra.gmra.mrb[16].mxu0 %vm926_vm2, %v883_v52  ;;  %3655 = vmatprep.subr.bf16.mxu1 %v3978_v63 }
 0x24b   : > { %3650 = vmatpush3.bf16.xpose.msra.mxu0 %v1253_v56  ;;  %3651 = vmatprep.mubr.msk.bf16.mxu0 %vm3979_vm1, %v3978_v63 }
 0x24c   : > { %3661 = vmatprep.subr.bf16.mxu0 %v3978_v63 }
 0x250   : > { %3646 = vmatmul.mubr.msk.bf16.vlgmr.msra.gmra.mrb[16].mxu1 %vm926_vm2, %v884_v61 }
 0x251   : > { %3656 = vmatpush3.bf16.msra.mxu1 %v1407_v1  ;;  %3657 = vmatprep.mubr.msk.bf16.mxu1 %vm3979_vm1, %v3978_v63 }
 0x252   : > { %3652 = vmatmul.mubr.msk.bf16.vlgmr.msra.gmra.mrb[20].mxu0 %vm926_vm2, %v885_v0  ;;  %3667 = vmatprep.subr.bf16.mxu1 %v3978_v63 }
 0x253   : > { %3662 = vmatpush3.bf16.msra.mxu0 %v1453_v2  ;;  %3663 = vmatprep.mubr.msk.bf16.mxu0 %vm3979_vm1, %v3978_v63 }
 0x254   : > { %3673 = vmatprep.subr.bf16.mxu0 %v3978_v63 }
 0x30b   : > { %v967_v4 = vpop.f32.mrb[4].mxu1 }
 0x30c   : > { %v1296_v5 = vadd.f32 %v1295_v3, %v967_v4  ;;  %v3611_v6 = vpop.f32.mrb[5].mxu1 }
 0x30d   : > { %v1013_v7 = vpop.f32.mrb[8].mxu0  ;;  %v970_v8 = vpop.f32.mrb[6].mxu1 }
 0x30e   : > { %v1297_v9 = vadd.f32 %v1295_v3, %v1013_v7  ;;  %v3617_v10 = vpop.f32.mrb[9].mxu0  ;;  %v3612_v11 = vpop.f32.mrb[7].mxu1  ;;  %v1305_v12 = vsel %vm1304_vm4, %v1296_v5, -inf }
 0x30f   : > { %v1016_v13 = vpop.f32.mrb[10].mxu0  ;;  %1306 = vmax.xlane.f32.xlu0 %v1305_v12 }
 0x310   : > { %v3618_v14 = vpop.f32.mrb[11].mxu0  ;;  %v1308_v15 = vsel %vm1304_vm4, %v1297_v9, -inf }
 0x311   : > { %1309 = vmax.xlane.f32.xlu1 %v1308_v15 }
 0x313   : > { %v1059_v16 = vpop.f32.mrb[8].mxu1 }
 0x314   : > { %v1298_v17 = vadd.f32 %v1295_v3, %v1059_v16  ;;  %v3623_v18 = vpop.f32.mrb[9].mxu1 }
 0x315   : > { %v1105_v20 = vpop.f32.mrb[12].mxu0  ;;  %v1062_v21 = vpop.f32.mrb[10].mxu1 }
 0x316   : > { %v1299_v22 = vadd.f32 %v1295_v3, %v1105_v20  ;;  %v3629_v23 = vpop.f32.mrb[13].mxu0  ;;  %v3624_v25 = vpop.f32.mrb[11].mxu1  ;;  %v1311_v26 = vsel %vm1304_vm4, %v1298_v17, -inf }
 0x317   : > { %v1108_v28 = vpop.f32.mrb[14].mxu0  ;;  %1312 = vmax.xlane.f32.xlu0 %v1311_v26 }
 0x318   : > { %v3630_v29 = vpop.f32.mrb[15].mxu0  ;;  %v1314_v30 = vsel %vm1304_vm4, %v1299_v22, -inf }
 0x319   : > { %1315 = vmax.xlane.f32.xlu1 %v1314_v30 }
 0x31b   : > { %v1151_v31 = vpop.f32.mrb[12].mxu1 }
 0x31c   : > { %v1300_v32 = vadd.f32 %v1295_v3, %v1151_v31  ;;  %v3635_v33 = vpop.f32.mrb[13].mxu1 }
 0x31d   : > { %v1197_v34 = vpop.f32.mrb[16].mxu0  ;;  %v1154_v35 = vpop.f32.mrb[14].mxu1 }
 0x31e   : > { %v1301_v36 = vadd.f32 %v1295_v3, %v1197_v34  ;;  %v3641_v37 = vpop.f32.mrb[17].mxu0  ;;  %v3636_v38 = vpop.f32.mrb[15].mxu1  ;;  %v1317_v39 = vsel %vm1304_vm4, %v1300_v32, -inf }
 0x31f   : > { %v1200_v40 = vpop.f32.mrb[18].mxu0  ;;  %1318 = vmax.xlane.f32.xlu0 %v1317_v39 }
 0x320   : > { %v3642_v41 = vpop.f32.mrb[19].mxu0  ;;  %v1320_v42 = vsel %vm1304_vm4, %v1301_v36, -inf  ;;  %v911_v40 = vcombine.high %v4163_v27, %v4163_v27 }
 0x321   : > { %1321 = vmax.xlane.f32.xlu1 %v1320_v42 }
 0x323   : > { %v1243_v43 = vpop.f32.mrb[16].mxu1 }
 0x324   : > { %v1302_v44 = vadd.f32 %v1295_v3, %v1243_v43  ;;  %v3647_v45 = vpop.f32.mrb[17].mxu1 }
 0x325   : > { %v1289_v46 = vpop.f32.mrb[20].mxu0  ;;  %v1246_v47 = vpop.f32.mrb[18].mxu1 }
 0x326   : > { %v1303_v48 = vadd.f32 %v1295_v3, %v1289_v46  ;;  %v3653_v49 = vpop.f32.mrb[21].mxu0  ;;  %v3648_v50 = vpop.f32.mrb[19].mxu1  ;;  %v1323_v51 = vsel %vm1304_vm4, %v1302_v44, -inf  ;;  %v921_v46 = vpack.c.bf16 %v911_v40, %v911_v40 }
 0x327   : > { %v1292_v52 = vpop.f32.mrb[22].mxu0  ;;  %1324 = vmax.xlane.f32.xlu0 %v1323_v51 }
 0x328   : > { %v3654_v53 = vpop.f32.mrb[23].mxu0  ;;  %v1326_v54 = vsel %vm1304_vm4, %v1303_v48, -inf  ;;  %v912_v52 = vcombine.high %v4157_v19, %v4157_v19 }
 0x329   : > { %1327 = vmax.xlane.f32.xlu1 %v1326_v54 }
 0x39c   : > { %v1307_v55 = vpop.xlane.xlu0 %1306 }
 0x39d   : > { %v1329_v56 = vsub.f32 %v1296_v5, %v1307_v55 }
 0x39e   : > { %v1310_v57 = vpop.xlane.xlu1 %1309 }
 0x39f   : > { %v1330_v58 = vsub.f32 %v1297_v9, %v1310_v57  ;;  %v1337_v60 = vmul.f32 1.442695, %v1329_v56  ;;  %v922_v56 = vpack.c.bf16 %v4157_v19, %v4157_v19 }
 0x3a1   : > { %v1339_v61 = vmul.f32 1.442695, %v1330_v58  ;;  %3886 = vpow2.f32 %v1337_v60  ;;  %v923_v58 = vpack.c.bf16 %v912_v52, %v912_v52 }
 0x3a3   : > { %3888 = vpow2.f32 %v1339_v61  ;;  %v1637_v19 = vsel %vm1405_vm3, %v923_v58, 0 }
 0x3a4   : > { %v1313_v0 = vpop.xlane.xlu0 %1312 }
 0x3a5   : > { %v1331_v1 = vsub.f32 %v1298_v17, %v1313_v0 }
 0x3a6   : > { %v1316_v2 = vpop.xlane.xlu1 %1315 }
 0x3a7   : > { %v1332_v3 = vsub.f32 %v1299_v22, %v1316_v2  ;;  %v1341_v4 = vmul.f32 1.442695, %v1331_v1  ;;  %v1591_v1 = vsel %vm1405_vm3, %v922_v56, 0 }
 0x3a9   : > { %v1343_v6 = vmul.f32 1.442695, %v1332_v3  ;;  %3890 = vpow2.f32 %v1341_v4  ;;  %v913_v3 = vcombine.high %v4160_v24, %v4160_v24 }
 0x3ab   : > { %3892 = vpow2.f32 %v1343_v6  ;;  %v3887_v7 = vpop.eup %3886 }
 0x3ac   : > { %v1319_v10 = vpop.xlane.xlu0 %1318  ;;  %v1353_v11 = vsel %vm1304_vm4, %v3887_v7, 0.0 }
 0x3ad   : > { %v3889_v8 = vpop.eup %3888  ;;  %v1333_v5 = vsub.f32 %v1300_v32, %v1319_v10  ;;  %1354 = vadd.xlane.f32.xlu0 %v1353_v11  ;;  %v925_v11 = vpack.c.bf16 %v913_v3, %v913_v3 }
 0x3ae   : > { %v1322_v9 = vpop.xlane.xlu1 %1321  ;;  %v1356_v12 = vsel %vm1304_vm4, %v3889_v8, 0.0 }
 0x3af   : > { %v1334_v13 = vsub.f32 %v1301_v36, %v1322_v9  ;;  %1357 = vadd.xlane.f32.xlu1 %v1356_v12  ;;  %v1345_v14 = vmul.f32 1.442695, %v1333_v5 }
 0x3b1   : > { %v1347_v15 = vmul.f32 1.442695, %v1334_v13  ;;  %3894 = vpow2.f32 %v1345_v14  ;;  %v3870_v13 = vld [vmem:[%s4559_s3 + $0x8] sm:$0xff]  }
 0x3b3   : > { %3896 = vpow2.f32 %v1347_v15  ;;  %v3891_v16 = vpop.eup %3890 }
 0x3b4   : > { %v1325_v18 = vpop.xlane.xlu0 %1324  ;;  %v1359_v20 = vsel %vm1304_vm4, %v3891_v16, 0.0 }
 0x3b5   : > { %v4223_v17 = vpop.eup %3892  ;;  %v1335_v21 = vsub.f32 %v1302_v44, %v1325_v18  ;;  %1360 = vadd.xlane.f32.xlu0 %v1359_v20  ;;  %v920_v44 = vpack.c.bf16 %v4163_v27, %v4163_v27  ;;  %v1545_v27 = vsel %vm1405_vm3, %v921_v46, 0 }
 0x3b6   : > { %v1328_v22 = vpop.xlane.xlu1 %1327  ;;  %v1362_v23 = vsel %vm1304_vm4, %v4223_v17, 0.0 }
 0x3b7   : > { %v1336_v25 = vsub.f32 %v1303_v48, %v1328_v22  ;;  %1363 = vadd.xlane.f32.xlu1 %v1362_v23  ;;  %v1349_v26 = vmul.f32 1.442695, %v1335_v21  ;;  %v1499_v50 = vsel %vm1405_vm3, %v920_v44, 0  ;;  %v3871_v22 = vld [vmem:[%s4561_s5 + $0x8] sm:$0xff]   ;;  %v1789_v23 = vld [vmem:[%s4566_s10] sm:$0xf] }
 0x3b9   : > { %v1351_v28 = vmul.f32 1.442695, %v1336_v25  ;;  %3898 = vpow2.f32 %v1349_v26  ;;  %v1798_v25 = vsel %vm1796_vm6, %v1789_v23, 0  ;;  %v3872_v26 = vld [vmem:[%s4560_s4 + $0x8] sm:$0xff]  }
 0x3bb   : > { %3900 = vpow2.f32 %v1351_v28  ;;  %v4228_v29 = vpop.eup %3894 }
 0x3bc   : > { %v1365_v31 = vsel %vm1304_vm4, %v4228_v29, 0.0 }
 0x3bd   : > { %v4230_v30 = vpop.eup %3896  ;;  %1366 = vadd.xlane.f32.xlu0 %v1365_v31 }
 0x3be   : > { %v1368_v32 = vsel %vm1304_vm4, %v4230_v30, 0.0 }
 0x3bf   : > { %1369 = vadd.xlane.f32.xlu1 %v1368_v32 }
 0x3c3   : > { %v4236_v33 = vpop.eup %3898 }
 0x3c4   : > { %v1371_v35 = vsel %vm1304_vm4, %v4236_v33, 0.0 }
 0x3c5   : > { %v4238_v34 = vpop.eup %3900  ;;  %1372 = vadd.xlane.f32.xlu0 %v1371_v35 }
 0x3c6   : > { %v1374_v36 = vsel %vm1304_vm4, %v4238_v34, 0.0 }
 0x3c7   : > { %1375 = vadd.xlane.f32.xlu1 %v1374_v36 }
 0x43a   : > { %v1355_v37 = vpop.xlane.xlu0 %1354 }
 0x43b   : > { %3902 = vrcp.f32 %v1355_v37 }
 0x43c   : > { %v1358_v38 = vpop.xlane.xlu1 %1357 }
 0x43d   : > { %3904 = vrcp.f32 %v1358_v38 }
 0x442   : > { %v1361_v39 = vpop.xlane.xlu0 %1360 }
 0x443   : > { %3906 = vrcp.f32 %v1361_v39 }
 0x444   : > { %v1364_v41 = vpop.xlane.xlu1 %1363 }
 0x445   : > { %3908 = vrcp.f32 %v1364_v41  ;;  %v3903_v42 = vpop.eup %3902 }
 0x446   : > { %v1385_v45 = vmul.f32 %v3903_v42, %v3887_v7 }
 0x447   : > { %v3905_v43 = vpop.eup %3904 }
 0x448   : > { %v1386_v47 = vmul.f32 %v3905_v43, %v3889_v8  ;;  %v1393_v48 = vpack.c.bf16 %v1385_v45, %v1385_v45  ;;  %v924_v8 = vpack.c.bf16 %v4160_v24, %v4160_v24  ;;  %v1729_v24 = vsel %vm1405_vm3, %v925_v11, 0 }
 0x44a   : > { %v1394_v49 = vpack.c.bf16 %v1386_v47, %v1386_v47  ;;  %3658 = vmatmul.mubr.msk.bf16.vlgmr.msra.gmra.mrb[20].mxu1 %vm1401_vm5, %v1393_v48  ;;  %v1367_v51 = vpop.xlane.xlu0 %1366  ;;  %v1683_v14 = vsel %vm1405_vm3, %v924_v8, 0  ;;  %v4328_v8 = vld [vmem:[%s4564_s8 + $0x1] ss:$0 sm:$0xff] }
 0x44b   : > { %3668 = vmatpush3.bf16.msra.mxu1 %v1499_v50  ;;  %3910 = vrcp.f32 %v1367_v51  ;;  %3669 = vmatprep.mubr.msk.bf16.mxu1 %vm3979_vm1, %v3978_v63 }
 0x44c   : > { %3664 = vmatmul.mubr.msk.bf16.vlgmr.msra.gmra.mrb[24].mxu0 %vm1401_vm5, %v1394_v49  ;;  %v1370_v53 = vpop.xlane.xlu1 %1369  ;;  %3679 = vmatprep.subr.bf16.mxu1 %v3978_v63 }
 0x44d   : > { %3674 = vmatpush3.bf16.msra.mxu0 %v1545_v27  ;;  %3912 = vrcp.f32 %v1370_v53  ;;  %v3907_v54 = vpop.eup %3906  ;;  %3675 = vmatprep.mubr.msk.bf16.mxu0 %vm3979_vm1, %v3978_v63 }
 0x44e   : > { %v1387_v57 = vmul.f32 %v3907_v54, %v3891_v16  ;;  %3685 = vmatprep.subr.bf16.mxu0 %v3978_v63 }
 0x44f   : > { %v3909_v55 = vpop.eup %3908 }
 0x450   : > { %v1388_v60 = vmul.f32 %v3909_v55, %v4223_v17  ;;  %v1395_v61 = vpack.c.bf16 %v1387_v57, %v1387_v57 }
 0x452   : > { %v1396_v0 = vpack.c.bf16 %v1388_v60, %v1388_v60  ;;  %3670 = vmatmul.mubr.msk.bf16.vlgmr.msra.gmra.mrb[24].mxu1 %vm1401_vm5, %v1395_v61  ;;  %v1373_v2 = vpop.xlane.xlu0 %1372 }
 0x453   : > { %3680 = vmatpush3.bf16.msra.mxu1 %v1591_v1  ;;  %3914 = vrcp.f32 %v1373_v2  ;;  %3681 = vmatprep.mubr.msk.bf16.mxu1 %vm3979_vm1, %v3978_v63 }
 0x454   : > { %3676 = vmatmul.mubr.msk.bf16.vlgmr.msra.gmra.mrb[28].mxu0 %vm1401_vm5, %v1396_v0  ;;  %v1376_v4 = vpop.xlane.xlu1 %1375  ;;  %3691 = vmatprep.subr.bf16.mxu1 %v3978_v63 }
 0x455   : > { %3686 = vmatpush3.bf16.msra.mxu0 %v1637_v19  ;;  %3916 = vrcp.f32 %v1376_v4  ;;  %v3911_v6 = vpop.eup %3910  ;;  %3687 = vmatprep.mubr.msk.bf16.mxu0 %vm3979_vm1, %v3978_v63 }
 0x456   : > { %v1389_v10 = vmul.f32 %v3911_v6, %v4228_v29  ;;  %3697 = vmatprep.subr.bf16.mxu0 %v3978_v63 }
 0x457   : > { %v3913_v7 = vpop.eup %3912 }
 0x458   : > { %v1390_v5 = vmul.f32 %v3913_v7, %v4230_v30  ;;  %v1397_v9 = vpack.c.bf16 %v1389_v10, %v1389_v10 }
 0x45a   : > { %v1398_v12 = vpack.c.bf16 %v1390_v5, %v1390_v5  ;;  %3682 = vmatmul.mubr.msk.bf16.vlgmr.msra.gmra.mrb[28].mxu1 %vm1401_vm5, %v1397_v9 }
 0x45b   : > { %3692 = vmatpush3.bf16.msra.mxu1 %v1683_v14  ;;  %3693 = vmatprep.mubr.msk.bf16.mxu1 %vm3979_vm1, %v3978_v63 }
 0x45c   : > { %3688 = vmatmul.mubr.msk.bf16.vlgmr.msra.gmra.mrb[32].mxu0 %vm1401_vm5, %v1398_v12  ;;  %3855 = vmatprep.subr.msk.bf16.mxu1 %vm1796_vm6, %v1789_v23 }
 0x45d   : > { %3698 = vmatpush3.bf16.msra.mxu0 %v1729_v24  ;;  %v3915_v15 = vpop.eup %3914  ;;  %3699 = vmatprep.mubr.msk.bf16.mxu0 %vm3979_vm1, %v3978_v63 }
 0x45e   : > { %3709 = vmatprep.subr.bf16.mxu0 %v3870_v13  ;;  %v1391_v17 = vmul.f32 %v3915_v15, %v4236_v33 }
 0x45f   : > { %v3917_v16 = vpop.eup %3916 }
 0x460   : > { %v1392_v18 = vmul.f32 %v3917_v16, %v4238_v34  ;;  %v1399_v20 = vpack.c.bf16 %v1391_v17, %v1391_v17  ;;  %v3437_v17 = vld [vmem:[%s4562_s6 + $0x1] ss:$0 sm:$0xff] }
 0x462   : > { %v1400_v21 = vpack.c.bf16 %v1392_v18, %v1392_v18  ;;  %3694 = vmatmul.mubr.msk.bf16.vlgmr.msra.gmra.mrb[32].mxu1 %vm1401_vm5, %v1399_v20 }
 0x463   : > { %3704 = vmatpush3.bf16.msra.mxu1 %v1798_v25 }
 0x464   : > { %3700 = vmatmul.mubr.msk.bf16.vlgmr.msra.gmra.mrb[36].mxu0 %vm1401_vm5, %v1400_v21  ;;  %3715 = vmatprep.subr.bf16.mxu1 %v3872_v26 }
 0x465   : > { %3711 = vmatprep.mubr.msk.bf16.mxu0 %vm591_vm0, %v4120_v59  ;;  %3710 = vmatpush3.bf16.msra.mxu0 %v3870_v13  ;;  %v3444_v13 = vld [vmem:[%s4563_s7 + $0x1] ss:$0 sm:$0xff] }
 0x466   : > { %3721 = vmatprep.subr.bf16.mxu0 %v3871_v22 }
 0x46c   : > { %3712 = vmatmul.mubr.msk.bf16.vlgmr.msra.gmra.mrb[40].mxu0 %vm591_vm0, %v4126_v62 }
 0x46d   : > { %3723 = vmatprep.mubr.msk.bf16.mxu0 %vm591_vm0, %v4120_v59  ;;  %3722 = vmatpush3.bf16.msra.mxu0 %v3871_v22 }
 0x46e   : > { %3733 = vmatprep.subr.bf16.mxu0 %v3978_v63 }
 0x474   : > { %3724 = vmatmul.mubr.msk.bf16.vlgmr.msra.gmra.mrb[44].mxu0 %vm591_vm0, %v4126_v62 }
 0x475   : > { %3735 = vmatprep.mubr.msk.bf16.mxu0 %vm3979_vm1, %v3978_v63 }
 0x51d   : > { %v1443_v28 = vpop.f32.mrb[20].mxu1 }
 0x51e   : > { %v3659_v29 = vpop.f32.mrb[21].mxu1 }
 0x51f   : > { %v1489_v30 = vpop.f32.mrb[24].mxu0  ;;  %v1446_v31 = vpop.f32.mrb[22].mxu1 }
 0x520   : > { %v1779_v32 = vcombine.low %v1443_v28, %v1489_v30  ;;  %v3665_v33 = vpop.f32.mrb[25].mxu0  ;;  %v3660_v34 = vpop.f32.mrb[23].mxu1 }
 0x521   : > { %v1492_v35 = vpop.f32.mrb[26].mxu0 }
 0x522   : > { %v3666_v36 = vpop.f32.mrb[27].mxu0 }
 0x525   : > { %v1535_v37 = vpop.f32.mrb[24].mxu1 }
 0x526   : > { %v3671_v38 = vpop.f32.mrb[25].mxu1 }
 0x527   : > { %v1581_v39 = vpop.f32.mrb[28].mxu0  ;;  %v1538_v40 = vpop.f32.mrb[26].mxu1 }
 0x528   : > { %v1780_v41 = vcombine.low %v1535_v37, %v1581_v39  ;;  %v3677_v42 = vpop.f32.mrb[29].mxu0  ;;  %v3672_v43 = vpop.f32.mrb[27].mxu1 }
 0x529   : > { %v1584_v44 = vpop.f32.mrb[30].mxu0 }
 0x52a   : > { %v1787_v45 = vpack.c.bf16 %v1780_v41, %v1779_v32  ;;  %v3678_v46 = vpop.f32.mrb[31].mxu0 }
 0x52c   : > { %3705 = vmatprep.mubr.msk.bf16.mxu1 %vm926_vm2, %v1787_v45 }
 0x52d   : > { %v1627_v47 = vpop.f32.mrb[28].mxu1 }
 0x52e   : > { %v3683_v48 = vpop.f32.mrb[29].mxu1 }
 0x52f   : > { %v1673_v49 = vpop.f32.mrb[32].mxu0  ;;  %v1630_v50 = vpop.f32.mrb[30].mxu1 }
 0x530   : > { %v1781_v51 = vcombine.low %v1627_v47, %v1673_v49  ;;  %v3689_v52 = vpop.f32.mrb[33].mxu0  ;;  %v3684_v27 = vpop.f32.mrb[31].mxu1 }
 0x531   : > { %v1676_v53 = vpop.f32.mrb[34].mxu0 }
 0x532   : > { %v3690_v54 = vpop.f32.mrb[35].mxu0 }
 0x535   : > { %v1719_v55 = vpop.f32.mrb[32].mxu1 }
 0x536   : > { %v3695_v56 = vpop.f32.mrb[33].mxu1 }
 0x537   : > { %v1765_v57 = vpop.f32.mrb[36].mxu0  ;;  %v1722_v58 = vpop.f32.mrb[34].mxu1 }
 0x538   : > { %v1782_v60 = vcombine.low %v1719_v55, %v1765_v57  ;;  %v3701_v61 = vpop.f32.mrb[37].mxu0  ;;  %v3696_v0 = vpop.f32.mrb[35].mxu1 }
 0x539   : > { %v1768_v1 = vpop.f32.mrb[38].mxu0 }
 0x53a   : > { %v1788_v2 = vpack.c.bf16 %v1782_v60, %v1781_v51  ;;  %v3702_v3 = vpop.f32.mrb[39].mxu0 }
 0x53c   : > { %3706 = vmatmul.mubr.msk.bf16.vlgmr.msra.gmra.mrb[36].mxu1 %vm926_vm2, %v1788_v2 }
 0x53d   : > { %3716 = vmatpush3.bf16.msra.mxu1 %v3872_v26  ;;  %3717 = vmatprep.mubr.msk.bf16.mxu1 %vm591_vm0, %v4120_v59 }
 0x53e   : > { %3727 = vmatprep.subr.bf16.mxu1 %v3978_v63 }
 0x53f   : > { %v3713_v19 = vpop.f32.mrb[40].mxu0 }
 0x540   : > { %v1910_v4 = vpop.f32.mrb[41].mxu0  ;;  %v1919_v45 = vadd.f32 %v3713_v19, %v3437_v17 }
 0x541   : > { %v4321_v6 = vpop.f32.mrb[42].mxu0  ;;  %v1911_v23 = vadd.f32 %v3437_v17, %v1910_v4  ;;  %v3463_v4 = vld [vmem:[%s4565_s9 + $0x4] sm:$0xf] }
 0x542   : > { %v1913_v7 = vpop.f32.mrb[43].mxu0  ;;  %v2063_v50 = vcombine.high %v1919_v45, %v1919_v45  ;;  %v2073_v52 = vpack.c.bf16 %v1919_v45, %v1919_v45  ;;  %v1922_v55 = vadd.f32 %v4321_v6, %v3437_v17 }
 0x543   : > { %v2061_v30 = vcombine.high %v1911_v23, %v1911_v23  ;;  %v2069_v32 = vpack.c.bf16 %v1911_v23, %v1911_v23  ;;  %v1914_v36 = vadd.f32 %v3437_v17, %v1913_v7 }
 0x544   : > { %3718 = vmatmul.mubr.msk.bf16.vlgmr.msra.gmra.mrb[40].mxu1 %vm591_vm0, %v4126_v62  ;;  %v2074_v54 = vpack.c.bf16 %v2063_v50, %v2063_v50  ;;  %v2064_v60 = vcombine.high %v1922_v55, %v1922_v55  ;;  %v2075_v0 = vpack.c.bf16 %v1922_v55, %v1922_v55 }
 0x545   : > { %3729 = vmatprep.mubr.msk.bf16.mxu1 %vm3979_vm1, %v3978_v63  ;;  %v2070_v35 = vpack.c.bf16 %v2061_v30, %v2061_v30  ;;  %v2062_v40 = vcombine.high %v1914_v36, %v1914_v36  ;;  %v2071_v42 = vpack.c.bf16 %v1914_v36, %v1914_v36 }
 0x546   : > { %v2076_v2 = vpack.c.bf16 %v2064_v60, %v2064_v60 }
 0x547   : > { %v3725_v10 = vpop.f32.mrb[44].mxu0  ;;  %v2072_v46 = vpack.c.bf16 %v2062_v40, %v2062_v40 }
 0x548   : > { %v4333_v59 = vadd.f32 %v3725_v10, %v4328_v8  ;;  %v4335_v11 = vpop.f32.mrb[45].mxu0 }
 0x549   : > { %v3726_v5 = vpop.f32.mrb[46].mxu0  ;;  %v2043_v27 = vadd.f32 %v4328_v8, %v4335_v11 }
 0x54a   : > { %v4338_v9 = vadd.f32 %v3726_v5, %v4328_v8  ;;  %v2045_v12 = vpop.f32.mrb[47].mxu0 }
 0x54b   : > { %v4341_v62 = vadd.f32 %v4328_v8, %v2045_v12  ;;  %v2101_v57 = vcombine.high %v2043_v27, %v2043_v27  ;;  %v2109_v61 = vpack.c.bf16 %v2043_v27, %v2043_v27 }
 0x54d   : > { %v2110_v1 = vpack.c.bf16 %v2101_v57, %v2101_v57  ;;  %v2595_v3 = vsel %vm1405_vm3, %v2109_v61, 0 }
 0x54f   : > { %v2641_v19 = vsel %vm1405_vm3, %v2110_v1, 0 }
 0x617   : > { %v3719_v14 = vpop.f32.mrb[40].mxu1 }
 0x618   : > { %v1976_v24 = vpop.f32.mrb[41].mxu1  ;;  %v1985_v33 = vadd.f32 %v3719_v14, %v3444_v13 }
 0x619   : > { %v1977_v15 = vadd.f32 %v3444_v13, %v1976_v24  ;;  %v3720_v16 = vpop.f32.mrb[42].mxu1 }
 0x61a   : > { %v1979_v18 = vpop.f32.mrb[43].mxu1  ;;  %v2083_v38 = vcombine.high %v1985_v33, %v1985_v33  ;;  %v2093_v41 = vpack.c.bf16 %v1985_v33, %v1985_v33  ;;  %v1988_v44 = vadd.f32 %v3720_v16, %v3444_v13 }
 0x61b   : > { %v2081_v20 = vcombine.high %v1977_v15, %v1977_v15  ;;  %v2089_v21 = vpack.c.bf16 %v1977_v15, %v1977_v15  ;;  %v1980_v22 = vadd.f32 %v3444_v13, %v1979_v18 }
 0x61c   : > { %v2094_v43 = vpack.c.bf16 %v2083_v38, %v2083_v38  ;;  %v2305_v47 = vsel %vm926_vm2, %v2093_v41, 0  ;;  %v2084_v48 = vcombine.high %v1988_v44, %v1988_v44  ;;  %v2095_v51 = vpack.c.bf16 %v1988_v44, %v1988_v44 }
 0x61d   : > { %v2090_v25 = vpack.c.bf16 %v2081_v20, %v2081_v20  ;;  %v2121_v26 = vsel %vm926_vm2, %v2089_v21, 0  ;;  %v2082_v28 = vcombine.high %v1980_v22, %v1980_v22  ;;  %v2091_v31 = vpack.c.bf16 %v1980_v22, %v1980_v22 }
 0x61e   : > { %3728 = vmatpush3.bf16.xpose.msra.mxu1 %v2121_v26  ;;  %v2351_v49 = vsel %vm926_vm2, %v2094_v43, 0  ;;  %v2096_v53 = vpack.c.bf16 %v2084_v48, %v2084_v48  ;;  %v2397_v56 = vsel %vm926_vm2, %v2095_v51, 0 }
 0x61f   : > { %v2167_v29 = vsel %vm926_vm2, %v2090_v25, 0  ;;  %3739 = vmatprep.subr.bf16.mxu1 %v3978_v63  ;;  %v2092_v34 = vpack.c.bf16 %v2082_v28, %v2082_v28  ;;  %v2213_v37 = vsel %vm926_vm2, %v2091_v31, 0 }
 0x620   : > { %3734 = vmatpush3.bf16.xpose.msra.mxu0 %v2167_v29  ;;  %v2443_v58 = vsel %vm926_vm2, %v2096_v53, 0 }
 0x621   : > { %3745 = vmatprep.subr.bf16.mxu0 %v3978_v63  ;;  %v2259_v39 = vsel %vm926_vm2, %v2092_v34, 0 }
 0x625   : > { %3730 = vmatmul.mubr.msk.bf16.vlgmr.msra.gmra.mrb[44].mxu1 %vm926_vm2, %v2069_v32 }
 0x626   : > { %3740 = vmatpush3.bf16.xpose.msra.mxu1 %v2213_v37  ;;  %3741 = vmatprep.mubr.msk.bf16.mxu1 %vm3979_vm1, %v3978_v63 }
 0x627   : > { %3736 = vmatmul.mubr.msk.bf16.vlgmr.msra.gmra.mrb[48].mxu0 %vm926_vm2, %v2070_v35  ;;  %3751 = vmatprep.subr.bf16.mxu1 %v3978_v63 }
 0x628   : > { %3746 = vmatpush3.bf16.xpose.msra.mxu0 %v2259_v39  ;;  %3747 = vmatprep.mubr.msk.bf16.mxu0 %vm3979_vm1, %v3978_v63 }
 0x629   : > { %3757 = vmatprep.subr.bf16.mxu0 %v3978_v63 }
 0x62d   : > { %3742 = vmatmul.mubr.msk.bf16.vlgmr.msra.gmra.mrb[48].mxu1 %vm926_vm2, %v2071_v42 }
 0x62e   : > { %3752 = vmatpush3.bf16.xpose.msra.mxu1 %v2305_v47  ;;  %3753 = vmatprep.mubr.msk.bf16.mxu1 %vm3979_vm1, %v3978_v63 }
 0x62f   : > { %3748 = vmatmul.mubr.msk.bf16.vlgmr.msra.gmra.mrb[52].mxu0 %vm926_vm2, %v2072_v46  ;;  %3763 = vmatprep.subr.bf16.mxu1 %v3978_v63 }
 0x630   : > { %3758 = vmatpush3.bf16.xpose.msra.mxu0 %v2351_v49  ;;  %3759 = vmatprep.mubr.msk.bf16.mxu0 %vm3979_vm1, %v3978_v63 }
 0x631   : > { %3769 = vmatprep.subr.bf16.mxu0 %v3978_v63 }
 0x635   : > { %3754 = vmatmul.mubr.msk.bf16.vlgmr.msra.gmra.mrb[52].mxu1 %vm926_vm2, %v2073_v52 }
 0x636   : > { %3764 = vmatpush3.bf16.xpose.msra.mxu1 %v2397_v56  ;;  %3765 = vmatprep.mubr.msk.bf16.mxu1 %vm3979_vm1, %v3978_v63 }
 0x637   : > { %3760 = vmatmul.mubr.msk.bf16.vlgmr.msra.gmra.mrb[56].mxu0 %vm926_vm2, %v2074_v54  ;;  %3775 = vmatprep.subr.bf16.mxu1 %v3978_v63 }
 0x638   : > { %3770 = vmatpush3.bf16.xpose.msra.mxu0 %v2443_v58  ;;  %3771 = vmatprep.mubr.msk.bf16.mxu0 %vm3979_vm1, %v3978_v63 }
 0x639   : > { %3781 = vmatprep.subr.bf16.mxu0 %v3978_v63 }
 0x63d   : > { %3766 = vmatmul.mubr.msk.bf16.vlgmr.msra.gmra.mrb[56].mxu1 %vm926_vm2, %v2075_v0 }
 0x63e   : > { %3776 = vmatpush3.bf16.msra.mxu1 %v2595_v3  ;;  %3777 = vmatprep.mubr.msk.bf16.mxu1 %vm3979_vm1, %v3978_v63 }
 0x63f   : > { %3772 = vmatmul.mubr.msk.bf16.vlgmr.msra.gmra.mrb[60].mxu0 %vm926_vm2, %v2076_v2  ;;  %3787 = vmatprep.subr.bf16.mxu1 %v3978_v63 }
 0x640   : > { %3782 = vmatpush3.bf16.msra.mxu0 %v2641_v19  ;;  %3783 = vmatprep.mubr.msk.bf16.mxu0 %vm3979_vm1, %v3978_v63 }
 0x641   : > { %3793 = vmatprep.subr.bf16.mxu0 %v3978_v63 }
 0x6f8   : > { %v2157_v6 = vpop.f32.mrb[44].mxu1 }
 0x6f9   : > { %v2487_v7 = vadd.f32 %v3463_v4, %v2157_v6  ;;  %v3731_v8 = vpop.f32.mrb[45].mxu1 }
 0x6fa   : > { %v2160_v10 = vpop.f32.mrb[46].mxu1  ;;  %v2203_v11 = vpop.f32.mrb[48].mxu0 }
 0x6fb   : > { %v2488_v5 = vadd.f32 %v3463_v4, %v2203_v11  ;;  %v3732_v12 = vpop.f32.mrb[47].mxu1  ;;  %v3737_v13 = vpop.f32.mrb[49].mxu0  ;;  %v2495_v14 = vsel %vm1304_vm4, %v2487_v7, -inf }
 0x6fc   : > { %2496 = vmax.xlane.f32.xlu0 %v2495_v14  ;;  %v2206_v24 = vpop.f32.mrb[50].mxu0 }
 0x6fd   : > { %v3738_v15 = vpop.f32.mrb[51].mxu0  ;;  %v2498_v16 = vsel %vm1304_vm4, %v2488_v5, -inf }
 0x6fe   : > { %2499 = vmax.xlane.f32.xlu1 %v2498_v16 }
 0x700   : > { %v2249_v17 = vpop.f32.mrb[48].mxu1 }
 0x701   : > { %v2489_v18 = vadd.f32 %v3463_v4, %v2249_v17  ;;  %v3743_v20 = vpop.f32.mrb[49].mxu1 }
 0x702   : > { %v2252_v21 = vpop.f32.mrb[50].mxu1  ;;  %v2295_v22 = vpop.f32.mrb[52].mxu0 }
 0x703   : > { %v2490_v23 = vadd.f32 %v3463_v4, %v2295_v22  ;;  %v3744_v25 = vpop.f32.mrb[51].mxu1  ;;  %v3749_v26 = vpop.f32.mrb[53].mxu0  ;;  %v2501_v28 = vsel %vm1304_vm4, %v2489_v18, -inf }
 0x704   : > { %2502 = vmax.xlane.f32.xlu0 %v2501_v28  ;;  %v2298_v29 = vpop.f32.mrb[54].mxu0 }
 0x705   : > { %v3750_v30 = vpop.f32.mrb[55].mxu0  ;;  %v2504_v31 = vsel %vm1304_vm4, %v2490_v23, -inf }
 0x706   : > { %2505 = vmax.xlane.f32.xlu1 %v2504_v31 }
 0x708   : > { %v2341_v32 = vpop.f32.mrb[52].mxu1 }
 0x709   : > { %v2491_v33 = vadd.f32 %v3463_v4, %v2341_v32  ;;  %v3755_v34 = vpop.f32.mrb[53].mxu1 }
 0x70a   : > { %v2344_v35 = vpop.f32.mrb[54].mxu1  ;;  %v2387_v36 = vpop.f32.mrb[56].mxu0 }
 0x70b   : > { %v2492_v37 = vadd.f32 %v3463_v4, %v2387_v36  ;;  %v3756_v38 = vpop.f32.mrb[55].mxu1  ;;  %v3761_v39 = vpop.f32.mrb[57].mxu0  ;;  %v2507_v40 = vsel %vm1304_vm4, %v2491_v33, -inf }
 0x70c   : > { %2508 = vmax.xlane.f32.xlu0 %v2507_v40  ;;  %v2390_v41 = vpop.f32.mrb[58].mxu0  ;;  %v2102_v39 = vcombine.high %v4341_v62, %v4341_v62 }
 0x70d   : > { %v3762_v42 = vpop.f32.mrb[59].mxu0  ;;  %v2510_v43 = vsel %vm1304_vm4, %v2492_v37, -inf }
 0x70e   : > { %2511 = vmax.xlane.f32.xlu1 %v2510_v43  ;;  %v2111_v42 = vpack.c.bf16 %v4341_v62, %v4341_v62 }
 0x710   : > { %v2433_v44 = vpop.f32.mrb[56].mxu1 }
 0x711   : > { %v2493_v45 = vadd.f32 %v3463_v4, %v2433_v44  ;;  %v3767_v46 = vpop.f32.mrb[57].mxu1 }
 0x712   : > { %v2436_v47 = vpop.f32.mrb[58].mxu1  ;;  %v2479_v48 = vpop.f32.mrb[60].mxu0 }
 0x713   : > { %v2494_v49 = vadd.f32 %v3463_v4, %v2479_v48  ;;  %v3768_v50 = vpop.f32.mrb[59].mxu1  ;;  %v3773_v51 = vpop.f32.mrb[61].mxu0  ;;  %v2513_v52 = vsel %vm1304_vm4, %v2493_v45, -inf  ;;  %v2687_v48 = vsel %vm1405_vm3, %v2111_v42, 0 }
 0x714   : > { %2514 = vmax.xlane.f32.xlu0 %v2513_v52  ;;  %v2482_v27 = vpop.f32.mrb[62].mxu0  ;;  %v2103_v51 = vcombine.high %v4333_v59, %v4333_v59 }
 0x715   : > { %v3774_v53 = vpop.f32.mrb[63].mxu0  ;;  %v2516_v54 = vsel %vm1304_vm4, %v2494_v49, -inf }
 0x716   : > { %2517 = vmax.xlane.f32.xlu1 %v2516_v54  ;;  %v2113_v53 = vpack.c.bf16 %v4333_v59, %v4333_v59  ;;  %v2104_v59 = vcombine.high %v4338_v9, %v4338_v9 }
 0x789   : > { %v2497_v55 = vpop.xlane.xlu0 %2496 }
 0x78a   : > { %v2519_v56 = vsub.f32 %v2487_v7, %v2497_v55 }
 0x78b   : > { %v2500_v57 = vpop.xlane.xlu1 %2499 }
 0x78c   : > { %v2527_v58 = vmul.f32 1.442695, %v2519_v56  ;;  %v2520_v60 = vsub.f32 %v2488_v5, %v2500_v57  ;;  %v2114_v56 = vpack.c.bf16 %v2103_v51, %v2103_v51 }
 0x78e   : > { %3918 = vpow2.f32 %v2527_v58  ;;  %v2529_v61 = vmul.f32 1.442695, %v2520_v60  ;;  %v2779_v60 = vsel %vm1405_vm3, %v2113_v53, 0 }
 0x790   : > { %3920 = vpow2.f32 %v2529_v61 }
 0x791   : > { %v2503_v0 = vpop.xlane.xlu0 %2502 }
 0x792   : > { %v2521_v1 = vsub.f32 %v2489_v18, %v2503_v0 }
 0x793   : > { %v2506_v2 = vpop.xlane.xlu1 %2505 }
 0x794   : > { %v2531_v3 = vmul.f32 1.442695, %v2521_v1  ;;  %v2522_v19 = vsub.f32 %v2490_v23, %v2506_v2  ;;  %v2825_v1 = vsel %vm1405_vm3, %v2114_v56, 0 }
 0x796   : > { %3922 = vpow2.f32 %v2531_v3  ;;  %v2533_v4 = vmul.f32 1.442695, %v2522_v19  ;;  %v2115_v19 = vpack.c.bf16 %v4338_v9, %v4338_v9 }
 0x798   : > { %v3919_v6 = vpop.eup %3918  ;;  %3924 = vpow2.f32 %v2533_v4 }
 0x799   : > { %v2509_v8 = vpop.xlane.xlu0 %2508  ;;  %v2543_v10 = vsel %vm1304_vm4, %v3919_v6, 0.0 }
 0x79a   : > { %v3921_v11 = vpop.eup %3920  ;;  %v2523_v7 = vsub.f32 %v2491_v33, %v2509_v8  ;;  %2544 = vadd.xlane.f32.xlu0 %v2543_v10  ;;  %v2116_v8 = vpack.c.bf16 %v2104_v59, %v2104_v59 }
 0x79b   : > { %v2512_v12 = vpop.xlane.xlu1 %2511  ;;  %v2546_v5 = vsel %vm1304_vm4, %v3921_v11, 0.0 }
 0x79c   : > { %v2535_v13 = vmul.f32 1.442695, %v2523_v7  ;;  %v2524_v14 = vsub.f32 %v2492_v37, %v2512_v12  ;;  %2547 = vadd.xlane.f32.xlu1 %v2546_v5  ;;  %v2871_v7 = vsel %vm1405_vm3, %v2115_v19, 0  ;;  %v2917_v9 = vsel %vm1405_vm3, %v2116_v8, 0 }
 0x79e   : > { %3926 = vpow2.f32 %v2535_v13  ;;  %v2537_v24 = vmul.f32 1.442695, %v2524_v14 }
 0x7a0   : > { %v3923_v15 = vpop.eup %3922  ;;  %3928 = vpow2.f32 %v2537_v24 }
 0x7a1   : > { %v2515_v16 = vpop.xlane.xlu0 %2514  ;;  %v2549_v17 = vsel %vm1304_vm4, %v3923_v15, 0.0 }
 0x7a2   : > { %v3925_v18 = vpop.eup %3924  ;;  %v2525_v20 = vsub.f32 %v2493_v45, %v2515_v16  ;;  %2550 = vadd.xlane.f32.xlu0 %v2549_v17  ;;  %v2112_v45 = vpack.c.bf16 %v2102_v39, %v2102_v39  ;;  %v3472_v17 = vld [vmem:[%s4566_s10 + $0x4] sm:$0xf] }
 0x7a3   : > { %v2518_v21 = vpop.xlane.xlu1 %2517  ;;  %v2552_v22 = vsel %vm1304_vm4, %v3925_v18, 0.0 }
 0x7a4   : > { %v2539_v23 = vmul.f32 1.442695, %v2525_v20  ;;  %v2526_v25 = vsub.f32 %v2494_v49, %v2518_v21  ;;  %2553 = vadd.xlane.f32.xlu1 %v2552_v22  ;;  %v2733_v62 = vsel %vm1405_vm3, %v2112_v45, 0 }
 0x7a6   : > { %3930 = vpow2.f32 %v2539_v23  ;;  %v2541_v26 = vmul.f32 1.442695, %v2526_v25 }
 0x7a8   : > { %v4411_v28 = vpop.eup %3926  ;;  %3932 = vpow2.f32 %v2541_v26 }
 0x7a9   : > { %v2555_v29 = vsel %vm1304_vm4, %v4411_v28, 0.0 }
 0x7aa   : > { %v4415_v30 = vpop.eup %3928  ;;  %2556 = vadd.xlane.f32.xlu0 %v2555_v29 }
 0x7ab   : > { %v2558_v31 = vsel %vm1304_vm4, %v4415_v30, 0.0 }
 0x7ac   : > { %2559 = vadd.xlane.f32.xlu1 %v2558_v31 }
 0x7b0   : > { %v4419_v32 = vpop.eup %3930 }
 0x7b1   : > { %v2561_v33 = vsel %vm1304_vm4, %v4419_v32, 0.0 }
 0x7b2   : > { %v4423_v34 = vpop.eup %3932  ;;  %2562 = vadd.xlane.f32.xlu0 %v2561_v33 }
 0x7b3   : > { %v2564_v35 = vsel %vm1304_vm4, %v4423_v34, 0.0 }
 0x7b4   : > { %2565 = vadd.xlane.f32.xlu1 %v2564_v35 }
 0x827   : > { %v2545_v36 = vpop.xlane.xlu0 %2544 }
 0x828   : > { %3934 = vrcp.f32 %v2545_v36 }
 0x829   : > { %v2548_v37 = vpop.xlane.xlu1 %2547 }
 0x82a   : > { %3936 = vrcp.f32 %v2548_v37 }
 0x82f   : > { %v2551_v38 = vpop.xlane.xlu0 %2550 }
 0x830   : > { %3938 = vrcp.f32 %v2551_v38 }
 0x831   : > { %v2554_v40 = vpop.xlane.xlu1 %2553 }
 0x832   : > { %v3935_v41 = vpop.eup %3934  ;;  %3940 = vrcp.f32 %v2554_v40 }
 0x833   : > { %v2575_v43 = vmul.f32 %v3935_v41, %v3919_v6 }
 0x834   : > { %v3937_v44 = vpop.eup %3936 }
 0x835   : > { %v2576_v46 = vmul.f32 %v3937_v44, %v3921_v11  ;;  %v2583_v47 = vpack.c.bf16 %v2575_v43, %v2575_v43 }
 0x837   : > { %3778 = vmatmul.mubr.msk.bf16.vlgmr.msra.gmra.mrb[60].mxu1 %vm1401_vm5, %v2583_v47  ;;  %v2557_v49 = vpop.xlane.xlu0 %2556  ;;  %v2584_v50 = vpack.c.bf16 %v2576_v46, %v2576_v46 }
 0x838   : > { %3788 = vmatpush3.bf16.msra.mxu1 %v2687_v48  ;;  %3942 = vrcp.f32 %v2557_v49  ;;  %3789 = vmatprep.mubr.msk.bf16.mxu1 %vm3979_vm1, %v3978_v63 }
 0x839   : > { %3784 = vmatmul.mubr.msk.bf16.vlgmr.msra.gmra.mrb[64].mxu0 %vm1401_vm5, %v2584_v50  ;;  %v2560_v52 = vpop.xlane.xlu1 %2559  ;;  %3799 = vmatprep.subr.bf16.mxu1 %v3978_v63 }
 0x83a   : > { %v3939_v27 = vpop.eup %3938  ;;  %3794 = vmatpush3.bf16.msra.mxu0 %v2733_v62  ;;  %3944 = vrcp.f32 %v2560_v52  ;;  %3795 = vmatprep.mubr.msk.bf16.mxu0 %vm3979_vm1, %v3978_v63 }
 0x83b   : > { %v2577_v54 = vmul.f32 %v3939_v27, %v3923_v15  ;;  %3805 = vmatprep.subr.bf16.mxu0 %v3978_v63 }
 0x83c   : > { %v3941_v55 = vpop.eup %3940 }
 0x83d   : > { %v2578_v57 = vmul.f32 %v3941_v55, %v3925_v18  ;;  %v2585_v58 = vpack.c.bf16 %v2577_v54, %v2577_v54  ;;  %v2986_v18 = vsel %vm1796_vm6, %v3472_v17, 0 }
 0x83f   : > { %3790 = vmatmul.mubr.msk.bf16.vlgmr.msra.gmra.mrb[64].mxu1 %vm1401_vm5, %v2585_v58  ;;  %v2563_v61 = vpop.xlane.xlu0 %2562  ;;  %v2586_v0 = vpack.c.bf16 %v2578_v57, %v2578_v57  ;;  %v3433_v57 = vld [vmem:[%s4567_s11] ss:$0 sm:$0xff] }
 0x840   : > { %3800 = vmatpush3.bf16.msra.mxu1 %v2779_v60  ;;  %3946 = vrcp.f32 %v2563_v61  ;;  %3801 = vmatprep.mubr.msk.bf16.mxu1 %vm3979_vm1, %v3978_v63 }
 0x841   : > { %3796 = vmatmul.mubr.msk.bf16.vlgmr.msra.gmra.mrb[68].mxu0 %vm1401_vm5, %v2586_v0  ;;  %v2566_v2 = vpop.xlane.xlu1 %2565  ;;  %3811 = vmatprep.subr.bf16.mxu1 %v3978_v63 }
 0x842   : > { %v3943_v3 = vpop.eup %3942  ;;  %3806 = vmatpush3.bf16.msra.mxu0 %v2825_v1  ;;  %3948 = vrcp.f32 %v2566_v2  ;;  %3807 = vmatprep.mubr.msk.bf16.mxu0 %vm3979_vm1, %v3978_v63  ;;  %v3966_v2 = vld [vmem:[%s4091_s20] sm:$0xff] }
 0x843   : > { %v2579_v4 = vmul.f32 %v3943_v3, %v4411_v28  ;;  %3817 = vmatprep.subr.bf16.mxu0 %v3978_v63 }
 0x844   : > { %v3945_v6 = vpop.eup %3944 }
 0x845   : > { %v2580_v10 = vmul.f32 %v3945_v6, %v4415_v30  ;;  %v2587_v11 = vpack.c.bf16 %v2579_v4, %v2579_v4  ;;  %v3967_v6 = vld [vmem:[%s4091_s20 + $0x10] sm:$0xff] }
 0x847   : > { %3802 = vmatmul.mubr.msk.bf16.vlgmr.msra.gmra.mrb[68].mxu1 %vm1401_vm5, %v2587_v11  ;;  %v2588_v12 = vpack.c.bf16 %v2580_v10, %v2580_v10  ;;  %v3968_v10 = vld [vmem:[%s4091_s20 + $0x8] sm:$0xff] }
 0x848   : > { %3812 = vmatpush3.bf16.msra.mxu1 %v2871_v7  ;;  %3813 = vmatprep.mubr.msk.bf16.mxu1 %vm3979_vm1, %v3978_v63 }
 0x849   : > { %3808 = vmatmul.mubr.msk.bf16.vlgmr.msra.gmra.mrb[72].mxu0 %vm1401_vm5, %v2588_v12  ;;  %3856 = vmatprep.subr.msk.bf16.mxu1 %vm1796_vm6, %v3472_v17  ;;  %v3969_v12 = vld [vmem:[%s4091_s20 + $0x18] sm:$0xff] }
 0x84a   : > { %v3947_v5 = vpop.eup %3946  ;;  %3818 = vmatpush3.bf16.msra.mxu0 %v2917_v9  ;;  %3819 = vmatprep.mubr.msk.bf16.mxu0 %vm3979_vm1, %v3978_v63 }
 0x84b   : > { %v2581_v13 = vmul.f32 %v3947_v5, %v4419_v32 }
 0x84c   : > { %v3949_v14 = vpop.eup %3948 }
 0x84d   : > { %v2582_v24 = vmul.f32 %v3949_v14, %v4423_v34  ;;  %v2589_v15 = vpack.c.bf16 %v2581_v13, %v2581_v13 }
 0x84f   : > { %3814 = vmatmul.mubr.msk.bf16.vlgmr.msra.gmra.mrb[72].mxu1 %vm1401_vm5, %v2589_v15  ;;  %v2590_v16 = vpack.c.bf16 %v2582_v24, %v2582_v24 }
 0x850   : > { %3824 = vmatpush3.bf16.msra.mxu1 %v2986_v18 }
 0x851   : > { %3820 = vmatmul.mubr.msk.bf16.vlgmr.msra.gmra.mrb[76].mxu0 %vm1401_vm5, %v2590_v16 }
 0x90a   : > { %v2631_v63 = vpop.f32.mrb[60].mxu1 }
 0x90b   : > { %v3779_v20 = vpop.f32.mrb[61].mxu1 }
 0x90c   : > { %v2634_v21 = vpop.f32.mrb[62].mxu1  ;;  %v2677_v22 = vpop.f32.mrb[64].mxu0 }
 0x90d   : > { %v2967_v23 = vcombine.low %v2631_v63, %v2677_v22  ;;  %v3780_v25 = vpop.f32.mrb[63].mxu1  ;;  %v3785_v26 = vpop.f32.mrb[65].mxu0 }
 0x90e   : > { %v2680_v28 = vpop.f32.mrb[66].mxu0 }
 0x90f   : > { %v3786_v29 = vpop.f32.mrb[67].mxu0 }
 0x912   : > { %v2723_v30 = vpop.f32.mrb[64].mxu1 }
 0x913   : > { %v3791_v31 = vpop.f32.mrb[65].mxu1 }
 0x914   : > { %v2726_v32 = vpop.f32.mrb[66].mxu1  ;;  %v2769_v33 = vpop.f32.mrb[68].mxu0 }
 0x915   : > { %v2968_v34 = vcombine.low %v2723_v30, %v2769_v33  ;;  %v3792_v35 = vpop.f32.mrb[67].mxu1  ;;  %v3797_v36 = vpop.f32.mrb[69].mxu0 }
 0x916   : > { %v2772_v37 = vpop.f32.mrb[70].mxu0  ;;  %v3873_v36 = vld [vmem:[%s4570_s14] sm:$0xff]  }
 0x917   : > { %v2975_v38 = vpack.c.bf16 %v2968_v34, %v2967_v23  ;;  %v3798_v39 = vpop.f32.mrb[71].mxu0  ;;  %3829 = vmatprep.subr.bf16.mxu0 %v3873_v36 }
 0x918   : > { %3830 = vmatpush3.bf16.msra.mxu0 %v3873_v36 }
 0x919   : > { %3825 = vmatprep.mubr.msk.bf16.mxu1 %vm926_vm2, %v2975_v38 }
 0x91a   : > { %v2815_v40 = vpop.f32.mrb[68].mxu1 }
 0x91b   : > { %v3803_v41 = vpop.f32.mrb[69].mxu1 }
 0x91c   : > { %v2818_v42 = vpop.f32.mrb[70].mxu1  ;;  %v2861_v43 = vpop.f32.mrb[72].mxu0 }
 0x91d   : > { %v2969_v44 = vcombine.low %v2815_v40, %v2861_v43  ;;  %v3804_v45 = vpop.f32.mrb[71].mxu1  ;;  %v3809_v46 = vpop.f32.mrb[73].mxu0 }
 0x91e   : > { %v2864_v47 = vpop.f32.mrb[74].mxu0 }
 0x91f   : > { %v3810_v48 = vpop.f32.mrb[75].mxu0 }
 0x922   : > { %v2907_v49 = vpop.f32.mrb[72].mxu1 }
 0x923   : > { %v3815_v50 = vpop.f32.mrb[73].mxu1 }
 0x924   : > { %v2910_v51 = vpop.f32.mrb[74].mxu1  ;;  %v2953_v62 = vpop.f32.mrb[76].mxu0  ;;  %v3475_v50 = vld [vmem:[%s4568_s12] ss:$0 sm:$0xff] }
 0x925   : > { %v2970_v52 = vcombine.low %v2907_v49, %v2953_v62  ;;  %v3816_v27 = vpop.f32.mrb[75].mxu1  ;;  %v3821_v53 = vpop.f32.mrb[77].mxu0 }
 0x926   : > { %v2956_v54 = vpop.f32.mrb[78].mxu0 }
 0x927   : > { %v2976_v55 = vpack.c.bf16 %v2970_v52, %v2969_v44  ;;  %v3822_v56 = vpop.f32.mrb[79].mxu0  ;;  %v3476_v54 = vld [vmem:[%s4569_s13] ss:$0 sm:$0xff] }
 0x929   : > { %3826 = vmatmul.mubr.msk.bf16.vlgmr.msra.gmra.mrb[36].mxu1 %vm926_vm2, %v2976_v55 }
 0x9fc   : > { %v3827_v58 = vpop.f32.mrb[36].mxu1 }
 0x9fd   : > { %v3022_v60 = vpop.f32.mrb[37].mxu1  ;;  %v3847_v61 = vadd.f32 %v3827_v58, %v3433_v57 }
 0x9fe   : > { %v3848_v0 = vadd.f32 %v3433_v57, %v3022_v60  ;;  %v3828_v59 = vpop.f32.mrb[38].mxu1 }
 0x9ff   : > { %v3025_v1 = vpop.f32.mrb[39].mxu1  ;;  %v3849_v19 = vadd.f32 %v3828_v59, %v3433_v57  ;;  %v4487_v8 = vadd.f32 %v3967_v6, %v3847_v61  ;;  %v3874_v6 = vld [vmem:[%s4572_s16] sm:$0xff]  }
 0xa00   : > { %v4484_v3 = vadd.f32 %v3966_v2, %v3848_v0  ;;  %v3850_v4 = vadd.f32 %v3433_v57, %v3025_v1  ;;  %3835 = vmatprep.subr.bf16.mxu1 %v3874_v6 }
 0xa01   : > { %v4495_v9 = vadd.f32 %v3969_v12, %v3849_v19  ;;  %v3053_v13 = vsel %vm591_vm0, %v4487_v8, 0.0  ;;  %3836 = vmatpush3.bf16.msra.mxu1 %v3874_v6  ;;  %v3877_v12 = vld [vmem:[%s4572_s16 + $0x18] sm:$0xff]  }
 0xa02   : > { %v4490_v11 = vadd.f32 %v3968_v10, %v3850_v4  ;;  %v3047_v7 = vsel %vm591_vm0, %v4484_v3, 0.0  ;;  %v3875_v10 = vld [vmem:[%s4572_s16 + $0x8] sm:$0xff]  }
 0xa03   : > { %3048 = vadd.xlane.f32.xlu0 %v3047_v7  ;;  %v3056_v14 = vsel %vm591_vm0, %v4495_v9, 0.0  ;;  %3837 = vmatprep.subr.bf16.mxu1 %v3875_v10  ;;  %v3876_v7 = vld [vmem:[%s4572_s16 + $0x10] sm:$0xff]  }
 0xa04   : > { %v3050_v5 = vsel %vm591_vm0, %v4490_v11, 0.0 }
 0xa05   : > { %3051 = vadd.xlane.f32.xlu1 %v3050_v5  ;;  %3838 = vmatpush3.bf16.msra.mxu1 %v3875_v10  ;;  %v3477_v5 = vld [vmem:[%s4571_s15] ss:$0 sm:$0xff] }
 0xa06   : > { %3839 = vmatprep.subr.bf16.mxu1 %v3876_v7 }
 0xa07   : > { %3054 = vadd.xlane.f32.xlu0 %v3053_v13 }
 0xa09   : > { %3057 = vadd.xlane.f32.xlu1 %v3056_v14  ;;  %3840 = vmatpush3.bf16.msra.mxu1 %v3876_v7 }
 0xa0a   : > { %3841 = vmatprep.subr.bf16.mxu1 %v3877_v12 }
 0xa0d   : > { %3842 = vmatpush3.bf16.msra.mxu1 %v3877_v12 }
 0xa90   : > { %v3049_v24 = vpop.xlane.xlu0 %3048 }
 0xa91   : > { %v3059_v15 = vmul.f32 0.0625, %v3049_v24 }
 0xa92   : > { %v3052_v16 = vpop.xlane.xlu1 %3051 }
 0xa93   : > { %v3063_v17 = vsub.f32 %v4484_v3, %v3059_v15  ;;  %v3060_v18 = vmul.f32 0.0625, %v3052_v16 }
 0xa94   : > { %v3055_v63 = vpop.xlane.xlu0 %3054 }
 0xa95   : > { %v3064_v20 = vsub.f32 %v4490_v11, %v3060_v18  ;;  %v3061_v21 = vmul.f32 0.0625, %v3055_v63  ;;  %v3067_v22 = vmul.f32 %v3063_v17, %v3063_v17 }
 0xa96   : > { %v3058_v23 = vpop.xlane.xlu1 %3057 }
 0xa97   : > { %v3065_v25 = vsub.f32 %v4487_v8, %v3061_v21  ;;  %v3062_v26 = vmul.f32 0.0625, %v3058_v23  ;;  %v3071_v28 = vsel %vm591_vm0, %v3067_v22, 0.0  ;;  %v3068_v29 = vmul.f32 %v3064_v20, %v3064_v20 }
 0xa98   : > { %3072 = vadd.xlane.f32.xlu0 %v3071_v28 }
 0xa99   : > { %v3066_v30 = vsub.f32 %v4495_v9, %v3062_v26  ;;  %v3074_v31 = vsel %vm591_vm0, %v3068_v29, 0.0  ;;  %v3069_v32 = vmul.f32 %v3065_v25, %v3065_v25 }
 0xa9a   : > { %3075 = vadd.xlane.f32.xlu1 %v3074_v31 }
 0xa9b   : > { %v3077_v33 = vsel %vm591_vm0, %v3069_v32, 0.0  ;;  %v3070_v34 = vmul.f32 %v3066_v30, %v3066_v30 }
 0xa9c   : > { %3078 = vadd.xlane.f32.xlu0 %v3077_v33 }
 0xa9d   : > { %v3080_v35 = vsel %vm591_vm0, %v3070_v34, 0.0 }
 0xa9e   : > { %3081 = vadd.xlane.f32.xlu1 %v3080_v35 }
 0xb25   : > { %v3073_v37 = vpop.xlane.xlu0 %3072 }
 0xb26   : > { %v3083_v38 = vmul.f32 0.0625, %v3073_v37 }
 0xb27   : > { %v3076_v39 = vpop.xlane.xlu1 %3075 }
 0xb28   : > { %v3087_v40 = vadd.f32 1e-05, %v3083_v38  ;;  %v3084_v41 = vmul.f32 0.0625, %v3076_v39 }
 0xb29   : > { %v3079_v42 = vpop.xlane.xlu0 %3078 }
 0xb2a   : > { %3950 = vrsqrt.f32 %v3087_v40  ;;  %v3088_v43 = vadd.f32 1e-05, %v3084_v41  ;;  %v3085_v44 = vmul.f32 0.0625, %v3079_v42 }
 0xb2b   : > { %v3082_v45 = vpop.xlane.xlu1 %3081 }
 0xb2c   : > { %3952 = vrsqrt.f32 %v3088_v43  ;;  %v3089_v46 = vadd.f32 1e-05, %v3085_v44  ;;  %v3086_v47 = vmul.f32 0.0625, %v3082_v45 }
 0xb2e   : > { %3954 = vrsqrt.f32 %v3089_v46  ;;  %v3090_v48 = vadd.f32 1e-05, %v3086_v47 }
 0xb30   : > { %3956 = vrsqrt.f32 %v3090_v48 }
 0xb34   : > { %v3951_v49 = vpop.eup %3950 }
 0xb35   : > { %v3095_v51 = vmul.f32 %v3951_v49, %v3063_v17 }
 0xb36   : > { %v3953_v62 = vpop.eup %3952 }
 0xb37   : > { %v3096_v52 = vmul.f32 %v3953_v62, %v3064_v20  ;;  %v3105_v27 = vmul.f32 %v3475_v50, %v3095_v51 }
 0xb38   : > { %v3955_v53 = vpop.eup %3954 }
 0xb39   : > { %v3097_v55 = vmul.f32 %v3955_v53, %v3065_v25  ;;  %v3106_v56 = vmul.f32 %v3475_v50, %v3096_v52  ;;  %v3115_v61 = vadd.f32 %v3476_v54, %v3105_v27 }
 0xb3a   : > { %v3957_v57 = vpop.eup %3956 }
 0xb3b   : > { %v3107_v58 = vmul.f32 %v3475_v50, %v3097_v55  ;;  %v3098_v60 = vmul.f32 %v3957_v57, %v3066_v30  ;;  %v3116_v0 = vadd.f32 %v3476_v54, %v3106_v56 }
 0xb3d   : > { %v3108_v59 = vmul.f32 %v3475_v50, %v3098_v60  ;;  %v3119_v1 = vpack.c.bf16 %v3116_v0, %v3115_v61  ;;  %v3117_v2 = vadd.f32 %v3476_v54, %v3107_v58  ;;  %v3481_v58 = vld [vmem:[%s4573_s17] ss:$0 sm:$0xff] }
 0xb3f   : > { %3831 = vmatprep.mubr.msk.bf16.mxu0 %vm591_vm0, %v3119_v1  ;;  %v3118_v19 = vadd.f32 %v3476_v54, %v3108_v59 }
 0xb41   : > { %v3120_v4 = vpack.c.bf16 %v3118_v19, %v3117_v2 }
 0xb43   : > { %3832 = vmatmul.mubr.msk.bf16.vlgmr.msra.gmra.mrb[80].mxu0 %vm591_vm0, %v3120_v4 }
 0xc16   : > { %v3833_v13 = vpop.f32.mrb[80].mxu0 }
 0xc17   : > { %v3185_v14 = vadd.f32 %v3833_v13, %v3477_v5  ;;  %v3176_v24 = vpop.f32.mrb[81].mxu0 }
 0xc18   : > { %v3177_v15 = vadd.f32 %v3477_v5, %v3176_v24  ;;  %v3834_v16 = vpop.f32.mrb[82].mxu0 }
 0xc19   : > { %v3193_v17 = vmul.f32 %v3185_v14, %v3185_v14  ;;  %v3188_v18 = vadd.f32 %v3834_v16, %v3477_v5  ;;  %v3179_v63 = vpop.f32.mrb[83].mxu0 }
 0xc1a   : > { %v3191_v20 = vmul.f32 %v3177_v15, %v3177_v15  ;;  %v3180_v21 = vadd.f32 %v3477_v5, %v3179_v63 }
 0xc1b   : > { %v3197_v22 = vmul.f32 %v3193_v17, %v3185_v14  ;;  %v3194_v23 = vmul.f32 %v3188_v18, %v3188_v18 }
 0xc1c   : > { %v3195_v25 = vmul.f32 %v3191_v20, %v3177_v15  ;;  %v3192_v26 = vmul.f32 %v3180_v21, %v3180_v21 }
 0xc1d   : > { %v3201_v28 = vmul.f32 0.044715, %v3197_v22  ;;  %v3198_v29 = vmul.f32 %v3194_v23, %v3188_v18 }
 0xc1e   : > { %v3199_v30 = vmul.f32 0.044715, %v3195_v25  ;;  %v3196_v31 = vmul.f32 %v3192_v26, %v3180_v21 }
 0xc1f   : > { %v3205_v32 = vadd.f32 %v3201_v28, %v3185_v14  ;;  %v3202_v33 = vmul.f32 0.044715, %v3198_v29 }
 0xc20   : > { %v3203_v34 = vadd.f32 %v3199_v30, %v3177_v15  ;;  %v3200_v35 = vmul.f32 0.044715, %v3196_v31 }
 0xc21   : > { %v3209_v36 = vmul.f32 0.7978846, %v3205_v32  ;;  %v3206_v37 = vadd.f32 %v3202_v33, %v3188_v18 }
 0xc22   : > { %v3207_v38 = vmul.f32 0.7978846, %v3203_v34  ;;  %v3204_v39 = vadd.f32 %v3200_v35, %v3180_v21 }
 0xc23   : > { %3958 = vtanh.f32 %v3209_v36  ;;  %v3210_v40 = vmul.f32 0.7978846, %v3206_v37 }
 0xc24   : > { %3960 = vtanh.f32 %v3207_v38  ;;  %v3208_v41 = vmul.f32 0.7978846, %v3204_v39 }
 0xc25   : > { %3962 = vtanh.f32 %v3210_v40 }
 0xc26   : > { %3964 = vtanh.f32 %v3208_v41 }
 0xc2d   : > { %v3959_v42 = vpop.eup %3958 }
 0xc2e   : > { %v3961_v43 = vpop.eup %3960  ;;  %v3217_v44 = vadd.f32 1.0, %v3959_v42 }
 0xc2f   : > { %v3963_v45 = vpop.eup %3962  ;;  %v3215_v46 = vadd.f32 1.0, %v3961_v43 }
 0xc30   : > { %v3965_v47 = vpop.eup %3964  ;;  %v3221_v48 = vmul.f32 0.5, %v3217_v44  ;;  %v3218_v49 = vadd.f32 1.0, %v3963_v45 }
 0xc31   : > { %v3219_v50 = vmul.f32 0.5, %v3215_v46  ;;  %v3216_v51 = vadd.f32 1.0, %v3965_v47 }
 0xc32   : > { %v3222_v62 = vmul.f32 0.5, %v3218_v49  ;;  %v3225_v27 = vmul.f32 %v3221_v48, %v3185_v14 }
 0xc33   : > { %v3220_v52 = vmul.f32 0.5, %v3216_v51  ;;  %v3223_v54 = vmul.f32 %v3219_v50, %v3177_v15 }
 0xc34   : > { %v3226_v53 = vmul.f32 %v3222_v62, %v3188_v18 }
 0xc35   : > { %v3224_v55 = vmul.f32 %v3220_v52, %v3180_v21 }
 0xc36   : > { %v3228_v56 = vpack.c.bf16 %v3226_v53, %v3225_v27 }
 0xc37   : > { %v3227_v57 = vpack.c.bf16 %v3224_v55, %v3223_v54 }
 0xc39   : > { %3843 = vmatprep.mubr.msk.bf16.mxu1 %vm3268_vm7, %v3227_v57 }
 0xc3a   : > { %3844 = vmatmul.mubr.msk.bf16.vlgmr.msra.gmra.mrb[76].mxu1 %vm3268_vm7, %v3228_v56 }
 0xd0d   : > { %v3845_v60 = vpop.f32.mrb[76].mxu1 }
 0xd0e   : > { %v3318_v61 = vadd.f32 %v3845_v60, %v3481_v58  ;;  %v3309_v0 = vpop.f32.mrb[77].mxu1 }
 0xd0f   : > { %v3310_v59 = vadd.f32 %v3481_v58, %v3309_v0  ;;  %v3846_v1 = vpop.f32.mrb[78].mxu1 }
 0xd10   : > { %v3321_v2 = vadd.f32 %v3846_v1, %v3481_v58  ;;  %v3312_v19 = vpop.f32.mrb[79].mxu1  ;;  %v3326_v10 = vadd.f32 %v3318_v61, %v4487_v8 }
 0xd11   : > { %v3324_v4 = vadd.f32 %v3310_v59, %v4484_v3  ;;  %v3313_v6 = vadd.f32 %v3481_v58, %v3312_v19 }
 0xd12   : > { %3330 = vst.msk [vmem:[%s582_s23 + $0x10] sm:$0xff] %vm591_vm0, %v3326_v10  ;;  %v3327_v12 = vadd.f32 %v3321_v2, %v4495_v9 }
 0xd13   : > { %3328 = vst.msk [vmem:[%s582_s23] sm:$0xff] %vm591_vm0, %v3324_v4  ;;  %v3325_v7 = vadd.f32 %v3313_v6, %v4490_v11 }
 0xd14   : > { %3331 = vst.msk [vmem:[%s582_s23 + $0x18] sm:$0xff] %vm591_vm0, %v3327_v12 }
 0xd15   : > { %3329 = vst.msk [vmem:[%s582_s23 + $0x8] sm:$0xff] %vm591_vm0, %v3325_v7 }
 0xd16 PF: > { %s28_s27 = sadd.s32 1, %s3976_s27  }
 0xd17   : > { %p25_p4 = scmp.ge.s32.totalorder %s28_s27, 4  }
 0xd19   :  { %27 = sbr.rel (!%p25_p4) target bundleno = 4 (0x4), region = 130 }

// kernel: swin_transformer_forward.10
= control target key start
LH: loop header
LB: loop body
LE: loop exit
PB: predicated region body
PF: predicated region fallthrough
CT: control target
= control target key end

     0   :  { %s519_s15 = smov 0   ;;  %s564_s0 = inlined_call_operand.vmem [shape: f32[4,4,64], index: 0, kind: input, shape index: {}]   ;;  %s565_s1 = inlined_call_operand.vmem [shape: f32[1,64], index: 1, kind: input, shape index: {}]   ;;  %s566_s2 = inlined_call_operand.vmem [shape: f32[1,64], index: 2, kind: input, shape index: {}]   ;;  %s567_s3 = inlined_call_operand.vmem [shape: bf16[64,32], index: 3, kind: input, shape index: {}]   ;;  %s568_s4 = inlined_call_operand.vmem [shape: f32[4,4,32], index: 4, kind: output, shape index: {}]  }
   0x1 LB: > { %s428_s16 = sadd.s32 4294967295, %s488_s15   ;;  %p432_p0 = scmp.ge.s32.totalorder %s488_s15, 1  ;;  %s488_s15 = sphi %s519_s15, %s14_s15  }
   0x2   : > { %p163_p1 = scmp.lt.s32.totalorder %s488_s15, 3 }
   0x4   : > { %p164_p2 = pnand %p432_p0, %p163_p1 }
   0x5   : > { %s433_s17 = sshll.u32 (!%p164_p2), %s428_s16, 1  ;;  %vm210_vm0 = vcmask (!%p164_p2), 523264   ;;  %v490_v4 = vmov (!%p164_p2), 839922192   ;;  %v220_v6 = vlaneseq (!%p164_p2)  ;;  %v491_v7 = vmov (!%p164_p2), 1985246804  }
   0x6   : > { %167 = sbr.rel (%p164_p2) target bundleno = 557 (0x22d), region = 36  ;;  %p190_p3 = scmp.lt.s32.totalorder (!%p164_p2), %s433_s17, 3  ;;  %v218_v5 = vunpack.c.l.s4 (!%p164_p2), %v490_v4  ;;  %v225_v8 = vunpack.c.l.s4 (!%p164_p2), %v491_v7  ;;  %v476_v24 = vld [vmem:[%s567_s3] sm:$0xff] (!%p164_p2)   ;;  %v492_v25 = vmov (!%p164_p2), 0.0   ;;  %v477_v26 = vld [vmem:[%s567_s3 + $0x8] sm:$0xff] (!%p164_p2)   ;;  %v478_v27 = vld [vmem:[%s567_s3 + $0x10] sm:$0xff] (!%p164_p2)  }
   0x7   : > { %v221_v10 = vshrl.u32 (!%p164_p2), %v220_v6, 7  ;;  %451 = vmatprep.subr.bf16.mxu0 (!%p164_p2), %v492_v25  ;;  %vm493_vm1 = vmmov (!%p164_p2), 0   ;;  %v479_v28 = vld [vmem:[%s567_s3 + $0x18] sm:$0xff] (!%p164_p2)   ;;  %v437_v32 = vld [vmem:[%s565_s1] ss:$0 sm:$0xff] (!%p164_p2)  ;;  %vm369_vm2 = vcmask (!%p164_p2), 257024  }
   0x8   : > { %v219_v9 = vunpack.c.0.s8 (!%p164_p2), %v218_v5  ;;  %v226_v11 = vunpack.c.0.s8 (!%p164_p2), %v225_v8  ;;  %452 = vmatpush3.bf16.msra.mxu0 (!%p164_p2), %v476_v24  ;;  %459 = vmatprep.mubr.msk.bf16.mxu0 (!%p164_p2), %vm493_vm1, %v492_v25  ;;  %v438_v34 = vld [vmem:[%s566_s2] ss:$0 sm:$0xff] (!%p164_p2)  ;;  %v272_v37 = vcombine.high (!%p164_p2), %v437_v32, %v437_v32 }
   0x9   : > { %453 = vmatprep.subr.bf16.mxu0 (!%p164_p2), %v492_v25  ;;  %v282_v40 = vcombine.high (!%p164_p2), %v438_v34, %v438_v34 }
   0xa   : > { %v222_v12 = vsub.s32 (!%p164_p2), %v219_v9, %v221_v10  ;;  %v229_v13 = vsub.s32 (!%p164_p2), %v226_v11, %v221_v10 }
   0xc   : > { %454 = vmatpush3.bf16.msra.mxu0 (!%p164_p2), %v477_v26 }
   0xd   : > { %s570_s17 = smov (!%p190_p3, %s433_s17), 3  ;;  %455 = vmatprep.subr.bf16.mxu0 %v492_v25 }
   0xe   : > { %s434_s18 = sshll.u32 %s570_s17, 2 }
   0xf   : > { %s193_s21 = scalar_lea.vmem %s564_s0, %s434_s18  ;;  %s199_s10 = scalar_lea.vmem %s568_s4, %s434_s18 }
  0x10   : > { %v202_v0 = vld [vmem:[%s193_s21] sm:$0xf]  ;;  %v203_v1 = vld [vmem:[%s193_s21 + $0x4] sm:$0xf]  ;;  %456 = vmatpush3.bf16.msra.mxu0 %v478_v27 }
  0x11   : > { %v208_v2 = vcombine.low %v202_v0, %v203_v1  ;;  %457 = vmatprep.subr.bf16.mxu0 %v492_v25 }
  0x13   : > { %v211_v3 = vsel %vm210_vm0, %v208_v2, 0.0 }
  0x14   : > { %212 = vadd.xlane.f32.xlu0 %v211_v3  ;;  %458 = vmatpush3.bf16.msra.mxu0 %v479_v28 }
  0xa1   : > { %v213_v14 = vpop.xlane.xlu0 %212 }
  0xa2   : > { %v215_v15 = vmul.f32 0.015625, %v213_v14 }
  0xa4   : > { %v223_v16 = vrot.slane %v215_v15, %v222_v12  ;;  %v230_v17 = vrot.slane %v215_v15, %v229_v13 }
  0xa6   : > { %v233_v18 = vsub.f32 %v202_v0, %v223_v16  ;;  %v234_v19 = vsub.f32 %v203_v1, %v230_v17 }
  0xa8   : > { %v235_v20 = vmul.f32 %v233_v18, %v233_v18  ;;  %v236_v21 = vmul.f32 %v234_v19, %v234_v19 }
  0xaa   : > { %v239_v22 = vcombine.low %v235_v20, %v236_v21 }
  0xac   : > { %v241_v23 = vsel %vm210_vm0, %v239_v22, 0.0 }
  0xad   : > { %242 = vadd.xlane.f32.xlu0 %v241_v23 }
 0x13a   : > { %v243_v29 = vpop.xlane.xlu0 %242 }
 0x13b   : > { %v244_v30 = vmul.f32 0.015625, %v243_v29 }
 0x13d   : > { %v245_v31 = vadd.f32 1e-05, %v244_v30 }
 0x13f   : > { %480 = vrsqrt.f32 %v245_v31 }
 0x149   : > { %v481_v33 = vpop.eup %480 }
 0x14a   : > { %v254_v35 = vrot.slane %v481_v33, %v222_v12  ;;  %v261_v36 = vrot.slane %v481_v33, %v229_v13 }
 0x14c   : > { %v264_v38 = vmul.f32 %v254_v35, %v233_v18  ;;  %v265_v39 = vmul.f32 %v261_v36, %v234_v19 }
 0x14e   : > { %v274_v41 = vmul.f32 %v437_v32, %v264_v38  ;;  %v275_v42 = vmul.f32 %v272_v37, %v265_v39 }
 0x150   : > { %v284_v43 = vadd.f32 %v438_v34, %v274_v41  ;;  %v285_v44 = vadd.f32 %v282_v40, %v275_v42 }
 0x152   : > { %v296_v45 = vcombine.low %v284_v43, %v285_v44 }
 0x154   : > { %v298_v46 = vpack.c.bf16 %v296_v45, %v296_v45 }
 0x156   : > { %460 = vmatmul.mubr.msk.bf16.vlgmr.msra.gmra.mrb[0].mxu0 %vm210_vm0, %v298_v46 }
 0x229   : > { %v360_v47 = vpop.f32.mrb[0].mxu0 }
 0x22a   : > { %v367_v48 = vcombine.high %v360_v47, %v360_v47  ;;  %370 = vst.msk [vmem:[%s199_s10] sm:$0xf] %vm369_vm2, %v360_v47  ;;  %v461_v49 = vpop.f32.mrb[1].mxu0 }
 0x22b   : > { %v363_v50 = vpop.f32.mrb[2].mxu0 }
 0x22c   : > { %371 = vst.msk [vmem:[%s199_s10 + $0x4] sm:$0xf] %vm369_vm2, %v367_v48  ;;  %v462_v51 = vpop.f32.mrb[3].mxu0 }
 0x22d PF: > { %s14_s15 = sadd.s32 1, %s488_s15  }
 0x22e   : > { %p11_p4 = scmp.ge.s32.totalorder %s14_s15, 4  }
 0x230   :  { %13 = sbr.rel (!%p11_p4) target bundleno = 1 (0x1), region = 66 }

// kernel: swin_transformer_forward.9
= control target key start
LH: loop header
LB: loop body
LE: loop exit
PB: predicated region body
PF: predicated region fallthrough
CT: control target
= control target key end

     0   :  { %s4636_s0 = inlined_call_operand.vmem [shape: f32[4,16,16], index: 0, kind: input, shape index: {}]   ;;  %s4637_s1 = inlined_call_operand.vmem [shape: f32[1,16], index: 1, kind: input, shape index: {}]   ;;  %s4638_s2 = inlined_call_operand.vmem [shape: f32[1,16], index: 2, kind: input, shape index: {}]   ;;  %s4639_s3 = inlined_call_operand.vmem [shape: bf16[2,16,8], index: 3, kind: input, shape index: {}]   ;;  %s4640_s4 = inlined_call_operand.vmem [shape: bf16[2,16,8], index: 4, kind: input, shape index: {}]   ;;  %s4641_s5 = inlined_call_operand.vmem [shape: bf16[2,16,8], index: 5, kind: input, shape index: {}]   ;;  %s4642_s6 = inlined_call_operand.vmem [shape: f32[2,1,8], index: 6, kind: input, shape index: {}]   ;;  %s4643_s7 = inlined_call_operand.vmem [shape: f32[2,1,8], index: 7, kind: input, shape index: {}]   ;;  %s4644_s8 = inlined_call_operand.vmem [shape: f32[2,1,8], index: 8, kind: input, shape index: {}]   ;;  %s4645_s9 = inlined_call_operand.vmem [shape: f32[2,4,4], index: 9, kind: input, shape index: {}]   ;;  %s4646_s10 = inlined_call_operand.vmem [shape: f32[4,4,4], index: 10, kind: input, shape index: {}]   ;;  %s4647_s11 = inlined_call_operand.vmem [shape: bf16[2,8,16], index: 11, kind: input, shape index: {}]   ;;  %s4648_s12 = inlined_call_operand.vmem [shape: f32[1,16], index: 12, kind: input, shape index: {}]   ;;  %s4649_s13 = inlined_call_operand.vmem [shape: f32[1,16], index: 13, kind: input, shape index: {}]   ;;  %s4650_s14 = inlined_call_operand.vmem [shape: f32[1,16], index: 14, kind: input, shape index: {}]   ;;  %s4651_s15 = inlined_call_operand.vmem [shape: bf16[16,64], index: 15, kind: input, shape index: {}]   ;;  %s4652_s16 = inlined_call_operand.vmem [shape: f32[1,64], index: 16, kind: input, shape index: {}]   ;;  %s4653_s17 = inlined_call_operand.vmem [shape: bf16[64,16], index: 17, kind: input, shape index: {}]   ;;  %s4654_s18 = inlined_call_operand.vmem [shape: f32[1,16], index: 18, kind: input, shape index: {}]   ;;  %s4655_s19 = inlined_call_operand.vmem [shape: f32[4,16,16], index: 19, kind: output, shape index: {}]  }
   0x1   :  { %4657 = sst [smem:[#allocation2_spill]] %s4636_s0  ;;  %s4131_s0 = smov 0  }
   0x2   :  { %4658 = sst [smem:[#allocation3_spill]] %s4637_s1 }
   0x3   :  { %4659 = sst [smem:[#allocation4_spill]] %s4638_s2 }
   0x4   :  { %4660 = sst [smem:[#allocation5_spill]] %s4639_s3 }
   0x5 LB: > { %s3441_s30 = sadd.s32 4294967295, %s4027_s0   ;;  %p3445_p0 = scmp.ge.s32.totalorder %s4027_s0, 1  ;;  %s4027_s0 = sphi %s4131_s0, %s29_s0  }
   0x6   : > { %p539_p1 = scmp.lt.s32.totalorder %s4027_s0, 3 }
   0x8   : > { %p540_p2 = pnand %p3445_p0, %p539_p1 }
   0x9   : > { %s3446_s20 = sshll.u32 (!%p540_p2), %s3441_s30, 1  ;;  %vm618_vm0 = vcmask (!%p540_p2), 130048   ;;  %s4661_s2 = sld [smem:[#allocation2_spill]] (!%p540_p2)  ;;  %v3919_v29 = vld [vmem:[%s4640_s4] sm:$0xff] (!%p540_p2)   ;;  %v4029_v63 = vmov (!%p540_p2), 0.0   ;;  %vm4030_vm1 = vmmov (!%p540_p2), 0  }
   0xa   : > { %543 = sbr.rel (%p540_p2) target bundleno = 3355 (0xd1b), region = 96  ;;  %p598_p3 = scmp.lt.s32.totalorder (!%p540_p2), %s3446_s20, 3  ;;  %3646 = vmatprep.subr.bf16.mxu1 (!%p540_p2), %v3919_v29  ;;  %v3920_v30 = vld [vmem:[%s4641_s5] sm:$0xff] (!%p540_p2)   ;;  %vm953_vm2 = vcmask (!%p540_p2), 64512   ;;  %vm1444_vm3 = vcmask (!%p540_p2), 1041408   ;;  %vm1343_vm4 = vcmask (!%p540_p2), 27648  }
   0xb   : > { %s4662_s3 = sld [smem:[#allocation5_spill]] (!%p540_p2)  ;;  %3647 = vmatpush3.bf16.msra.mxu1 (!%p540_p2), %v3919_v29  ;;  %s4663_s22 = sld [smem:[#allocation3_spill]] (!%p540_p2)  ;;  %vm1440_vm5 = vcmask (!%p540_p2), 31744   ;;  %vm1835_vm6 = vcmask (!%p540_p2), 1043456   ;;  %vm3319_vm7 = vcmask (!%p540_p2), 523264  }
   0xc   : > { %s4664_s25 = sld [smem:[#allocation4_spill]] (!%p540_p2)  ;;  %3658 = vmatprep.subr.bf16.mxu1 (!%p540_p2), %v4029_v63 }
  0x11   : > { %s4666_s20 = smov (!%p598_p3, %s3446_s20), 3  ;;  %v3918_v28 = vld [vmem:[%s4662_s3] sm:$0xff]  }
  0x12   : > { %s3541_s21 = sshll.u32 %s4666_s20, 4  ;;  %3640 = vmatprep.subr.bf16.mxu0 %v3918_v28  ;;  %v3452_v45 = vld [vmem:[%s4663_s22] ss:$0 sm:$0xff] }
  0x13   : > { %s4147_s23 = scalar_lea.vmem %s4661_s2, %s3541_s21  ;;  %3641 = vmatpush3.bf16.msra.mxu0 %v3918_v28  ;;  %v3453_v50 = vld [vmem:[%s4664_s25] ss:$0 sm:$0xff]  ;;  %s609_s28 = scalar_lea.vmem %s4655_s19, %s3541_s21 }
  0x14   : > { %v612_v0 = vld [vmem:[%s4147_s23] sm:$0xff]  ;;  %v614_v1 = vld [vmem:[%s4147_s23 + $0x10] sm:$0xff]  ;;  %v613_v2 = vld [vmem:[%s4147_s23 + $0x8] sm:$0xff]  ;;  %3652 = vmatprep.subr.bf16.mxu0 %v3920_v30 }
  0x15   : > { %v619_v3 = vsel %vm618_vm0, %v612_v0, 0.0  ;;  %v625_v4 = vsel %vm618_vm0, %v614_v1, 0.0  ;;  %v615_v5 = vld [vmem:[%s4147_s23 + $0x18] sm:$0xff]  ;;  %v622_v6 = vsel %vm618_vm0, %v613_v2, 0.0 }
  0x16   : > { %620 = vadd.xlane.f32.xlu0 %v619_v3  ;;  %626 = vadd.xlane.f32.xlu1 %v625_v4  ;;  %v628_v7 = vsel %vm618_vm0, %v615_v5, 0.0 }
  0x1a   : > { %623 = vadd.xlane.f32.xlu0 %v622_v6  ;;  %629 = vadd.xlane.f32.xlu1 %v628_v7 }
  0xa3   : > { %v621_v8 = vpop.xlane.xlu0 %620  ;;  %v627_v9 = vpop.xlane.xlu1 %626 }
  0xa4   : > { %v632_v10 = vmul.f32 0.0625, %v621_v8  ;;  %v634_v11 = vmul.f32 0.0625, %v627_v9 }
  0xa6   : > { %v636_v12 = vsub.f32 %v612_v0, %v632_v10  ;;  %v638_v13 = vsub.f32 %v614_v1, %v634_v11  ;;  %v3458_v0 = vld [vmem:[%s4643_s7] ss:$0 sm:$0xff] }
  0xa7   : > { %v624_v14 = vpop.xlane.xlu0 %623  ;;  %v630_v15 = vpop.xlane.xlu1 %629  ;;  %v4206_v11 = vld [vmem:[%s4642_s6] ss:$0 sm:$0xff] }
  0xa8   : > { %v633_v16 = vmul.f32 0.0625, %v624_v14  ;;  %v635_v17 = vmul.f32 0.0625, %v630_v15  ;;  %v640_v18 = vmul.f32 %v636_v12, %v636_v12  ;;  %v642_v19 = vmul.f32 %v638_v13, %v638_v13  ;;  %v3462_v15 = vld [vmem:[%s4644_s8] ss:$0 sm:$0xff] }
  0xaa   : > { %v637_v20 = vsub.f32 %v613_v2, %v633_v16  ;;  %v639_v21 = vsub.f32 %v615_v5, %v635_v17  ;;  %v644_v22 = vsel %vm618_vm0, %v640_v18, 0.0  ;;  %v650_v23 = vsel %vm618_vm0, %v642_v19, 0.0 }
  0xab   : > { %645 = vadd.xlane.f32.xlu0 %v644_v22 }
  0xac   : > { %v641_v24 = vmul.f32 %v637_v20, %v637_v20  ;;  %v643_v25 = vmul.f32 %v639_v21, %v639_v21 }
  0xae   : > { %v647_v26 = vsel %vm618_vm0, %v641_v24, 0.0  ;;  %v653_v27 = vsel %vm618_vm0, %v643_v25, 0.0 }
  0xaf   : > { %651 = vadd.xlane.f32.xlu0 %v650_v23  ;;  %648 = vadd.xlane.f32.xlu1 %v647_v26 }
  0xb3   : > { %654 = vadd.xlane.f32.xlu1 %v653_v27 }
 0x138   : > { %v646_v31 = vpop.xlane.xlu0 %645 }
 0x139   : > { %v656_v32 = vmul.f32 0.0625, %v646_v31 }
 0x13b   : > { %v660_v33 = vadd.f32 1e-05, %v656_v32 }
 0x13c   : > { %v649_v34 = vpop.xlane.xlu1 %648  ;;  %v652_v35 = vpop.xlane.xlu0 %651 }
 0x13d   : > { %3929 = vrsqrt.f32 %v660_v33  ;;  %v657_v36 = vmul.f32 0.0625, %v649_v34  ;;  %v658_v37 = vmul.f32 0.0625, %v652_v35 }
 0x13f   : > { %v661_v38 = vadd.f32 1e-05, %v657_v36  ;;  %v662_v39 = vadd.f32 1e-05, %v658_v37 }
 0x140   : > { %v655_v40 = vpop.xlane.xlu1 %654 }
 0x141   : > { %3931 = vrsqrt.f32 %v661_v38  ;;  %v659_v41 = vmul.f32 0.0625, %v655_v40 }
 0x142   : > { %3933 = vrsqrt.f32 %v662_v39 }
 0x143   : > { %v663_v42 = vadd.f32 1e-05, %v659_v41 }
 0x145   : > { %3935 = vrsqrt.f32 %v663_v42 }
 0x147   : > { %v3930_v43 = vpop.eup %3929 }
 0x148   : > { %v668_v44 = vmul.f32 %v3930_v43, %v636_v12 }
 0x14a   : > { %v678_v48 = vmul.f32 %v3452_v45, %v668_v44 }
 0x14b   : > { %v3932_v46 = vpop.eup %3931 }
 0x14c   : > { %v3934_v47 = vpop.eup %3933  ;;  %v669_v49 = vmul.f32 %v3932_v46, %v637_v20  ;;  %v688_v54 = vadd.f32 %v3453_v50, %v678_v48 }
 0x14d   : > { %v670_v51 = vmul.f32 %v3934_v47, %v638_v13 }
 0x14e   : > { %v679_v52 = vmul.f32 %v3452_v45, %v669_v49 }
 0x14f   : > { %v3936_v53 = vpop.eup %3935  ;;  %v680_v56 = vmul.f32 %v3452_v45, %v670_v51 }
 0x150   : > { %v689_v55 = vadd.f32 %v3453_v50, %v679_v52  ;;  %v671_v57 = vmul.f32 %v3936_v53, %v639_v21 }
 0x151   : > { %v690_v60 = vadd.f32 %v3453_v50, %v680_v56 }
 0x152   : > { %v681_v58 = vmul.f32 %v3452_v45, %v671_v57  ;;  %v4176_v59 = vpack.c.bf16 %v689_v55, %v688_v54 }
 0x154   : > { %v691_v61 = vadd.f32 %v3453_v50, %v681_v58  ;;  %3642 = vmatprep.mubr.msk.bf16.mxu0 %vm618_vm0, %v4176_v59  ;;  %3648 = vmatprep.mubr.msk.bf16.mxu1 %vm618_vm0, %v4176_v59 }
 0x156   : > { %v4182_v62 = vpack.c.bf16 %v691_v61, %v690_v60 }
 0x158   : > { %3643 = vmatmul.mubr.msk.bf16.vlgmr.msra.gmra.mrb[0].mxu0 %vm618_vm0, %v4182_v62  ;;  %3649 = vmatmul.mubr.msk.bf16.vlgmr.msra.gmra.mrb[0].mxu1 %vm618_vm0, %v4182_v62 }
 0x159   : > { %3654 = vmatprep.mubr.msk.bf16.mxu0 %vm618_vm0, %v4176_v59  ;;  %3653 = vmatpush3.bf16.msra.mxu0 %v3920_v30 }
 0x15a   : > { %3664 = vmatprep.subr.bf16.mxu0 %v4029_v63  ;;  %3660 = vmatprep.mubr.msk.bf16.mxu1 %vm4030_vm1, %v4029_v63 }
 0x160   : > { %3655 = vmatmul.mubr.msk.bf16.vlgmr.msra.gmra.mrb[4].mxu0 %vm618_vm0, %v4182_v62 }
 0x161   : > { %3666 = vmatprep.mubr.msk.bf16.mxu0 %vm4030_vm1, %v4029_v63 }
 0x22b   : > { %v3644_v1 = vpop.f32.mrb[0].mxu0  ;;  %v3650_v2 = vpop.f32.mrb[0].mxu1 }
 0x22c   : > { %v750_v3 = vpop.f32.mrb[1].mxu0  ;;  %v814_v4 = vpop.f32.mrb[1].mxu1  ;;  %v823_v29 = vadd.f32 %v3650_v2, %v3458_v0  ;;  %v759_v42 = vadd.f32 %v3644_v1, %v4206_v11 }
 0x22d   : > { %v815_v5 = vadd.f32 %v3458_v0, %v814_v4  ;;  %v4201_v6 = vpop.f32.mrb[2].mxu0  ;;  %v3651_v7 = vpop.f32.mrb[2].mxu1  ;;  %v751_v16 = vadd.f32 %v4206_v11, %v750_v3  ;;  %v1322_v3 = vld [vmem:[%s4645_s9] sm:$0xf] }
 0x22e   : > { %v753_v8 = vpop.f32.mrb[3].mxu0  ;;  %v817_v9 = vpop.f32.mrb[3].mxu1  ;;  %v919_v35 = vcombine.high %v823_v29, %v823_v29  ;;  %v929_v38 = vpack.c.bf16 %v823_v29, %v823_v29  ;;  %v826_v40 = vadd.f32 %v3651_v7, %v3458_v0  ;;  %v899_v47 = vcombine.high %v759_v42, %v759_v42 }
 0x22f   : > { %v917_v10 = vcombine.high %v815_v5, %v815_v5  ;;  %v925_v12 = vpack.c.bf16 %v815_v5, %v815_v5  ;;  %v818_v14 = vadd.f32 %v3458_v0, %v817_v9  ;;  %v897_v26 = vcombine.high %v751_v16, %v751_v16  ;;  %v1331_v5 = vld [vmem:[%s4646_s10] sm:$0xf]  ;;  %v1332_v9 = vld [vmem:[%s4646_s10 + $0x4] sm:$0xf] }
 0x230   : > { %v905_v31 = vpack.c.bf16 %v751_v16, %v751_v16  ;;  %v754_v33 = vadd.f32 %v4206_v11, %v753_v8  ;;  %v930_v39 = vpack.c.bf16 %v919_v35, %v919_v35  ;;  %v1142_v44 = vsel %vm953_vm2, %v929_v38, 0 }
 0x231   : > { %v926_v13 = vpack.c.bf16 %v917_v10, %v917_v10  ;;  %v958_v18 = vsel %vm953_vm2, %v925_v12, 0  ;;  %v918_v21 = vcombine.high %v818_v14, %v818_v14  ;;  %v927_v28 = vpack.c.bf16 %v818_v14, %v818_v14 }
 0x232   : > { %3659 = vmatpush3.bf16.xpose.msra.mxu1 %v958_v18  ;;  %v906_v32 = vpack.c.bf16 %v897_v26, %v897_v26  ;;  %v898_v37 = vcombine.high %v754_v33, %v754_v33  ;;  %v907_v41 = vpack.c.bf16 %v754_v33, %v754_v33  ;;  %v920_v45 = vcombine.high %v826_v40, %v826_v40 }
 0x233   : > { %v3656_v17 = vpop.f32.mrb[4].mxu0  ;;  %v1004_v22 = vsel %vm953_vm2, %v926_v13, 0  ;;  %3670 = vmatprep.subr.bf16.mxu1 %v4029_v63  ;;  %v928_v30 = vpack.c.bf16 %v918_v21, %v918_v21  ;;  %v1050_v34 = vsel %vm953_vm2, %v927_v28, 0  ;;  %v1188_v46 = vsel %vm953_vm2, %v930_v39, 0  ;;  %v1334_v28 = vld [vmem:[%s4646_s10 + $0xc] sm:$0xf] }
 0x234   : > { %v4213_v19 = vadd.f32 %v3656_v17, %v3462_v15  ;;  %v878_v20 = vpop.f32.mrb[5].mxu0  ;;  %3665 = vmatpush3.bf16.xpose.msra.mxu0 %v1004_v22  ;;  %v908_v43 = vpack.c.bf16 %v898_v37, %v898_v37  ;;  %v931_v48 = vpack.c.bf16 %v826_v40, %v826_v40  ;;  %v932_v49 = vpack.c.bf16 %v920_v45, %v920_v45  ;;  %v1333_v22 = vld [vmem:[%s4646_s10 + $0x8] sm:$0xf] }
 0x235   : > { %v3657_v23 = vpop.f32.mrb[6].mxu0  ;;  %3676 = vmatprep.subr.bf16.mxu0 %v4029_v63  ;;  %v1096_v36 = vsel %vm953_vm2, %v928_v30, 0  ;;  %v879_v50 = vadd.f32 %v3462_v15, %v878_v20  ;;  %v909_v51 = vpack.c.bf16 %v759_v42, %v759_v42  ;;  %v910_v52 = vpack.c.bf16 %v899_v47, %v899_v47 }
 0x236   : > { %v4216_v24 = vadd.f32 %v3657_v23, %v3462_v15  ;;  %v881_v25 = vpop.f32.mrb[7].mxu0  ;;  %v762_v53 = vadd.f32 %v4201_v6, %v4206_v11  ;;  %v1234_v54 = vsel %vm953_vm2, %v931_v48, 0  ;;  %v1280_v56 = vsel %vm953_vm2, %v932_v49, 0 }
 0x237   : > { %v4219_v27 = vadd.f32 %v3462_v15, %v881_v25  ;;  %v937_v55 = vcombine.high %v879_v50, %v879_v50  ;;  %v945_v58 = vpack.c.bf16 %v879_v50, %v879_v50 }
 0x238   : > { %v900_v57 = vcombine.high %v762_v53, %v762_v53  ;;  %v911_v61 = vpack.c.bf16 %v762_v53, %v762_v53 }
 0x239   : > { %3661 = vmatmul.mubr.msk.bf16.vlgmr.msra.gmra.mrb[4].mxu1 %vm953_vm2, %v905_v31  ;;  %v946_v60 = vpack.c.bf16 %v937_v55, %v937_v55  ;;  %v1446_v1 = vsel %vm1444_vm3, %v945_v58, 0 }
 0x23a   : > { %3671 = vmatpush3.bf16.xpose.msra.mxu1 %v1050_v34  ;;  %3672 = vmatprep.mubr.msk.bf16.mxu1 %vm4030_vm1, %v4029_v63  ;;  %v912_v0 = vpack.c.bf16 %v900_v57, %v900_v57 }
 0x23b   : > { %3667 = vmatmul.mubr.msk.bf16.vlgmr.msra.gmra.mrb[8].mxu0 %vm953_vm2, %v906_v32  ;;  %3682 = vmatprep.subr.bf16.mxu1 %v4029_v63  ;;  %v1492_v2 = vsel %vm1444_vm3, %v946_v60, 0 }
 0x23c   : > { %3677 = vmatpush3.bf16.xpose.msra.mxu0 %v1096_v36  ;;  %3678 = vmatprep.mubr.msk.bf16.mxu0 %vm4030_vm1, %v4029_v63 }
 0x23d   : > { %3688 = vmatprep.subr.bf16.mxu0 %v4029_v63 }
 0x241   : > { %3673 = vmatmul.mubr.msk.bf16.vlgmr.msra.gmra.mrb[8].mxu1 %vm953_vm2, %v907_v41 }
 0x242   : > { %3683 = vmatpush3.bf16.xpose.msra.mxu1 %v1142_v44  ;;  %3684 = vmatprep.mubr.msk.bf16.mxu1 %vm4030_vm1, %v4029_v63 }
 0x243   : > { %3679 = vmatmul.mubr.msk.bf16.vlgmr.msra.gmra.mrb[12].mxu0 %vm953_vm2, %v908_v43  ;;  %3694 = vmatprep.subr.bf16.mxu1 %v4029_v63 }
 0x244   : > { %3689 = vmatpush3.bf16.xpose.msra.mxu0 %v1188_v46  ;;  %3690 = vmatprep.mubr.msk.bf16.mxu0 %vm4030_vm1, %v4029_v63 }
 0x245   : > { %3700 = vmatprep.subr.bf16.mxu0 %v4029_v63 }
 0x249   : > { %3685 = vmatmul.mubr.msk.bf16.vlgmr.msra.gmra.mrb[12].mxu1 %vm953_vm2, %v909_v51 }
 0x24a   : > { %3695 = vmatpush3.bf16.xpose.msra.mxu1 %v1234_v54  ;;  %3696 = vmatprep.mubr.msk.bf16.mxu1 %vm4030_vm1, %v4029_v63 }
 0x24b   : > { %3691 = vmatmul.mubr.msk.bf16.vlgmr.msra.gmra.mrb[16].mxu0 %vm953_vm2, %v910_v52  ;;  %3706 = vmatprep.subr.bf16.mxu1 %v4029_v63 }
 0x24c   : > { %3701 = vmatpush3.bf16.xpose.msra.mxu0 %v1280_v56  ;;  %3702 = vmatprep.mubr.msk.bf16.mxu0 %vm4030_vm1, %v4029_v63 }
 0x24d   : > { %3712 = vmatprep.subr.bf16.mxu0 %v4029_v63 }
 0x251   : > { %3697 = vmatmul.mubr.msk.bf16.vlgmr.msra.gmra.mrb[16].mxu1 %vm953_vm2, %v911_v61 }
 0x252   : > { %3707 = vmatpush3.bf16.msra.mxu1 %v1446_v1  ;;  %3708 = vmatprep.mubr.msk.bf16.mxu1 %vm4030_vm1, %v4029_v63 }
 0x253   : > { %3703 = vmatmul.mubr.msk.bf16.vlgmr.msra.gmra.mrb[20].mxu0 %vm953_vm2, %v912_v0  ;;  %3718 = vmatprep.subr.bf16.mxu1 %v4029_v63 }
 0x254   : > { %3713 = vmatpush3.bf16.msra.mxu0 %v1492_v2  ;;  %3714 = vmatprep.mubr.msk.bf16.mxu0 %vm4030_vm1, %v4029_v63 }
 0x255   : > { %3724 = vmatprep.subr.bf16.mxu0 %v4029_v63 }
 0x30c   : > { %v994_v4 = vpop.f32.mrb[4].mxu1 }
 0x30d   : > { %v1323_v6 = vadd.f32 %v1322_v3, %v994_v4  ;;  %v3662_v7 = vpop.f32.mrb[5].mxu1 }
 0x30e   : > { %v1040_v8 = vpop.f32.mrb[8].mxu0  ;;  %v997_v10 = vpop.f32.mrb[6].mxu1 }
 0x30f   : > { %v1324_v11 = vadd.f32 %v1322_v3, %v1040_v8  ;;  %v3668_v12 = vpop.f32.mrb[9].mxu0  ;;  %v3663_v13 = vpop.f32.mrb[7].mxu1  ;;  %v1335_v15 = vadd.f32 %v1331_v5, %v1323_v6 }
 0x310   : > { %v1043_v14 = vpop.f32.mrb[10].mxu0 }
 0x311   : > { %v3669_v16 = vpop.f32.mrb[11].mxu0  ;;  %v1336_v17 = vadd.f32 %v1332_v9, %v1324_v11  ;;  %v1344_v18 = vsel %vm1343_vm4, %v1335_v15, -inf }
 0x312   : > { %1345 = vmax.xlane.f32.xlu0 %v1344_v18 }
 0x313   : > { %v1347_v20 = vsel %vm1343_vm4, %v1336_v17, -inf }
 0x314   : > { %1348 = vmax.xlane.f32.xlu1 %v1347_v20  ;;  %v1086_v21 = vpop.f32.mrb[8].mxu1 }
 0x315   : > { %v1325_v23 = vadd.f32 %v1322_v3, %v1086_v21  ;;  %v3674_v25 = vpop.f32.mrb[9].mxu1 }
 0x316   : > { %v1132_v26 = vpop.f32.mrb[12].mxu0  ;;  %v1089_v29 = vpop.f32.mrb[10].mxu1 }
 0x317   : > { %v1326_v30 = vadd.f32 %v1322_v3, %v1132_v26  ;;  %v3680_v31 = vpop.f32.mrb[13].mxu0  ;;  %v3675_v32 = vpop.f32.mrb[11].mxu1  ;;  %v1337_v34 = vadd.f32 %v1333_v22, %v1325_v23 }
 0x318   : > { %v1135_v33 = vpop.f32.mrb[14].mxu0 }
 0x319   : > { %v3681_v35 = vpop.f32.mrb[15].mxu0  ;;  %v1338_v36 = vadd.f32 %v1334_v28, %v1326_v30  ;;  %v1350_v37 = vsel %vm1343_vm4, %v1337_v34, -inf }
 0x31a   : > { %1351 = vmax.xlane.f32.xlu0 %v1350_v37 }
 0x31b   : > { %v1353_v38 = vsel %vm1343_vm4, %v1338_v36, -inf }
 0x31c   : > { %1354 = vmax.xlane.f32.xlu1 %v1353_v38  ;;  %v1178_v39 = vpop.f32.mrb[12].mxu1 }
 0x31d   : > { %v1327_v40 = vadd.f32 %v1322_v3, %v1178_v39  ;;  %v3686_v41 = vpop.f32.mrb[13].mxu1 }
 0x31e   : > { %v1224_v42 = vpop.f32.mrb[16].mxu0  ;;  %v1181_v43 = vpop.f32.mrb[14].mxu1 }
 0x31f   : > { %v1328_v44 = vadd.f32 %v1322_v3, %v1224_v42  ;;  %v3692_v45 = vpop.f32.mrb[17].mxu0  ;;  %v3687_v46 = vpop.f32.mrb[15].mxu1  ;;  %v1339_v48 = vadd.f32 %v1331_v5, %v1327_v40 }
 0x320   : > { %v1227_v47 = vpop.f32.mrb[18].mxu0 }
 0x321   : > { %v3693_v49 = vpop.f32.mrb[19].mxu0  ;;  %v1340_v50 = vadd.f32 %v1332_v9, %v1328_v44  ;;  %v1356_v51 = vsel %vm1343_vm4, %v1339_v48, -inf }
 0x322   : > { %1357 = vmax.xlane.f32.xlu0 %v1356_v51 }
 0x323   : > { %v1359_v52 = vsel %vm1343_vm4, %v1340_v50, -inf }
 0x324   : > { %1360 = vmax.xlane.f32.xlu1 %v1359_v52  ;;  %v1270_v53 = vpop.f32.mrb[16].mxu1  ;;  %v938_v52 = vcombine.high %v4219_v27, %v4219_v27 }
 0x325   : > { %v1329_v54 = vadd.f32 %v1322_v3, %v1270_v53  ;;  %v3698_v55 = vpop.f32.mrb[17].mxu1 }
 0x326   : > { %v1316_v56 = vpop.f32.mrb[20].mxu0  ;;  %v1273_v57 = vpop.f32.mrb[18].mxu1 }
 0x327   : > { %v1330_v58 = vadd.f32 %v1322_v3, %v1316_v56  ;;  %v3704_v60 = vpop.f32.mrb[21].mxu0  ;;  %v3699_v61 = vpop.f32.mrb[19].mxu1  ;;  %v1341_v1 = vadd.f32 %v1333_v22, %v1329_v54  ;;  %v947_v56 = vpack.c.bf16 %v4219_v27, %v4219_v27 }
 0x328   : > { %v1319_v0 = vpop.f32.mrb[22].mxu0 }
 0x329   : > { %v3705_v2 = vpop.f32.mrb[23].mxu0  ;;  %v1342_v4 = vadd.f32 %v1334_v28, %v1330_v58  ;;  %v1362_v5 = vsel %vm1343_vm4, %v1341_v1, -inf  ;;  %v948_v58 = vpack.c.bf16 %v938_v52, %v938_v52 }
 0x32a   : > { %1363 = vmax.xlane.f32.xlu0 %v1362_v5 }
 0x32b   : > { %v1365_v6 = vsel %vm1343_vm4, %v1342_v4, -inf  ;;  %v1584_v27 = vsel %vm1444_vm3, %v948_v58, 0 }
 0x32c   : > { %1366 = vmax.xlane.f32.xlu1 %v1365_v6 }
 0x39f   : > { %v1346_v7 = vpop.xlane.xlu0 %1345 }
 0x3a0   : > { %v1368_v8 = vsub.f32 %v1335_v15, %v1346_v7 }
 0x3a1   : > { %v1349_v9 = vpop.xlane.xlu1 %1348 }
 0x3a2   : > { %v1369_v10 = vsub.f32 %v1336_v17, %v1349_v9  ;;  %v1376_v11 = vmul.f32 1.442695, %v1368_v8  ;;  %v949_v8 = vpack.c.bf16 %v4213_v19, %v4213_v19 }
 0x3a4   : > { %v1378_v12 = vmul.f32 1.442695, %v1369_v10  ;;  %3937 = vpow2.f32 %v1376_v11 }
 0x3a6   : > { %3939 = vpow2.f32 %v1378_v12 }
 0x3a7   : > { %v1352_v3 = vpop.xlane.xlu0 %1351 }
 0x3a8   : > { %v1370_v13 = vsub.f32 %v1337_v34, %v1352_v3 }
 0x3a9   : > { %v1355_v14 = vpop.xlane.xlu1 %1354 }
 0x3aa   : > { %v1371_v16 = vsub.f32 %v1338_v36, %v1355_v14  ;;  %v1380_v18 = vmul.f32 1.442695, %v1370_v13  ;;  %v1630_v13 = vsel %vm1444_vm3, %v949_v8, 0 }
 0x3ac   : > { %v1382_v20 = vmul.f32 1.442695, %v1371_v16  ;;  %3941 = vpow2.f32 %v1380_v18  ;;  %v940_v16 = vcombine.high %v4216_v24, %v4216_v24 }
 0x3ae   : > { %3943 = vpow2.f32 %v1382_v20  ;;  %v3938_v21 = vpop.eup %3937 }
 0x3af   : > { %v1358_v23 = vpop.xlane.xlu0 %1357  ;;  %v1392_v25 = vsel %vm1343_vm4, %v3938_v21, 0.0 }
 0x3b0   : > { %v3940_v22 = vpop.eup %3939  ;;  %v1372_v15 = vsub.f32 %v1339_v48, %v1358_v23  ;;  %1393 = vadd.xlane.f32.xlu0 %v1392_v25  ;;  %v952_v25 = vpack.c.bf16 %v940_v16, %v940_v16 }
 0x3b1   : > { %v1361_v17 = vpop.xlane.xlu1 %1360  ;;  %v1395_v26 = vsel %vm1343_vm4, %v3940_v22, 0.0 }
 0x3b2   : > { %v1373_v28 = vsub.f32 %v1340_v50, %v1361_v17  ;;  %1396 = vadd.xlane.f32.xlu1 %v1395_v26  ;;  %v1384_v29 = vmul.f32 1.442695, %v1372_v15 }
 0x3b4   : > { %v1386_v30 = vmul.f32 1.442695, %v1373_v28  ;;  %3945 = vpow2.f32 %v1384_v29  ;;  %v3921_v28 = vld [vmem:[%s4662_s3 + $0x8] sm:$0xff]  }
 0x3b6   : > { %3947 = vpow2.f32 %v1386_v30  ;;  %v3942_v31 = vpop.eup %3941 }
 0x3b7   : > { %v1364_v33 = vpop.xlane.xlu0 %1363  ;;  %v1398_v34 = vsel %vm1343_vm4, %v3942_v31, 0.0 }
 0x3b8   : > { %v4291_v32 = vpop.eup %3943  ;;  %v1374_v35 = vsub.f32 %v1341_v1, %v1364_v33  ;;  %1399 = vadd.xlane.f32.xlu0 %v1398_v34  ;;  %v1538_v1 = vsel %vm1444_vm3, %v947_v56, 0 }
 0x3b9   : > { %v1367_v36 = vpop.xlane.xlu1 %1366  ;;  %v1401_v37 = vsel %vm1343_vm4, %v4291_v32, 0.0 }
 0x3ba   : > { %v1375_v38 = vsub.f32 %v1342_v4, %v1367_v36  ;;  %1402 = vadd.xlane.f32.xlu1 %v1401_v37  ;;  %v1388_v39 = vmul.f32 1.442695, %v1374_v35  ;;  %v939_v4 = vcombine.high %v4213_v19, %v4213_v19  ;;  %v3922_v36 = vld [vmem:[%s4641_s5 + $0x8] sm:$0xff]   ;;  %v1828_v37 = vld [vmem:[%s4647_s11] sm:$0xf] }
 0x3bc   : > { %v1390_v40 = vmul.f32 1.442695, %v1375_v38  ;;  %3949 = vpow2.f32 %v1388_v39  ;;  %v950_v10 = vpack.c.bf16 %v939_v4, %v939_v4  ;;  %v1837_v38 = vsel %vm1835_vm6, %v1828_v37, 0  ;;  %v3923_v39 = vld [vmem:[%s4640_s4 + $0x8] sm:$0xff]  }
 0x3be   : > { %3951 = vpow2.f32 %v1390_v40  ;;  %v4296_v41 = vpop.eup %3945  ;;  %v1676_v19 = vsel %vm1444_vm3, %v950_v10, 0 }
 0x3bf   : > { %v1404_v43 = vsel %vm1343_vm4, %v4296_v41, 0.0 }
 0x3c0   : > { %v4298_v42 = vpop.eup %3947  ;;  %1405 = vadd.xlane.f32.xlu0 %v1404_v43 }
 0x3c1   : > { %v1407_v44 = vsel %vm1343_vm4, %v4298_v42, 0.0 }
 0x3c2   : > { %1408 = vadd.xlane.f32.xlu1 %v1407_v44 }
 0x3c6   : > { %v4304_v45 = vpop.eup %3949 }
 0x3c7   : > { %v1410_v47 = vsel %vm1343_vm4, %v4304_v45, 0.0 }
 0x3c8   : > { %v4306_v46 = vpop.eup %3951  ;;  %1411 = vadd.xlane.f32.xlu0 %v1410_v47 }
 0x3c9   : > { %v1413_v48 = vsel %vm1343_vm4, %v4306_v46, 0.0 }
 0x3ca   : > { %1414 = vadd.xlane.f32.xlu1 %v1413_v48 }
 0x43d   : > { %v1394_v49 = vpop.xlane.xlu0 %1393 }
 0x43e   : > { %3953 = vrcp.f32 %v1394_v49 }
 0x43f   : > { %v1397_v50 = vpop.xlane.xlu1 %1396 }
 0x440   : > { %3955 = vrcp.f32 %v1397_v50 }
 0x445   : > { %v1400_v51 = vpop.xlane.xlu0 %1399 }
 0x446   : > { %3957 = vrcp.f32 %v1400_v51 }
 0x447   : > { %v1403_v53 = vpop.xlane.xlu1 %1402 }
 0x448   : > { %3959 = vrcp.f32 %v1403_v53  ;;  %v3954_v54 = vpop.eup %3953 }
 0x449   : > { %v1424_v57 = vmul.f32 %v3954_v54, %v3938_v21 }
 0x44a   : > { %v3956_v55 = vpop.eup %3955 }
 0x44b   : > { %v1425_v60 = vmul.f32 %v3956_v55, %v3940_v22  ;;  %v1432_v61 = vpack.c.bf16 %v1424_v57, %v1424_v57  ;;  %v951_v22 = vpack.c.bf16 %v4216_v24, %v4216_v24  ;;  %v1768_v24 = vsel %vm1444_vm3, %v952_v25, 0 }
 0x44d   : > { %v1433_v0 = vpack.c.bf16 %v1425_v60, %v1425_v60  ;;  %3709 = vmatmul.mubr.msk.bf16.vlgmr.msra.gmra.mrb[20].mxu1 %vm1440_vm5, %v1432_v61  ;;  %v1406_v2 = vpop.xlane.xlu0 %1405  ;;  %v1722_v29 = vsel %vm1444_vm3, %v951_v22, 0  ;;  %v4396_v22 = vld [vmem:[%s4644_s8 + $0x1] ss:$0 sm:$0xff] }
 0x44e   : > { %3719 = vmatpush3.bf16.msra.mxu1 %v1538_v1  ;;  %3961 = vrcp.f32 %v1406_v2  ;;  %3720 = vmatprep.mubr.msk.bf16.mxu1 %vm4030_vm1, %v4029_v63 }
 0x44f   : > { %3715 = vmatmul.mubr.msk.bf16.vlgmr.msra.gmra.mrb[24].mxu0 %vm1440_vm5, %v1433_v0  ;;  %v1409_v5 = vpop.xlane.xlu1 %1408  ;;  %3730 = vmatprep.subr.bf16.mxu1 %v4029_v63 }
 0x450   : > { %3725 = vmatpush3.bf16.msra.mxu0 %v1584_v27  ;;  %3963 = vrcp.f32 %v1409_v5  ;;  %v3958_v6 = vpop.eup %3957  ;;  %3726 = vmatprep.mubr.msk.bf16.mxu0 %vm4030_vm1, %v4029_v63 }
 0x451   : > { %v1426_v9 = vmul.f32 %v3958_v6, %v3942_v31  ;;  %3736 = vmatprep.subr.bf16.mxu0 %v4029_v63 }
 0x452   : > { %v3960_v7 = vpop.eup %3959 }
 0x453   : > { %v1427_v11 = vmul.f32 %v3960_v7, %v4291_v32  ;;  %v1434_v12 = vpack.c.bf16 %v1426_v9, %v1426_v9 }
 0x455   : > { %v1435_v3 = vpack.c.bf16 %v1427_v11, %v1427_v11  ;;  %3721 = vmatmul.mubr.msk.bf16.vlgmr.msra.gmra.mrb[24].mxu1 %vm1440_vm5, %v1434_v12  ;;  %v1412_v14 = vpop.xlane.xlu0 %1411 }
 0x456   : > { %3731 = vmatpush3.bf16.msra.mxu1 %v1630_v13  ;;  %3965 = vrcp.f32 %v1412_v14  ;;  %3732 = vmatprep.mubr.msk.bf16.mxu1 %vm4030_vm1, %v4029_v63 }
 0x457   : > { %3727 = vmatmul.mubr.msk.bf16.vlgmr.msra.gmra.mrb[28].mxu0 %vm1440_vm5, %v1435_v3  ;;  %v1415_v18 = vpop.xlane.xlu1 %1414  ;;  %3742 = vmatprep.subr.bf16.mxu1 %v4029_v63 }
 0x458   : > { %3737 = vmatpush3.bf16.msra.mxu0 %v1676_v19  ;;  %3967 = vrcp.f32 %v1415_v18  ;;  %v3962_v20 = vpop.eup %3961  ;;  %3738 = vmatprep.mubr.msk.bf16.mxu0 %vm4030_vm1, %v4029_v63 }
 0x459   : > { %v1428_v23 = vmul.f32 %v3962_v20, %v4296_v41  ;;  %3748 = vmatprep.subr.bf16.mxu0 %v4029_v63 }
 0x45a   : > { %v3964_v21 = vpop.eup %3963 }
 0x45b   : > { %v1429_v15 = vmul.f32 %v3964_v21, %v4298_v42  ;;  %v1436_v17 = vpack.c.bf16 %v1428_v23, %v1428_v23 }
 0x45d   : > { %v1437_v26 = vpack.c.bf16 %v1429_v15, %v1429_v15  ;;  %3733 = vmatmul.mubr.msk.bf16.vlgmr.msra.gmra.mrb[28].mxu1 %vm1440_vm5, %v1436_v17 }
 0x45e   : > { %3743 = vmatpush3.bf16.msra.mxu1 %v1722_v29  ;;  %3744 = vmatprep.mubr.msk.bf16.mxu1 %vm4030_vm1, %v4029_v63 }
 0x45f   : > { %3739 = vmatmul.mubr.msk.bf16.vlgmr.msra.gmra.mrb[32].mxu0 %vm1440_vm5, %v1437_v26  ;;  %3906 = vmatprep.subr.msk.bf16.mxu1 %vm1835_vm6, %v1828_v37 }
 0x460   : > { %3749 = vmatpush3.bf16.msra.mxu0 %v1768_v24  ;;  %v3966_v30 = vpop.eup %3965  ;;  %3750 = vmatprep.mubr.msk.bf16.mxu0 %vm4030_vm1, %v4029_v63 }
 0x461   : > { %3760 = vmatprep.subr.bf16.mxu0 %v3921_v28  ;;  %v1430_v32 = vmul.f32 %v3966_v30, %v4304_v45 }
 0x462   : > { %v3968_v31 = vpop.eup %3967 }
 0x463   : > { %v1431_v33 = vmul.f32 %v3968_v31, %v4306_v46  ;;  %v1438_v34 = vpack.c.bf16 %v1430_v32, %v1430_v32  ;;  %v3488_v32 = vld [vmem:[%s4642_s6 + $0x1] ss:$0 sm:$0xff] }
 0x465   : > { %v1439_v35 = vpack.c.bf16 %v1431_v33, %v1431_v33  ;;  %3745 = vmatmul.mubr.msk.bf16.vlgmr.msra.gmra.mrb[32].mxu1 %vm1440_vm5, %v1438_v34 }
 0x466   : > { %3755 = vmatpush3.bf16.msra.mxu1 %v1837_v38 }
 0x467   : > { %3751 = vmatmul.mubr.msk.bf16.vlgmr.msra.gmra.mrb[36].mxu0 %vm1440_vm5, %v1439_v35  ;;  %3766 = vmatprep.subr.bf16.mxu1 %v3923_v39 }
 0x468   : > { %3762 = vmatprep.mubr.msk.bf16.mxu0 %vm618_vm0, %v4176_v59  ;;  %3761 = vmatpush3.bf16.msra.mxu0 %v3921_v28  ;;  %v3495_v28 = vld [vmem:[%s4643_s7 + $0x1] ss:$0 sm:$0xff] }
 0x469   : > { %3772 = vmatprep.subr.bf16.mxu0 %v3922_v36 }
 0x46f   : > { %3763 = vmatmul.mubr.msk.bf16.vlgmr.msra.gmra.mrb[40].mxu0 %vm618_vm0, %v4182_v62 }
 0x470   : > { %3774 = vmatprep.mubr.msk.bf16.mxu0 %vm618_vm0, %v4176_v59  ;;  %3773 = vmatpush3.bf16.msra.mxu0 %v3922_v36 }
 0x471   : > { %3784 = vmatprep.subr.bf16.mxu0 %v4029_v63 }
 0x477   : > { %3775 = vmatmul.mubr.msk.bf16.vlgmr.msra.gmra.mrb[44].mxu0 %vm618_vm0, %v4182_v62 }
 0x478   : > { %3786 = vmatprep.mubr.msk.bf16.mxu0 %vm4030_vm1, %v4029_v63 }
 0x520   : > { %v1482_v40 = vpop.f32.mrb[20].mxu1 }
 0x521   : > { %v3710_v41 = vpop.f32.mrb[21].mxu1 }
 0x522   : > { %v1528_v42 = vpop.f32.mrb[24].mxu0  ;;  %v1485_v43 = vpop.f32.mrb[22].mxu1 }
 0x523   : > { %v1818_v44 = vcombine.low %v1482_v40, %v1528_v42  ;;  %v3716_v45 = vpop.f32.mrb[25].mxu0  ;;  %v3711_v46 = vpop.f32.mrb[23].mxu1 }
 0x524   : > { %v1531_v47 = vpop.f32.mrb[26].mxu0 }
 0x525   : > { %v3717_v48 = vpop.f32.mrb[27].mxu0 }
 0x528   : > { %v1574_v49 = vpop.f32.mrb[24].mxu1 }
 0x529   : > { %v3722_v50 = vpop.f32.mrb[25].mxu1 }
 0x52a   : > { %v1620_v51 = vpop.f32.mrb[28].mxu0  ;;  %v1577_v52 = vpop.f32.mrb[26].mxu1 }
 0x52b   : > { %v1819_v53 = vcombine.low %v1574_v49, %v1620_v51  ;;  %v3728_v54 = vpop.f32.mrb[29].mxu0  ;;  %v3723_v55 = vpop.f32.mrb[27].mxu1 }
 0x52c   : > { %v1623_v56 = vpop.f32.mrb[30].mxu0 }
 0x52d   : > { %v1826_v57 = vpack.c.bf16 %v1819_v53, %v1818_v44  ;;  %v3729_v58 = vpop.f32.mrb[31].mxu0 }
 0x52f   : > { %3756 = vmatprep.mubr.msk.bf16.mxu1 %vm953_vm2, %v1826_v57 }
 0x530   : > { %v1666_v60 = vpop.f32.mrb[28].mxu1 }
 0x531   : > { %v3734_v61 = vpop.f32.mrb[29].mxu1 }
 0x532   : > { %v1712_v0 = vpop.f32.mrb[32].mxu0  ;;  %v1669_v1 = vpop.f32.mrb[30].mxu1 }
 0x533   : > { %v1820_v2 = vcombine.low %v1666_v60, %v1712_v0  ;;  %v3740_v4 = vpop.f32.mrb[33].mxu0  ;;  %v3735_v27 = vpop.f32.mrb[31].mxu1 }
 0x534   : > { %v1715_v5 = vpop.f32.mrb[34].mxu0 }
 0x535   : > { %v3741_v6 = vpop.f32.mrb[35].mxu0 }
 0x538   : > { %v1758_v7 = vpop.f32.mrb[32].mxu1 }
 0x539   : > { %v3746_v8 = vpop.f32.mrb[33].mxu1 }
 0x53a   : > { %v1804_v9 = vpop.f32.mrb[36].mxu0  ;;  %v1761_v10 = vpop.f32.mrb[34].mxu1 }
 0x53b   : > { %v1821_v11 = vcombine.low %v1758_v7, %v1804_v9  ;;  %v3752_v12 = vpop.f32.mrb[37].mxu0  ;;  %v3747_v3 = vpop.f32.mrb[35].mxu1 }
 0x53c   : > { %v1807_v13 = vpop.f32.mrb[38].mxu0 }
 0x53d   : > { %v1827_v14 = vpack.c.bf16 %v1821_v11, %v1820_v2  ;;  %v3753_v16 = vpop.f32.mrb[39].mxu0 }
 0x53f   : > { %3757 = vmatmul.mubr.msk.bf16.vlgmr.msra.gmra.mrb[36].mxu1 %vm953_vm2, %v1827_v14 }
 0x540   : > { %3767 = vmatpush3.bf16.msra.mxu1 %v3923_v39  ;;  %3768 = vmatprep.mubr.msk.bf16.mxu1 %vm618_vm0, %v4176_v59 }
 0x541   : > { %3778 = vmatprep.subr.bf16.mxu1 %v4029_v63 }
 0x542   : > { %v3764_v19 = vpop.f32.mrb[40].mxu0 }
 0x543   : > { %v1949_v18 = vpop.f32.mrb[41].mxu0  ;;  %v1958_v57 = vadd.f32 %v3764_v19, %v3488_v32 }
 0x544   : > { %v4389_v20 = vpop.f32.mrb[42].mxu0  ;;  %v1950_v37 = vadd.f32 %v3488_v32, %v1949_v18  ;;  %v3514_v18 = vld [vmem:[%s4645_s9 + $0x4] sm:$0xf] }
 0x545   : > { %v1952_v21 = vpop.f32.mrb[43].mxu0  ;;  %v2102_v1 = vcombine.high %v1958_v57, %v1958_v57  ;;  %v2112_v4 = vpack.c.bf16 %v1958_v57, %v1958_v57  ;;  %v1961_v7 = vadd.f32 %v4389_v20, %v3488_v32 }
 0x546   : > { %v2100_v42 = vcombine.high %v1950_v37, %v1950_v37  ;;  %v2108_v44 = vpack.c.bf16 %v1950_v37, %v1950_v37  ;;  %v1953_v48 = vadd.f32 %v3488_v32, %v1952_v21  ;;  %v2534_v21 = vld [vmem:[%s4646_s10] sm:$0xf]  ;;  %v2536_v37 = vld [vmem:[%s4646_s10 + $0x8] sm:$0xf] }
 0x547   : > { %3769 = vmatmul.mubr.msk.bf16.vlgmr.msra.gmra.mrb[40].mxu1 %vm618_vm0, %v4182_v62  ;;  %v2113_v6 = vpack.c.bf16 %v2102_v1, %v2102_v1  ;;  %v2103_v11 = vcombine.high %v1961_v7, %v1961_v7  ;;  %v2114_v3 = vpack.c.bf16 %v1961_v7, %v1961_v7 }
 0x548   : > { %3780 = vmatprep.mubr.msk.bf16.mxu1 %vm4030_vm1, %v4029_v63  ;;  %v2109_v47 = vpack.c.bf16 %v2100_v42, %v2100_v42  ;;  %v2101_v52 = vcombine.high %v1953_v48, %v1953_v48  ;;  %v2110_v54 = vpack.c.bf16 %v1953_v48, %v1953_v48  ;;  %v2537_v42 = vld [vmem:[%s4646_s10 + $0xc] sm:$0xf] }
 0x549   : > { %v2115_v14 = vpack.c.bf16 %v2103_v11, %v2103_v11 }
 0x54a   : > { %v3776_v23 = vpop.f32.mrb[44].mxu0  ;;  %v2111_v58 = vpack.c.bf16 %v2101_v52, %v2101_v52 }
 0x54b   : > { %v4401_v59 = vadd.f32 %v3776_v23, %v4396_v22  ;;  %v4403_v25 = vpop.f32.mrb[45].mxu0 }
 0x54c   : > { %v3777_v15 = vpop.f32.mrb[46].mxu0  ;;  %v2082_v27 = vadd.f32 %v4396_v22, %v4403_v25 }
 0x54d   : > { %v4406_v17 = vadd.f32 %v3777_v15, %v4396_v22  ;;  %v2084_v26 = vpop.f32.mrb[47].mxu0 }
 0x54e   : > { %v4409_v62 = vadd.f32 %v4396_v22, %v2084_v26  ;;  %v2140_v9 = vcombine.high %v2082_v27, %v2082_v27  ;;  %v2148_v12 = vpack.c.bf16 %v2082_v27, %v2082_v27  ;;  %v2535_v26 = vld [vmem:[%s4646_s10 + $0x4] sm:$0xf] }
 0x550   : > { %v2149_v13 = vpack.c.bf16 %v2140_v9, %v2140_v9  ;;  %v2646_v16 = vsel %vm1444_vm3, %v2148_v12, 0 }
 0x552   : > { %v2692_v19 = vsel %vm1444_vm3, %v2149_v13, 0 }
 0x61a   : > { %v3770_v29 = vpop.f32.mrb[40].mxu1 }
 0x61b   : > { %v2015_v24 = vpop.f32.mrb[41].mxu1  ;;  %v2024_v45 = vadd.f32 %v3770_v29, %v3495_v28 }
 0x61c   : > { %v2016_v30 = vadd.f32 %v3495_v28, %v2015_v24  ;;  %v3771_v31 = vpop.f32.mrb[42].mxu1 }
 0x61d   : > { %v2018_v33 = vpop.f32.mrb[43].mxu1  ;;  %v2122_v50 = vcombine.high %v2024_v45, %v2024_v45  ;;  %v2132_v53 = vpack.c.bf16 %v2024_v45, %v2024_v45  ;;  %v2027_v56 = vadd.f32 %v3771_v31, %v3495_v28 }
 0x61e   : > { %v2120_v34 = vcombine.high %v2016_v30, %v2016_v30  ;;  %v2128_v35 = vpack.c.bf16 %v2016_v30, %v2016_v30  ;;  %v2019_v36 = vadd.f32 %v3495_v28, %v2018_v33 }
 0x61f   : > { %v2133_v55 = vpack.c.bf16 %v2122_v50, %v2122_v50  ;;  %v2344_v60 = vsel %vm953_vm2, %v2132_v53, 0  ;;  %v2123_v61 = vcombine.high %v2027_v56, %v2027_v56  ;;  %v2134_v2 = vpack.c.bf16 %v2027_v56, %v2027_v56 }
 0x620   : > { %v2129_v38 = vpack.c.bf16 %v2120_v34, %v2120_v34  ;;  %v2160_v39 = vsel %vm953_vm2, %v2128_v35, 0  ;;  %v2121_v40 = vcombine.high %v2019_v36, %v2019_v36  ;;  %v2130_v43 = vpack.c.bf16 %v2019_v36, %v2019_v36 }
 0x621   : > { %3779 = vmatpush3.bf16.xpose.msra.mxu1 %v2160_v39  ;;  %v2390_v0 = vsel %vm953_vm2, %v2133_v55, 0  ;;  %v2135_v5 = vpack.c.bf16 %v2123_v61, %v2123_v61  ;;  %v2436_v8 = vsel %vm953_vm2, %v2134_v2, 0 }
 0x622   : > { %v2206_v41 = vsel %vm953_vm2, %v2129_v38, 0  ;;  %3790 = vmatprep.subr.bf16.mxu1 %v4029_v63  ;;  %v2131_v46 = vpack.c.bf16 %v2121_v40, %v2121_v40  ;;  %v2252_v49 = vsel %vm953_vm2, %v2130_v43, 0 }
 0x623   : > { %3785 = vmatpush3.bf16.xpose.msra.mxu0 %v2206_v41  ;;  %v2482_v10 = vsel %vm953_vm2, %v2135_v5, 0 }
 0x624   : > { %3796 = vmatprep.subr.bf16.mxu0 %v4029_v63  ;;  %v2298_v51 = vsel %vm953_vm2, %v2131_v46, 0 }
 0x628   : > { %3781 = vmatmul.mubr.msk.bf16.vlgmr.msra.gmra.mrb[44].mxu1 %vm953_vm2, %v2108_v44 }
 0x629   : > { %3791 = vmatpush3.bf16.xpose.msra.mxu1 %v2252_v49  ;;  %3792 = vmatprep.mubr.msk.bf16.mxu1 %vm4030_vm1, %v4029_v63 }
 0x62a   : > { %3787 = vmatmul.mubr.msk.bf16.vlgmr.msra.gmra.mrb[48].mxu0 %vm953_vm2, %v2109_v47  ;;  %3802 = vmatprep.subr.bf16.mxu1 %v4029_v63 }
 0x62b   : > { %3797 = vmatpush3.bf16.xpose.msra.mxu0 %v2298_v51  ;;  %3798 = vmatprep.mubr.msk.bf16.mxu0 %vm4030_vm1, %v4029_v63 }
 0x62c   : > { %3808 = vmatprep.subr.bf16.mxu0 %v4029_v63 }
 0x630   : > { %3793 = vmatmul.mubr.msk.bf16.vlgmr.msra.gmra.mrb[48].mxu1 %vm953_vm2, %v2110_v54 }
 0x631   : > { %3803 = vmatpush3.bf16.xpose.msra.mxu1 %v2344_v60  ;;  %3804 = vmatprep.mubr.msk.bf16.mxu1 %vm4030_vm1, %v4029_v63 }
 0x632   : > { %3799 = vmatmul.mubr.msk.bf16.vlgmr.msra.gmra.mrb[52].mxu0 %vm953_vm2, %v2111_v58  ;;  %3814 = vmatprep.subr.bf16.mxu1 %v4029_v63 }
 0x633   : > { %3809 = vmatpush3.bf16.xpose.msra.mxu0 %v2390_v0  ;;  %3810 = vmatprep.mubr.msk.bf16.mxu0 %vm4030_vm1, %v4029_v63 }
 0x634   : > { %3820 = vmatprep.subr.bf16.mxu0 %v4029_v63 }
 0x638   : > { %3805 = vmatmul.mubr.msk.bf16.vlgmr.msra.gmra.mrb[52].mxu1 %vm953_vm2, %v2112_v4 }
 0x639   : > { %3815 = vmatpush3.bf16.xpose.msra.mxu1 %v2436_v8  ;;  %3816 = vmatprep.mubr.msk.bf16.mxu1 %vm4030_vm1, %v4029_v63 }
 0x63a   : > { %3811 = vmatmul.mubr.msk.bf16.vlgmr.msra.gmra.mrb[56].mxu0 %vm953_vm2, %v2113_v6  ;;  %3826 = vmatprep.subr.bf16.mxu1 %v4029_v63 }
 0x63b   : > { %3821 = vmatpush3.bf16.xpose.msra.mxu0 %v2482_v10  ;;  %3822 = vmatprep.mubr.msk.bf16.mxu0 %vm4030_vm1, %v4029_v63 }
 0x63c   : > { %3832 = vmatprep.subr.bf16.mxu0 %v4029_v63 }
 0x640   : > { %3817 = vmatmul.mubr.msk.bf16.vlgmr.msra.gmra.mrb[56].mxu1 %vm953_vm2, %v2114_v3 }
 0x641   : > { %3827 = vmatpush3.bf16.msra.mxu1 %v2646_v16  ;;  %3828 = vmatprep.mubr.msk.bf16.mxu1 %vm4030_vm1, %v4029_v63 }
 0x642   : > { %3823 = vmatmul.mubr.msk.bf16.vlgmr.msra.gmra.mrb[60].mxu0 %vm953_vm2, %v2115_v14  ;;  %3838 = vmatprep.subr.bf16.mxu1 %v4029_v63 }
 0x643   : > { %3833 = vmatpush3.bf16.msra.mxu0 %v2692_v19  ;;  %3834 = vmatprep.mubr.msk.bf16.mxu0 %vm4030_vm1, %v4029_v63 }
 0x644   : > { %3844 = vmatprep.subr.bf16.mxu0 %v4029_v63 }
 0x6fb   : > { %v2196_v20 = vpop.f32.mrb[44].mxu1 }
 0x6fc   : > { %v2526_v22 = vadd.f32 %v3514_v18, %v2196_v20  ;;  %v3782_v23 = vpop.f32.mrb[45].mxu1 }
 0x6fd   : > { %v2199_v25 = vpop.f32.mrb[46].mxu1  ;;  %v2242_v15 = vpop.f32.mrb[48].mxu0 }
 0x6fe   : > { %v2527_v28 = vadd.f32 %v3514_v18, %v2242_v15  ;;  %v3783_v29 = vpop.f32.mrb[47].mxu1  ;;  %v3788_v24 = vpop.f32.mrb[49].mxu0  ;;  %v2538_v30 = vadd.f32 %v2534_v21, %v2526_v22 }
 0x6ff   : > { %v2245_v31 = vpop.f32.mrb[50].mxu0 }
 0x700   : > { %v3789_v32 = vpop.f32.mrb[51].mxu0  ;;  %v2546_v33 = vsel %vm1343_vm4, %v2538_v30, -inf  ;;  %v2539_v34 = vadd.f32 %v2535_v26, %v2527_v28 }
 0x701   : > { %2547 = vmax.xlane.f32.xlu0 %v2546_v33 }
 0x702   : > { %v2549_v35 = vsel %vm1343_vm4, %v2539_v34, -inf }
 0x703   : > { %v2288_v36 = vpop.f32.mrb[48].mxu1  ;;  %2550 = vmax.xlane.f32.xlu1 %v2549_v35 }
 0x704   : > { %v2528_v38 = vadd.f32 %v3514_v18, %v2288_v36  ;;  %v3794_v39 = vpop.f32.mrb[49].mxu1 }
 0x705   : > { %v2291_v40 = vpop.f32.mrb[50].mxu1  ;;  %v2334_v41 = vpop.f32.mrb[52].mxu0 }
 0x706   : > { %v2529_v43 = vadd.f32 %v3514_v18, %v2334_v41  ;;  %v3795_v44 = vpop.f32.mrb[51].mxu1  ;;  %v3800_v45 = vpop.f32.mrb[53].mxu0  ;;  %v2540_v46 = vadd.f32 %v2536_v37, %v2528_v38 }
 0x707   : > { %v2337_v47 = vpop.f32.mrb[54].mxu0 }
 0x708   : > { %v3801_v48 = vpop.f32.mrb[55].mxu0  ;;  %v2552_v49 = vsel %vm1343_vm4, %v2540_v46, -inf  ;;  %v2541_v50 = vadd.f32 %v2537_v42, %v2529_v43 }
 0x709   : > { %2553 = vmax.xlane.f32.xlu0 %v2552_v49 }
 0x70a   : > { %v2555_v51 = vsel %vm1343_vm4, %v2541_v50, -inf }
 0x70b   : > { %v2380_v52 = vpop.f32.mrb[52].mxu1  ;;  %2556 = vmax.xlane.f32.xlu1 %v2555_v51 }
 0x70c   : > { %v2530_v53 = vadd.f32 %v3514_v18, %v2380_v52  ;;  %v3806_v54 = vpop.f32.mrb[53].mxu1 }
 0x70d   : > { %v2383_v55 = vpop.f32.mrb[54].mxu1  ;;  %v2426_v56 = vpop.f32.mrb[56].mxu0 }
 0x70e   : > { %v2531_v57 = vadd.f32 %v3514_v18, %v2426_v56  ;;  %v3807_v58 = vpop.f32.mrb[55].mxu1  ;;  %v3812_v60 = vpop.f32.mrb[57].mxu0  ;;  %v2542_v61 = vadd.f32 %v2534_v21, %v2530_v53 }
 0x70f   : > { %v2429_v0 = vpop.f32.mrb[58].mxu0 }
 0x710   : > { %v3813_v1 = vpop.f32.mrb[59].mxu0  ;;  %v2558_v2 = vsel %vm1343_vm4, %v2542_v61, -inf  ;;  %v2543_v4 = vadd.f32 %v2535_v26, %v2531_v57 }
 0x711   : > { %2559 = vmax.xlane.f32.xlu0 %v2558_v2  ;;  %v2141_v2 = vcombine.high %v4409_v62, %v4409_v62 }
 0x712   : > { %v2561_v27 = vsel %vm1343_vm4, %v2543_v4, -inf }
 0x713   : > { %v2472_v5 = vpop.f32.mrb[56].mxu1  ;;  %2562 = vmax.xlane.f32.xlu1 %v2561_v27 }
 0x714   : > { %v2532_v6 = vadd.f32 %v3514_v18, %v2472_v5  ;;  %v3818_v7 = vpop.f32.mrb[57].mxu1  ;;  %v2150_v5 = vpack.c.bf16 %v4409_v62, %v4409_v62 }
 0x715   : > { %v2475_v8 = vpop.f32.mrb[58].mxu1  ;;  %v2518_v9 = vpop.f32.mrb[60].mxu0 }
 0x716   : > { %v2533_v10 = vadd.f32 %v3514_v18, %v2518_v9  ;;  %v3819_v11 = vpop.f32.mrb[59].mxu1  ;;  %v3824_v12 = vpop.f32.mrb[61].mxu0  ;;  %v2544_v3 = vadd.f32 %v2536_v37, %v2532_v6  ;;  %v2151_v8 = vpack.c.bf16 %v2141_v2, %v2141_v2 }
 0x717   : > { %v2521_v13 = vpop.f32.mrb[62].mxu0  ;;  %v2738_v11 = vsel %vm1444_vm3, %v2150_v5, 0 }
 0x718   : > { %v3825_v14 = vpop.f32.mrb[63].mxu0  ;;  %v2564_v16 = vsel %vm1343_vm4, %v2544_v3, -inf  ;;  %v2545_v19 = vadd.f32 %v2537_v42, %v2533_v10  ;;  %v2142_v13 = vcombine.high %v4401_v59, %v4401_v59  ;;  %v2784_v62 = vsel %vm1444_vm3, %v2151_v8, 0 }
 0x719   : > { %2565 = vmax.xlane.f32.xlu0 %v2564_v16 }
 0x71a   : > { %v2567_v20 = vsel %vm1343_vm4, %v2545_v19, -inf }
 0x71b   : > { %2568 = vmax.xlane.f32.xlu1 %v2567_v20 }
 0x78e   : > { %v2548_v21 = vpop.xlane.xlu0 %2547 }
 0x78f   : > { %v2570_v22 = vsub.f32 %v2538_v30, %v2548_v21 }
 0x790   : > { %v2551_v23 = vpop.xlane.xlu1 %2550 }
 0x791   : > { %v2578_v25 = vmul.f32 1.442695, %v2570_v22  ;;  %v2571_v15 = vsub.f32 %v2539_v34, %v2551_v23  ;;  %v2153_v22 = vpack.c.bf16 %v2142_v13, %v2142_v13 }
 0x793   : > { %3969 = vpow2.f32 %v2578_v25  ;;  %v2580_v26 = vmul.f32 1.442695, %v2571_v15 }
 0x795   : > { %3971 = vpow2.f32 %v2580_v26 }
 0x796   : > { %v2554_v18 = vpop.xlane.xlu0 %2553 }
 0x797   : > { %v2572_v28 = vsub.f32 %v2540_v46, %v2554_v18 }
 0x798   : > { %v2557_v29 = vpop.xlane.xlu1 %2556 }
 0x799   : > { %v2582_v24 = vmul.f32 1.442695, %v2572_v28  ;;  %v2573_v31 = vsub.f32 %v2541_v50, %v2557_v29  ;;  %v2876_v28 = vsel %vm1444_vm3, %v2153_v22, 0 }
 0x79b   : > { %3973 = vpow2.f32 %v2582_v24  ;;  %v2584_v32 = vmul.f32 1.442695, %v2573_v31  ;;  %v2154_v31 = vpack.c.bf16 %v4406_v17, %v4406_v17 }
 0x79d   : > { %v3970_v33 = vpop.eup %3969  ;;  %3975 = vpow2.f32 %v2584_v32 }
 0x79e   : > { %v2560_v35 = vpop.xlane.xlu0 %2559  ;;  %v2594_v36 = vsel %vm1343_vm4, %v3970_v33, 0.0 }
 0x79f   : > { %v3972_v37 = vpop.eup %3971  ;;  %v2574_v30 = vsub.f32 %v2542_v61, %v2560_v35  ;;  %2595 = vadd.xlane.f32.xlu0 %v2594_v36 }
 0x7a0   : > { %v2563_v38 = vpop.xlane.xlu1 %2562  ;;  %v2597_v34 = vsel %vm1343_vm4, %v3972_v37, 0.0 }
 0x7a1   : > { %v2586_v39 = vmul.f32 1.442695, %v2574_v30  ;;  %v2575_v40 = vsub.f32 %v2543_v4, %v2563_v38  ;;  %2598 = vadd.xlane.f32.xlu1 %v2597_v34  ;;  %v2922_v30 = vsel %vm1444_vm3, %v2154_v31, 0 }
 0x7a3   : > { %3977 = vpow2.f32 %v2586_v39  ;;  %v2588_v41 = vmul.f32 1.442695, %v2575_v40 }
 0x7a5   : > { %v3974_v42 = vpop.eup %3973  ;;  %3979 = vpow2.f32 %v2588_v41 }
 0x7a6   : > { %v2566_v43 = vpop.xlane.xlu0 %2565  ;;  %v2600_v44 = vsel %vm1343_vm4, %v3974_v42, 0.0 }
 0x7a7   : > { %v3976_v45 = vpop.eup %3975  ;;  %v2576_v46 = vsub.f32 %v2544_v3, %v2566_v43  ;;  %2601 = vadd.xlane.f32.xlu0 %v2600_v44  ;;  %v3523_v44 = vld [vmem:[%s4647_s11 + $0x4] sm:$0xf] }
 0x7a8   : > { %v2569_v47 = vpop.xlane.xlu1 %2568  ;;  %v2603_v48 = vsel %vm1343_vm4, %v3976_v45, 0.0 }
 0x7a9   : > { %v2590_v49 = vmul.f32 1.442695, %v2576_v46  ;;  %v2577_v50 = vsub.f32 %v2545_v19, %v2569_v47  ;;  %2604 = vadd.xlane.f32.xlu1 %v2603_v48  ;;  %v2152_v19 = vpack.c.bf16 %v4401_v59, %v4401_v59  ;;  %v2143_v59 = vcombine.high %v4406_v17, %v4406_v17 }
 0x7ab   : > { %3981 = vpow2.f32 %v2590_v49  ;;  %v2592_v51 = vmul.f32 1.442695, %v2577_v50  ;;  %v2830_v15 = vsel %vm1444_vm3, %v2152_v19, 0  ;;  %v2155_v35 = vpack.c.bf16 %v2143_v59, %v2143_v59 }
 0x7ad   : > { %v4491_v52 = vpop.eup %3977  ;;  %3983 = vpow2.f32 %v2592_v51  ;;  %v2968_v17 = vsel %vm1444_vm3, %v2155_v35, 0 }
 0x7ae   : > { %v2606_v53 = vsel %vm1343_vm4, %v4491_v52, 0.0 }
 0x7af   : > { %v4495_v54 = vpop.eup %3979  ;;  %2607 = vadd.xlane.f32.xlu0 %v2606_v53 }
 0x7b0   : > { %v2609_v55 = vsel %vm1343_vm4, %v4495_v54, 0.0 }
 0x7b1   : > { %2610 = vadd.xlane.f32.xlu1 %v2609_v55 }
 0x7b5   : > { %v4499_v56 = vpop.eup %3981 }
 0x7b6   : > { %v2612_v57 = vsel %vm1343_vm4, %v4499_v56, 0.0 }
 0x7b7   : > { %v4503_v58 = vpop.eup %3983  ;;  %2613 = vadd.xlane.f32.xlu0 %v2612_v57 }
 0x7b8   : > { %v2615_v60 = vsel %vm1343_vm4, %v4503_v58, 0.0 }
 0x7b9   : > { %2616 = vadd.xlane.f32.xlu1 %v2615_v60 }
 0x82c   : > { %v2596_v61 = vpop.xlane.xlu0 %2595 }
 0x82d   : > { %3985 = vrcp.f32 %v2596_v61 }
 0x82e   : > { %v2599_v0 = vpop.xlane.xlu1 %2598 }
 0x82f   : > { %3987 = vrcp.f32 %v2599_v0 }
 0x834   : > { %v2602_v1 = vpop.xlane.xlu0 %2601 }
 0x835   : > { %3989 = vrcp.f32 %v2602_v1 }
 0x836   : > { %v2605_v4 = vpop.xlane.xlu1 %2604 }
 0x837   : > { %v3986_v27 = vpop.eup %3985  ;;  %3991 = vrcp.f32 %v2605_v4 }
 0x838   : > { %v2626_v6 = vmul.f32 %v3986_v27, %v3970_v33 }
 0x839   : > { %v3988_v7 = vpop.eup %3987 }
 0x83a   : > { %v2627_v9 = vmul.f32 %v3988_v7, %v3972_v37  ;;  %v2634_v10 = vpack.c.bf16 %v2626_v6, %v2626_v6 }
 0x83c   : > { %3829 = vmatmul.mubr.msk.bf16.vlgmr.msra.gmra.mrb[60].mxu1 %vm1440_vm5, %v2634_v10  ;;  %v2608_v12 = vpop.xlane.xlu0 %2607  ;;  %v2635_v3 = vpack.c.bf16 %v2627_v9, %v2627_v9 }
 0x83d   : > { %3839 = vmatpush3.bf16.msra.mxu1 %v2738_v11  ;;  %3993 = vrcp.f32 %v2608_v12  ;;  %3840 = vmatprep.mubr.msk.bf16.mxu1 %vm4030_vm1, %v4029_v63 }
 0x83e   : > { %3835 = vmatmul.mubr.msk.bf16.vlgmr.msra.gmra.mrb[64].mxu0 %vm1440_vm5, %v2635_v3  ;;  %v2611_v14 = vpop.xlane.xlu1 %2610  ;;  %3850 = vmatprep.subr.bf16.mxu1 %v4029_v63 }
 0x83f   : > { %v3990_v16 = vpop.eup %3989  ;;  %3845 = vmatpush3.bf16.msra.mxu0 %v2784_v62  ;;  %3995 = vrcp.f32 %v2611_v14  ;;  %3846 = vmatprep.mubr.msk.bf16.mxu0 %vm4030_vm1, %v4029_v63 }
 0x840   : > { %v2628_v20 = vmul.f32 %v3990_v16, %v3974_v42  ;;  %3856 = vmatprep.subr.bf16.mxu0 %v4029_v63 }
 0x841   : > { %v3992_v21 = vpop.eup %3991 }
 0x842   : > { %v2629_v23 = vmul.f32 %v3992_v21, %v3976_v45  ;;  %v2636_v25 = vpack.c.bf16 %v2628_v20, %v2628_v20  ;;  %v3037_v45 = vsel %vm1835_vm6, %v3523_v44, 0 }
 0x844   : > { %3841 = vmatmul.mubr.msk.bf16.vlgmr.msra.gmra.mrb[64].mxu1 %vm1440_vm5, %v2636_v25  ;;  %v2614_v26 = vpop.xlane.xlu0 %2613  ;;  %v2637_v18 = vpack.c.bf16 %v2629_v23, %v2629_v23  ;;  %v3484_v23 = vld [vmem:[%s4648_s12] ss:$0 sm:$0xff] }
 0x845   : > { %3851 = vmatpush3.bf16.msra.mxu1 %v2830_v15  ;;  %3997 = vrcp.f32 %v2614_v26  ;;  %3852 = vmatprep.mubr.msk.bf16.mxu1 %vm4030_vm1, %v4029_v63 }
 0x846   : > { %3847 = vmatmul.mubr.msk.bf16.vlgmr.msra.gmra.mrb[68].mxu0 %vm1440_vm5, %v2637_v18  ;;  %v2617_v29 = vpop.xlane.xlu1 %2616  ;;  %3862 = vmatprep.subr.bf16.mxu1 %v4029_v63 }
 0x847   : > { %v3994_v24 = vpop.eup %3993  ;;  %3857 = vmatpush3.bf16.msra.mxu0 %v2876_v28  ;;  %3999 = vrcp.f32 %v2617_v29  ;;  %3858 = vmatprep.mubr.msk.bf16.mxu0 %vm4030_vm1, %v4029_v63  ;;  %v4017_v29 = vld [vmem:[%s4147_s23] sm:$0xff] }
 0x848   : > { %v2630_v32 = vmul.f32 %v3994_v24, %v4491_v52  ;;  %3868 = vmatprep.subr.bf16.mxu0 %v4029_v63 }
 0x849   : > { %v3996_v33 = vpop.eup %3995 }
 0x84a   : > { %v2631_v36 = vmul.f32 %v3996_v33, %v4495_v54  ;;  %v2638_v37 = vpack.c.bf16 %v2630_v32, %v2630_v32  ;;  %v4018_v33 = vld [vmem:[%s4147_s23 + $0x10] sm:$0xff] }
 0x84c   : > { %3853 = vmatmul.mubr.msk.bf16.vlgmr.msra.gmra.mrb[68].mxu1 %vm1440_vm5, %v2638_v37  ;;  %v2639_v38 = vpack.c.bf16 %v2631_v36, %v2631_v36  ;;  %v4019_v36 = vld [vmem:[%s4147_s23 + $0x8] sm:$0xff] }
 0x84d   : > { %3863 = vmatpush3.bf16.msra.mxu1 %v2922_v30  ;;  %3864 = vmatprep.mubr.msk.bf16.mxu1 %vm4030_vm1, %v4029_v63 }
 0x84e   : > { %3859 = vmatmul.mubr.msk.bf16.vlgmr.msra.gmra.mrb[72].mxu0 %vm1440_vm5, %v2639_v38  ;;  %3907 = vmatprep.subr.msk.bf16.mxu1 %vm1835_vm6, %v3523_v44  ;;  %v4020_v38 = vld [vmem:[%s4147_s23 + $0x18] sm:$0xff] }
 0x84f   : > { %v3998_v34 = vpop.eup %3997  ;;  %3869 = vmatpush3.bf16.msra.mxu0 %v2968_v17  ;;  %3870 = vmatprep.mubr.msk.bf16.mxu0 %vm4030_vm1, %v4029_v63 }
 0x850   : > { %v2632_v39 = vmul.f32 %v3998_v34, %v4499_v56 }
 0x851   : > { %v4000_v40 = vpop.eup %3999 }
 0x852   : > { %v2633_v41 = vmul.f32 %v4000_v40, %v4503_v58  ;;  %v2640_v42 = vpack.c.bf16 %v2632_v39, %v2632_v39 }
 0x854   : > { %3865 = vmatmul.mubr.msk.bf16.vlgmr.msra.gmra.mrb[72].mxu1 %vm1440_vm5, %v2640_v42  ;;  %v2641_v43 = vpack.c.bf16 %v2633_v41, %v2633_v41 }
 0x855   : > { %3875 = vmatpush3.bf16.msra.mxu1 %v3037_v45 }
 0x856   : > { %3871 = vmatmul.mubr.msk.bf16.vlgmr.msra.gmra.mrb[76].mxu0 %vm1440_vm5, %v2641_v43 }
 0x90f   : > { %v2682_v63 = vpop.f32.mrb[60].mxu1 }
 0x910   : > { %v3830_v46 = vpop.f32.mrb[61].mxu1 }
 0x911   : > { %v2685_v47 = vpop.f32.mrb[62].mxu1  ;;  %v2728_v48 = vpop.f32.mrb[64].mxu0 }
 0x912   : > { %v3018_v49 = vcombine.low %v2682_v63, %v2728_v48  ;;  %v3831_v50 = vpop.f32.mrb[63].mxu1  ;;  %v3836_v51 = vpop.f32.mrb[65].mxu0 }
 0x913   : > { %v2731_v52 = vpop.f32.mrb[66].mxu0 }
 0x914   : > { %v3837_v53 = vpop.f32.mrb[67].mxu0 }
 0x917   : > { %v2774_v54 = vpop.f32.mrb[64].mxu1 }
 0x918   : > { %v3842_v55 = vpop.f32.mrb[65].mxu1 }
 0x919   : > { %v2777_v56 = vpop.f32.mrb[66].mxu1  ;;  %v2820_v57 = vpop.f32.mrb[68].mxu0 }
 0x91a   : > { %v3019_v58 = vcombine.low %v2774_v54, %v2820_v57  ;;  %v3843_v60 = vpop.f32.mrb[67].mxu1  ;;  %v3848_v61 = vpop.f32.mrb[69].mxu0 }
 0x91b   : > { %v2823_v0 = vpop.f32.mrb[70].mxu0  ;;  %v3924_v61 = vld [vmem:[%s4651_s15] sm:$0xff]  }
 0x91c   : > { %v3026_v1 = vpack.c.bf16 %v3019_v58, %v3018_v49  ;;  %v3849_v2 = vpop.f32.mrb[71].mxu0  ;;  %3880 = vmatprep.subr.bf16.mxu0 %v3924_v61 }
 0x91d   : > { %3881 = vmatpush3.bf16.msra.mxu0 %v3924_v61 }
 0x91e   : > { %3876 = vmatprep.mubr.msk.bf16.mxu1 %vm953_vm2, %v3026_v1 }
 0x91f   : > { %v2866_v4 = vpop.f32.mrb[68].mxu1 }
 0x920   : > { %v3854_v27 = vpop.f32.mrb[69].mxu1 }
 0x921   : > { %v2869_v5 = vpop.f32.mrb[70].mxu1  ;;  %v2912_v6 = vpop.f32.mrb[72].mxu0 }
 0x922   : > { %v3020_v7 = vcombine.low %v2866_v4, %v2912_v6  ;;  %v3855_v8 = vpop.f32.mrb[71].mxu1  ;;  %v3860_v9 = vpop.f32.mrb[73].mxu0 }
 0x923   : > { %v2915_v10 = vpop.f32.mrb[74].mxu0 }
 0x924   : > { %v3861_v11 = vpop.f32.mrb[75].mxu0 }
 0x927   : > { %v2958_v12 = vpop.f32.mrb[72].mxu1 }
 0x928   : > { %v3866_v3 = vpop.f32.mrb[73].mxu1 }
 0x929   : > { %v2961_v13 = vpop.f32.mrb[74].mxu1  ;;  %v3004_v62 = vpop.f32.mrb[76].mxu0  ;;  %v3526_v3 = vld [vmem:[%s4649_s13] ss:$0 sm:$0xff] }
 0x92a   : > { %v3021_v14 = vcombine.low %v2958_v12, %v3004_v62  ;;  %v3867_v16 = vpop.f32.mrb[75].mxu1  ;;  %v3872_v19 = vpop.f32.mrb[77].mxu0 }
 0x92b   : > { %v3007_v20 = vpop.f32.mrb[78].mxu0 }
 0x92c   : > { %v3027_v21 = vpack.c.bf16 %v3021_v14, %v3020_v7  ;;  %v3873_v22 = vpop.f32.mrb[79].mxu0  ;;  %v3527_v20 = vld [vmem:[%s4650_s14] ss:$0 sm:$0xff] }
 0x92e   : > { %3877 = vmatmul.mubr.msk.bf16.vlgmr.msra.gmra.mrb[36].mxu1 %vm953_vm2, %v3027_v21 }
 0xa01   : > { %v3878_v25 = vpop.f32.mrb[36].mxu1 }
 0xa02   : > { %v3073_v15 = vpop.f32.mrb[37].mxu1  ;;  %v3898_v26 = vadd.f32 %v3878_v25, %v3484_v23 }
 0xa03   : > { %v3899_v18 = vadd.f32 %v3484_v23, %v3073_v15  ;;  %v3879_v59 = vpop.f32.mrb[38].mxu1 }
 0xa04   : > { %v3076_v28 = vpop.f32.mrb[39].mxu1  ;;  %v3900_v31 = vadd.f32 %v3879_v59, %v3484_v23  ;;  %v4567_v35 = vadd.f32 %v4018_v33, %v3898_v26  ;;  %v3925_v33 = vld [vmem:[%s4653_s17] sm:$0xff]  }
 0xa05   : > { %v4564_v24 = vadd.f32 %v4017_v29, %v3899_v18  ;;  %v3901_v32 = vadd.f32 %v3484_v23, %v3076_v28  ;;  %3886 = vmatprep.subr.bf16.mxu1 %v3925_v33 }
 0xa06   : > { %v4575_v17 = vadd.f32 %v4020_v38, %v3900_v31  ;;  %v3104_v39 = vsel %vm618_vm0, %v4567_v35, 0.0  ;;  %3887 = vmatpush3.bf16.msra.mxu1 %v3925_v33  ;;  %v3928_v38 = vld [vmem:[%s4653_s17 + $0x18] sm:$0xff]  }
 0xa07   : > { %v4570_v37 = vadd.f32 %v4019_v36, %v3901_v32  ;;  %v3098_v30 = vsel %vm618_vm0, %v4564_v24, 0.0  ;;  %v3926_v36 = vld [vmem:[%s4653_s17 + $0x8] sm:$0xff]  }
 0xa08   : > { %3099 = vadd.xlane.f32.xlu0 %v3098_v30  ;;  %v3107_v40 = vsel %vm618_vm0, %v4575_v17, 0.0  ;;  %3888 = vmatprep.subr.bf16.mxu1 %v3926_v36  ;;  %v3927_v30 = vld [vmem:[%s4653_s17 + $0x10] sm:$0xff]  }
 0xa09   : > { %v3101_v34 = vsel %vm618_vm0, %v4570_v37, 0.0 }
 0xa0a   : > { %3102 = vadd.xlane.f32.xlu1 %v3101_v34  ;;  %3889 = vmatpush3.bf16.msra.mxu1 %v3926_v36  ;;  %v3528_v34 = vld [vmem:[%s4652_s16] ss:$0 sm:$0xff] }
 0xa0b   : > { %3890 = vmatprep.subr.bf16.mxu1 %v3927_v30 }
 0xa0c   : > { %3105 = vadd.xlane.f32.xlu0 %v3104_v39 }
 0xa0e   : > { %3108 = vadd.xlane.f32.xlu1 %v3107_v40  ;;  %3891 = vmatpush3.bf16.msra.mxu1 %v3927_v30 }
 0xa0f   : > { %3892 = vmatprep.subr.bf16.mxu1 %v3928_v38 }
 0xa12   : > { %3893 = vmatpush3.bf16.msra.mxu1 %v3928_v38 }
 0xa95   : > { %v3100_v41 = vpop.xlane.xlu0 %3099 }
 0xa96   : > { %v3110_v42 = vmul.f32 0.0625, %v3100_v41 }
 0xa97   : > { %v3103_v43 = vpop.xlane.xlu1 %3102 }
 0xa98   : > { %v3114_v44 = vsub.f32 %v4564_v24, %v3110_v42  ;;  %v3111_v45 = vmul.f32 0.0625, %v3103_v43 }
 0xa99   : > { %v3106_v63 = vpop.xlane.xlu0 %3105 }
 0xa9a   : > { %v3115_v46 = vsub.f32 %v4570_v37, %v3111_v45  ;;  %v3112_v47 = vmul.f32 0.0625, %v3106_v63  ;;  %v3118_v48 = vmul.f32 %v3114_v44, %v3114_v44 }
 0xa9b   : > { %v3109_v49 = vpop.xlane.xlu1 %3108 }
 0xa9c   : > { %v3116_v50 = vsub.f32 %v4567_v35, %v3112_v47  ;;  %v3113_v51 = vmul.f32 0.0625, %v3109_v49  ;;  %v3122_v52 = vsel %vm618_vm0, %v3118_v48, 0.0  ;;  %v3119_v53 = vmul.f32 %v3115_v46, %v3115_v46 }
 0xa9d   : > { %3123 = vadd.xlane.f32.xlu0 %v3122_v52 }
 0xa9e   : > { %v3117_v54 = vsub.f32 %v4575_v17, %v3113_v51  ;;  %v3125_v55 = vsel %vm618_vm0, %v3119_v53, 0.0  ;;  %v3120_v56 = vmul.f32 %v3116_v50, %v3116_v50 }
 0xa9f   : > { %3126 = vadd.xlane.f32.xlu1 %v3125_v55 }
 0xaa0   : > { %v3128_v57 = vsel %vm618_vm0, %v3120_v56, 0.0  ;;  %v3121_v58 = vmul.f32 %v3117_v54, %v3117_v54 }
 0xaa1   : > { %3129 = vadd.xlane.f32.xlu0 %v3128_v57 }
 0xaa2   : > { %v3131_v60 = vsel %vm618_vm0, %v3121_v58, 0.0 }
 0xaa3   : > { %3132 = vadd.xlane.f32.xlu1 %v3131_v60 }
 0xb2a   : > { %v3124_v0 = vpop.xlane.xlu0 %3123 }
 0xb2b   : > { %v3134_v1 = vmul.f32 0.0625, %v3124_v0 }
 0xb2c   : > { %v3127_v2 = vpop.xlane.xlu1 %3126 }
 0xb2d   : > { %v3138_v4 = vadd.f32 1e-05, %v3134_v1  ;;  %v3135_v27 = vmul.f32 0.0625, %v3127_v2 }
 0xb2e   : > { %v3130_v5 = vpop.xlane.xlu0 %3129 }
 0xb2f   : > { %4001 = vrsqrt.f32 %v3138_v4  ;;  %v3139_v6 = vadd.f32 1e-05, %v3135_v27  ;;  %v3136_v7 = vmul.f32 0.0625, %v3130_v5 }
 0xb30   : > { %v3133_v8 = vpop.xlane.xlu1 %3132 }
 0xb31   : > { %4003 = vrsqrt.f32 %v3139_v6  ;;  %v3140_v9 = vadd.f32 1e-05, %v3136_v7  ;;  %v3137_v10 = vmul.f32 0.0625, %v3133_v8 }
 0xb33   : > { %4005 = vrsqrt.f32 %v3140_v9  ;;  %v3141_v11 = vadd.f32 1e-05, %v3137_v10 }
 0xb35   : > { %4007 = vrsqrt.f32 %v3141_v11 }
 0xb39   : > { %v4002_v12 = vpop.eup %4001 }
 0xb3a   : > { %v3146_v13 = vmul.f32 %v4002_v12, %v3114_v44 }
 0xb3b   : > { %v4004_v62 = vpop.eup %4003 }
 0xb3c   : > { %v3147_v14 = vmul.f32 %v4004_v62, %v3115_v46  ;;  %v3156_v16 = vmul.f32 %v3526_v3, %v3146_v13 }
 0xb3d   : > { %v4006_v19 = vpop.eup %4005 }
 0xb3e   : > { %v3148_v21 = vmul.f32 %v4006_v19, %v3116_v50  ;;  %v3157_v22 = vmul.f32 %v3526_v3, %v3147_v14  ;;  %v3166_v26 = vadd.f32 %v3527_v20, %v3156_v16 }
 0xb3f   : > { %v4008_v23 = vpop.eup %4007 }
 0xb40   : > { %v3158_v25 = vmul.f32 %v3526_v3, %v3148_v21  ;;  %v3149_v15 = vmul.f32 %v4008_v23, %v3117_v54  ;;  %v3167_v18 = vadd.f32 %v3527_v20, %v3157_v22 }
 0xb42   : > { %v3159_v59 = vmul.f32 %v3526_v3, %v3149_v15  ;;  %v3170_v28 = vpack.c.bf16 %v3167_v18, %v3166_v26  ;;  %v3168_v29 = vadd.f32 %v3527_v20, %v3158_v25  ;;  %v3532_v25 = vld [vmem:[%s4654_s18] ss:$0 sm:$0xff] }
 0xb44   : > { %3882 = vmatprep.mubr.msk.bf16.mxu0 %vm618_vm0, %v3170_v28  ;;  %v3169_v31 = vadd.f32 %v3527_v20, %v3159_v59 }
 0xb46   : > { %v3171_v32 = vpack.c.bf16 %v3169_v31, %v3168_v29 }
 0xb48   : > { %3883 = vmatmul.mubr.msk.bf16.vlgmr.msra.gmra.mrb[80].mxu0 %vm618_vm0, %v3171_v32 }
 0xc1b   : > { %v3884_v39 = vpop.f32.mrb[80].mxu0 }
 0xc1c   : > { %v3236_v40 = vadd.f32 %v3884_v39, %v3528_v34  ;;  %v3227_v41 = vpop.f32.mrb[81].mxu0 }
 0xc1d   : > { %v3228_v42 = vadd.f32 %v3528_v34, %v3227_v41  ;;  %v3885_v43 = vpop.f32.mrb[82].mxu0 }
 0xc1e   : > { %v3244_v44 = vmul.f32 %v3236_v40, %v3236_v40  ;;  %v3239_v45 = vadd.f32 %v3885_v43, %v3528_v34  ;;  %v3230_v63 = vpop.f32.mrb[83].mxu0 }
 0xc1f   : > { %v3242_v46 = vmul.f32 %v3228_v42, %v3228_v42  ;;  %v3231_v47 = vadd.f32 %v3528_v34, %v3230_v63 }
 0xc20   : > { %v3248_v48 = vmul.f32 %v3244_v44, %v3236_v40  ;;  %v3245_v49 = vmul.f32 %v3239_v45, %v3239_v45 }
 0xc21   : > { %v3246_v50 = vmul.f32 %v3242_v46, %v3228_v42  ;;  %v3243_v51 = vmul.f32 %v3231_v47, %v3231_v47 }
 0xc22   : > { %v3252_v52 = vmul.f32 0.044715, %v3248_v48  ;;  %v3249_v53 = vmul.f32 %v3245_v49, %v3239_v45 }
 0xc23   : > { %v3250_v54 = vmul.f32 0.044715, %v3246_v50  ;;  %v3247_v55 = vmul.f32 %v3243_v51, %v3231_v47 }
 0xc24   : > { %v3256_v56 = vadd.f32 %v3252_v52, %v3236_v40  ;;  %v3253_v57 = vmul.f32 0.044715, %v3249_v53 }
 0xc25   : > { %v3254_v58 = vadd.f32 %v3250_v54, %v3228_v42  ;;  %v3251_v60 = vmul.f32 0.044715, %v3247_v55 }
 0xc26   : > { %v3260_v61 = vmul.f32 0.7978846, %v3256_v56  ;;  %v3257_v0 = vadd.f32 %v3253_v57, %v3239_v45 }
 0xc27   : > { %v3258_v1 = vmul.f32 0.7978846, %v3254_v58  ;;  %v3255_v2 = vadd.f32 %v3251_v60, %v3231_v47 }
 0xc28   : > { %4009 = vtanh.f32 %v3260_v61  ;;  %v3261_v4 = vmul.f32 0.7978846, %v3257_v0 }
 0xc29   : > { %4011 = vtanh.f32 %v3258_v1  ;;  %v3259_v27 = vmul.f32 0.7978846, %v3255_v2 }
 0xc2a   : > { %4013 = vtanh.f32 %v3261_v4 }
 0xc2b   : > { %4015 = vtanh.f32 %v3259_v27 }
 0xc32   : > { %v4010_v5 = vpop.eup %4009 }
 0xc33   : > { %v4012_v6 = vpop.eup %4011  ;;  %v3268_v7 = vadd.f32 1.0, %v4010_v5 }
 0xc34   : > { %v4014_v8 = vpop.eup %4013  ;;  %v3266_v9 = vadd.f32 1.0, %v4012_v6 }
 0xc35   : > { %v4016_v10 = vpop.eup %4015  ;;  %v3272_v11 = vmul.f32 0.5, %v3268_v7  ;;  %v3269_v12 = vadd.f32 1.0, %v4014_v8 }
 0xc36   : > { %v3270_v3 = vmul.f32 0.5, %v3266_v9  ;;  %v3267_v13 = vadd.f32 1.0, %v4016_v10 }
 0xc37   : > { %v3273_v62 = vmul.f32 0.5, %v3269_v12  ;;  %v3276_v16 = vmul.f32 %v3272_v11, %v3236_v40 }
 0xc38   : > { %v3271_v14 = vmul.f32 0.5, %v3267_v13  ;;  %v3274_v20 = vmul.f32 %v3270_v3, %v3228_v42 }
 0xc39   : > { %v3277_v19 = vmul.f32 %v3273_v62, %v3239_v45 }
 0xc3a   : > { %v3275_v21 = vmul.f32 %v3271_v14, %v3231_v47 }
 0xc3b   : > { %v3279_v22 = vpack.c.bf16 %v3277_v19, %v3276_v16 }
 0xc3c   : > { %v3278_v23 = vpack.c.bf16 %v3275_v21, %v3274_v20 }
 0xc3e   : > { %3894 = vmatprep.mubr.msk.bf16.mxu1 %vm3319_vm7, %v3278_v23 }
 0xc3f   : > { %3895 = vmatmul.mubr.msk.bf16.vlgmr.msra.gmra.mrb[76].mxu1 %vm3319_vm7, %v3279_v22 }
 0xd12   : > { %v3896_v15 = vpop.f32.mrb[76].mxu1 }
 0xd13   : > { %v3369_v26 = vadd.f32 %v3896_v15, %v3532_v25  ;;  %v3360_v18 = vpop.f32.mrb[77].mxu1 }
 0xd14   : > { %v3361_v59 = vadd.f32 %v3532_v25, %v3360_v18  ;;  %v3897_v28 = vpop.f32.mrb[78].mxu1 }
 0xd15   : > { %v3372_v29 = vadd.f32 %v3897_v28, %v3532_v25  ;;  %v3363_v31 = vpop.f32.mrb[79].mxu1  ;;  %v3377_v36 = vadd.f32 %v3369_v26, %v4567_v35 }
 0xd16   : > { %v3375_v32 = vadd.f32 %v3361_v59, %v4564_v24  ;;  %v3364_v33 = vadd.f32 %v3532_v25, %v3363_v31 }
 0xd17   : > { %3381 = vst.msk [vmem:[%s609_s28 + $0x10] sm:$0xff] %vm618_vm0, %v3377_v36  ;;  %v3378_v38 = vadd.f32 %v3372_v29, %v4575_v17 }
 0xd18   : > { %3379 = vst.msk [vmem:[%s609_s28] sm:$0xff] %vm618_vm0, %v3375_v32  ;;  %v3376_v30 = vadd.f32 %v3364_v33, %v4570_v37 }
 0xd19   : > { %3382 = vst.msk [vmem:[%s609_s28 + $0x18] sm:$0xff] %vm618_vm0, %v3378_v38 }
 0xd1a   : > { %3380 = vst.msk [vmem:[%s609_s28 + $0x8] sm:$0xff] %vm618_vm0, %v3376_v30 }
 0xd1b PF: > { %s29_s0 = sadd.s32 1, %s4027_s0  }
 0xd1c   : > { %p26_p4 = scmp.ge.s32.totalorder %s29_s0, 4  }
 0xd1e   :  { %28 = sbr.rel (!%p26_p4) target bundleno = 5 (0x5), region = 134 }

// kernel: swin_transformer_forward.13
= control target key start
LH: loop header
LB: loop body
LE: loop exit
PB: predicated region body
PF: predicated region fallthrough
CT: control target
= control target key end

     0   :  { %vm36_vm0 = vcmask 261120   ;;  %s547_s0 = inlined_call_operand.vmem [shape: f32[4,4,32], index: 0, kind: input, shape index: {}]   ;;  %s548_s1 = inlined_call_operand.vmem [shape: f32[1,32], index: 1, kind: input, shape index: {}]   ;;  %s549_s2 = inlined_call_operand.vmem [shape: f32[1,32], index: 2, kind: input, shape index: {}]   ;;  %s550_s3 = inlined_call_operand.vmem [shape: bf16[32,24], index: 3, kind: input, shape index: {}]   ;;  %s551_s4 = inlined_call_operand.vmem [shape: f32[1,24], index: 4, kind: input, shape index: {}]   ;;  %s552_s5 = inlined_call_operand.hbm [shape: f32[2,2], index: 5, kind: output, shape index: {}]  }
   0x1   :  { %v22_v0 = vld [vmem:[%s547_s0] sm:$0xf]  ;;  %v23_v1 = vld [vmem:[%s547_s0 + $0x4] sm:$0xf]  ;;  %v24_v3 = vld [vmem:[%s547_s0 + $0x8] sm:$0xf] }
   0x2   :  { %v32_v2 = vcombine.low %v22_v0, %v23_v1  ;;  %v25_v4 = vld [vmem:[%s547_s0 + $0xc] sm:$0xf] }
   0x3   :  { %v33_v5 = vcombine.low %v24_v3, %v25_v4 }
   0x4   :  { %v37_v6 = vsel %vm36_vm0, %v32_v2, 0.0 }
   0x5   :  { %38 = vadd.xlane.f32.xlu0 %v37_v6 }
   0x6   :  { %10 = vsyncpa [#allocation3], 0  ;;  %v40_v7 = vsel %vm36_vm0, %v33_v5, 0.0  ;;  %v464_v8 = vmov 839922192   ;;  %v51_v10 = vlaneseq  ;;  %v430_v38 = vld [vmem:[%s550_s3] sm:$0xff]  }
   0x7   :  { %v49_v9 = vunpack.c.l.s4 %v464_v8  ;;  %v465_v11 = vmov 1985246804   ;;  %v466_v39 = vmov 0.0   ;;  %vm467_vm1 = vmmov 0   ;;  %v431_v40 = vld [vmem:[%s550_s3 + $0x8] sm:$0xff]   ;;  %s468_s3 = smov [#allocation2]  }
   0x8   :  { %v56_v12 = vunpack.c.l.s4 %v465_v11  ;;  %v52_v14 = vshrl.u32 %v51_v10, 7  ;;  %410 = vmatprep.subr.bf16.mxu0 %v466_v39  ;;  %414 = vmatprep.mubr.msk.bf16.mxu0 %vm467_vm1, %v466_v39  ;;  %v397_v47 = vld [vmem:[%s548_s1] ss:$0 sm:$0xff]  ;;  %vm170_vm2 = vcmask 257024   ;;  %vm227_vm3 = vcmask 1041409  }
   0x9   :  { %41 = vadd.xlane.f32.xlu0 %v40_v7  ;;  %v50_v13 = vunpack.c.0.s8 %v49_v9  ;;  %411 = vmatpush3.bf16.msra.mxu0 %v430_v38  ;;  %v398_v49 = vld [vmem:[%s549_s2] ss:$0 sm:$0xff]  ;;  %v152_v50 = vcombine.high %v397_v47, %v397_v47  ;;  %vm229_vm4 = vcmask 1042434   ;;  %vm231_vm5 = vcmask 1043459  }
   0xa   :  { %v57_v15 = vunpack.c.0.s8 %v56_v12  ;;  %418 = vmatprep.subr.mxu1 %v466_v39  ;;  %412 = vmatprep.subr.bf16.mxu0 %v466_v39  ;;  %v164_v53 = vcombine.high %v398_v49, %v398_v49  ;;  %vm290_vm6 = vcmask 191488   ;;  %vm306_vm9 = vcmask 195584  }
   0xb   :  { %v53_v16 = vsub.s32 %v50_v13, %v52_v14  ;;  %420 = vmatprep.mubr.msk.f32.mxu1 %vm467_vm1, %v466_v39  ;;  %vm381_vm10 = vcmask 9216  }
   0xc   :  { %v60_v17 = vsub.s32 %v57_v15, %v52_v14 }
   0xd   :  { %413 = vmatpush3.bf16.msra.mxu0 %v431_v40 }
  0x92   :  { %v39_v18 = vpop.xlane.xlu0 %38 }
  0x93   :  { %v44_v19 = vmul.f32 0.03125, %v39_v18 }
  0x95   :  { %v54_v20 = vrot.slane %v44_v19, %v53_v16  ;;  %v61_v21 = vrot.slane %v44_v19, %v60_v17 }
  0x96   :  { %v42_v22 = vpop.xlane.xlu0 %41 }
  0x97   :  { %v80_v23 = vsub.f32 %v22_v0, %v54_v20  ;;  %v81_v24 = vsub.f32 %v23_v1, %v61_v21  ;;  %v45_v25 = vmul.f32 0.03125, %v42_v22 }
  0x99   :  { %v68_v26 = vrot.slane %v45_v25, %v53_v16  ;;  %v75_v27 = vrot.slane %v45_v25, %v60_v17  ;;  %v84_v28 = vmul.f32 %v80_v23, %v80_v23  ;;  %v85_v29 = vmul.f32 %v81_v24, %v81_v24 }
  0x9b   :  { %v82_v30 = vsub.f32 %v24_v3, %v68_v26  ;;  %v83_v31 = vsub.f32 %v25_v4, %v75_v27  ;;  %v92_v32 = vcombine.low %v84_v28, %v85_v29 }
  0x9d   :  { %v96_v33 = vsel %vm36_vm0, %v92_v32, 0.0  ;;  %v86_v34 = vmul.f32 %v82_v30, %v82_v30  ;;  %v87_v35 = vmul.f32 %v83_v31, %v83_v31 }
  0x9e   :  { %97 = vadd.xlane.f32.xlu1 %v96_v33 }
  0x9f   :  { %v93_v36 = vcombine.low %v86_v34, %v87_v35 }
  0xa1   :  { %v99_v37 = vsel %vm36_vm0, %v93_v36, 0.0 }
  0xa2   :  { %100 = vadd.xlane.f32.xlu1 %v99_v37 }
 0x12b   :  { %v98_v41 = vpop.xlane.xlu1 %97 }
 0x12c   :  { %v102_v42 = vmul.f32 0.03125, %v98_v41 }
 0x12e   :  { %v104_v43 = vadd.f32 1e-05, %v102_v42 }
 0x12f   :  { %v101_v44 = vpop.xlane.xlu1 %100 }
 0x130   :  { %432 = vrsqrt.f32 %v104_v43  ;;  %v103_v45 = vmul.f32 0.03125, %v101_v44 }
 0x132   :  { %v105_v46 = vadd.f32 1e-05, %v103_v45 }
 0x134   :  { %434 = vrsqrt.f32 %v105_v46 }
 0x13a   :  { %v433_v48 = vpop.eup %432 }
 0x13b   :  { %v116_v51 = vrot.slane %v433_v48, %v53_v16  ;;  %v123_v52 = vrot.slane %v433_v48, %v60_v17 }
 0x13d   :  { %v142_v54 = vmul.f32 %v116_v51, %v80_v23  ;;  %v143_v55 = vmul.f32 %v123_v52, %v81_v24 }
 0x13e   :  { %v435_v56 = vpop.eup %434 }
 0x13f   :  { %v154_v57 = vmul.f32 %v397_v47, %v142_v54  ;;  %v155_v58 = vmul.f32 %v152_v50, %v143_v55  ;;  %v130_v59 = vrot.slane %v435_v56, %v53_v16  ;;  %v137_v60 = vrot.slane %v435_v56, %v60_v17 }
 0x141   :  { %v166_v61 = vadd.f32 %v398_v49, %v154_v57  ;;  %v167_v62 = vadd.f32 %v164_v53, %v155_v58  ;;  %v144_v63 = vmul.f32 %v130_v59, %v82_v30  ;;  %v145_v0 = vmul.f32 %v137_v60, %v83_v31 }
 0x143   :  { %v171_v1 = vsel %vm170_vm2, %v166_v61, 0.0  ;;  %v178_v2 = vsel %vm170_vm2, %v167_v62, 0.0  ;;  %v156_v3 = vmul.f32 %v397_v47, %v144_v63  ;;  %v157_v4 = vmul.f32 %v152_v50, %v145_v0 }
 0x144   :  { %v172_v5 = vrot.slane %v171_v1, 4  ;;  %v179_v6 = vrot.slane %v178_v2, 4 }
 0x145   :  { %v168_v7 = vadd.f32 %v398_v49, %v156_v3  ;;  %v169_v8 = vadd.f32 %v164_v53, %v157_v4  ;;  %v399_v49 = vld [vmem:[%s551_s4] ss:$0 sm:$0xff]  ;;  %s389_s4 = sshll.u32 %s468_s3, 4  ;;  %s390_s4 = int_to_ptr.vmem [resolvable:$true] %s389_s4 }
 0x146   :  { %v173_v9 = vadd.f32 %v172_v5, %v171_v1  ;;  %v180_v10 = vadd.f32 %v179_v6, %v178_v2  ;;  %s440_s8 = scalar_lea.vmem %s390_s4, 32  ;;  %p445_p1 = scmp.lt.s32.totalorder %s390_s4, %s390_s4 }
 0x147   :  { %v185_v11 = vsel %vm170_vm2, %v168_v7, 0.0  ;;  %v192_v12 = vsel %vm170_vm2, %v169_v8, 0.0  ;;  %p441_p0 = scmp.ne.s32.totalorder %s390_s4, %s440_s8  ;;  %p446_p2 = scmp.lt.s32.totalorder %s440_s8, %s440_s8 }
 0x148   :  { %v186_v13 = vrot.slane %v185_v11, 4  ;;  %v174_v14 = vrot.slane %v173_v9, 2  ;;  %v181_v15 = vrot.slane %v180_v10, 2  ;;  %v193_v16 = vrot.slane %v192_v12, 4 }
 0x149   :  { %p447_p3 = por %p446_p2, %p445_p1 }
 0x14a   :  { %v175_v17 = vadd.f32 %v174_v14, %v173_v9  ;;  %v182_v18 = vadd.f32 %v181_v15, %v180_v10  ;;  %v187_v19 = vadd.f32 %v186_v13, %v185_v11  ;;  %v194_v20 = vadd.f32 %v193_v16, %v192_v12 }
 0x14b   :  { %p448_p4 = pnand %p447_p3, %p441_p0 }
 0x14c   :  { %v176_v21 = vrot.slane %v175_v17, 1  ;;  %v183_v22 = vrot.slane %v182_v18, 1  ;;  %v188_v23 = vrot.slane %v187_v19, 2  ;;  %v195_v24 = vrot.slane %v194_v20, 2 }
 0x14e   :  { %v177_v25 = vadd.f32 %v176_v21, %v175_v17  ;;  %v184_v26 = vadd.f32 %v183_v22, %v182_v18  ;;  %v189_v27 = vadd.f32 %v188_v23, %v187_v19  ;;  %v196_v28 = vadd.f32 %v195_v24, %v194_v20 }
 0x150   :  { %v190_v29 = vrot.slane %v189_v27, 1  ;;  %v197_v30 = vrot.slane %v196_v28, 1  ;;  %v200_v31 = vmul.f32 0.25, %v177_v25  ;;  %v201_v32 = vmul.f32 0.25, %v184_v26 }
 0x152   :  { %v191_v33 = vadd.f32 %v190_v29, %v189_v27  ;;  %v198_v34 = vadd.f32 %v197_v30, %v196_v28  ;;  %v208_v35 = vpack.c.bf16 %v200_v31, %v200_v31  ;;  %v209_v36 = vpack.c.bf16 %v201_v32, %v201_v32 }
 0x154   :  { %v202_v37 = vmul.f32 0.25, %v191_v33  ;;  %v203_v38 = vmul.f32 0.25, %v198_v34  ;;  %v223_v39 = vunpack.c.l.b16 %v208_v35  ;;  %v224_v40 = vunpack.c.l.b16 %v209_v36 }
 0x156   :  { %v210_v41 = vpack.c.bf16 %v202_v37, %v202_v37  ;;  %v211_v42 = vpack.c.bf16 %v203_v38, %v203_v38  ;;  %v228_v45 = vsel %vm227_vm3, %v224_v40, %v223_v39 }
 0x158   :  { %v225_v43 = vunpack.c.l.b16 %v210_v41  ;;  %v226_v44 = vunpack.c.l.b16 %v211_v42 }
 0x15a   :  { %v230_v46 = vsel %vm229_vm4, %v225_v43, %v228_v45 }
 0x15b   :  { %v232_v47 = vsel %vm231_vm5, %v226_v44, %v230_v46 }
 0x15c   :  { %v233_v48 = vpack.c.b16 %v232_v47, %v232_v47 }
 0x15e   :  { %415 = vmatmul.mubr.msk.bf16.vlgmr.msra.gmra.mrb[0].mxu0 %vm36_vm0, %v233_v48 }
 0x231   :  { %v283_v50 = vpop.f32.mrb[0].mxu0 }
 0x232   :  { %v284_v51 = vadd.f32 %v399_v49, %v283_v50  ;;  %v416_v52 = vpop.f32.mrb[1].mxu0 }
 0x233   :  { %v286_v53 = vpop.f32.mrb[2].mxu0 }
 0x234   :  { %v417_v54 = vpop.f32.mrb[3].mxu0  ;;  %v289_v55 = vmul.f32 %v284_v51, %v284_v51 }
 0x236   :  { %v291_v56 = vsel %vm290_vm6, %v289_v55, 0.0 }
 0x237   :  { %292 = vadd.xlane.f32.xlu0 %v291_v56 }
 0x2c4   :  { %v293_v57 = vpop.xlane.xlu0 %292 }
 0x2c5   :  { %436 = vrsqrt.f32 %v293_v57  ;;  %vm296_vm7 = vcmp.eq.f32.partialorder %v293_v57, inf  ;;  %v299_v60 = vand.u32 2147483648, %v293_v57  ;;  %vm298_vm8 = vcmp.eq.f32.partialorder %v293_v57, 0.0 }
 0x2cf   :  { %v437_v58 = vpop.eup %436 }
 0x2d0   :  { %v295_v59 = vmul.f32 %v437_v58, %v293_v57 }
 0x2d2   :  { %v297_v61 = vsel %vm296_vm7, %v293_v57, %v295_v59 }
 0x2d3   :  { %v300_v62 = vsel %vm298_vm8, %v299_v60, %v297_v61 }
 0x2d4   :  { %v301_v63 = vmax.f32 %v300_v62, 1e-12 }
 0x2d6   :  { %438 = vrcp.f32 %v301_v63 }
 0x2e0   :  { %v439_v0 = vpop.eup %438 }
 0x2e1   :  { %v303_v1 = vmul.f32 %v439_v0, %v284_v51 }
 0x2e3   :  { %v305_v2 = vrot.slane %v303_v1, 2 }
 0x2e5   :  { %419 = vmatpush3.xpose.msk.msra.mxu1 %vm306_vm9, %v305_v2 }
 0x2e8   :  { %421 = vmatmul.mubr.msk.f32.vlgmr.msra.gmra.mrb[0].mxu1 %vm306_vm9, %v303_v1 }
 0x3bb   :  { %v377_v3 = vpop.f32.mrb[0].mxu1 }
 0x3bc   :  { %382 = vst.msk [vmem:[#allocation2] sm:$0x3] %vm381_vm10, %v377_v3  ;;  %v422_v4 = vpop.f32.mrb[1].mxu1 }
 0x3bd   :  { %451 = shalt.err (!%p448_p4)
}
 0x3be   :  { %s452_s11 = scalar_lea.hbm %s552_s5, 32 }
 0x3bf   :  { %p453_p5 = scmp.ne.s32.totalorder %s552_s5, %s452_s11  ;;  %p456_p6 = scmp.lt.u32.totalorder %s452_s11, %s552_s5 }
 0x3c1   :  { %p458_p7 = pnand %p456_p6, %p453_p5 }
 0x3c3   :  { %461 = shalt.err (!%p458_p7)
}
 0x3c4   :  { %392 = dma.vmem_to_hbm [thread:$0]  %s390_s4, 32, %s552_s5, [#allocation3]  }
 0x3c5   :  { %462 = dma.done.wait [#allocation3], 32  }
 0x3c6   :  { %463 = vsyncadd [#allocation3], 4294967264 }
 0x3c7   :  { %396 = vsyncpa [#allocation3], 1 }

// kernel: swin_transformer_forward.11
= control target key start
LH: loop header
LB: loop body
LE: loop exit
PB: predicated region body
PF: predicated region fallthrough
CT: control target
= control target key end

     0   :  { %s3608_s27 = smov 0   ;;  %s4052_s0 = inlined_call_operand.vmem [shape: f32[4,4,32], index: 0, kind: input, shape index: {}]   ;;  %s4053_s1 = inlined_call_operand.vmem [shape: f32[1,32], index: 1, kind: input, shape index: {}]   ;;  %s4054_s2 = inlined_call_operand.vmem [shape: f32[1,32], index: 2, kind: input, shape index: {}]   ;;  %s4055_s3 = inlined_call_operand.vmem [shape: bf16[4,32,8], index: 3, kind: input, shape index: {}]   ;;  %s4056_s4 = inlined_call_operand.vmem [shape: bf16[4,32,8], index: 4, kind: input, shape index: {}]   ;;  %s4057_s5 = inlined_call_operand.vmem [shape: bf16[4,32,8], index: 5, kind: input, shape index: {}]   ;;  %s4058_s6 = inlined_call_operand.vmem [shape: f32[4,1,8], index: 6, kind: input, shape index: {}]   ;;  %s4059_s7 = inlined_call_operand.vmem [shape: f32[4,1,8], index: 7, kind: input, shape index: {}]   ;;  %s4060_s8 = inlined_call_operand.vmem [shape: f32[4,1,8], index: 8, kind: input, shape index: {}]   ;;  %s4061_s9 = inlined_call_operand.vmem [shape: f32[4,4,4], index: 9, kind: input, shape index: {}]   ;;  %s4062_s10 = inlined_call_operand.vmem [shape: bf16[4,8,32], index: 10, kind: input, shape index: {}]   ;;  %s4063_s11 = inlined_call_operand.vmem [shape: f32[1,32], index: 11, kind: input, shape index: {}]   ;;  %s4064_s12 = inlined_call_operand.vmem [shape: f32[1,32], index: 12, kind: input, shape index: {}]   ;;  %s4065_s13 = inlined_call_operand.vmem [shape: f32[1,32], index: 13, kind: input, shape index: {}]   ;;  %s4066_s14 = inlined_call_operand.vmem [shape: bf16[32,128], index: 14, kind: input, shape index: {}]   ;;  %s4067_s15 = inlined_call_operand.vmem [shape: f32[1,128], index: 15, kind: input, shape index: {}]   ;;  %s4068_s16 = inlined_call_operand.vmem [shape: bf16[128,32], index: 16, kind: input, shape index: {}]   ;;  %s4069_s17 = inlined_call_operand.vmem [shape: f32[1,32], index: 17, kind: input, shape index: {}]   ;;  %s4070_s18 = inlined_call_operand.vmem [shape: f32[4,4,32], index: 18, kind: output, shape index: {}]  }
   0x1   :  { %4071 = sst [smem:[#allocation2_spill]] %s4052_s0 }
   0x2   :  { %4072 = sst [smem:[#allocation3_spill]] %s4053_s1 }
   0x3   :  { %4073 = sst [smem:[#allocation4_spill]] %s4054_s2 }
   0x4 LB: > { %s2921_s28 = sadd.s32 4294967295, %s3507_s27   ;;  %p2925_p0 = scmp.ge.s32.totalorder %s3507_s27, 1  ;;  %s3507_s27 = sphi %s3608_s27, %s28_s27  }
   0x5   : > { %p513_p1 = scmp.lt.s32.totalorder %s3507_s27, 3 }
   0x7   : > { %p514_p2 = pnand %p2925_p0, %p513_p1 }
   0x8   : > { %s2926_s29 = sshll.u32 (!%p514_p2), %s2921_s28, 1  ;;  %vm588_vm0 = vcmask (!%p514_p2), 261120   ;;  %s4074_s1 = sld [smem:[#allocation2_spill]] (!%p514_p2)  ;;  %v3509_v4 = vmov (!%p514_p2), 839922192   ;;  %v598_v6 = vlaneseq (!%p514_p2)  ;;  %v3427_v24 = vld [vmem:[%s4055_s3] sm:$0xff] (!%p514_p2)  }
   0x9   : > { %517 = sbr.rel (%p514_p2) target bundleno = 5272 (0x1498), region = 92  ;;  %p568_p3 = scmp.lt.s32.totalorder (!%p514_p2), %s2926_s29, 3  ;;  %v596_v5 = vunpack.c.l.s4 (!%p514_p2), %v3509_v4  ;;  %v3510_v7 = vmov (!%p514_p2), 1985246804   ;;  %v3511_v25 = vmov (!%p514_p2), 0.0   ;;  %v3428_v26 = vld [vmem:[%s4055_s3 + $0x8] sm:$0xff] (!%p514_p2)  }
   0xa   : > { %v603_v8 = vunpack.c.l.s4 (!%p514_p2), %v3510_v7  ;;  %v599_v10 = vshrl.u32 (!%p514_p2), %v598_v6, 7  ;;  %3157 = vmatprep.subr.bf16.mxu0 (!%p514_p2), %v3511_v25  ;;  %3181 = vmatprep.subr.bf16.mxu1 (!%p514_p2), %v3511_v25  ;;  %vm3512_vm1 = vmmov (!%p514_p2), 0   ;;  %s4075_s26 = sld [smem:[#allocation3_spill]] (!%p514_p2)  ;;  %s4076_s19 = sld [smem:[#allocation4_spill]] (!%p514_p2)  ;;  %v3429_v44 = vld [vmem:[%s4056_s4] sm:$0xff] (!%p514_p2)   ;;  %v3430_v46 = vld [vmem:[%s4056_s4 + $0x8] sm:$0xff] (!%p514_p2)  }
   0xb   : > { %v597_v9 = vunpack.c.0.s8 (!%p514_p2), %v596_v5  ;;  %3158 = vmatpush3.bf16.msra.mxu0 (!%p514_p2), %v3427_v24  ;;  %3161 = vmatprep.mubr.msk.bf16.mxu0 (!%p514_p2), %vm3512_vm1, %v3511_v25  ;;  %v3431_v47 = vld [vmem:[%s4057_s5] sm:$0xff] (!%p514_p2)   ;;  %v3432_v48 = vld [vmem:[%s4057_s5 + $0x8] sm:$0xff] (!%p514_p2)   ;;  %vm877_vm2 = vcmask (!%p514_p2), 64512   ;;  %vm1002_vm3 = vcmask (!%p514_p2), 1041408   ;;  %vm973_vm4 = vcmask (!%p514_p2), 27648  }
   0xc   : > { %v604_v11 = vunpack.c.0.s8 (!%p514_p2), %v603_v8  ;;  %3159 = vmatprep.subr.bf16.mxu0 (!%p514_p2), %v3511_v25  ;;  %3183 = vmatprep.mubr.msk.bf16.mxu1 (!%p514_p2), %vm3512_vm1, %v3511_v25  ;;  %v2936_v53 = vld [vmem:[%s4059_s7] ss:$0 sm:$0xff] (!%p514_p2)  ;;  %vm998_vm5 = vcmask (!%p514_p2), 31744   ;;  %vm1101_vm6 = vcmask (!%p514_p2), 1043456   ;;  %vm2862_vm7 = vcmask (!%p514_p2), 257024  }
   0xd   : > { %v3629_v12 = vsub.s32 (!%p514_p2), %v597_v9, %v599_v10  ;;  %v2932_v57 = vld [vmem:[%s4058_s6] ss:$0 sm:$0xff] (!%p514_p2) }
   0xe   : > { %v3631_v13 = vsub.s32 (!%p514_p2), %v604_v11, %v599_v10 }
   0xf   : > { %3160 = vmatpush3.bf16.msra.mxu0 (!%p514_p2), %v3428_v26 }
  0x10   : > { %s4078_s29 = smov (!%p568_p3, %s2926_s29), 3  ;;  %3165 = vmatprep.subr.bf16.mxu0 %v3511_v25  ;;  %v2930_v30 = vld [vmem:[%s4075_s26] ss:$0 sm:$0xff] }
  0x11   : > { %s2927_s30 = sshll.u32 %s4078_s29, 2  ;;  %v2931_v32 = vld [vmem:[%s4076_s19] ss:$0 sm:$0xff]  ;;  %v650_v33 = vcombine.high %v2930_v30, %v2930_v30 }
  0x12   : > { %s3624_s20 = scalar_lea.vmem %s4074_s1, %s2927_s30  ;;  %v660_v36 = vcombine.high %v2931_v32, %v2931_v32  ;;  %s577_s2 = scalar_lea.vmem %s4070_s18, %s2927_s30 }
  0x13   : > { %v580_v0 = vld [vmem:[%s3624_s20] sm:$0xf]  ;;  %v581_v1 = vld [vmem:[%s3624_s20 + $0x4] sm:$0xf] }
  0x14   : > { %v586_v2 = vcombine.low %v580_v0, %v581_v1 }
  0x16   : > { %v589_v3 = vsel %vm588_vm0, %v586_v2, 0.0 }
  0x17   : > { %590 = vadd.xlane.f32.xlu0 %v589_v3 }
  0xa4   : > { %v591_v14 = vpop.xlane.xlu0 %590 }
  0xa5   : > { %v593_v15 = vmul.f32 0.03125, %v591_v14 }
  0xa7   : > { %v601_v16 = vrot.slane %v593_v15, %v3629_v12  ;;  %v608_v17 = vrot.slane %v593_v15, %v3631_v13 }
  0xa9   : > { %v611_v18 = vsub.f32 %v580_v0, %v601_v16  ;;  %v612_v19 = vsub.f32 %v581_v1, %v608_v17  ;;  %v2940_v1 = vld [vmem:[%s4060_s8] ss:$0 sm:$0xff] }
  0xab   : > { %v613_v20 = vmul.f32 %v611_v18, %v611_v18  ;;  %v614_v21 = vmul.f32 %v612_v19, %v612_v19 }
  0xad   : > { %v617_v22 = vcombine.low %v613_v20, %v614_v21 }
  0xaf   : > { %v619_v23 = vsel %vm588_vm0, %v617_v22, 0.0 }
  0xb0   : > { %620 = vadd.xlane.f32.xlu0 %v619_v23 }
 0x13d   : > { %v621_v27 = vpop.xlane.xlu0 %620 }
 0x13e   : > { %v622_v28 = vmul.f32 0.03125, %v621_v27 }
 0x140   : > { %v623_v29 = vadd.f32 1e-05, %v622_v28 }
 0x142   : > { %3461 = vrsqrt.f32 %v623_v29 }
 0x14c   : > { %v3462_v31 = vpop.eup %3461 }
 0x14d   : > { %v632_v34 = vrot.slane %v3462_v31, %v3629_v12  ;;  %v639_v35 = vrot.slane %v3462_v31, %v3631_v13 }
 0x14f   : > { %v642_v37 = vmul.f32 %v632_v34, %v611_v18  ;;  %v643_v38 = vmul.f32 %v639_v35, %v612_v19  ;;  %v970_v18 = vld [vmem:[%s4061_s9] sm:$0xf] }
 0x151   : > { %v652_v39 = vmul.f32 %v2930_v30, %v642_v37  ;;  %v653_v40 = vmul.f32 %v650_v33, %v643_v38 }
 0x153   : > { %v662_v41 = vadd.f32 %v2931_v32, %v652_v39  ;;  %v663_v42 = vadd.f32 %v660_v36, %v653_v40 }
 0x155   : > { %v666_v43 = vcombine.low %v662_v41, %v663_v42 }
 0x157   : > { %v3661_v45 = vpack.c.bf16 %v666_v43, %v666_v43 }
 0x159   : > { %3162 = vmatmul.mubr.msk.bf16.vlgmr.msra.gmra.mrb[0].mxu0 %vm588_vm0, %v3661_v45 }
 0x15a   : > { %3166 = vmatpush3.bf16.msra.mxu0 %v3429_v44  ;;  %3169 = vmatprep.mubr.msk.bf16.mxu0 %vm3512_vm1, %v3511_v25 }
 0x15b   : > { %3167 = vmatprep.subr.bf16.mxu0 %v3511_v25 }
 0x15e   : > { %3168 = vmatpush3.bf16.msra.mxu0 %v3430_v46 }
 0x15f   : > { %3173 = vmatprep.subr.bf16.mxu0 %v3511_v25 }
 0x161   : > { %3170 = vmatmul.mubr.msk.bf16.vlgmr.msra.gmra.mrb[4].mxu0 %vm588_vm0, %v3661_v45 }
 0x162   : > { %3174 = vmatpush3.bf16.msra.mxu0 %v3431_v47  ;;  %3177 = vmatprep.mubr.msk.bf16.mxu0 %vm3512_vm1, %v3511_v25 }
 0x163   : > { %3175 = vmatprep.subr.bf16.mxu0 %v3511_v25 }
 0x166   : > { %3176 = vmatpush3.bf16.msra.mxu0 %v3432_v48 }
 0x167   : > { %3187 = vmatprep.subr.bf16.mxu0 %v3511_v25 }
 0x169   : > { %3178 = vmatmul.mubr.msk.bf16.vlgmr.msra.gmra.mrb[8].mxu0 %vm588_vm0, %v3661_v45 }
 0x16a   : > { %3189 = vmatprep.mubr.msk.bf16.mxu0 %vm3512_vm1, %v3511_v25 }
 0x22c   : > { %v730_v49 = vpop.f32.mrb[0].mxu0 }
 0x22d   : > { %v3163_v50 = vpop.f32.mrb[1].mxu0  ;;  %v731_v62 = vadd.f32 %v2932_v57, %v730_v49 }
 0x22e   : > { %v733_v51 = vpop.f32.mrb[2].mxu0  ;;  %v3433_v50 = vld [vmem:[%s4055_s3 + $0x10] sm:$0xff]  }
 0x22f   : > { %v3164_v52 = vpop.f32.mrb[3].mxu0  ;;  %v863_v4 = vcombine.high %v731_v62, %v731_v62  ;;  %v865_v8 = vpack.c.bf16 %v731_v62, %v731_v62 }
 0x230   : > { %v3434_v52 = vld [vmem:[%s4055_s3 + $0x18] sm:$0xff]  }
 0x231   : > { %v866_v14 = vpack.c.bf16 %v863_v4, %v863_v4  ;;  %v3438_v4 = vld [vmem:[%s4056_s4 + $0x18] sm:$0xff]  }
 0x234   : > { %v793_v54 = vpop.f32.mrb[4].mxu0 }
 0x235   : > { %v794_v55 = vadd.f32 %v2936_v53, %v793_v54  ;;  %v3171_v56 = vpop.f32.mrb[5].mxu0  ;;  %v3435_v53 = vld [vmem:[%s4057_s5 + $0x10] sm:$0xff]   ;;  %v3436_v54 = vld [vmem:[%s4057_s5 + $0x18] sm:$0xff]  }
 0x236   : > { %v796_v58 = vpop.f32.mrb[6].mxu0 }
 0x237   : > { %v868_v59 = vcombine.high %v794_v55, %v794_v55  ;;  %v3172_v60 = vpop.f32.mrb[7].mxu0  ;;  %v870_v61 = vpack.c.bf16 %v794_v55, %v794_v55  ;;  %v1097_v55 = vld [vmem:[%s4062_s10] sm:$0xf] }
 0x238   : > { %v1103_v56 = vsel %vm1101_vm6, %v1097_v55, 0 }
 0x239   : > { %v871_v63 = vpack.c.bf16 %v868_v59, %v868_v59  ;;  %v882_v0 = vsel %vm877_vm2, %v870_v61, 0 }
 0x23a   : > { %3182 = vmatpush3.bf16.xpose.msra.mxu1 %v882_v0 }
 0x23b   : > { %v928_v2 = vsel %vm877_vm2, %v871_v63, 0  ;;  %3193 = vmatprep.subr.bf16.mxu1 %v3511_v25 }
 0x23c   : > { %v856_v3 = vpop.f32.mrb[8].mxu0  ;;  %3188 = vmatpush3.bf16.xpose.msra.mxu0 %v928_v2 }
 0x23d   : > { %v857_v5 = vadd.f32 %v2940_v1, %v856_v3  ;;  %v3179_v6 = vpop.f32.mrb[9].mxu0  ;;  %3199 = vmatprep.subr.bf16.mxu0 %v3511_v25  ;;  %v3437_v1 = vld [vmem:[%s4056_s4 + $0x10] sm:$0xff]  }
 0x23e   : > { %v859_v7 = vpop.f32.mrb[10].mxu0 }
 0x23f   : > { %v873_v9 = vcombine.high %v857_v5, %v857_v5  ;;  %v875_v10 = vpack.c.bf16 %v857_v5, %v857_v5  ;;  %v3180_v11 = vpop.f32.mrb[11].mxu0 }
 0x241   : > { %v876_v15 = vpack.c.bf16 %v873_v9, %v873_v9  ;;  %3184 = vmatmul.mubr.msk.bf16.vlgmr.msra.gmra.mrb[0].mxu1 %vm877_vm2, %v865_v8  ;;  %v1004_v16 = vsel %vm1002_vm3, %v875_v10, 0 }
 0x242   : > { %3194 = vmatpush3.bf16.msra.mxu1 %v1004_v16  ;;  %3195 = vmatprep.mubr.msk.bf16.mxu1 %vm3512_vm1, %v3511_v25  ;;  %v2973_v16 = vld [vmem:[%s4060_s8 + $0x1] ss:$0 sm:$0xff] }
 0x243   : > { %3190 = vmatmul.mubr.msk.bf16.vlgmr.msra.gmra.mrb[12].mxu0 %vm877_vm2, %v866_v14  ;;  %v1050_v17 = vsel %vm1002_vm3, %v876_v15, 0  ;;  %3205 = vmatprep.subr.bf16.mxu1 %v3511_v25  ;;  %v2964_v15 = vld [vmem:[%s4059_s7 + $0x1] ss:$0 sm:$0xff] }
 0x244   : > { %3200 = vmatpush3.bf16.msra.mxu0 %v1050_v17  ;;  %3201 = vmatprep.mubr.msk.bf16.mxu0 %vm3512_vm1, %v3511_v25 }
 0x245   : > { %3211 = vmatprep.subr.bf16.mxu0 %v3511_v25 }
 0x314   : > { %v918_v19 = vpop.f32.mrb[0].mxu1 }
 0x315   : > { %v971_v20 = vadd.f32 %v970_v18, %v918_v19  ;;  %v3185_v21 = vpop.f32.mrb[1].mxu1 }
 0x316   : > { %v921_v22 = vpop.f32.mrb[2].mxu1  ;;  %v964_v23 = vpop.f32.mrb[12].mxu0 }
 0x317   : > { %v972_v24 = vadd.f32 %v970_v18, %v964_v23  ;;  %v3186_v26 = vpop.f32.mrb[3].mxu1  ;;  %v3191_v27 = vpop.f32.mrb[13].mxu0  ;;  %v974_v28 = vsel %vm973_vm4, %v971_v20, -inf }
 0x318   : > { %975 = vmax.xlane.f32.xlu1 %v974_v28  ;;  %v967_v29 = vpop.f32.mrb[14].mxu0 }
 0x319   : > { %v3192_v30 = vpop.f32.mrb[15].mxu0  ;;  %v977_v31 = vsel %vm973_vm4, %v972_v24, -inf }
 0x31c   : > { %978 = vmax.xlane.f32.xlu1 %v977_v31 }
 0x3a5   : > { %v976_v32 = vpop.xlane.xlu1 %975 }
 0x3a6   : > { %v980_v33 = vsub.f32 %v971_v20, %v976_v32  ;;  %v2955_v20 = vld [vmem:[%s4058_s6 + $0x1] ss:$0 sm:$0xff] }
 0x3a8   : > { %v982_v34 = vmul.f32 1.442695, %v980_v33 }
 0x3a9   : > { %v979_v35 = vpop.xlane.xlu1 %978 }
 0x3aa   : > { %3463 = vpow2.f32 %v982_v34  ;;  %v981_v36 = vsub.f32 %v972_v24, %v979_v35 }
 0x3ac   : > { %v984_v37 = vmul.f32 1.442695, %v981_v36 }
 0x3ae   : > { %3465 = vpow2.f32 %v984_v37 }
 0x3b4   : > { %v3464_v38 = vpop.eup %3463 }
 0x3b5   : > { %v986_v39 = vsel %vm973_vm4, %v3464_v38, 0.0 }
 0x3b6   : > { %987 = vadd.xlane.f32.xlu0 %v986_v39  ;;  %v2979_v39 = vld [vmem:[%s4061_s9 + $0x4] sm:$0xf] }
 0x3b8   : > { %v3466_v40 = vpop.eup %3465 }
 0x3b9   : > { %v989_v41 = vsel %vm973_vm4, %v3466_v40, 0.0 }
 0x3ba   : > { %990 = vadd.xlane.f32.xlu1 %v989_v41 }
 0x443   : > { %v988_v42 = vpop.xlane.xlu0 %987 }
 0x444   : > { %3467 = vrcp.f32 %v988_v42 }
 0x447   : > { %v991_v43 = vpop.xlane.xlu1 %990 }
 0x448   : > { %3469 = vrcp.f32 %v991_v43 }
 0x44e   : > { %v3468_v44 = vpop.eup %3467 }
 0x44f   : > { %v994_v46 = vmul.f32 %v3468_v44, %v3464_v38 }
 0x451   : > { %v996_v47 = vpack.c.bf16 %v994_v46, %v994_v46 }
 0x452   : > { %v3470_v48 = vpop.eup %3469 }
 0x453   : > { %v995_v49 = vmul.f32 %v3470_v48, %v3466_v40  ;;  %3196 = vmatmul.mubr.msk.bf16.vlgmr.msra.gmra.mrb[4].mxu1 %vm998_vm5, %v996_v47 }
 0x454   : > { %3207 = vmatprep.mubr.msk.bf16.mxu1 %vm3512_vm1, %v3511_v25  ;;  %3206 = vmatpush3.bf16.msra.mxu1 %v1103_v56 }
 0x455   : > { %v997_v51 = vpack.c.bf16 %v995_v49, %v995_v49  ;;  %3219 = vmatprep.subr.bf16.mxu1 %v3511_v25 }
 0x457   : > { %3202 = vmatmul.mubr.msk.bf16.vlgmr.msra.gmra.mrb[16].mxu0 %vm998_vm5, %v997_v51 }
 0x458   : > { %3212 = vmatpush3.bf16.msra.mxu0 %v3433_v50  ;;  %3215 = vmatprep.mubr.msk.bf16.mxu0 %vm3512_vm1, %v3511_v25 }
 0x459   : > { %3213 = vmatprep.subr.bf16.mxu0 %v3511_v25 }
 0x45c   : > { %3214 = vmatpush3.bf16.msra.mxu0 %v3434_v52 }
 0x45d   : > { %3227 = vmatprep.subr.bf16.mxu0 %v3511_v25 }
 0x45f   : > { %3216 = vmatmul.mubr.msk.bf16.vlgmr.msra.gmra.mrb[20].mxu0 %vm588_vm0, %v3661_v45 }
 0x460   : > { %3228 = vmatpush3.bf16.msra.mxu0 %v3435_v53  ;;  %3231 = vmatprep.mubr.msk.bf16.mxu0 %vm3512_vm1, %v3511_v25 }
 0x461   : > { %3229 = vmatprep.subr.bf16.mxu0 %v3511_v25 }
 0x464   : > { %3230 = vmatpush3.bf16.msra.mxu0 %v3436_v54 }
 0x465   : > { %3241 = vmatprep.subr.bf16.mxu0 %v3511_v25 }
 0x467   : > { %3232 = vmatmul.mubr.msk.bf16.vlgmr.msra.gmra.mrb[24].mxu0 %vm588_vm0, %v3661_v45 }
 0x468   : > { %3243 = vmatprep.mubr.msk.bf16.mxu0 %vm3512_vm1, %v3511_v25 }
 0x526   : > { %v1040_v57 = vpop.f32.mrb[4].mxu1 }
 0x527   : > { %v3197_v58 = vpop.f32.mrb[5].mxu1 }
 0x528   : > { %v1043_v59 = vpop.f32.mrb[6].mxu1 }
 0x529   : > { %v3198_v60 = vpop.f32.mrb[7].mxu1 }
 0x52a   : > { %v1086_v61 = vpop.f32.mrb[16].mxu0 }
 0x52b   : > { %v1094_v62 = vcombine.low %v1040_v57, %v1086_v61  ;;  %v3203_v63 = vpop.f32.mrb[17].mxu0 }
 0x52c   : > { %v1089_v0 = vpop.f32.mrb[18].mxu0 }
 0x52d   : > { %v1096_v2 = vpack.c.bf16 %v1094_v62, %v1094_v62  ;;  %v3204_v3 = vpop.f32.mrb[19].mxu0 }
 0x52f   : > { %3208 = vmatmul.mubr.msk.bf16.vlgmr.msra.gmra.mrb[8].mxu1 %vm877_vm2, %v1096_v2 }
 0x530   : > { %3220 = vmatpush3.bf16.msra.mxu1 %v3437_v1  ;;  %3223 = vmatprep.mubr.msk.bf16.mxu1 %vm3512_vm1, %v3511_v25 }
 0x531   : > { %3221 = vmatprep.subr.bf16.mxu1 %v3511_v25 }
 0x532   : > { %v1211_v5 = vpop.f32.mrb[20].mxu0 }
 0x533   : > { %v3217_v6 = vpop.f32.mrb[21].mxu0  ;;  %v1212_v27 = vadd.f32 %v2955_v20, %v1211_v5 }
 0x534   : > { %v1214_v7 = vpop.f32.mrb[22].mxu0  ;;  %3222 = vmatpush3.bf16.msra.mxu1 %v3438_v4  ;;  %v3439_v6 = vld [vmem:[%s4055_s3 + $0x20] sm:$0xff]  }
 0x535   : > { %v3218_v8 = vpop.f32.mrb[23].mxu0  ;;  %3235 = vmatprep.subr.bf16.mxu1 %v3511_v25  ;;  %v1348_v32 = vcombine.high %v1212_v27, %v1212_v27  ;;  %v1350_v34 = vpack.c.bf16 %v1212_v27, %v1212_v27  ;;  %v3444_v27 = vld [vmem:[%s4056_s4 + $0x28] sm:$0xff]  }
 0x536   : > { %v3440_v8 = vld [vmem:[%s4055_s3 + $0x28] sm:$0xff]  }
 0x537   : > { %3224 = vmatmul.mubr.msk.bf16.vlgmr.msra.gmra.mrb[12].mxu1 %vm588_vm0, %v3661_v45  ;;  %v1351_v36 = vpack.c.bf16 %v1348_v32, %v1348_v32 }
 0x538   : > { %3237 = vmatprep.mubr.msk.bf16.mxu1 %vm3512_vm1, %v3511_v25 }
 0x53a   : > { %v1341_v9 = vpop.f32.mrb[24].mxu0 }
 0x53b   : > { %v3233_v10 = vpop.f32.mrb[25].mxu0  ;;  %v1342_v22 = vadd.f32 %v2973_v16, %v1341_v9  ;;  %v3441_v9 = vld [vmem:[%s4057_s5 + $0x20] sm:$0xff]  }
 0x53c   : > { %v1344_v11 = vpop.f32.mrb[26].mxu0  ;;  %v3442_v10 = vld [vmem:[%s4057_s5 + $0x28] sm:$0xff]  }
 0x53d   : > { %v3234_v14 = vpop.f32.mrb[27].mxu0  ;;  %v1358_v30 = vcombine.high %v1342_v22, %v1342_v22  ;;  %v1360_v33 = vpack.c.bf16 %v1342_v22, %v1342_v22  ;;  %v2982_v11 = vld [vmem:[%s4062_s10 + $0x4] sm:$0xf] }
 0x53e   : > { %v1585_v14 = vsel %vm1101_vm6, %v2982_v11, 0 }
 0x53f   : > { %v1361_v35 = vpack.c.bf16 %v1358_v30, %v1358_v30  ;;  %v1486_v37 = vsel %vm1002_vm3, %v1360_v33, 0 }
 0x541   : > { %v1532_v38 = vsel %vm1002_vm3, %v1361_v35, 0 }
 0x60a   : > { %v1276_v17 = vpop.f32.mrb[12].mxu1 }
 0x60b   : > { %v1277_v18 = vadd.f32 %v2964_v15, %v1276_v17  ;;  %v3225_v19 = vpop.f32.mrb[13].mxu1 }
 0x60c   : > { %v1279_v21 = vpop.f32.mrb[14].mxu1 }
 0x60d   : > { %v1353_v23 = vcombine.high %v1277_v18, %v1277_v18  ;;  %v1355_v24 = vpack.c.bf16 %v1277_v18, %v1277_v18  ;;  %v3226_v26 = vpop.f32.mrb[15].mxu1 }
 0x60f   : > { %v1356_v28 = vpack.c.bf16 %v1353_v23, %v1353_v23  ;;  %v1366_v29 = vsel %vm877_vm2, %v1355_v24, 0  ;;  %v3443_v23 = vld [vmem:[%s4056_s4 + $0x20] sm:$0xff]  }
 0x610   : > { %3236 = vmatpush3.bf16.xpose.msra.mxu1 %v1366_v29 }
 0x611   : > { %v1412_v31 = vsel %vm877_vm2, %v1356_v28, 0  ;;  %3247 = vmatprep.subr.bf16.mxu1 %v3511_v25 }
 0x612   : > { %3242 = vmatpush3.bf16.xpose.msra.mxu0 %v1412_v31 }
 0x613   : > { %3253 = vmatprep.subr.bf16.mxu0 %v3511_v25 }
 0x617   : > { %3238 = vmatmul.mubr.msk.bf16.vlgmr.msra.gmra.mrb[16].mxu1 %vm877_vm2, %v1350_v34 }
 0x618   : > { %3248 = vmatpush3.bf16.msra.mxu1 %v1486_v37  ;;  %3249 = vmatprep.mubr.msk.bf16.mxu1 %vm3512_vm1, %v3511_v25  ;;  %v3007_v37 = vld [vmem:[%s4060_s8 + $0x2] ss:$0 sm:$0xff] }
 0x619   : > { %3244 = vmatmul.mubr.msk.bf16.vlgmr.msra.gmra.mrb[28].mxu0 %vm877_vm2, %v1351_v36  ;;  %3259 = vmatprep.subr.bf16.mxu1 %v3511_v25  ;;  %v2998_v36 = vld [vmem:[%s4059_s7 + $0x2] ss:$0 sm:$0xff] }
 0x61a   : > { %3254 = vmatpush3.bf16.msra.mxu0 %v1532_v38  ;;  %3255 = vmatprep.mubr.msk.bf16.mxu0 %vm3512_vm1, %v3511_v25 }
 0x61b   : > { %3265 = vmatprep.subr.bf16.mxu0 %v3511_v25 }
 0x6ea   : > { %v1402_v40 = vpop.f32.mrb[16].mxu1 }
 0x6eb   : > { %v1456_v41 = vadd.f32 %v2979_v39, %v1402_v40  ;;  %v3239_v42 = vpop.f32.mrb[17].mxu1 }
 0x6ec   : > { %v1405_v43 = vpop.f32.mrb[18].mxu1  ;;  %v1448_v44 = vpop.f32.mrb[28].mxu0 }
 0x6ed   : > { %v1457_v46 = vadd.f32 %v2979_v39, %v1448_v44  ;;  %v3240_v47 = vpop.f32.mrb[19].mxu1  ;;  %v3245_v48 = vpop.f32.mrb[29].mxu0  ;;  %v1458_v49 = vsel %vm973_vm4, %v1456_v41, -inf }
 0x6ee   : > { %1459 = vmax.xlane.f32.xlu0 %v1458_v49  ;;  %v1451_v50 = vpop.f32.mrb[30].mxu0 }
 0x6ef   : > { %v3246_v51 = vpop.f32.mrb[31].mxu0  ;;  %v1461_v52 = vsel %vm973_vm4, %v1457_v46, -inf }
 0x6f0   : > { %1462 = vmax.xlane.f32.xlu1 %v1461_v52 }
 0x77b   : > { %v1460_v53 = vpop.xlane.xlu0 %1459 }
 0x77c   : > { %v1464_v54 = vsub.f32 %v1456_v41, %v1460_v53  ;;  %v2989_v41 = vld [vmem:[%s4058_s6 + $0x2] ss:$0 sm:$0xff] }
 0x77d   : > { %v1463_v55 = vpop.xlane.xlu1 %1462 }
 0x77e   : > { %v1466_v56 = vmul.f32 1.442695, %v1464_v54  ;;  %v1465_v57 = vsub.f32 %v1457_v46, %v1463_v55 }
 0x780   : > { %3471 = vpow2.f32 %v1466_v56  ;;  %v1468_v58 = vmul.f32 1.442695, %v1465_v57 }
 0x782   : > { %3473 = vpow2.f32 %v1468_v58 }
 0x78a   : > { %v3472_v59 = vpop.eup %3471 }
 0x78b   : > { %v1470_v60 = vsel %vm973_vm4, %v3472_v59, 0.0 }
 0x78c   : > { %v3474_v61 = vpop.eup %3473  ;;  %1471 = vadd.xlane.f32.xlu0 %v1470_v60  ;;  %v3013_v60 = vld [vmem:[%s4061_s9 + $0x8] sm:$0xf] }
 0x78d   : > { %v1473_v62 = vsel %vm973_vm4, %v3474_v61, 0.0 }
 0x78e   : > { %1474 = vadd.xlane.f32.xlu1 %v1473_v62 }
 0x819   : > { %v1472_v63 = vpop.xlane.xlu0 %1471 }
 0x81a   : > { %3475 = vrcp.f32 %v1472_v63 }
 0x81b   : > { %v1475_v0 = vpop.xlane.xlu1 %1474 }
 0x81c   : > { %3477 = vrcp.f32 %v1475_v0 }
 0x824   : > { %v3476_v1 = vpop.eup %3475 }
 0x825   : > { %v1478_v2 = vmul.f32 %v3476_v1, %v3472_v59 }
 0x826   : > { %v3478_v3 = vpop.eup %3477 }
 0x827   : > { %v1479_v4 = vmul.f32 %v3478_v3, %v3474_v61  ;;  %v1480_v5 = vpack.c.bf16 %v1478_v2, %v1478_v2 }
 0x829   : > { %3250 = vmatmul.mubr.msk.bf16.vlgmr.msra.gmra.mrb[20].mxu1 %vm998_vm5, %v1480_v5  ;;  %v1481_v7 = vpack.c.bf16 %v1479_v4, %v1479_v4 }
 0x82a   : > { %3261 = vmatprep.mubr.msk.bf16.mxu1 %vm3512_vm1, %v3511_v25  ;;  %3260 = vmatpush3.bf16.msra.mxu1 %v1585_v14 }
 0x82b   : > { %3256 = vmatmul.mubr.msk.bf16.vlgmr.msra.gmra.mrb[32].mxu0 %vm998_vm5, %v1481_v7  ;;  %3273 = vmatprep.subr.bf16.mxu1 %v3511_v25 }
 0x82c   : > { %3266 = vmatpush3.bf16.msra.mxu0 %v3439_v6  ;;  %3269 = vmatprep.mubr.msk.bf16.mxu0 %vm3512_vm1, %v3511_v25 }
 0x82d   : > { %3267 = vmatprep.subr.bf16.mxu0 %v3511_v25 }
 0x830   : > { %3268 = vmatpush3.bf16.msra.mxu0 %v3440_v8 }
 0x831   : > { %3281 = vmatprep.subr.bf16.mxu0 %v3511_v25 }
 0x833   : > { %3270 = vmatmul.mubr.msk.bf16.vlgmr.msra.gmra.mrb[36].mxu0 %vm588_vm0, %v3661_v45 }
 0x834   : > { %3282 = vmatpush3.bf16.msra.mxu0 %v3441_v9  ;;  %3285 = vmatprep.mubr.msk.bf16.mxu0 %vm3512_vm1, %v3511_v25 }
 0x835   : > { %3283 = vmatprep.subr.bf16.mxu0 %v3511_v25 }
 0x838   : > { %3284 = vmatpush3.bf16.msra.mxu0 %v3442_v10 }
 0x839   : > { %3295 = vmatprep.subr.bf16.mxu0 %v3511_v25 }
 0x83b   : > { %3286 = vmatmul.mubr.msk.bf16.vlgmr.msra.gmra.mrb[40].mxu0 %vm588_vm0, %v3661_v45 }
 0x83c   : > { %3297 = vmatprep.mubr.msk.bf16.mxu0 %vm3512_vm1, %v3511_v25 }
 0x8fc   : > { %v1522_v15 = vpop.f32.mrb[20].mxu1 }
 0x8fd   : > { %v3251_v16 = vpop.f32.mrb[21].mxu1 }
 0x8fe   : > { %v1525_v17 = vpop.f32.mrb[22].mxu1  ;;  %v1568_v18 = vpop.f32.mrb[32].mxu0 }
 0x8ff   : > { %v1576_v19 = vcombine.low %v1522_v15, %v1568_v18  ;;  %v3252_v20 = vpop.f32.mrb[23].mxu1  ;;  %v3257_v21 = vpop.f32.mrb[33].mxu0 }
 0x900   : > { %v1571_v22 = vpop.f32.mrb[34].mxu0 }
 0x901   : > { %v1578_v24 = vpack.c.bf16 %v1576_v19, %v1576_v19  ;;  %v3258_v26 = vpop.f32.mrb[35].mxu0 }
 0x903   : > { %3262 = vmatmul.mubr.msk.bf16.vlgmr.msra.gmra.mrb[8].mxu1 %vm877_vm2, %v1578_v24 }
 0x904   : > { %3274 = vmatpush3.bf16.msra.mxu1 %v3443_v23  ;;  %3277 = vmatprep.mubr.msk.bf16.mxu1 %vm3512_vm1, %v3511_v25 }
 0x905   : > { %3275 = vmatprep.subr.bf16.mxu1 %v3511_v25 }
 0x906   : > { %v1687_v28 = vpop.f32.mrb[36].mxu0 }
 0x907   : > { %v3271_v29 = vpop.f32.mrb[37].mxu0  ;;  %v1688_v48 = vadd.f32 %v2989_v41, %v1687_v28 }
 0x908   : > { %v1690_v30 = vpop.f32.mrb[38].mxu0  ;;  %3276 = vmatpush3.bf16.msra.mxu1 %v3444_v27  ;;  %v3445_v29 = vld [vmem:[%s4055_s3 + $0x30] sm:$0xff]  }
 0x909   : > { %v3272_v31 = vpop.f32.mrb[39].mxu0  ;;  %3289 = vmatprep.subr.bf16.mxu1 %v3511_v25  ;;  %v1824_v53 = vcombine.high %v1688_v48, %v1688_v48  ;;  %v1826_v55 = vpack.c.bf16 %v1688_v48, %v1688_v48  ;;  %v3450_v48 = vld [vmem:[%s4056_s4 + $0x38] sm:$0xff]  }
 0x90a   : > { %v3446_v31 = vld [vmem:[%s4055_s3 + $0x38] sm:$0xff]  }
 0x90b   : > { %3278 = vmatmul.mubr.msk.bf16.vlgmr.msra.gmra.mrb[24].mxu1 %vm588_vm0, %v3661_v45  ;;  %v1827_v57 = vpack.c.bf16 %v1824_v53, %v1824_v53 }
 0x90c   : > { %3291 = vmatprep.mubr.msk.bf16.mxu1 %vm3512_vm1, %v3511_v25 }
 0x90e   : > { %v1817_v32 = vpop.f32.mrb[40].mxu0 }
 0x90f   : > { %v3287_v33 = vpop.f32.mrb[41].mxu0  ;;  %v1818_v43 = vadd.f32 %v3007_v37, %v1817_v32  ;;  %v3447_v32 = vld [vmem:[%s4057_s5 + $0x30] sm:$0xff]  }
 0x910   : > { %v1820_v34 = vpop.f32.mrb[42].mxu0  ;;  %v3448_v33 = vld [vmem:[%s4057_s5 + $0x38] sm:$0xff]  }
 0x911   : > { %v3288_v35 = vpop.f32.mrb[43].mxu0  ;;  %v1834_v51 = vcombine.high %v1818_v43, %v1818_v43  ;;  %v1836_v54 = vpack.c.bf16 %v1818_v43, %v1818_v43  ;;  %v3016_v34 = vld [vmem:[%s4062_s10 + $0x8] sm:$0xf] }
 0x912   : > { %v2061_v35 = vsel %vm1101_vm6, %v3016_v34, 0 }
 0x913   : > { %v1837_v56 = vpack.c.bf16 %v1834_v51, %v1834_v51  ;;  %v1962_v58 = vsel %vm1002_vm3, %v1836_v54, 0 }
 0x915   : > { %v2008_v59 = vsel %vm1002_vm3, %v1837_v56, 0 }
 0x9de   : > { %v1752_v38 = vpop.f32.mrb[24].mxu1 }
 0x9df   : > { %v1753_v39 = vadd.f32 %v2998_v36, %v1752_v38  ;;  %v3279_v40 = vpop.f32.mrb[25].mxu1 }
 0x9e0   : > { %v1755_v42 = vpop.f32.mrb[26].mxu1 }
 0x9e1   : > { %v1829_v44 = vcombine.high %v1753_v39, %v1753_v39  ;;  %v1831_v46 = vpack.c.bf16 %v1753_v39, %v1753_v39  ;;  %v3280_v47 = vpop.f32.mrb[27].mxu1 }
 0x9e3   : > { %v1832_v49 = vpack.c.bf16 %v1829_v44, %v1829_v44  ;;  %v1842_v50 = vsel %vm877_vm2, %v1831_v46, 0  ;;  %v3449_v44 = vld [vmem:[%s4056_s4 + $0x30] sm:$0xff]  }
 0x9e4   : > { %3290 = vmatpush3.bf16.xpose.msra.mxu1 %v1842_v50 }
 0x9e5   : > { %v1888_v52 = vsel %vm877_vm2, %v1832_v49, 0  ;;  %3301 = vmatprep.subr.bf16.mxu1 %v3511_v25 }
 0x9e6   : > { %3296 = vmatpush3.bf16.xpose.msra.mxu0 %v1888_v52 }
 0x9e7   : > { %3307 = vmatprep.subr.bf16.mxu0 %v3511_v25 }
 0x9eb   : > { %3292 = vmatmul.mubr.msk.bf16.vlgmr.msra.gmra.mrb[28].mxu1 %vm877_vm2, %v1826_v55 }
 0x9ec   : > { %3302 = vmatpush3.bf16.msra.mxu1 %v1962_v58  ;;  %3303 = vmatprep.mubr.msk.bf16.mxu1 %vm3512_vm1, %v3511_v25  ;;  %v3041_v58 = vld [vmem:[%s4060_s8 + $0x3] ss:$0 sm:$0xff] }
 0x9ed   : > { %3298 = vmatmul.mubr.msk.bf16.vlgmr.msra.gmra.mrb[44].mxu0 %vm877_vm2, %v1827_v57  ;;  %3313 = vmatprep.subr.bf16.mxu1 %v3511_v25  ;;  %v3032_v57 = vld [vmem:[%s4059_s7 + $0x3] ss:$0 sm:$0xff] }
 0x9ee   : > { %3308 = vmatpush3.bf16.msra.mxu0 %v2008_v59  ;;  %3309 = vmatprep.mubr.msk.bf16.mxu0 %vm3512_vm1, %v3511_v25 }
 0x9ef   : > { %3319 = vmatprep.subr.bf16.mxu0 %v3511_v25 }
 0xabe   : > { %v1878_v61 = vpop.f32.mrb[28].mxu1 }
 0xabf   : > { %v1932_v62 = vadd.f32 %v3013_v60, %v1878_v61  ;;  %v3293_v63 = vpop.f32.mrb[29].mxu1 }
 0xac0   : > { %v1881_v0 = vpop.f32.mrb[30].mxu1  ;;  %v1924_v1 = vpop.f32.mrb[44].mxu0 }
 0xac1   : > { %v1933_v2 = vadd.f32 %v3013_v60, %v1924_v1  ;;  %v3294_v3 = vpop.f32.mrb[31].mxu1  ;;  %v3299_v4 = vpop.f32.mrb[45].mxu0  ;;  %v1934_v5 = vsel %vm973_vm4, %v1932_v62, -inf }
 0xac2   : > { %1935 = vmax.xlane.f32.xlu0 %v1934_v5  ;;  %v1927_v6 = vpop.f32.mrb[46].mxu0 }
 0xac3   : > { %v3300_v7 = vpop.f32.mrb[47].mxu0  ;;  %v1937_v8 = vsel %vm973_vm4, %v1933_v2, -inf }
 0xac4   : > { %1938 = vmax.xlane.f32.xlu1 %v1937_v8 }
 0xb4f   : > { %v1936_v9 = vpop.xlane.xlu0 %1935 }
 0xb50   : > { %v1940_v10 = vsub.f32 %v1932_v62, %v1936_v9 }
 0xb51   : > { %v1939_v11 = vpop.xlane.xlu1 %1938 }
 0xb52   : > { %v1942_v14 = vmul.f32 1.442695, %v1940_v10  ;;  %v1941_v15 = vsub.f32 %v1933_v2, %v1939_v11 }
 0xb54   : > { %3479 = vpow2.f32 %v1942_v14  ;;  %v1944_v16 = vmul.f32 1.442695, %v1941_v15 }
 0xb56   : > { %3481 = vpow2.f32 %v1944_v16 }
 0xb5e   : > { %v3480_v17 = vpop.eup %3479 }
 0xb5f   : > { %v1946_v18 = vsel %vm973_vm4, %v3480_v17, 0.0 }
 0xb60   : > { %v3482_v19 = vpop.eup %3481  ;;  %1947 = vadd.xlane.f32.xlu0 %v1946_v18 }
 0xb61   : > { %v1949_v20 = vsel %vm973_vm4, %v3482_v19, 0.0 }
 0xb62   : > { %1950 = vadd.xlane.f32.xlu1 %v1949_v20 }
 0xbed   : > { %v1948_v21 = vpop.xlane.xlu0 %1947 }
 0xbee   : > { %3483 = vrcp.f32 %v1948_v21 }
 0xbef   : > { %v1951_v22 = vpop.xlane.xlu1 %1950 }
 0xbf0   : > { %3485 = vrcp.f32 %v1951_v22 }
 0xbf8   : > { %v3484_v23 = vpop.eup %3483 }
 0xbf9   : > { %v1954_v24 = vmul.f32 %v3484_v23, %v3480_v17  ;;  %v3047_v17 = vld [vmem:[%s4061_s9 + $0xc] sm:$0xf] }
 0xbfa   : > { %v3486_v26 = vpop.eup %3485 }
 0xbfb   : > { %v1955_v27 = vmul.f32 %v3486_v26, %v3482_v19  ;;  %v1956_v28 = vpack.c.bf16 %v1954_v24, %v1954_v24 }
 0xbfd   : > { %3304 = vmatmul.mubr.msk.bf16.vlgmr.msra.gmra.mrb[32].mxu1 %vm998_vm5, %v1956_v28  ;;  %v1957_v30 = vpack.c.bf16 %v1955_v27, %v1955_v27 }
 0xbfe   : > { %3315 = vmatprep.mubr.msk.bf16.mxu1 %vm3512_vm1, %v3511_v25  ;;  %3314 = vmatpush3.bf16.msra.mxu1 %v2061_v35 }
 0xbff   : > { %3310 = vmatmul.mubr.msk.bf16.vlgmr.msra.gmra.mrb[48].mxu0 %vm998_vm5, %v1957_v30  ;;  %3327 = vmatprep.subr.bf16.mxu1 %v3511_v25 }
 0xc00   : > { %3320 = vmatpush3.bf16.msra.mxu0 %v3445_v29  ;;  %3323 = vmatprep.mubr.msk.bf16.mxu0 %vm3512_vm1, %v3511_v25 }
 0xc01   : > { %3321 = vmatprep.subr.bf16.mxu0 %v3511_v25 }
 0xc04   : > { %3322 = vmatpush3.bf16.msra.mxu0 %v3446_v31 }
 0xc05   : > { %3335 = vmatprep.subr.bf16.mxu0 %v3511_v25 }
 0xc07   : > { %3324 = vmatmul.mubr.msk.bf16.vlgmr.msra.gmra.mrb[52].mxu0 %vm588_vm0, %v3661_v45 }
 0xc08   : > { %3336 = vmatpush3.bf16.msra.mxu0 %v3447_v32  ;;  %3339 = vmatprep.mubr.msk.bf16.mxu0 %vm3512_vm1, %v3511_v25 }
 0xc09   : > { %3337 = vmatprep.subr.bf16.mxu0 %v3511_v25 }
 0xc0c   : > { %3338 = vmatpush3.bf16.msra.mxu0 %v3448_v33 }
 0xc0d   : > { %3349 = vmatprep.subr.bf16.mxu0 %v3511_v25 }
 0xc0f   : > { %3340 = vmatmul.mubr.msk.bf16.vlgmr.msra.gmra.mrb[56].mxu0 %vm588_vm0, %v3661_v45 }
 0xc10   : > { %3351 = vmatprep.mubr.msk.bf16.mxu0 %vm3512_vm1, %v3511_v25 }
 0xcd0   : > { %v1998_v36 = vpop.f32.mrb[32].mxu1 }
 0xcd1   : > { %v3305_v37 = vpop.f32.mrb[33].mxu1 }
 0xcd2   : > { %v2001_v38 = vpop.f32.mrb[34].mxu1  ;;  %v2044_v39 = vpop.f32.mrb[48].mxu0 }
 0xcd3   : > { %v2052_v40 = vcombine.low %v1998_v36, %v2044_v39  ;;  %v3306_v41 = vpop.f32.mrb[35].mxu1  ;;  %v3311_v42 = vpop.f32.mrb[49].mxu0 }
 0xcd4   : > { %v2047_v43 = vpop.f32.mrb[50].mxu0 }
 0xcd5   : > { %v2054_v46 = vpack.c.bf16 %v2052_v40, %v2052_v40  ;;  %v3312_v47 = vpop.f32.mrb[51].mxu0 }
 0xcd7   : > { %3316 = vmatmul.mubr.msk.bf16.vlgmr.msra.gmra.mrb[8].mxu1 %vm877_vm2, %v2054_v46 }
 0xcd8   : > { %3328 = vmatpush3.bf16.msra.mxu1 %v3449_v44  ;;  %3331 = vmatprep.mubr.msk.bf16.mxu1 %vm3512_vm1, %v3511_v25 }
 0xcd9   : > { %3329 = vmatprep.subr.bf16.mxu1 %v3511_v25 }
 0xcda   : > { %v2163_v49 = vpop.f32.mrb[52].mxu0 }
 0xcdb   : > { %v3325_v50 = vpop.f32.mrb[53].mxu0 }
 0xcdc   : > { %v2166_v51 = vpop.f32.mrb[54].mxu0  ;;  %3330 = vmatpush3.bf16.msra.mxu1 %v3450_v48  ;;  %v3050_v50 = vld [vmem:[%s4062_s10 + $0xc] sm:$0xf] }
 0xcdd   : > { %v3326_v52 = vpop.f32.mrb[55].mxu0  ;;  %3343 = vmatprep.subr.bf16.mxu1 %v3511_v25  ;;  %v2537_v51 = vsel %vm1101_vm6, %v3050_v50, 0  ;;  %v3054_v50 = vld [vmem:[%s4067_s15] ss:$0 sm:$0xff] }
 0xcdf   : > { %3332 = vmatmul.mubr.msk.bf16.vlgmr.msra.gmra.mrb[36].mxu1 %vm588_vm0, %v3661_v45  ;;  %v3023_v45 = vld [vmem:[%s4058_s6 + $0x3] ss:$0 sm:$0xff] }
 0xce0   : > { %3345 = vmatprep.mubr.msk.bf16.mxu1 %vm3512_vm1, %v3511_v25  ;;  %v2164_v3 = vadd.f32 %v3023_v45, %v2163_v49  ;;  %v2949_v45 = vld [vmem:[%s4063_s11] ss:$0 sm:$0xff] }
 0xce2   : > { %v2293_v53 = vpop.f32.mrb[56].mxu0  ;;  %v2300_v8 = vcombine.high %v2164_v3, %v2164_v3  ;;  %v2302_v10 = vpack.c.bf16 %v2164_v3, %v2164_v3 }
 0xce3   : > { %v3341_v54 = vpop.f32.mrb[57].mxu0  ;;  %v2294_v63 = vadd.f32 %v3041_v58, %v2293_v53 }
 0xce4   : > { %v2296_v55 = vpop.f32.mrb[58].mxu0  ;;  %v2303_v14 = vpack.c.bf16 %v2300_v8, %v2300_v8 }
 0xce5   : > { %v3342_v56 = vpop.f32.mrb[59].mxu0  ;;  %v2310_v6 = vcombine.high %v2294_v63, %v2294_v63  ;;  %v2312_v9 = vpack.c.bf16 %v2294_v63, %v2294_v63 }
 0xce7   : > { %v2313_v11 = vpack.c.bf16 %v2310_v6, %v2310_v6  ;;  %v2438_v15 = vsel %vm1002_vm3, %v2312_v9, 0  ;;  %v3500_v6 = vld [vmem:[%s3624_s20 + $0x4] sm:$0xf] }
 0xce9   : > { %v2484_v16 = vsel %vm1002_vm3, %v2313_v11, 0 }
 0xdb2   : > { %v2228_v59 = vpop.f32.mrb[36].mxu1 }
 0xdb3   : > { %v2229_v60 = vadd.f32 %v3032_v57, %v2228_v59  ;;  %v3333_v61 = vpop.f32.mrb[37].mxu1 }
 0xdb4   : > { %v2231_v62 = vpop.f32.mrb[38].mxu1 }
 0xdb5   : > { %v2305_v0 = vcombine.high %v2229_v60, %v2229_v60  ;;  %v2307_v1 = vpack.c.bf16 %v2229_v60, %v2229_v60  ;;  %v3334_v2 = vpop.f32.mrb[39].mxu1 }
 0xdb7   : > { %v2308_v4 = vpack.c.bf16 %v2305_v0, %v2305_v0  ;;  %v2318_v5 = vsel %vm877_vm2, %v2307_v1, 0 }
 0xdb8   : > { %3344 = vmatpush3.bf16.xpose.msra.mxu1 %v2318_v5 }
 0xdb9   : > { %v2364_v7 = vsel %vm877_vm2, %v2308_v4, 0  ;;  %3355 = vmatprep.subr.bf16.mxu1 %v3511_v25  ;;  %v3499_v4 = vld [vmem:[%s3624_s20] sm:$0xf] }
 0xdba   : > { %3350 = vmatpush3.bf16.xpose.msra.mxu0 %v2364_v7 }
 0xdbb   : > { %3361 = vmatprep.subr.bf16.mxu0 %v3511_v25 }
 0xdbf   : > { %3346 = vmatmul.mubr.msk.bf16.vlgmr.msra.gmra.mrb[40].mxu1 %vm877_vm2, %v2302_v10 }
 0xdc0   : > { %3356 = vmatpush3.bf16.msra.mxu1 %v2438_v15  ;;  %3357 = vmatprep.mubr.msk.bf16.mxu1 %vm3512_vm1, %v3511_v25 }
 0xdc1   : > { %3352 = vmatmul.mubr.msk.bf16.vlgmr.msra.gmra.mrb[60].mxu0 %vm877_vm2, %v2303_v14  ;;  %3367 = vmatprep.subr.bf16.mxu1 %v3511_v25 }
 0xdc2   : > { %3362 = vmatpush3.bf16.msra.mxu0 %v2484_v16  ;;  %3363 = vmatprep.mubr.msk.bf16.mxu0 %vm3512_vm1, %v3511_v25 }
 0xdc3   : > { %3373 = vmatprep.subr.bf16.mxu0 %v3511_v25 }
 0xe92   : > { %v2354_v18 = vpop.f32.mrb[40].mxu1 }
 0xe93   : > { %v2408_v19 = vadd.f32 %v3047_v17, %v2354_v18  ;;  %v3347_v20 = vpop.f32.mrb[41].mxu1 }
 0xe94   : > { %v2357_v21 = vpop.f32.mrb[42].mxu1  ;;  %v2400_v22 = vpop.f32.mrb[60].mxu0 }
 0xe95   : > { %v2409_v23 = vadd.f32 %v3047_v17, %v2400_v22  ;;  %v3348_v24 = vpop.f32.mrb[43].mxu1  ;;  %v3353_v26 = vpop.f32.mrb[61].mxu0  ;;  %v2410_v27 = vsel %vm973_vm4, %v2408_v19, -inf  ;;  %v3451_v22 = vld [vmem:[%s4066_s14] sm:$0xff]  }
 0xe96   : > { %2411 = vmax.xlane.f32.xlu0 %v2410_v27  ;;  %v2403_v28 = vpop.f32.mrb[62].mxu0 }
 0xe97   : > { %v3354_v29 = vpop.f32.mrb[63].mxu0  ;;  %v2413_v30 = vsel %vm973_vm4, %v2409_v23, -inf  ;;  %v3052_v28 = vld [vmem:[%s4064_s12] ss:$0 sm:$0xff] }
 0xe98   : > { %2414 = vmax.xlane.f32.xlu1 %v2413_v30  ;;  %v3053_v30 = vld [vmem:[%s4065_s13] ss:$0 sm:$0xff] }
 0xf23   : > { %v2412_v31 = vpop.xlane.xlu0 %2411 }
 0xf24   : > { %v2416_v32 = vsub.f32 %v2408_v19, %v2412_v31  ;;  %v2651_v31 = vcombine.high %v3052_v28, %v3052_v28 }
 0xf25   : > { %v2415_v33 = vpop.xlane.xlu1 %2414 }
 0xf26   : > { %v2418_v34 = vmul.f32 1.442695, %v2416_v32  ;;  %v2417_v35 = vsub.f32 %v2409_v23, %v2415_v33  ;;  %v3452_v23 = vld [vmem:[%s4066_s14 + $0x8] sm:$0xff]  }
 0xf28   : > { %3487 = vpow2.f32 %v2418_v34  ;;  %v2420_v36 = vmul.f32 1.442695, %v2417_v35 }
 0xf2a   : > { %3489 = vpow2.f32 %v2420_v36  ;;  %v2661_v36 = vcombine.high %v3053_v30, %v3053_v30 }
 0xf32   : > { %v3488_v37 = vpop.eup %3487 }
 0xf33   : > { %v2422_v38 = vsel %vm973_vm4, %v3488_v37, 0.0 }
 0xf34   : > { %v3490_v39 = vpop.eup %3489  ;;  %2423 = vadd.xlane.f32.xlu0 %v2422_v38 }
 0xf35   : > { %v2425_v40 = vsel %vm973_vm4, %v3490_v39, 0.0 }
 0xf36   : > { %2426 = vadd.xlane.f32.xlu1 %v2425_v40 }
 0xfc1   : > { %v2424_v41 = vpop.xlane.xlu0 %2423 }
 0xfc2   : > { %3491 = vrcp.f32 %v2424_v41 }
 0xfc3   : > { %v2427_v42 = vpop.xlane.xlu1 %2426 }
 0xfc4   : > { %3493 = vrcp.f32 %v2427_v42 }
 0xfcc   : > { %v3492_v43 = vpop.eup %3491 }
 0xfcd   : > { %v2430_v44 = vmul.f32 %v3492_v43, %v3488_v37  ;;  %v3453_v43 = vld [vmem:[%s4068_s16] sm:$0xff]  }
 0xfce   : > { %v3494_v46 = vpop.eup %3493 }
 0xfcf   : > { %v2431_v47 = vmul.f32 %v3494_v46, %v3490_v39  ;;  %v2432_v48 = vpack.c.bf16 %v2430_v44, %v2430_v44  ;;  %v3456_v44 = vld [vmem:[%s4068_s16 + $0x18] sm:$0xff]   ;;  %v3457_v46 = vld [vmem:[%s4068_s16 + $0x20] sm:$0xff]  }
 0xfd1   : > { %3358 = vmatmul.mubr.msk.bf16.vlgmr.msra.gmra.mrb[44].mxu1 %vm998_vm5, %v2432_v48  ;;  %v2433_v49 = vpack.c.bf16 %v2431_v47, %v2431_v47  ;;  %v3458_v47 = vld [vmem:[%s4068_s16 + $0x28] sm:$0xff]   ;;  %v3459_v48 = vld [vmem:[%s4068_s16 + $0x30] sm:$0xff]  }
 0xfd2   : > { %3369 = vmatprep.mubr.msk.bf16.mxu1 %vm3512_vm1, %v3511_v25  ;;  %3368 = vmatpush3.bf16.msra.mxu1 %v2537_v51 }
 0xfd3   : > { %3364 = vmatmul.mubr.msk.bf16.vlgmr.msra.gmra.mrb[64].mxu0 %vm998_vm5, %v2433_v49  ;;  %3381 = vmatprep.subr.bf16.mxu1 %v3511_v25  ;;  %v3460_v49 = vld [vmem:[%s4068_s16 + $0x38] sm:$0xff]  }
 0xfd4   : > { %3377 = vmatprep.mubr.msk.bf16.mxu0 %vm3512_vm1, %v3511_v25  ;;  %3374 = vmatpush3.bf16.msra.mxu0 %v3451_v22 }
 0xfd5   : > { %3375 = vmatprep.subr.bf16.mxu0 %v3511_v25 }
 0xfd8   : > { %3376 = vmatpush3.bf16.msra.mxu0 %v3452_v23 }
0x10a4   : > { %v2474_v52 = vpop.f32.mrb[44].mxu1 }
0x10a5   : > { %v3359_v53 = vpop.f32.mrb[45].mxu1 }
0x10a6   : > { %v2477_v54 = vpop.f32.mrb[46].mxu1  ;;  %v2520_v55 = vpop.f32.mrb[64].mxu0 }
0x10a7   : > { %v2528_v56 = vcombine.low %v2474_v52, %v2520_v55  ;;  %v3360_v57 = vpop.f32.mrb[47].mxu1  ;;  %v3365_v58 = vpop.f32.mrb[65].mxu0 }
0x10a8   : > { %v2523_v59 = vpop.f32.mrb[66].mxu0 }
0x10a9   : > { %v2530_v60 = vpack.c.bf16 %v2528_v56, %v2528_v56  ;;  %v3366_v61 = vpop.f32.mrb[67].mxu0 }
0x10ab   : > { %3370 = vmatmul.mubr.msk.bf16.vlgmr.msra.gmra.mrb[8].mxu1 %vm877_vm2, %v2530_v60 }
0x10ac   : > { %3397 = vmatprep.mubr.msk.bf16.mxu1 %vm3512_vm1, %v3511_v25  ;;  %3382 = vmatpush3.bf16.msra.mxu1 %v3453_v43 }
0x10ad   : > { %3383 = vmatprep.subr.bf16.mxu1 %v3511_v25 }
0x117e   : > { %v2573_v62 = vpop.f32.mrb[8].mxu1 }
0x117f   : > { %v3401_v63 = vadd.f32 %v2949_v45, %v2573_v62  ;;  %v3371_v0 = vpop.f32.mrb[9].mxu1 }
0x1180   : > { %v2576_v1 = vpop.f32.mrb[10].mxu1  ;;  %v3058_v0 = vld [vmem:[%s4069_s17] ss:$0 sm:$0xff] }
0x1181   : > { %v2581_v2 = vcombine.high %v3401_v63, %v3401_v63  ;;  %v3372_v3 = vpop.f32.mrb[11].mxu1  ;;  %v3976_v5 = vadd.f32 %v3499_v4, %v3401_v63 }
0x1183   : > { %v3979_v7 = vadd.f32 %v3500_v6, %v2581_v2 }
0x1185   : > { %v2589_v8 = vcombine.low %v3976_v5, %v3979_v7 }
0x1187   : > { %v2591_v9 = vsel %vm588_vm0, %v2589_v8, 0.0 }
0x1188   : > { %2592 = vadd.xlane.f32.xlu0 %v2591_v9 }
0x1215   : > { %v2593_v10 = vpop.xlane.xlu0 %2592 }
0x1216   : > { %v2594_v11 = vmul.f32 0.03125, %v2593_v10 }
0x1218   : > { %v2602_v14 = vrot.slane %v2594_v11, %v3629_v12  ;;  %v2609_v15 = vrot.slane %v2594_v11, %v3631_v13 }
0x121a   : > { %v2612_v16 = vsub.f32 %v3976_v5, %v2602_v14  ;;  %v2613_v17 = vsub.f32 %v3979_v7, %v2609_v15 }
0x121c   : > { %v2614_v18 = vmul.f32 %v2612_v16, %v2612_v16  ;;  %v2615_v19 = vmul.f32 %v2613_v17, %v2613_v17 }
0x121e   : > { %v2618_v20 = vcombine.low %v2614_v18, %v2615_v19 }
0x1220   : > { %v2620_v21 = vsel %vm588_vm0, %v2618_v20, 0.0 }
0x1221   : > { %2621 = vadd.xlane.f32.xlu1 %v2620_v21 }
0x12ae   : > { %v2622_v24 = vpop.xlane.xlu1 %2621 }
0x12af   : > { %v2623_v26 = vmul.f32 0.03125, %v2622_v24 }
0x12b1   : > { %v2624_v27 = vadd.f32 1e-05, %v2623_v26 }
0x12b3   : > { %3495 = vrsqrt.f32 %v2624_v27 }
0x12bd   : > { %v3496_v29 = vpop.eup %3495 }
0x12be   : > { %v2633_v32 = vrot.slane %v3496_v29, %v3629_v12  ;;  %v2640_v33 = vrot.slane %v3496_v29, %v3631_v13  ;;  %v3454_v12 = vld [vmem:[%s4068_s16 + $0x8] sm:$0xff]   ;;  %v3455_v13 = vld [vmem:[%s4068_s16 + $0x10] sm:$0xff]  }
0x12bf   : > { %3384 = vmatpush3.bf16.msra.mxu1 %v3454_v12 }
0x12c0   : > { %v2643_v34 = vmul.f32 %v2633_v32, %v2612_v16  ;;  %v2644_v35 = vmul.f32 %v2640_v33, %v2613_v17  ;;  %3385 = vmatprep.subr.bf16.mxu1 %v3511_v25 }
0x12c2   : > { %v2653_v37 = vmul.f32 %v3052_v28, %v2643_v34  ;;  %v2654_v38 = vmul.f32 %v2651_v31, %v2644_v35 }
0x12c3   : > { %3386 = vmatpush3.bf16.msra.mxu1 %v3455_v13 }
0x12c4   : > { %v2663_v39 = vadd.f32 %v3053_v30, %v2653_v37  ;;  %v2664_v40 = vadd.f32 %v2661_v36, %v2654_v38  ;;  %3387 = vmatprep.subr.bf16.mxu1 %v3511_v25 }
0x12c6   : > { %v2667_v41 = vcombine.low %v2663_v39, %v2664_v40 }
0x12c7   : > { %3388 = vmatpush3.bf16.msra.mxu1 %v3456_v44 }
0x12c8   : > { %v2669_v42 = vpack.c.bf16 %v2667_v41, %v2667_v41  ;;  %3389 = vmatprep.subr.bf16.mxu1 %v3511_v25 }
0x12ca   : > { %3378 = vmatmul.mubr.msk.bf16.vlgmr.msra.gmra.mrb[68].mxu0 %vm588_vm0, %v2669_v42 }
0x12cb   : > { %3390 = vmatpush3.bf16.msra.mxu1 %v3457_v46 }
0x12cc   : > { %3391 = vmatprep.subr.bf16.mxu1 %v3511_v25 }
0x12cf   : > { %3392 = vmatpush3.bf16.msra.mxu1 %v3458_v47 }
0x12d0   : > { %3393 = vmatprep.subr.bf16.mxu1 %v3511_v25 }
0x12d3   : > { %3394 = vmatpush3.bf16.msra.mxu1 %v3459_v48 }
0x12d4   : > { %3395 = vmatprep.subr.bf16.mxu1 %v3511_v25 }
0x12d7   : > { %3396 = vmatpush3.bf16.msra.mxu1 %v3460_v49 }
0x139d   : > { %v2730_v51 = vpop.f32.mrb[68].mxu0 }
0x139e   : > { %v2731_v52 = vadd.f32 %v3054_v50, %v2730_v51  ;;  %v3379_v53 = vpop.f32.mrb[69].mxu0 }
0x139f   : > { %v2733_v54 = vpop.f32.mrb[70].mxu0 }
0x13a0   : > { %v2736_v55 = vmul.f32 %v2731_v52, %v2731_v52  ;;  %v3380_v56 = vpop.f32.mrb[71].mxu0 }
0x13a2   : > { %v2737_v57 = vmul.f32 %v2736_v55, %v2731_v52 }
0x13a4   : > { %v2738_v58 = vmul.f32 0.044715, %v2737_v57 }
0x13a6   : > { %v2739_v59 = vadd.f32 %v2738_v58, %v2731_v52 }
0x13a8   : > { %v2740_v60 = vmul.f32 0.7978846, %v2739_v59 }
0x13aa   : > { %3497 = vtanh.f32 %v2740_v60 }
0x13b4   : > { %v3498_v61 = vpop.eup %3497 }
0x13b5   : > { %v2742_v45 = vadd.f32 1.0, %v3498_v61 }
0x13b7   : > { %v2743_v25 = vmul.f32 0.5, %v2742_v45 }
0x13b9   : > { %v2744_v62 = vmul.f32 %v2743_v25, %v2731_v52 }
0x13bb   : > { %v2745_v63 = vpack.c.bf16 %v2744_v62, %v2744_v62 }
0x13bd   : > { %3398 = vmatmul.mubr.bf16.vlgmr.msra.gmra.mrb[48].mxu1 %v2745_v63 }
0x1490   : > { %v2851_v1 = vpop.f32.mrb[48].mxu1 }
0x1491   : > { %v2852_v2 = vadd.f32 %v3058_v0, %v2851_v1  ;;  %v3399_v3 = vpop.f32.mrb[49].mxu1 }
0x1492   : > { %v2854_v4 = vpop.f32.mrb[50].mxu1 }
0x1493   : > { %v2858_v6 = vcombine.high %v2852_v2, %v2852_v2  ;;  %v2860_v8 = vadd.f32 %v2852_v2, %v3976_v5  ;;  %v3400_v9 = vpop.f32.mrb[51].mxu1 }
0x1495   : > { %v2861_v10 = vadd.f32 %v2858_v6, %v3979_v7  ;;  %2863 = vst.msk [vmem:[%s577_s2] sm:$0xf] %vm2862_vm7, %v2860_v8 }
0x1497   : > { %2864 = vst.msk [vmem:[%s577_s2 + $0x4] sm:$0xf] %vm2862_vm7, %v2861_v10 }
0x1498 PF: > { %s28_s27 = sadd.s32 1, %s3507_s27  }
0x1499   : > { %p25_p4 = scmp.ge.s32.totalorder %s28_s27, 4  }
0x149b   :  { %27 = sbr.rel (!%p25_p4) target bundleno = 4 (0x4), region = 146 }

</bundles_post_ra>
